<compile_context>
chip_gen: v7x
topology: tpu7x:2x2x1
jax: 0.10.0
libtpu: 0.0.40
codegen_flags: <defaults>
</compile_context>

<pallas_src>
import functools
import math

import jax
import jax.numpy as jnp
from jax.experimental import pallas as pl
from jax.experimental.pallas import tpu as pltpu


def _round_up(n, m):
    return ((n + m - 1) // m) * m


def _gmm_vae_kernel(kw,
                    x_ref, w1_ref, b1_ref, w2_ref, b2_ref, w3_ref, b3_ref,
                    wd1_ref, bd1_ref, wd2_ref, bd2_ref,
                    head_ref, dec_ref):
    # Encoder: 896(pad of 784) -> 1024 -> 1024 -> 2*k*w (fused mu|std head).
    x = x_ref[...].astype(jnp.bfloat16)
    h1 = jnp.maximum(
        jnp.dot(x, w1_ref[...], preferred_element_type=jnp.float32) + b1_ref[...], 0.0)
    h2 = jnp.maximum(
        jnp.dot(h1.astype(jnp.bfloat16), w2_ref[...],
                preferred_element_type=jnp.float32) + b2_ref[...], 0.0)
    head = jnp.dot(h2.astype(jnp.bfloat16), w3_ref[...],
                   preferred_element_type=jnp.float32) + b3_ref[...]

    # Lane-dense combined output: first kw lanes = mu, last kw lanes =
    # softplus(std_pre - 5) (F.softplus(z - 5, beta=1)). Split in the wrapper.
    col = jax.lax.broadcasted_iota(jnp.int32, head.shape, 1)
    head_ref[...] = jnp.where(col < kw, head, jax.nn.softplus(head - 5.0))

    # Eval path (self.training == False): z = mu, GMM-weighted sum over the w
    # mixture components. wd1_ref already folds S (mixing) into the first decoder
    # weight and has zero rows for the std half, so it consumes the raw head.
    # TODO(synk): training-mode reparametrize(mu, std) uses utils.reparametrize
    # (RNG sampling), not part of the provided module; eval path only.
    d1 = jnp.maximum(
        jnp.dot(head.astype(jnp.bfloat16), wd1_ref[...],
                preferred_element_type=jnp.float32) + bd1_ref[...], 0.0)
    logits = jnp.dot(d1.astype(jnp.bfloat16), wd2_ref[...],
                     preferred_element_type=jnp.float32) + bd2_ref[...]
    dec_ref[...] = jax.nn.sigmoid(logits)


def _xavier_uniform(key, fan_in, fan_out, gain):
    a = gain * math.sqrt(6.0 / (fan_in + fan_out))
    return jax.random.uniform(key, (fan_in, fan_out), dtype=jnp.float32,
                              minval=-a, maxval=a)


def init_params(key, k, w):
    gain = math.sqrt(2.0)  # nn.init.calculate_gain('relu')
    keys = jax.random.split(key, 5)
    params = {
        "w1": _xavier_uniform(keys[0], 784, 1024, gain),
        "b1": jnp.zeros((1, 1024), jnp.float32),
        "w2": _xavier_uniform(keys[1], 1024, 1024, gain),
        "b2": jnp.zeros((1, 1024), jnp.float32),
    }
    # Encoder head (1024 -> 2*k*w), split into mu / std columns.
    w3 = _xavier_uniform(keys[2], 1024, 2 * k * w, gain)
    params["w3_mu"] = w3[:, : k * w]
    params["w3_std"] = w3[:, k * w:]
    params["b3_mu"] = jnp.zeros((1, k * w), jnp.float32)
    params["b3_std"] = jnp.zeros((1, k * w), jnp.float32)
    # GMM mixture weights: ones(1, w) / w (not xavier-initialized in the module).
    params["gmm_weights"] = jnp.ones((1, w), jnp.float32) / float(w)
    # Decoder.
    params["wd1"] = _xavier_uniform(keys[3], k, 1024, gain)
    params["bd1"] = jnp.zeros((1, 1024), jnp.float32)
    params["wd2"] = _xavier_uniform(keys[4], 1024, 784, gain)
    params["bd2"] = jnp.zeros((1, 784), jnp.float32)
    return params


def fmnist_gmm_vae_forward(params, x, k, w, batch_tile=128):
    assert k % w == 0
    B = x.shape[0]
    kw = k * w
    x_flat = x.reshape(B, -1).astype(jnp.float32)          # x.view(B, -1)
    d_in = x_flat.shape[1]                                  # 784
    d_pad = _round_up(d_in, 128)                            # 896 = 7*128

    # --- batch tiling: TB rows per grid step, weights resident across steps. ---
    TB = min(batch_tile, _round_up(B, 8))
    Bp = _round_up(B, TB)
    x_pad = jnp.pad(x_flat, ((0, Bp - B), (0, d_pad - d_in)))

    # --- weight prep in the wrapper (bf16, fused head, folded GMM, lane padding). ---
    w1p = jnp.pad(params["w1"], ((0, d_pad - d_in), (0, 0))).astype(jnp.bfloat16)
    w2p = params["w2"].astype(jnp.bfloat16)
    w3p = jnp.concatenate([params["w3_mu"], params["w3_std"]], axis=1).astype(jnp.bfloat16)
    b3p = jnp.concatenate([params["b3_mu"], params["b3_std"]], axis=1)
    wp = params["gmm_weights"]                              # (1, w), raw weights
    # S[j*w + i, j] = wp[0, i]  -> mu_flat @ S == sum_i weights[i] * mu[:, i, :]
    S = (jnp.eye(k, dtype=jnp.float32)[:, None, :]
         * wp[0][None, :, None]).reshape(kw, k)
    # Fold GMM mixing + first decoder linear; zero rows kill the std half of head.
    wd1_eff = jnp.concatenate(
        [S @ params["wd1"], jnp.zeros((kw, 1024), jnp.float32)], axis=0
    ).astype(jnp.bfloat16)                                  # (2*kw, 1024)
    wd2p = jnp.pad(params["wd2"], ((0, 0), (0, d_pad - d_in))).astype(jnp.bfloat16)
    bd2p = jnp.pad(params["bd2"], ((0, 0), (0, d_pad - d_in)))

    n_grid = Bp // TB
    batch_spec = lambda shape: pl.BlockSpec(shape, lambda i: (i, 0))
    const_spec = lambda shape: pl.BlockSpec(shape, lambda i: (0, 0))

    weight_bytes = 2 * (d_pad * 1024 + 1024 * 1024 + 1024 * 2 * kw
                        + 2 * kw * 1024 + 1024 * d_pad)
    bias_bytes = 4 * (1024 + 1024 + 2 * kw + 1024 + d_pad)
    io_bytes = 4 * Bp * (d_pad + 2 * kw + d_pad)
    cost = pl.CostEstimate(
        flops=2 * Bp * (d_pad * 1024 + 1024 * 1024 + 1024 * 2 * kw
                        + 2 * kw * 1024 + 1024 * d_pad),
        transcendentals=Bp * (2 * kw + d_pad),
        bytes_accessed=weight_bytes + bias_bytes + io_bytes)

    head_out, dec_out = pl.pallas_call(
        functools.partial(_gmm_vae_kernel, kw),
        grid=(n_grid,),
        out_shape=(jax.ShapeDtypeStruct((Bp, 2 * kw), jnp.float32),
                   jax.ShapeDtypeStruct((Bp, d_pad), jnp.float32)),
        in_specs=[
            batch_spec((TB, d_pad)),            # x
            const_spec((d_pad, 1024)),          # w1
            const_spec((1, 1024)),              # b1
            const_spec((1024, 1024)),           # w2
            const_spec((1, 1024)),              # b2
            const_spec((1024, 2 * kw)),         # w3 (mu|std fused)
            const_spec((1, 2 * kw)),            # b3
            const_spec((2 * kw, 1024)),         # wd1_eff (S folded, zero-padded)
            const_spec((1, 1024)),              # bd1
            const_spec((1024, d_pad)),          # wd2 (lane padded)
            const_spec((1, d_pad)),             # bd2
        ],
        out_specs=(batch_spec((TB, 2 * kw)),
                   batch_spec((TB, d_pad))),
        compiler_params=pltpu.CompilerParams(
            dimension_semantics=("parallel",),
            vmem_limit_bytes=32 << 20),
        cost_estimate=cost,
    )(x_pad, w1p, params["b1"], w2p, params["b2"], w3p, b3p,
      wd1_eff, params["bd1"], wd2p, bd2p)

    head_out = head_out[:B]
    decoded = dec_out[:B, :d_in]
    mu_flat = head_out[:, :kw]
    std_flat = head_out[:, kw:]
    # torch.stack(torch.split(., w, dim=-1), dim=2): (B, k*w) -> (B, w, k)
    mu = mu_flat.reshape(B, k, w).transpose(0, 2, 1)
    std = std_flat.reshape(B, k, w).transpose(0, 2, 1)
    # MixtureModle returns raw (pre-softmax) weights tiled to (1, w, k).
    weights = jnp.tile(wp.reshape(1, w, 1), (1, 1, k))
    return (mu, std), decoded, weights


if __name__ == "__main__":
    k, w = 16, 4          # k % w == 0
    B = 8
    key = jax.random.PRNGKey(0)
    pkey, xkey = jax.random.split(key)
    params = init_params(pkey, k, w)
    x = jax.random.uniform(xkey, (B, 1, 28, 28), dtype=jnp.float32)

    (mu, std), decoded, weights = fmnist_gmm_vae_forward(params, x, k, w)
    jax.block_until_ready((mu, std, decoded, weights))

    assert mu.shape == (B, w, k)
    assert std.shape == (B, w, k)
    assert decoded.shape == (B, 784)
    assert weights.shape == (1, w, k)
    assert bool(jnp.all(std > 0.0))
    assert bool(jnp.all((decoded >= 0.0) & (decoded <= 1.0)))
    print("KERNEL_OK")
</pallas_src>

<mosaic_0001>
module attributes {stable_mosaic.version = 11 : i64} {
  func.func @_gmm_vae_kernel(%arg0: i32, %arg1: memref<8x896xf32, #tpu.memory_space<vmem>>, %arg2: memref<896x1024xbf16, #tpu.memory_space<vmem>>, %arg3: memref<1x1024xf32, #tpu.memory_space<vmem>>, %arg4: memref<1024x1024xbf16, #tpu.memory_space<vmem>>, %arg5: memref<1x1024xf32, #tpu.memory_space<vmem>>, %arg6: memref<1024x128xbf16, #tpu.memory_space<vmem>>, %arg7: memref<1x128xf32, #tpu.memory_space<vmem>>, %arg8: memref<128x1024xbf16, #tpu.memory_space<vmem>>, %arg9: memref<1x1024xf32, #tpu.memory_space<vmem>>, %arg10: memref<1024x896xbf16, #tpu.memory_space<vmem>>, %arg11: memref<1x896xf32, #tpu.memory_space<vmem>>, %arg12: memref<8x128xf32, #tpu.memory_space<vmem>>, %arg13: memref<8x896xf32, #tpu.memory_space<vmem>>) attributes {dimension_semantics = [#tpu.dimension_semantics<parallel>], iteration_bounds = array<i64: 1>, scalar_prefetch = 0 : i64, scratch_operands = 0 : i64, tpu.core_type = #tpu.core_type<tc>, window_params = [{transform_indices = @transform_0, window_bounds = array<i64: 8, 896>}, {pipeline_mode = #tpu.pipeline_mode<synchronous>, transform_indices = @transform_1, window_bounds = array<i64: 896, 1024>}, {pipeline_mode = #tpu.pipeline_mode<synchronous>, transform_indices = @transform_2, window_bounds = array<i64: 1, 1024>}, {pipeline_mode = #tpu.pipeline_mode<synchronous>, transform_indices = @transform_3, window_bounds = array<i64: 1024, 1024>}, {pipeline_mode = #tpu.pipeline_mode<synchronous>, transform_indices = @transform_4, window_bounds = array<i64: 1, 1024>}, {pipeline_mode = #tpu.pipeline_mode<synchronous>, transform_indices = @transform_5, window_bounds = array<i64: 1024, 128>}, {pipeline_mode = #tpu.pipeline_mode<synchronous>, transform_indices = @transform_6, window_bounds = array<i64: 1, 128>}, {pipeline_mode = #tpu.pipeline_mode<synchronous>, transform_indices = @transform_7, window_bounds = array<i64: 128, 1024>}, {pipeline_mode = #tpu.pipeline_mode<synchronous>, transform_indices = @transform_8, window_bounds = array<i64: 1, 1024>}, {pipeline_mode = #tpu.pipeline_mode<synchronous>, transform_indices = @transform_9, window_bounds = array<i64: 1024, 896>}, {pipeline_mode = #tpu.pipeline_mode<synchronous>, transform_indices = @transform_10, window_bounds = array<i64: 1, 896>}, {transform_indices = @transform_11, window_bounds = array<i64: 8, 128>}, {transform_indices = @transform_12, window_bounds = array<i64: 8, 896>}]} {
    %c0 = arith.constant 0 : index
    %c0_0 = arith.constant 0 : index
    %0 = vector.load %arg1[%c0, %c0_0] : memref<8x896xf32, #tpu.memory_space<vmem>>, vector<8x896xf32>
    %1 = arith.truncf %0 : vector<8x896xf32> to vector<8x896xbf16>
    %c0_1 = arith.constant 0 : index
    %c0_2 = arith.constant 0 : index
    %2 = vector.load %arg2[%c0_1, %c0_2] : memref<896x1024xbf16, #tpu.memory_space<vmem>>, vector<896x1024xbf16>
    %cst = arith.constant dense<0.000000e+00> : vector<8x1024xf32>
    %3 = tpu.matmul %1, %2, %cst {dimension_numbers = #tpu.dot_dimension_numbers<[1], [0], [0], [1], [0, 0, 1, 1], [], []>} : vector<8x896xbf16>, vector<896x1024xbf16>, vector<8x1024xf32> -> vector<8x1024xf32>
    %c0_3 = arith.constant 0 : index
    %c0_4 = arith.constant 0 : index
    %4 = vector.load %arg3[%c0_3, %c0_4] : memref<1x1024xf32, #tpu.memory_space<vmem>>, vector<1x1024xf32>
    %5 = vector.broadcast %4 : vector<1x1024xf32> to vector<8x1024xf32>
    %6 = arith.addf %3, %5 : vector<8x1024xf32>
    %cst_5 = arith.constant 0.000000e+00 : f32
    %7 = vector.broadcast %cst_5 : f32 to vector<8x1024xf32>
    %8 = arith.maximumf %6, %7 : vector<8x1024xf32>
    %9 = arith.truncf %8 : vector<8x1024xf32> to vector<8x1024xbf16>
    %c0_6 = arith.constant 0 : index
    %c0_7 = arith.constant 0 : index
    %10 = vector.load %arg4[%c0_6, %c0_7] : memref<1024x1024xbf16, #tpu.memory_space<vmem>>, vector<1024x1024xbf16>
    %cst_8 = arith.constant dense<0.000000e+00> : vector<8x1024xf32>
    %11 = tpu.matmul %9, %10, %cst_8 {dimension_numbers = #tpu.dot_dimension_numbers<[1], [0], [0], [1], [0, 0, 1, 1], [], []>} : vector<8x1024xbf16>, vector<1024x1024xbf16>, vector<8x1024xf32> -> vector<8x1024xf32>
    %c0_9 = arith.constant 0 : index
    %c0_10 = arith.constant 0 : index
    %12 = vector.load %arg5[%c0_9, %c0_10] : memref<1x1024xf32, #tpu.memory_space<vmem>>, vector<1x1024xf32>
    %13 = vector.broadcast %12 : vector<1x1024xf32> to vector<8x1024xf32>
    %14 = arith.addf %11, %13 : vector<8x1024xf32>
    %cst_11 = arith.constant 0.000000e+00 : f32
    %15 = vector.broadcast %cst_11 : f32 to vector<8x1024xf32>
    %16 = arith.maximumf %14, %15 : vector<8x1024xf32>
    %17 = arith.truncf %16 : vector<8x1024xf32> to vector<8x1024xbf16>
    %c0_12 = arith.constant 0 : index
    %c0_13 = arith.constant 0 : index
    %18 = vector.load %arg6[%c0_12, %c0_13] : memref<1024x128xbf16, #tpu.memory_space<vmem>>, vector<1024x128xbf16>
    %cst_14 = arith.constant dense<0.000000e+00> : vector<8x128xf32>
    %19 = tpu.matmul %17, %18, %cst_14 {dimension_numbers = #tpu.dot_dimension_numbers<[1], [0], [0], [1], [0, 0, 1, 1], [], []>} : vector<8x1024xbf16>, vector<1024x128xbf16>, vector<8x128xf32> -> vector<8x128xf32>
    %c0_15 = arith.constant 0 : index
    %c0_16 = arith.constant 0 : index
    %20 = vector.load %arg7[%c0_15, %c0_16] : memref<1x128xf32, #tpu.memory_space<vmem>>, vector<1x128xf32>
    %21 = vector.broadcast %20 : vector<1x128xf32> to vector<8x128xf32>
    %22 = arith.addf %19, %21 : vector<8x128xf32>
    %23 = tpu.iota {dimensions = array<i32: 1>} : vector<8x128xi32>
    %c64_i32 = arith.constant 64 : i32
    %24 = vector.broadcast %c64_i32 : i32 to vector<8x128xi32>
    %25 = arith.cmpi slt, %23, %24 : vector<8x128xi32>
    %cst_17 = arith.constant 5.000000e+00 : f32
    %26 = vector.broadcast %cst_17 : f32 to vector<8x128xf32>
    %27 = arith.subf %22, %26 : vector<8x128xf32>
    %cst_18 = arith.constant 0.000000e+00 : f32
    %28 = vector.broadcast %cst_18 : f32 to vector<8x128xf32>
    %29 = arith.maximumf %27, %28 : vector<8x128xf32>
    %30 = vector.broadcast %cst_18 : f32 to vector<8x128xf32>
    %31 = arith.subf %27, %30 : vector<8x128xf32>
    %32 = arith.cmpf one, %31, %31 : vector<8x128xf32>
    %33 = vector.broadcast %cst_18 : f32 to vector<8x128xf32>
    %34 = arith.addf %27, %33 : vector<8x128xf32>
    %35 = math.absf %31 : vector<8x128xf32>
    %cst_19 = arith.constant 0.000000e+00 : f32
    %36 = vector.broadcast %cst_19 : f32 to vector<8x128xf32>
    %37 = arith.subf %36, %35 : vector<8x128xf32>
    %38 = math.exp %37 : vector<8x128xf32>
    %39 = math.log1p %38 : vector<8x128xf32>
    %40 = arith.addf %29, %39 : vector<8x128xf32>
    %41 = arith.select %32, %34, %40 : vector<8x128xi1>, vector<8x128xf32>
    %42 = arith.select %25, %22, %41 : vector<8x128xi1>, vector<8x128xf32>
    %c0_20 = arith.constant 0 : index
    %c0_21 = arith.constant 0 : index
    %43 = vector.load %arg12[%c0_20, %c0_21] : memref<8x128xf32, #tpu.memory_space<vmem>>, vector<8x128xf32>
    tpu.vector_store %arg12[%c0_20, %c0_21], %42 {strides = array<i32>} : memref<8x128xf32, #tpu.memory_space<vmem>>, vector<8x128xf32>,
    %44 = arith.truncf %22 : vector<8x128xf32> to vector<8x128xbf16>
    %c0_22 = arith.constant 0 : index
    %c0_23 = arith.constant 0 : index
    %45 = vector.load %arg8[%c0_22, %c0_23] : memref<128x1024xbf16, #tpu.memory_space<vmem>>, vector<128x1024xbf16>
    %cst_24 = arith.constant dense<0.000000e+00> : vector<8x1024xf32>
    %46 = tpu.matmul %44, %45, %cst_24 {dimension_numbers = #tpu.dot_dimension_numbers<[1], [0], [0], [1], [0, 0, 1, 1], [], []>} : vector<8x128xbf16>, vector<128x1024xbf16>, vector<8x1024xf32> -> vector<8x1024xf32>
    %c0_25 = arith.constant 0 : index
    %c0_26 = arith.constant 0 : index
    %47 = vector.load %arg9[%c0_25, %c0_26] : memref<1x1024xf32, #tpu.memory_space<vmem>>, vector<1x1024xf32>
    %48 = vector.broadcast %47 : vector<1x1024xf32> to vector<8x1024xf32>
    %49 = arith.addf %46, %48 : vector<8x1024xf32>
    %cst_27 = arith.constant 0.000000e+00 : f32
    %50 = vector.broadcast %cst_27 : f32 to vector<8x1024xf32>
    %51 = arith.maximumf %49, %50 : vector<8x1024xf32>
    %52 = arith.truncf %51 : vector<8x1024xf32> to vector<8x1024xbf16>
    %c0_28 = arith.constant 0 : index
    %c0_29 = arith.constant 0 : index
    %53 = vector.load %arg10[%c0_28, %c0_29] : memref<1024x896xbf16, #tpu.memory_space<vmem>>, vector<1024x896xbf16>
    %cst_30 = arith.constant dense<0.000000e+00> : vector<8x896xf32>
    %54 = tpu.matmul %52, %53, %cst_30 {dimension_numbers = #tpu.dot_dimension_numbers<[1], [0], [0], [1], [0, 0, 1, 1], [], []>} : vector<8x1024xbf16>, vector<1024x896xbf16>, vector<8x896xf32> -> vector<8x896xf32>
    %c0_31 = arith.constant 0 : index
    %c0_32 = arith.constant 0 : index
    %55 = vector.load %arg11[%c0_31, %c0_32] : memref<1x896xf32, #tpu.memory_space<vmem>>, vector<1x896xf32>
    %56 = vector.broadcast %55 : vector<1x896xf32> to vector<8x896xf32>
    %57 = arith.addf %54, %56 : vector<8x896xf32>
    %58 = arith.negf %57 : vector<8x896xf32>
    %59 = math.exp %58 : vector<8x896xf32>
    %cst_33 = arith.constant 1.000000e+00 : f32
    %60 = vector.broadcast %cst_33 : f32 to vector<8x896xf32>
    %61 = arith.addf %60, %59 : vector<8x896xf32>
    %62 = arith.divf %60, %61 : vector<8x896xf32>
    %c0_34 = arith.constant 0 : index
    %c0_35 = arith.constant 0 : index
    %63 = vector.load %arg13[%c0_34, %c0_35] : memref<8x896xf32, #tpu.memory_space<vmem>>, vector<8x896xf32>
    tpu.vector_store %arg13[%c0_34, %c0_35], %62 {strides = array<i32>} : memref<8x896xf32, #tpu.memory_space<vmem>>, vector<8x896xf32>,
    return
  }
  func.func @transform_0(%arg0: i32) -> (i32, i32) {
    %c0_i32 = arith.constant 0 : i32
    %c0_i32_0 = arith.constant 0 : i32
    return %arg0, %c0_i32 : i32, i32
  }
  func.func @transform_1(%arg0: i32) -> (i32, i32) {
    %c0_i32 = arith.constant 0 : i32
    %c0_i32_0 = arith.constant 0 : i32
    %c0_i32_1 = arith.constant 0 : i32
    return %c0_i32, %c0_i32_0 : i32, i32
  }
  func.func @transform_2(%arg0: i32) -> (i32, i32) {
    %c0_i32 = arith.constant 0 : i32
    %c0_i32_0 = arith.constant 0 : i32
    %c0_i32_1 = arith.constant 0 : i32
    return %c0_i32, %c0_i32_0 : i32, i32
  }
  func.func @transform_3(%arg0: i32) -> (i32, i32) {
    %c0_i32 = arith.constant 0 : i32
    %c0_i32_0 = arith.constant 0 : i32
    %c0_i32_1 = arith.constant 0 : i32
    return %c0_i32, %c0_i32_0 : i32, i32
  }
  func.func @transform_4(%arg0: i32) -> (i32, i32) {
    %c0_i32 = arith.constant 0 : i32
    %c0_i32_0 = arith.constant 0 : i32
    %c0_i32_1 = arith.constant 0 : i32
    return %c0_i32, %c0_i32_0 : i32, i32
  }
  func.func @transform_5(%arg0: i32) -> (i32, i32) {
    %c0_i32 = arith.constant 0 : i32
    %c0_i32_0 = arith.constant 0 : i32
    %c0_i32_1 = arith.constant 0 : i32
    return %c0_i32, %c0_i32_0 : i32, i32
  }
  func.func @transform_6(%arg0: i32) -> (i32, i32) {
    %c0_i32 = arith.constant 0 : i32
    %c0_i32_0 = arith.constant 0 : i32
    %c0_i32_1 = arith.constant 0 : i32
    return %c0_i32, %c0_i32_0 : i32, i32
  }
  func.func @transform_7(%arg0: i32) -> (i32, i32) {
    %c0_i32 = arith.constant 0 : i32
    %c0_i32_0 = arith.constant 0 : i32
    %c0_i32_1 = arith.constant 0 : i32
    return %c0_i32, %c0_i32_0 : i32, i32
  }
  func.func @transform_8(%arg0: i32) -> (i32, i32) {
    %c0_i32 = arith.constant 0 : i32
    %c0_i32_0 = arith.constant 0 : i32
    %c0_i32_1 = arith.constant 0 : i32
    return %c0_i32, %c0_i32_0 : i32, i32
  }
  func.func @transform_9(%arg0: i32) -> (i32, i32) {
    %c0_i32 = arith.constant 0 : i32
    %c0_i32_0 = arith.constant 0 : i32
    %c0_i32_1 = arith.constant 0 : i32
    return %c0_i32, %c0_i32_0 : i32, i32
  }
  func.func @transform_10(%arg0: i32) -> (i32, i32) {
    %c0_i32 = arith.constant 0 : i32
    %c0_i32_0 = arith.constant 0 : i32
    %c0_i32_1 = arith.constant 0 : i32
    return %c0_i32, %c0_i32_0 : i32, i32
  }
  func.func @transform_11(%arg0: i32) -> (i32, i32) {
    %c0_i32 = arith.constant 0 : i32
    %c0_i32_0 = arith.constant 0 : i32
    return %arg0, %c0_i32 : i32, i32
  }
  func.func @transform_12(%arg0: i32) -> (i32, i32) {
    %c0_i32 = arith.constant 0 : i32
    %c0_i32_0 = arith.constant 0 : i32
    return %arg0, %c0_i32 : i32, i32
  }
}

</mosaic_0001>

<bundles_post_ra>
// kernel: tpu_custom_call.1
= control target key start
LH: loop header
LB: loop body
LE: loop exit
PB: predicated region body
PF: predicated region fallthrough
CT: control target
= control target key end

     0   :  { %18 = vsyncpa [#allocation3], 0  ;;  %s15785_s0 = inlined_call_operand.hbm [shape: f32[8,896], index: 0, kind: input, shape index: {}]   ;;  %s15786_s1 = inlined_call_operand.hbm [shape: bf16[896,1024], index: 1, kind: input, shape index: {}]   ;;  %s15787_s2 = inlined_call_operand.hbm [shape: f32[1,1024], index: 2, kind: input, shape index: {}]   ;;  %s15788_s3 = inlined_call_operand.hbm [shape: bf16[1024,1024], index: 3, kind: input, shape index: {}]   ;;  %s15789_s4 = inlined_call_operand.hbm [shape: f32[1,1024], index: 4, kind: input, shape index: {}]   ;;  %s15790_s5 = inlined_call_operand.hbm [shape: bf16[1024,128], index: 5, kind: input, shape index: {}]   ;;  %s15791_s6 = inlined_call_operand.hbm [shape: f32[1,128], index: 6, kind: input, shape index: {}]   ;;  %s15792_s7 = inlined_call_operand.hbm [shape: bf16[128,1024], index: 7, kind: input, shape index: {}]   ;;  %s15793_s8 = inlined_call_operand.hbm [shape: f32[1,1024], index: 8, kind: input, shape index: {}]   ;;  %s15794_s9 = inlined_call_operand.hbm [shape: bf16[1024,896], index: 9, kind: input, shape index: {}]   ;;  %s15795_s10 = inlined_call_operand.hbm [shape: f32[1,896], index: 10, kind: input, shape index: {}]   ;;  %s15796_s11 = inlined_call_operand.hbm [shape: f32[8,128], index: 11, kind: output, shape index: {0}]   ;;  %s15797_s12 = inlined_call_operand.hbm [shape: f32[8,896], index: 12, kind: output, shape index: {1}]  }
   0x1   :  { %19 = vsyncpa [#allocation6], 0 }
   0x2   :  { %20 = vsyncpa [#allocation9], 0 }
   0x3   :  { %21 = vsyncpa [#allocation12], 0 }
   0x4   :  { %22 = vsyncpa [#allocation15], 0 }
   0x5   :  { %23 = vsyncpa [#allocation18], 0 }
   0x6   :  { %24 = vsyncpa [#allocation4], 0 }
   0x7   :  { %25 = vsyncpa [#allocation22], 0  ;;  %s15212_s21 = smov [#allocation5]   ;;  %s14910_s25 = scalar_lea.hbm %s15786_s1, 57344 }
   0x8   :  { %s41_s22 = sshll.u32 %s15212_s21, 4  ;;  %p14911_p0 = scmp.ne.s32.totalorder %s15786_s1, %s14910_s25  ;;  %s42_s22 = int_to_ptr.vmem [resolvable:$true] %s41_s22 }
   0x9   :  { %p14914_p1 = scmp.lt.u32.totalorder %s14910_s25, %s15786_s1 }
   0xb   :  { %p14916_p2 = pnand %p14914_p1, %p14911_p0 }
   0xd   :  { %14919 = shalt.err (!%p14916_p2)
}
   0xe   :  { %s14920_s30 = scalar_lea.vmem %s42_s22, 57344  ;;  %p14925_p4 = scmp.lt.s32.totalorder %s42_s22, %s42_s22 }
   0xf   :  { %p14921_p3 = scmp.ne.s32.totalorder %s42_s22, %s14920_s30  ;;  %p14926_p5 = scmp.lt.s32.totalorder %s14920_s30, %s14920_s30 }
  0x11   :  { %p14927_p6 = por %p14926_p5, %p14925_p4 }
  0x13   :  { %p14928_p7 = pnand %p14927_p6, %p14921_p3 }
  0x15   :  { %14931 = shalt.err (!%p14928_p7)
}
  0x16   :  { %s15213_s13 = smov 512   ;;  %s15214_s14 = smov 32  }
  0x17   :  { %47 = dma.hbm_to_vmem [thread:$0]  %s15786_s1, 57344, %s42_s22, [#allocation6], %s15213_s13, %s15213_s13, %s15214_s14  }
  0x18   :  { %s15215_s17 = smov [#allocation8]   ;;  %s15216_s19 = smov [#allocation11]  }
  0x19   :  { %s63_s18 = sshll.u32 %s15215_s17, 4  ;;  %s85_s20 = sshll.u32 %s15216_s19, 4  ;;  %s64_s18 = int_to_ptr.vmem [resolvable:$true] %s63_s18  ;;  %s86_s20 = int_to_ptr.vmem [resolvable:$true] %s85_s20 }
  0x1a   :  { %s14932_s24 = scalar_lea.hbm %s15788_s3, 65536 }
  0x1b   :  { %p14933_p8 = scmp.ne.s32.totalorder %s15788_s3, %s14932_s24  ;;  %p14936_p9 = scmp.lt.u32.totalorder %s14932_s24, %s15788_s3 }
  0x1d   :  { %p14938_p10 = pnand %p14936_p9, %p14933_p8 }
  0x1f   :  { %14941 = shalt.err (!%p14938_p10)
}
  0x20   :  { %s14942_s1 = scalar_lea.vmem %s64_s18, 65536  ;;  %p14947_p12 = scmp.lt.s32.totalorder %s64_s18, %s64_s18 }
  0x21   :  { %p14943_p11 = scmp.ne.s32.totalorder %s64_s18, %s14942_s1  ;;  %p14948_p13 = scmp.lt.s32.totalorder %s14942_s1, %s14942_s1 }
  0x23   :  { %p14949_p0 = por %p14948_p13, %p14947_p12 }
  0x25   :  { %p14950_p1 = pnand %p14949_p0, %p14943_p11 }
  0x27   :  { %14953 = shalt.err (!%p14950_p1)
}
  0x28   :  { %69 = dma.hbm_to_vmem [thread:$0]  %s15788_s3, 65536, %s64_s18, [#allocation9], %s15213_s13, %s15213_s13, %s15214_s14  }
  0x29   :  { %s14954_s16 = scalar_lea.hbm %s15790_s5, 8192 }
  0x2a   :  { %p14955_p2 = scmp.ne.s32.totalorder %s15790_s5, %s14954_s16  ;;  %p14958_p3 = scmp.lt.u32.totalorder %s14954_s16, %s15790_s5 }
  0x2c   :  { %p14960_p4 = pnand %p14958_p3, %p14955_p2 }
  0x2e   :  { %14963 = shalt.err (!%p14960_p4)
}
  0x2f   :  { %s14964_s24 = scalar_lea.vmem %s86_s20, 8192  ;;  %p14969_p6 = scmp.lt.s32.totalorder %s86_s20, %s86_s20 }
  0x30   :  { %p14965_p5 = scmp.ne.s32.totalorder %s86_s20, %s14964_s24  ;;  %p14970_p7 = scmp.lt.s32.totalorder %s14964_s24, %s14964_s24 }
  0x32   :  { %p14971_p8 = por %p14970_p7, %p14969_p6 }
  0x34   :  { %p14972_p9 = pnand %p14971_p8, %p14965_p5 }
  0x36   :  { %14975 = shalt.err (!%p14972_p9)
}
  0x37   :  { %s15217_s3 = smov 64   ;;  %s15218_s18 = smov 4  }
  0x38   :  { %91 = dma.hbm_to_vmem [thread:$0]  %s15790_s5, 8192, %s86_s20, [#allocation12], %s15217_s3, %s15217_s3, %s15218_s18  }
  0x39   :  { %s15219_s27 = smov [#allocation14]   ;;  %s15220_s1 = smov [#allocation17]  }
  0x3a   :  { %s107_s28 = sshll.u32 %s15219_s27, 4  ;;  %s129_s22 = sshll.u32 %s15220_s1, 4  ;;  %s108_s28 = int_to_ptr.vmem [resolvable:$true] %s107_s28  ;;  %s130_s22 = int_to_ptr.vmem [resolvable:$true] %s129_s22 }
  0x3b   :  { %s14976_s15 = scalar_lea.hbm %s15792_s7, 8192 }
  0x3c   :  { %p14977_p10 = scmp.ne.s32.totalorder %s15792_s7, %s14976_s15  ;;  %p14980_p11 = scmp.lt.u32.totalorder %s14976_s15, %s15792_s7 }
  0x3e   :  { %p14982_p12 = pnand %p14980_p11, %p14977_p10 }
  0x40   :  { %14985 = shalt.err (!%p14982_p12)
}
  0x41   :  { %s14986_s5 = scalar_lea.vmem %s108_s28, 8192  ;;  %p14991_p0 = scmp.lt.s32.totalorder %s108_s28, %s108_s28 }
  0x42   :  { %p14987_p13 = scmp.ne.s32.totalorder %s108_s28, %s14986_s5  ;;  %p14992_p1 = scmp.lt.s32.totalorder %s14986_s5, %s14986_s5 }
  0x44   :  { %p14993_p2 = por %p14992_p1, %p14991_p0 }
  0x46   :  { %p14994_p3 = pnand %p14993_p2, %p14987_p13 }
  0x48   :  { %14997 = shalt.err (!%p14994_p3)
}
  0x49   :  { %113 = dma.hbm_to_vmem [thread:$0]  %s15792_s7, 8192, %s108_s28, [#allocation15], %s15213_s13, %s15213_s13, %s15214_s14  }
  0x4a   :  { %s14998_s18 = scalar_lea.hbm %s15794_s9, 57344 }
  0x4b   :  { %p14999_p4 = scmp.ne.s32.totalorder %s15794_s9, %s14998_s18  ;;  %p15002_p5 = scmp.lt.u32.totalorder %s14998_s18, %s15794_s9 }
  0x4d   :  { %p15004_p6 = pnand %p15002_p5, %p14999_p4 }
  0x4f   :  { %15007 = shalt.err (!%p15004_p6)
}
  0x50   :  { %s15008_s29 = scalar_lea.vmem %s130_s22, 57344  ;;  %p15013_p8 = scmp.lt.s32.totalorder %s130_s22, %s130_s22 }
  0x51   :  { %p15009_p7 = scmp.ne.s32.totalorder %s130_s22, %s15008_s29  ;;  %p15014_p9 = scmp.lt.s32.totalorder %s15008_s29, %s15008_s29 }
  0x53   :  { %p15015_p10 = por %p15014_p9, %p15013_p8 }
  0x55   :  { %p15016_p11 = pnand %p15015_p10, %p15009_p7 }
  0x57   :  { %15019 = shalt.err (!%p15016_p11)
}
  0x58   :  { %s15221_s7 = smov 448   ;;  %s15222_s13 = smov 28  }
  0x59   :  { %135 = dma.hbm_to_vmem [thread:$0]  %s15794_s9, 57344, %s130_s22, [#allocation18], %s15221_s7, %s15221_s7, %s15222_s13  }
  0x5a   :  { %s15223_s30 = smov [#allocation2]   ;;  %s15224_s16 = smov [#allocation7]  }
  0x5b   :  { %s32_s15 = sshll.u32 %s15223_s30, 4  ;;  %s54_s17 = sshll.u32 %s15224_s16, 4  ;;  %s33_s15 = int_to_ptr.vmem [resolvable:$true] %s32_s15  ;;  %s55_s17 = int_to_ptr.vmem [resolvable:$true] %s54_s17 }
  0x5c   :  { %s15020_s5 = scalar_lea.hbm %s15785_s0, 896 }
  0x5d   :  { %p15021_p12 = scmp.ne.s32.totalorder %s15785_s0, %s15020_s5  ;;  %p15024_p13 = scmp.lt.u32.totalorder %s15020_s5, %s15785_s0 }
  0x5f   :  { %p15026_p0 = pnand %p15024_p13, %p15021_p12 }
  0x61   :  { %15029 = shalt.err (!%p15026_p0)
}
  0x62   :  { %s15030_s9 = scalar_lea.vmem %s33_s15, 896  ;;  %p15035_p2 = scmp.lt.s32.totalorder %s33_s15, %s33_s15 }
  0x63   :  { %p15031_p1 = scmp.ne.s32.totalorder %s33_s15, %s15030_s9  ;;  %p15036_p3 = scmp.lt.s32.totalorder %s15030_s9, %s15030_s9 }
  0x65   :  { %p15037_p4 = por %p15036_p3, %p15035_p2 }
  0x67   :  { %p15038_p5 = pnand %p15037_p4, %p15031_p1 }
  0x69   :  { %15041 = shalt.err (!%p15038_p5)
}
  0x6a   :  { %35 = dma.hbm_to_vmem [thread:$0]  %s15785_s0, 896, %s33_s15, [#allocation3]  }
  0x6b   :  { %s15042_s27 = scalar_lea.hbm %s15787_s2, 128 }
  0x6c   :  { %p15043_p6 = scmp.ne.s32.totalorder %s15787_s2, %s15042_s27  ;;  %p15046_p7 = scmp.lt.u32.totalorder %s15042_s27, %s15787_s2 }
  0x6e   :  { %p15048_p8 = pnand %p15046_p7, %p15043_p6 }
  0x70   :  { %15051 = shalt.err (!%p15048_p8)
}
  0x71   :  { %s15052_s14 = scalar_lea.vmem %s55_s17, 128  ;;  %p15057_p10 = scmp.lt.s32.totalorder %s55_s17, %s55_s17 }
  0x72   :  { %p15053_p9 = scmp.ne.s32.totalorder %s55_s17, %s15052_s14  ;;  %p15058_p11 = scmp.lt.s32.totalorder %s15052_s14, %s15052_s14 }
  0x74   :  { %p15059_p12 = por %p15058_p11, %p15057_p10 }
  0x76   :  { %p15060_p13 = pnand %p15059_p12, %p15053_p9 }
  0x78   :  { %15063 = shalt.err (!%p15060_p13)
}
  0x79   :  { %57 = dma.hbm_to_vmem [thread:$0]  %s15787_s2, 128, %s55_s17, [#allocation6]  }
  0x7a   :  { %s15225_s30 = smov [#allocation10]   ;;  %s15226_s16 = smov [#allocation13]  }
  0x7b   :  { %s76_s15 = sshll.u32 %s15225_s30, 4  ;;  %s98_s19 = sshll.u32 %s15226_s16, 4  ;;  %s77_s15 = int_to_ptr.vmem [resolvable:$true] %s76_s15  ;;  %s99_s19 = int_to_ptr.vmem [resolvable:$true] %s98_s19 }
  0x7c   :  { %s15064_s20 = scalar_lea.hbm %s15789_s4, 128 }
  0x7d   :  { %p15065_p0 = scmp.ne.s32.totalorder %s15789_s4, %s15064_s20  ;;  %p15068_p1 = scmp.lt.u32.totalorder %s15064_s20, %s15789_s4 }
  0x7f   :  { %p15070_p2 = pnand %p15068_p1, %p15065_p0 }
  0x81   :  { %15073 = shalt.err (!%p15070_p2)
}
  0x82   :  { %s15074_s2 = scalar_lea.vmem %s77_s15, 128  ;;  %p15079_p4 = scmp.lt.s32.totalorder %s77_s15, %s77_s15 }
  0x83   :  { %p15075_p3 = scmp.ne.s32.totalorder %s77_s15, %s15074_s2  ;;  %p15080_p5 = scmp.lt.s32.totalorder %s15074_s2, %s15074_s2 }
  0x85   :  { %p15081_p6 = por %p15080_p5, %p15079_p4 }
  0x87   :  { %p15082_p7 = pnand %p15081_p6, %p15075_p3 }
  0x89   :  { %15085 = shalt.err (!%p15082_p7)
}
  0x8a   :  { %79 = dma.hbm_to_vmem [thread:$0]  %s15789_s4, 128, %s77_s15, [#allocation9]  }
  0x8b   :  { %s15086_s26 = scalar_lea.hbm %s15791_s6, 16 }
  0x8c   :  { %p15087_p8 = scmp.ne.s32.totalorder %s15791_s6, %s15086_s26  ;;  %p15090_p9 = scmp.lt.u32.totalorder %s15086_s26, %s15791_s6 }
  0x8e   :  { %p15092_p10 = pnand %p15090_p9, %p15087_p8 }
  0x90   :  { %15095 = shalt.err (!%p15092_p10)
}
  0x91   :  { %s15096_s13 = scalar_lea.vmem %s99_s19, 16  ;;  %s15100_s14 = scalar_lea.vmem %s99_s19, 32 }
  0x92   :  { %p15097_p11 = scmp.ne.s32.totalorder %s99_s19, %s15096_s13  ;;  %p15101_p12 = scmp.lt.s32.totalorder %s99_s19, %s99_s19 }
  0x93   :  { %p15102_p13 = scmp.lt.s32.totalorder %s15100_s14, %s15096_s13 }
  0x95   :  { %p15103_p0 = por %p15102_p13, %p15101_p12 }
  0x97   :  { %p15104_p1 = pnand %p15103_p0, %p15097_p11 }
  0x99   :  { %15107 = shalt.err (!%p15104_p1)
}
  0x9a   :  { %101 = dma.hbm_to_vmem [thread:$0]  %s15791_s6, 16, %s99_s19, [#allocation12]  }
  0x9b   :  { %s15227_s28 = smov [#allocation16]   ;;  %s15228_s15 = smov [#allocation19]  }
  0x9c   :  { %s120_s30 = sshll.u32 %s15227_s28, 4  ;;  %s142_s16 = sshll.u32 %s15228_s15, 4  ;;  %s121_s30 = int_to_ptr.vmem [resolvable:$true] %s120_s30  ;;  %s143_s16 = int_to_ptr.vmem [resolvable:$true] %s142_s16 }
  0x9d   :  { %s15108_s20 = scalar_lea.hbm %s15793_s8, 128 }
  0x9e   :  { %p15109_p2 = scmp.ne.s32.totalorder %s15793_s8, %s15108_s20  ;;  %p15112_p3 = scmp.lt.u32.totalorder %s15108_s20, %s15793_s8 }
  0xa0   :  { %p15114_p4 = pnand %p15112_p3, %p15109_p2 }
  0xa2   :  { %15117 = shalt.err (!%p15114_p4)
}
  0xa3   :  { %s15118_s6 = scalar_lea.vmem %s121_s30, 128  ;;  %p15123_p6 = scmp.lt.s32.totalorder %s121_s30, %s121_s30 }
  0xa4   :  { %p15119_p5 = scmp.ne.s32.totalorder %s121_s30, %s15118_s6  ;;  %p15124_p7 = scmp.lt.s32.totalorder %s15118_s6, %s15118_s6 }
  0xa6   :  { %p15125_p8 = por %p15124_p7, %p15123_p6 }
  0xa8   :  { %p15126_p9 = pnand %p15125_p8, %p15119_p5 }
  0xaa   :  { %15129 = shalt.err (!%p15126_p9)
}
  0xab   :  { %123 = dma.hbm_to_vmem [thread:$0]  %s15793_s8, 128, %s121_s30, [#allocation15]  }
  0xac   :  { %s15130_s18 = scalar_lea.hbm %s15795_s10, 112 }
  0xad   :  { %p15131_p10 = scmp.ne.s32.totalorder %s15795_s10, %s15130_s18  ;;  %p15134_p11 = scmp.lt.u32.totalorder %s15130_s18, %s15795_s10 }
  0xaf   :  { %p15136_p12 = pnand %p15134_p11, %p15131_p10 }
  0xb1   :  { %15139 = shalt.err (!%p15136_p12)
}
  0xb2   :  { %s15140_s29 = scalar_lea.vmem %s143_s16, 112  ;;  %s15144_s7 = scalar_lea.vmem %s143_s16, 128 }
  0xb3   :  { %p15141_p13 = scmp.ne.s32.totalorder %s143_s16, %s15140_s29  ;;  %p15145_p0 = scmp.lt.s32.totalorder %s143_s16, %s143_s16 }
  0xb4   :  { %p15146_p1 = scmp.lt.s32.totalorder %s15144_s7, %s15140_s29 }
  0xb6   :  { %p15147_p2 = por %p15146_p1, %p15145_p0 }
  0xb8   :  { %p15148_p3 = pnand %p15147_p2, %p15141_p13 }
  0xba   :  { %15151 = shalt.err (!%p15148_p3)
}
  0xbb   :  { %145 = dma.hbm_to_vmem [thread:$0]  %s15795_s10, 112, %s143_s16, [#allocation18]  }
  0xbc   :  { %15196 = dma.done.wait [#allocation3], 896  }
  0xbd   :  { %15197 = vsyncadd [#allocation3], 4294966400 }
  0xbe   :  { %15198 = dma.done.wait [#allocation6], 57472  }
  0xbf   :  { %15199 = vsyncadd [#allocation6], 4294909824 }
  0xc0   :  { %15200 = dma.done.wait [#allocation9], 65664  }
  0xc1   :  { %15201 = vsyncadd [#allocation9], 4294901632 }
  0xc2   :  { %15202 = dma.done.wait [#allocation12], 8208  }
  0xc3   :  { %15203 = vsyncadd [#allocation12], 4294959088 }
  0xc4   :  { %15204 = dma.done.wait [#allocation15], 8320  }
  0xc5   :  { %15205 = vsyncadd [#allocation15], 4294958976 }
  0xc6   :  { %15206 = dma.done.wait [#allocation18], 57456  }
  0xc7   :  { %15207 = vsyncadd [#allocation18], 4294909840  ;;  %v194_v0 = vld [vmem:[#allocation5] sm:$0xff]  ;;  %v181_v53 = vld [vmem:[#allocation2 + $0x8] sm:$0xff]  ;;  %s15230_s10 = smov [#allocation20]  }
  0xc8   :  { %v198_v1 = vld [vmem:[#allocation5 + $0x20] sm:$0xff]  ;;  %v15438_v57 = vpack.c.bf16 %v181_v53, %v181_v53  ;;  %s12252_s14 = sshll.u32 %s15230_s10, 4  ;;  %s12253_s14 = int_to_ptr.vmem [resolvable:$true] %s12252_s14 }
  0xc9   :  { %v322_v2 = vld [vmem:[#allocation5 + $0x400] sm:$0xff]  ;;  %v12281_v3 = vcombine.high %v194_v0, %v198_v1  ;;  %v12280_v5 = vcombine.low %v194_v0, %v198_v1  ;;  %s15152_s4 = scalar_lea.vmem %s12253_s14, 128  ;;  %p15157_p5 = scmp.lt.s32.totalorder %s12253_s14, %s12253_s14 }
  0xca   :  { %v326_v4 = vld [vmem:[#allocation5 + $0x420] sm:$0xff]  ;;  %2956 = vmatprep.mubr.bf16.mxu1 %v15438_v57  ;;  %p15153_p4 = scmp.ne.s32.totalorder %s12253_s14, %s15152_s4  ;;  %p15158_p6 = scmp.lt.s32.totalorder %s15152_s4, %s15152_s4 }
  0xcb   :  { %v202_v6 = vld [vmem:[#allocation5 + $0x40] sm:$0xff]  ;;  %v12409_v8 = vcombine.high %v322_v2, %v326_v4  ;;  %v12408_v9 = vcombine.low %v322_v2, %v326_v4  ;;  %2924 = vmatprep.subr.bf16.mxu1 %v12281_v3 }
  0xcc   :  { %v206_v7 = vld [vmem:[#allocation5 + $0x60] sm:$0xff]  ;;  %2925 = vmatpush1.bf16.msra.mxu1 %v12280_v5  ;;  %p15159_p7 = por %p15158_p6, %p15157_p5 }
  0xcd   :  { %v12289_v10 = vcombine.high %v202_v6, %v206_v7  ;;  %v330_v11 = vld [vmem:[#allocation5 + $0x440] sm:$0xff]  ;;  %2965 = vmatprep.subr.bf16.mxu0 %v12409_v8  ;;  %v12288_v18 = vcombine.low %v202_v6, %v206_v7 }
  0xce   :  { %v334_v12 = vld [vmem:[#allocation5 + $0x460] sm:$0xff]  ;;  %2966 = vmatpush1.bf16.msra.mxu0 %v12408_v9  ;;  %p15160_p8 = pnand %p15159_p7, %p15153_p4 }
  0xcf   :  { %v210_v13 = vld [vmem:[#allocation5 + $0x80] sm:$0xff]  ;;  %v12417_v14 = vcombine.high %v330_v11, %v334_v12  ;;  %2926 = vmatprep.subr.bf16.mxu1 %v12289_v10  ;;  %v12416_v19 = vcombine.low %v330_v11, %v334_v12 }
  0xd0   :  { %v214_v15 = vld [vmem:[#allocation5 + $0xa0] sm:$0xff]  ;;  %2927 = vmatpush1.bf16.msra.mxu1 %v12288_v18 }
  0xd1   :  { %v338_v16 = vld [vmem:[#allocation5 + $0x480] sm:$0xff]  ;;  %v12297_v20 = vcombine.high %v210_v13, %v214_v15  ;;  %2967 = vmatprep.subr.bf16.mxu0 %v12417_v14  ;;  %v12296_v26 = vcombine.low %v210_v13, %v214_v15 }
  0xd2   :  { %v342_v17 = vld [vmem:[#allocation5 + $0x4a0] sm:$0xff]  ;;  %2968 = vmatpush1.bf16.msra.mxu0 %v12416_v19 }
  0xd3   :  { %v12425_v21 = vcombine.high %v338_v16, %v342_v17  ;;  %v218_v22 = vld [vmem:[#allocation5 + $0xc0] sm:$0xff]  ;;  %2928 = vmatprep.subr.bf16.mxu1 %v12297_v20  ;;  %v12424_v27 = vcombine.low %v338_v16, %v342_v17 }
  0xd4   :  { %v222_v23 = vld [vmem:[#allocation5 + $0xe0] sm:$0xff]  ;;  %2929 = vmatpush1.bf16.msra.mxu1 %v12296_v26 }
  0xd5   :  { %v346_v24 = vld [vmem:[#allocation5 + $0x4c0] sm:$0xff]  ;;  %v12305_v28 = vcombine.high %v218_v22, %v222_v23  ;;  %2969 = vmatprep.subr.bf16.mxu0 %v12425_v21  ;;  %v12304_v34 = vcombine.low %v218_v22, %v222_v23 }
  0xd6   :  { %v350_v25 = vld [vmem:[#allocation5 + $0x4e0] sm:$0xff]  ;;  %2970 = vmatpush1.bf16.msra.mxu0 %v12424_v27 }
  0xd7   :  { %v12433_v29 = vcombine.high %v346_v24, %v350_v25  ;;  %v226_v30 = vld [vmem:[#allocation5 + $0x100] sm:$0xff]  ;;  %2930 = vmatprep.subr.bf16.mxu1 %v12305_v28  ;;  %v12432_v35 = vcombine.low %v346_v24, %v350_v25 }
  0xd8   :  { %v230_v31 = vld [vmem:[#allocation5 + $0x120] sm:$0xff]  ;;  %2931 = vmatpush1.bf16.msra.mxu1 %v12304_v34 }
  0xd9   :  { %v354_v32 = vld [vmem:[#allocation5 + $0x500] sm:$0xff]  ;;  %v12313_v36 = vcombine.high %v226_v30, %v230_v31  ;;  %2971 = vmatprep.subr.bf16.mxu0 %v12433_v29  ;;  %v12312_v42 = vcombine.low %v226_v30, %v230_v31 }
  0xda   :  { %v358_v33 = vld [vmem:[#allocation5 + $0x520] sm:$0xff]  ;;  %2972 = vmatpush1.bf16.msra.mxu0 %v12432_v35 }
  0xdb   :  { %v12441_v37 = vcombine.high %v354_v32, %v358_v33  ;;  %v234_v38 = vld [vmem:[#allocation5 + $0x140] sm:$0xff]  ;;  %2932 = vmatprep.subr.bf16.mxu1 %v12313_v36  ;;  %v12440_v43 = vcombine.low %v354_v32, %v358_v33 }
  0xdc   :  { %v238_v39 = vld [vmem:[#allocation5 + $0x160] sm:$0xff]  ;;  %2933 = vmatpush1.bf16.msra.mxu1 %v12312_v42 }
  0xdd   :  { %v362_v40 = vld [vmem:[#allocation5 + $0x540] sm:$0xff]  ;;  %v12321_v44 = vcombine.high %v234_v38, %v238_v39  ;;  %2973 = vmatprep.subr.bf16.mxu0 %v12441_v37  ;;  %v12320_v50 = vcombine.low %v234_v38, %v238_v39 }
  0xde   :  { %v366_v41 = vld [vmem:[#allocation5 + $0x560] sm:$0xff]  ;;  %2974 = vmatpush1.bf16.msra.mxu0 %v12440_v43 }
  0xdf   :  { %v12449_v45 = vcombine.high %v362_v40, %v366_v41  ;;  %v242_v46 = vld [vmem:[#allocation5 + $0x180] sm:$0xff]  ;;  %2934 = vmatprep.subr.bf16.mxu1 %v12321_v44  ;;  %v12448_v51 = vcombine.low %v362_v40, %v366_v41 }
  0xe0   :  { %v246_v47 = vld [vmem:[#allocation5 + $0x1a0] sm:$0xff]  ;;  %2935 = vmatpush1.bf16.msra.mxu1 %v12320_v50 }
  0xe1   :  { %v370_v48 = vld [vmem:[#allocation5 + $0x580] sm:$0xff]  ;;  %v12329_v52 = vcombine.high %v242_v46, %v246_v47  ;;  %2975 = vmatprep.subr.bf16.mxu0 %v12449_v45  ;;  %v12328_v62 = vcombine.low %v242_v46, %v246_v47 }
  0xe2   :  { %v374_v49 = vld [vmem:[#allocation5 + $0x5a0] sm:$0xff]  ;;  %2976 = vmatpush1.bf16.msra.mxu0 %v12448_v51 }
  0xe3   :  { %v12457_v54 = vcombine.high %v370_v48, %v374_v49  ;;  %v250_v55 = vld [vmem:[#allocation5 + $0x1c0] sm:$0xff]  ;;  %2936 = vmatprep.subr.bf16.mxu1 %v12329_v52  ;;  %v12456_v63 = vcombine.low %v370_v48, %v374_v49 }
  0xe4   :  { %v254_v56 = vld [vmem:[#allocation5 + $0x1e0] sm:$0xff]  ;;  %2937 = vmatpush1.bf16.msra.mxu1 %v12328_v62 }
  0xe5   :  { %v183_v58 = vld [vmem:[#allocation2 + $0x18] sm:$0xff]  ;;  %v12337_v0 = vcombine.high %v250_v55, %v254_v56  ;;  %2977 = vmatprep.subr.bf16.mxu0 %v12457_v54  ;;  %v12336_v6 = vcombine.low %v250_v55, %v254_v56 }
  0xe6   :  { %v378_v59 = vld [vmem:[#allocation5 + $0x5c0] sm:$0xff]  ;;  %v15440_v61 = vpack.c.bf16 %v183_v58, %v183_v58  ;;  %2978 = vmatpush1.bf16.msra.mxu0 %v12456_v63 }
  0xe7   :  { %v382_v60 = vld [vmem:[#allocation5 + $0x5e0] sm:$0xff]  ;;  %2938 = vmatprep.subr.bf16.mxu1 %v12337_v0 }
  0xe8   :  { %v12465_v1 = vcombine.high %v378_v59, %v382_v60  ;;  %v258_v2 = vld [vmem:[#allocation5 + $0x200] sm:$0xff]  ;;  %2997 = vmatprep.mubr.bf16.mxu0 %v15440_v61  ;;  %v12464_v7 = vcombine.low %v378_v59, %v382_v60  ;;  %2939 = vmatpush1.bf16.msra.mxu1 %v12336_v6 }
  0xe9   :  { %v262_v3 = vld [vmem:[#allocation5 + $0x220] sm:$0xff] }
  0xea   :  { %v386_v4 = vld [vmem:[#allocation5 + $0x600] sm:$0xff]  ;;  %v12345_v8 = vcombine.high %v258_v2, %v262_v3  ;;  %2979 = vmatprep.subr.bf16.mxu0 %v12465_v1  ;;  %v12344_v14 = vcombine.low %v258_v2, %v262_v3 }
  0xeb   :  { %v390_v5 = vld [vmem:[#allocation5 + $0x620] sm:$0xff]  ;;  %2980 = vmatpush1.bf16.msra.mxu0 %v12464_v7 }
  0xec   :  { %v12473_v9 = vcombine.high %v386_v4, %v390_v5  ;;  %v266_v10 = vld [vmem:[#allocation5 + $0x240] sm:$0xff]  ;;  %2940 = vmatprep.subr.bf16.mxu1 %v12345_v8  ;;  %v12472_v15 = vcombine.low %v386_v4, %v390_v5  ;;  %v195_v4 = vld [vmem:[#allocation5 + $0x8] sm:$0xff] }
  0xed   :  { %v270_v11 = vld [vmem:[#allocation5 + $0x260] sm:$0xff]  ;;  %2941 = vmatpush1.bf16.msra.mxu1 %v12344_v14  ;;  %v199_v5 = vld [vmem:[#allocation5 + $0x28] sm:$0xff] }
  0xee   :  { %v394_v12 = vld [vmem:[#allocation5 + $0x640] sm:$0xff]  ;;  %v12353_v16 = vcombine.high %v266_v10, %v270_v11  ;;  %2981 = vmatprep.subr.bf16.mxu0 %v12473_v9  ;;  %v12352_v22 = vcombine.low %v266_v10, %v270_v11  ;;  %v180_v9 = vld [vmem:[#allocation2] sm:$0xff]  ;;  %v12283_v11 = vcombine.high %v195_v4, %v199_v5 }
  0xef   :  { %v398_v13 = vld [vmem:[#allocation5 + $0x660] sm:$0xff]  ;;  %2982 = vmatpush1.bf16.msra.mxu0 %v12472_v15  ;;  %v203_v14 = vld [vmem:[#allocation5 + $0x48] sm:$0xff] }
  0xf0   :  { %v12481_v17 = vcombine.high %v394_v12, %v398_v13  ;;  %v274_v18 = vld [vmem:[#allocation5 + $0x280] sm:$0xff]  ;;  %2942 = vmatprep.subr.bf16.mxu1 %v12353_v16  ;;  %v12480_v23 = vcombine.low %v394_v12, %v398_v13  ;;  %v182_v12 = vld [vmem:[#allocation2 + $0x10] sm:$0xff]  ;;  %v207_v15 = vld [vmem:[#allocation5 + $0x68] sm:$0xff]  ;;  %v15444_v16 = vpack.c.bf16 %v180_v9, %v180_v9 }
  0xf1   :  { %v278_v19 = vld [vmem:[#allocation5 + $0x2a0] sm:$0xff]  ;;  %2943 = vmatpush1.bf16.msra.mxu1 %v12352_v22 }
  0xf2   :  { %v402_v20 = vld [vmem:[#allocation5 + $0x680] sm:$0xff]  ;;  %v12361_v24 = vcombine.high %v274_v18, %v278_v19  ;;  %2983 = vmatprep.subr.bf16.mxu0 %v12481_v17  ;;  %v12360_v30 = vcombine.low %v274_v18, %v278_v19  ;;  %v185_v19 = vld [vmem:[#allocation2 + $0x28] sm:$0xff] }
  0xf3   :  { %v406_v21 = vld [vmem:[#allocation5 + $0x6a0] sm:$0xff]  ;;  %2984 = vmatpush1.bf16.msra.mxu0 %v12480_v23  ;;  %v12291_v23 = vcombine.high %v203_v14, %v207_v15 }
  0xf4   :  { %v12489_v25 = vcombine.high %v402_v20, %v406_v21  ;;  %v282_v26 = vld [vmem:[#allocation5 + $0x2c0] sm:$0xff]  ;;  %2944 = vmatprep.subr.bf16.mxu1 %v12361_v24  ;;  %v12488_v31 = vcombine.low %v402_v20, %v406_v21  ;;  %v12282_v20 = vcombine.low %v195_v4, %v199_v5  ;;  %v15446_v21 = vpack.c.bf16 %v182_v12, %v182_v12  ;;  %v251_v5 = vld [vmem:[#allocation5 + $0x1c8] sm:$0xff] }
  0xf5   :  { %v286_v27 = vld [vmem:[#allocation5 + $0x2e0] sm:$0xff]  ;;  %2945 = vmatpush1.bf16.msra.mxu1 %v12360_v30  ;;  %v12290_v30 = vcombine.low %v203_v14, %v207_v15  ;;  %v263_v15 = vld [vmem:[#allocation5 + $0x228] sm:$0xff] }
  0xf6   :  { %v410_v28 = vld [vmem:[#allocation5 + $0x6c0] sm:$0xff]  ;;  %v12369_v32 = vcombine.high %v282_v26, %v286_v27  ;;  %2985 = vmatprep.subr.bf16.mxu0 %v12489_v25  ;;  %v12368_v38 = vcombine.low %v282_v26, %v286_v27  ;;  %v211_v25 = vld [vmem:[#allocation5 + $0x88] sm:$0xff]  ;;  %v15448_v27 = vpack.c.bf16 %v185_v19, %v185_v19 }
  0xf7   :  { %v414_v29 = vld [vmem:[#allocation5 + $0x6e0] sm:$0xff]  ;;  %2986 = vmatpush1.bf16.msra.mxu0 %v12488_v31  ;;  %v215_v26 = vld [vmem:[#allocation5 + $0xa8] sm:$0xff] }
  0xf8   :  { %v12497_v33 = vcombine.high %v410_v28, %v414_v29  ;;  %v290_v34 = vld [vmem:[#allocation5 + $0x300] sm:$0xff]  ;;  %2946 = vmatprep.subr.bf16.mxu1 %v12369_v32  ;;  %v12496_v39 = vcombine.low %v410_v28, %v414_v29  ;;  %v12299_v32 = vcombine.high %v211_v25, %v215_v26 }
  0xf9   :  { %v294_v35 = vld [vmem:[#allocation5 + $0x320] sm:$0xff]  ;;  %2947 = vmatpush1.bf16.msra.mxu1 %v12368_v38  ;;  %v12298_v38 = vcombine.low %v211_v25, %v215_v26  ;;  %v271_v25 = vld [vmem:[#allocation5 + $0x268] sm:$0xff] }
  0xfa   :  { %v418_v36 = vld [vmem:[#allocation5 + $0x700] sm:$0xff]  ;;  %v12377_v40 = vcombine.high %v290_v34, %v294_v35  ;;  %2987 = vmatprep.subr.bf16.mxu0 %v12497_v33  ;;  %v12376_v46 = vcombine.low %v290_v34, %v294_v35  ;;  %v219_v35 = vld [vmem:[#allocation5 + $0xc8] sm:$0xff] }
  0xfb   :  { %v422_v37 = vld [vmem:[#allocation5 + $0x720] sm:$0xff]  ;;  %2988 = vmatpush1.bf16.msra.mxu0 %v12496_v39 }
  0xfc   :  { %v12505_v41 = vcombine.high %v418_v36, %v422_v37  ;;  %v298_v42 = vld [vmem:[#allocation5 + $0x340] sm:$0xff]  ;;  %2948 = vmatprep.subr.bf16.mxu1 %v12377_v40  ;;  %v12504_v47 = vcombine.low %v418_v36, %v422_v37  ;;  %v223_v37 = vld [vmem:[#allocation5 + $0xe8] sm:$0xff] }
  0xfd   :  { %v302_v43 = vld [vmem:[#allocation5 + $0x360] sm:$0xff]  ;;  %2949 = vmatpush1.bf16.msra.mxu1 %v12376_v46  ;;  %v12307_v40 = vcombine.high %v219_v35, %v223_v37  ;;  %v12306_v46 = vcombine.low %v219_v35, %v223_v37 }
  0xfe   :  { %v426_v44 = vld [vmem:[#allocation5 + $0x740] sm:$0xff]  ;;  %v12385_v48 = vcombine.high %v298_v42, %v302_v43  ;;  %2989 = vmatprep.subr.bf16.mxu0 %v12505_v41  ;;  %v12384_v54 = vcombine.low %v298_v42, %v302_v43  ;;  %v227_v43 = vld [vmem:[#allocation5 + $0x108] sm:$0xff] }
  0xff   :  { %v430_v45 = vld [vmem:[#allocation5 + $0x760] sm:$0xff]  ;;  %2990 = vmatpush1.bf16.msra.mxu0 %v12504_v47 }
 0x100   :  { %v12513_v49 = vcombine.high %v426_v44, %v430_v45  ;;  %v306_v50 = vld [vmem:[#allocation5 + $0x380] sm:$0xff]  ;;  %2950 = vmatprep.subr.bf16.mxu1 %v12385_v48  ;;  %v12512_v55 = vcombine.low %v426_v44, %v430_v45  ;;  %v231_v45 = vld [vmem:[#allocation5 + $0x128] sm:$0xff] }
 0x101   :  { %v310_v51 = vld [vmem:[#allocation5 + $0x3a0] sm:$0xff]  ;;  %2951 = vmatpush1.bf16.msra.mxu1 %v12384_v54  ;;  %v12315_v48 = vcombine.high %v227_v43, %v231_v45  ;;  %v12314_v54 = vcombine.low %v227_v43, %v231_v45 }
 0x102   :  { %v434_v52 = vld [vmem:[#allocation5 + $0x780] sm:$0xff]  ;;  %v12393_v56 = vcombine.high %v306_v50, %v310_v51  ;;  %2991 = vmatprep.subr.bf16.mxu0 %v12513_v49  ;;  %v12392_v0 = vcombine.low %v306_v50, %v310_v51  ;;  %v235_v51 = vld [vmem:[#allocation5 + $0x148] sm:$0xff] }
 0x103   :  { %v438_v53 = vld [vmem:[#allocation5 + $0x7a0] sm:$0xff]  ;;  %2992 = vmatpush1.bf16.msra.mxu0 %v12512_v55 }
 0x104   :  { %v12521_v58 = vcombine.high %v434_v52, %v438_v53  ;;  %v314_v59 = vld [vmem:[#allocation5 + $0x3c0] sm:$0xff]  ;;  %2952 = vmatprep.subr.bf16.mxu1 %v12393_v56  ;;  %v12520_v1 = vcombine.low %v434_v52, %v438_v53  ;;  %v239_v53 = vld [vmem:[#allocation5 + $0x168] sm:$0xff] }
 0x105   :  { %v318_v60 = vld [vmem:[#allocation5 + $0x3e0] sm:$0xff]  ;;  %2953 = vmatpush1.bf16.msra.mxu1 %v12392_v0  ;;  %v12323_v56 = vcombine.high %v235_v51, %v239_v53  ;;  %v12322_v0 = vcombine.low %v235_v51, %v239_v53 }
 0x106   :  { %v442_v62 = vld [vmem:[#allocation5 + $0x7c0] sm:$0xff]  ;;  %v12401_v2 = vcombine.high %v314_v59, %v318_v60  ;;  %2993 = vmatprep.subr.bf16.mxu0 %v12521_v58  ;;  %v12400_v8 = vcombine.low %v314_v59, %v318_v60  ;;  %v243_v60 = vld [vmem:[#allocation5 + $0x188] sm:$0xff] }
 0x107   :  { %v446_v63 = vld [vmem:[#allocation5 + $0x7e0] sm:$0xff]  ;;  %2994 = vmatpush1.bf16.msra.mxu0 %v12520_v1 }
 0x108   :  { %v12529_v3 = vcombine.high %v442_v62, %v446_v63  ;;  %v450_v6 = vld [vmem:[#allocation5 + $0x800] sm:$0xff]  ;;  %2954 = vmatprep.subr.bf16.mxu1 %v12401_v2  ;;  %v12528_v10 = vcombine.low %v442_v62, %v446_v63  ;;  %v247_v63 = vld [vmem:[#allocation5 + $0x1a8] sm:$0xff] }
 0x109   :  { %v454_v7 = vld [vmem:[#allocation5 + $0x820] sm:$0xff]  ;;  %2955 = vmatpush1.bf16.msra.mxu1 %v12400_v8  ;;  %v12331_v2 = vcombine.high %v243_v60, %v247_v63  ;;  %v12330_v8 = vcombine.low %v243_v60, %v247_v63 }
 0x10a   :  { %2995 = vmatprep.subr.bf16.mxu0 %v12529_v3  ;;  %v12537_v13 = vcombine.high %v450_v6, %v454_v7  ;;  %v458_v17 = vld [vmem:[#allocation5 + $0x840] sm:$0xff]  ;;  %v12536_v22 = vcombine.low %v450_v6, %v454_v7  ;;  %3088 = vmatprep.subr.bf16.mxu1 %v12283_v11  ;;  %v255_v7 = vld [vmem:[#allocation5 + $0x1e8] sm:$0xff] }
 0x10b   :  { %v462_v18 = vld [vmem:[#allocation5 + $0x860] sm:$0xff]  ;;  %2996 = vmatpush1.bf16.msra.mxu0 %v12528_v10  ;;  %v12339_v10 = vcombine.high %v251_v5, %v255_v7 }
 0x10c   :  { %3006 = vmatprep.subr.bf16.mxu0 %v12537_v13  ;;  %v12545_v24 = vcombine.high %v458_v17, %v462_v18  ;;  %2957 = vmatmul.mubr.bf16.vlgmr.msra.gmra.mrb[0].mxu1 %v15444_v16  ;;  %v466_v28 = vld [vmem:[#allocation5 + $0x880] sm:$0xff]  ;;  %v12544_v31 = vcombine.low %v458_v17, %v462_v18  ;;  %v259_v13 = vld [vmem:[#allocation5 + $0x208] sm:$0xff]  ;;  %v12338_v17 = vcombine.low %v251_v5, %v255_v7 }
 0x10d   :  { %v470_v29 = vld [vmem:[#allocation5 + $0x8a0] sm:$0xff]  ;;  %3089 = vmatpush1.bf16.msra.mxu1 %v12282_v20  ;;  %3120 = vmatprep.mubr.bf16.mxu1 %v15438_v57  ;;  %v12347_v19 = vcombine.high %v259_v13, %v263_v15  ;;  %v12346_v26 = vcombine.low %v259_v13, %v263_v15 }
 0x10e   :  { %2998 = vmatmul.mubr.bf16.vlgmr.msra.gmra.mrb[0].mxu0 %v15446_v21  ;;  %3090 = vmatprep.subr.bf16.mxu1 %v12291_v23  ;;  %v474_v33 = vld [vmem:[#allocation5 + $0x8c0] sm:$0xff]  ;;  %v12553_v36 = vcombine.high %v466_v28, %v470_v29  ;;  %v12552_v39 = vcombine.low %v466_v28, %v470_v29  ;;  %v267_v23 = vld [vmem:[#allocation5 + $0x248] sm:$0xff] }
 0x10f   :  { %3007 = vmatpush1.bf16.msra.mxu0 %v12536_v22  ;;  %v478_v34 = vld [vmem:[#allocation5 + $0x8e0] sm:$0xff]  ;;  %3038 = vmatprep.mubr.bf16.mxu0 %v15448_v27  ;;  %v12355_v29 = vcombine.high %v267_v23, %v271_v25  ;;  %v12354_v35 = vcombine.low %v267_v23, %v271_v25  ;;  %v184_v23 = vld [vmem:[#allocation2 + $0x20] sm:$0xff] }
 0x110   :  { %3008 = vmatprep.subr.bf16.mxu0 %v12545_v24  ;;  %v482_v41 = vld [vmem:[#allocation5 + $0x900] sm:$0xff]  ;;  %v12561_v44 = vcombine.high %v474_v33, %v478_v34  ;;  %v12560_v47 = vcombine.low %v474_v33, %v478_v34  ;;  %v279_v34 = vld [vmem:[#allocation5 + $0x2a8] sm:$0xff] }
 0x111   :  { %3091 = vmatpush1.bf16.msra.mxu1 %v12290_v30  ;;  %v486_v42 = vld [vmem:[#allocation5 + $0x920] sm:$0xff] }
 0x112   :  { %3092 = vmatprep.subr.bf16.mxu1 %v12299_v32  ;;  %v490_v49 = vld [vmem:[#allocation5 + $0x940] sm:$0xff]  ;;  %v12569_v52 = vcombine.high %v482_v41, %v486_v42  ;;  %v12568_v55 = vcombine.low %v482_v41, %v486_v42  ;;  %v275_v32 = vld [vmem:[#allocation5 + $0x288] sm:$0xff] }
 0x113   :  { %3009 = vmatpush1.bf16.msra.mxu0 %v12544_v31  ;;  %v494_v50 = vld [vmem:[#allocation5 + $0x960] sm:$0xff]  ;;  %v12363_v37 = vcombine.high %v275_v32, %v279_v34  ;;  %v287_v42 = vld [vmem:[#allocation5 + $0x2e8] sm:$0xff]  ;;  %v12362_v43 = vcombine.low %v275_v32, %v279_v34  ;;  %v15454_v34 = vpack.c.bf16 %v184_v23, %v184_v23 }
 0x114   :  { %3010 = vmatprep.subr.bf16.mxu0 %v12553_v36  ;;  %v498_v58 = vld [vmem:[#allocation5 + $0x980] sm:$0xff]  ;;  %v12577_v62 = vcombine.high %v490_v49, %v494_v50  ;;  %v12576_v1 = vcombine.low %v490_v49, %v494_v50  ;;  %v295_v50 = vld [vmem:[#allocation5 + $0x328] sm:$0xff] }
 0x115   :  { %3093 = vmatpush1.bf16.msra.mxu1 %v12298_v38  ;;  %v502_v59 = vld [vmem:[#allocation5 + $0x9a0] sm:$0xff]  ;;  %v335_v32 = vld [vmem:[#allocation5 + $0x468] sm:$0xff] }
 0x116   :  { %3094 = vmatprep.subr.bf16.mxu1 %v12307_v40  ;;  %v506_v3 = vld [vmem:[#allocation5 + $0x9c0] sm:$0xff]  ;;  %v12585_v6 = vcombine.high %v498_v58, %v502_v59  ;;  %v12584_v9 = vcombine.low %v498_v58, %v502_v59  ;;  %v283_v40 = vld [vmem:[#allocation5 + $0x2c8] sm:$0xff] }
 0x117   :  { %3011 = vmatpush1.bf16.msra.mxu0 %v12552_v39  ;;  %v510_v4 = vld [vmem:[#allocation5 + $0x9e0] sm:$0xff]  ;;  %v12371_v45 = vcombine.high %v283_v40, %v287_v42  ;;  %v12370_v51 = vcombine.low %v283_v40, %v287_v42  ;;  %v303_v59 = vld [vmem:[#allocation5 + $0x368] sm:$0xff] }
 0x118   :  { %3012 = vmatprep.subr.bf16.mxu0 %v12561_v44  ;;  %v514_v11 = vld [vmem:[#allocation5 + $0xa00] sm:$0xff]  ;;  %v12593_v14 = vcombine.high %v506_v3, %v510_v4  ;;  %v12592_v18 = vcombine.low %v506_v3, %v510_v4  ;;  %v311_v4 = vld [vmem:[#allocation5 + $0x3a8] sm:$0xff] }
 0x119   :  { %3095 = vmatpush1.bf16.msra.mxu1 %v12306_v46  ;;  %v518_v12 = vld [vmem:[#allocation5 + $0xa20] sm:$0xff] }
 0x11a   :  { %3096 = vmatprep.subr.bf16.mxu1 %v12315_v48  ;;  %v522_v20 = vld [vmem:[#allocation5 + $0xa40] sm:$0xff]  ;;  %v12601_v24 = vcombine.high %v514_v11, %v518_v12  ;;  %v12600_v28 = vcombine.low %v514_v11, %v518_v12  ;;  %v291_v48 = vld [vmem:[#allocation5 + $0x308] sm:$0xff] }
 0x11b   :  { %3013 = vmatpush1.bf16.msra.mxu0 %v12560_v47  ;;  %v526_v22 = vld [vmem:[#allocation5 + $0xa60] sm:$0xff]  ;;  %v12379_v53 = vcombine.high %v291_v48, %v295_v50  ;;  %v12378_v60 = vcombine.low %v291_v48, %v295_v50  ;;  %v319_v12 = vld [vmem:[#allocation5 + $0x3e8] sm:$0xff]  ;;  %v15229_v50 = vmov 0  }
 0x11c   :  { %3014 = vmatprep.subr.bf16.mxu0 %v12569_v52  ;;  %v530_v30 = vld [vmem:[#allocation5 + $0xa80] sm:$0xff]  ;;  %v12609_v33 = vcombine.high %v522_v20, %v526_v22  ;;  %v12608_v36 = vcombine.low %v522_v20, %v526_v22  ;;  %v327_v22 = vld [vmem:[#allocation5 + $0x428] sm:$0xff] }
 0x11d   :  { %3097 = vmatpush1.bf16.msra.mxu1 %v12314_v54  ;;  %v534_v31 = vld [vmem:[#allocation5 + $0xaa0] sm:$0xff] }
 0x11e   :  { %3098 = vmatprep.subr.bf16.mxu1 %v12323_v56  ;;  %v538_v38 = vld [vmem:[#allocation5 + $0xac0] sm:$0xff]  ;;  %v12617_v41 = vcombine.high %v530_v30, %v534_v31  ;;  %v12616_v44 = vcombine.low %v530_v30, %v534_v31  ;;  %v299_v56 = vld [vmem:[#allocation5 + $0x348] sm:$0xff] }
 0x11f   :  { %3015 = vmatpush1.bf16.msra.mxu0 %v12568_v55  ;;  %v542_v39 = vld [vmem:[#allocation5 + $0xae0] sm:$0xff]  ;;  %v12387_v63 = vcombine.high %v299_v56, %v303_v59  ;;  %v12386_v5 = vcombine.low %v299_v56, %v303_v59  ;;  %v331_v30 = vld [vmem:[#allocation5 + $0x448] sm:$0xff] }
 0x120   :  { %3016 = vmatprep.subr.bf16.mxu0 %v12577_v62  ;;  %v546_v46 = vld [vmem:[#allocation5 + $0xb00] sm:$0xff]  ;;  %v12625_v49 = vcombine.high %v538_v38, %v542_v39  ;;  %v12624_v52 = vcombine.low %v538_v38, %v542_v39  ;;  %v339_v39 = vld [vmem:[#allocation5 + $0x488] sm:$0xff]  ;;  %v12418_v42 = vcombine.low %v331_v30, %v335_v32 }
 0x121   :  { %3099 = vmatpush1.bf16.msra.mxu1 %v12322_v0  ;;  %v550_v47 = vld [vmem:[#allocation5 + $0xb20] sm:$0xff]  ;;  %v355_v56 = vld [vmem:[#allocation5 + $0x508] sm:$0xff] }
 0x122   :  { %3100 = vmatprep.subr.bf16.mxu1 %v12331_v2  ;;  %v554_v54 = vld [vmem:[#allocation5 + $0xb40] sm:$0xff]  ;;  %v12633_v58 = vcombine.high %v546_v46, %v550_v47  ;;  %v12632_v62 = vcombine.low %v546_v46, %v550_v47  ;;  %v307_v2 = vld [vmem:[#allocation5 + $0x388] sm:$0xff] }
 0x123   :  { %3017 = vmatpush1.bf16.msra.mxu0 %v12576_v1  ;;  %v558_v55 = vld [vmem:[#allocation5 + $0xb60] sm:$0xff]  ;;  %v12395_v7 = vcombine.high %v307_v2, %v311_v4  ;;  %v12394_v13 = vcombine.low %v307_v2, %v311_v4  ;;  %v347_v47 = vld [vmem:[#allocation5 + $0x4c8] sm:$0xff] }
 0x124   :  { %3018 = vmatprep.subr.bf16.mxu0 %v12585_v6  ;;  %v562_v0 = vld [vmem:[#allocation5 + $0xb80] sm:$0xff]  ;;  %v12641_v3 = vcombine.high %v554_v54, %v558_v55  ;;  %v12640_v6 = vcombine.low %v554_v54, %v558_v55  ;;  %v359_v59 = vld [vmem:[#allocation5 + $0x528] sm:$0xff] }
 0x125   :  { %3101 = vmatpush1.bf16.msra.mxu1 %v12330_v8  ;;  %v566_v1 = vld [vmem:[#allocation5 + $0xba0] sm:$0xff]  ;;  %v363_v2 = vld [vmem:[#allocation5 + $0x548] sm:$0xff] }
 0x126   :  { %3102 = vmatprep.subr.bf16.mxu1 %v12339_v10  ;;  %v570_v8 = vld [vmem:[#allocation5 + $0xbc0] sm:$0xff]  ;;  %v315_v10 = vld [vmem:[#allocation5 + $0x3c8] sm:$0xff]  ;;  %v12649_v11 = vcombine.high %v562_v0, %v566_v1 }
 0x127   :  { %3019 = vmatpush1.bf16.msra.mxu0 %v12584_v9  ;;  %v574_v9 = vld [vmem:[#allocation5 + $0xbe0] sm:$0xff]  ;;  %v12403_v15 = vcombine.high %v315_v10, %v319_v12  ;;  %v367_v4 = vld [vmem:[#allocation5 + $0x568] sm:$0xff] }
 0x128   :  { %3020 = vmatprep.subr.bf16.mxu0 %v12593_v14  ;;  %v12648_v14 = vcombine.low %v562_v0, %v566_v1  ;;  %v12657_v20 = vcombine.high %v570_v8, %v574_v9  ;;  %v12656_v25 = vcombine.low %v570_v8, %v574_v9  ;;  %v598_v38 = vld [vmem:[#allocation5 + $0xca0] sm:$0xff] }
 0x129   :  { %3103 = vmatpush1.bf16.msra.mxu1 %v12338_v17  ;;  %v578_v17 = vld [vmem:[#allocation5 + $0xc00] sm:$0xff] }
 0x12a   :  { %3104 = vmatprep.subr.bf16.mxu1 %v12347_v19  ;;  %v323_v19 = vld [vmem:[#allocation5 + $0x408] sm:$0xff]  ;;  %v606_v46 = vld [vmem:[#allocation5 + $0xce0] sm:$0xff] }
 0x12b   :  { %3021 = vmatpush1.bf16.msra.mxu0 %v12592_v18  ;;  %v582_v18 = vld [vmem:[#allocation5 + $0xc20] sm:$0xff] }
 0x12c   :  { %3022 = vmatprep.subr.bf16.mxu0 %v12601_v24  ;;  %v12402_v24 = vcombine.low %v315_v10, %v319_v12  ;;  %v12665_v31 = vcombine.high %v578_v17, %v582_v18  ;;  %v610_v54 = vld [vmem:[#allocation5 + $0xd00] sm:$0xff]  ;;  %v371_v10 = vld [vmem:[#allocation5 + $0x588] sm:$0xff] }
 0x12d   :  { %3105 = vmatpush1.bf16.msra.mxu1 %v12346_v26  ;;  %v12411_v26 = vcombine.high %v323_v19, %v327_v22  ;;  %v614_v55 = vld [vmem:[#allocation5 + $0xd20] sm:$0xff]  ;;  %v375_v12 = vld [vmem:[#allocation5 + $0x5a8] sm:$0xff] }
 0x12e   :  { %3106 = vmatprep.subr.bf16.mxu1 %v12355_v29  ;;  %v590_v29 = vld [vmem:[#allocation5 + $0xc60] sm:$0xff]  ;;  %v12458_v23 = vcombine.low %v371_v10, %v375_v12 }
 0x12f   :  { %3023 = vmatpush1.bf16.msra.mxu0 %v12600_v28  ;;  %v586_v28 = vld [vmem:[#allocation5 + $0xc40] sm:$0xff] }
 0x130   :  { %3024 = vmatprep.subr.bf16.mxu0 %v12609_v33  ;;  %v12410_v33 = vcombine.low %v323_v19, %v327_v22  ;;  %v12673_v40 = vcombine.high %v586_v28, %v590_v29  ;;  %v618_v0 = vld [vmem:[#allocation5 + $0xd40] sm:$0xff]  ;;  %v383_v22 = vld [vmem:[#allocation5 + $0x5e8] sm:$0xff] }
 0x131   :  { %3107 = vmatpush1.bf16.msra.mxu1 %v12354_v35  ;;  %v12664_v35 = vcombine.low %v578_v17, %v582_v18  ;;  %v622_v1 = vld [vmem:[#allocation5 + $0xd60] sm:$0xff] }
 0x132   :  { %3108 = vmatprep.subr.bf16.mxu1 %v12363_v37  ;;  %v594_v37 = vld [vmem:[#allocation5 + $0xc80] sm:$0xff] }
 0x133   :  { %3025 = vmatpush1.bf16.msra.mxu0 %v12608_v36  ;;  %v12419_v36 = vcombine.high %v331_v30, %v335_v32  ;;  %v12681_v48 = vcombine.high %v594_v37, %v598_v38  ;;  %v626_v8 = vld [vmem:[#allocation5 + $0xd80] sm:$0xff]  ;;  %v186_v32 = vld [vmem:[#allocation2 + $0x30] sm:$0xff] }
 0x134   :  { %3026 = vmatprep.subr.bf16.mxu0 %v12617_v41  ;;  %v343_v41 = vld [vmem:[#allocation5 + $0x4a8] sm:$0xff]  ;;  %v630_v9 = vld [vmem:[#allocation5 + $0xda0] sm:$0xff] }
 0x135   :  { %3109 = vmatpush1.bf16.msra.mxu1 %v12362_v43  ;;  %v12672_v43 = vcombine.low %v586_v28, %v590_v29  ;;  %v634_v17 = vld [vmem:[#allocation5 + $0xdc0] sm:$0xff]  ;;  %v12713_v19 = vcombine.high %v626_v8, %v630_v9  ;;  %v391_v28 = vld [vmem:[#allocation5 + $0x628] sm:$0xff]  ;;  %v196_v29 = vld [vmem:[#allocation5 + $0x10] sm:$0xff] }
 0x136   :  { %3110 = vmatprep.subr.bf16.mxu1 %v12371_v45  ;;  %v602_v45 = vld [vmem:[#allocation5 + $0xcc0] sm:$0xff] }
 0x137   :  { %3027 = vmatpush1.bf16.msra.mxu0 %v12616_v44  ;;  %v12427_v44 = vcombine.high %v339_v39, %v343_v41  ;;  %v638_v18 = vld [vmem:[#allocation5 + $0xde0] sm:$0xff] }
 0x138   :  { %3028 = vmatprep.subr.bf16.mxu0 %v12625_v49  ;;  %v351_v49 = vld [vmem:[#allocation5 + $0x4e8] sm:$0xff]  ;;  %v12721_v30 = vcombine.high %v634_v17, %v638_v18 }
 0x139   :  { %3111 = vmatpush1.bf16.msra.mxu1 %v12370_v51  ;;  %v12426_v51 = vcombine.low %v339_v39, %v343_v41  ;;  %v204_v39 = vld [vmem:[#allocation5 + $0x50] sm:$0xff] }
 0x13a   :  { %3112 = vmatprep.subr.bf16.mxu1 %v12379_v53  ;;  %v12435_v53 = vcombine.high %v347_v47, %v351_v49  ;;  %v208_v41 = vld [vmem:[#allocation5 + $0x70] sm:$0xff] }
 0x13b   :  { %3029 = vmatpush1.bf16.msra.mxu0 %v12624_v52  ;;  %v12680_v52 = vcombine.low %v594_v37, %v598_v38  ;;  %v395_v37 = vld [vmem:[#allocation5 + $0x648] sm:$0xff] }
 0x13c   :  { %3030 = vmatprep.subr.bf16.mxu0 %v12633_v58  ;;  %v12689_v58 = vcombine.high %v602_v45, %v606_v46  ;;  %v399_v38 = vld [vmem:[#allocation5 + $0x668] sm:$0xff] }
 0x13d   :  { %3113 = vmatpush1.bf16.msra.mxu1 %v12378_v60  ;;  %v12434_v60 = vcombine.low %v347_v47, %v351_v49  ;;  %v407_v47 = vld [vmem:[#allocation5 + $0x6a8] sm:$0xff]  ;;  %v12293_v49 = vcombine.high %v204_v39, %v208_v41 }
 0x13e   :  { %3114 = vmatprep.subr.bf16.mxu1 %v12387_v63  ;;  %v12443_v63 = vcombine.high %v355_v56, %v359_v59 }
 0x13f   :  { %3031 = vmatpush1.bf16.msra.mxu0 %v12632_v62  ;;  %v12688_v62 = vcombine.low %v602_v45, %v606_v46  ;;  %v12483_v45 = vcombine.high %v395_v37, %v399_v38  ;;  %v403_v46 = vld [vmem:[#allocation5 + $0x688] sm:$0xff] }
 0x140   :  { %3032 = vmatprep.subr.bf16.mxu0 %v12641_v3  ;;  %v12697_v3 = vcombine.high %v610_v54, %v614_v55 }
 0x141   :  { %3115 = vmatpush1.bf16.msra.mxu1 %v12386_v5  ;;  %v12442_v5 = vcombine.low %v355_v56, %v359_v59  ;;  %v415_v56 = vld [vmem:[#allocation5 + $0x6e8] sm:$0xff] }
 0x142   :  { %3116 = vmatprep.subr.bf16.mxu1 %v12395_v7  ;;  %v12451_v7 = vcombine.high %v363_v2, %v367_v4 }
 0x143   :  { %3033 = vmatpush1.bf16.msra.mxu0 %v12640_v6  ;;  %v12696_v6 = vcombine.low %v610_v54, %v614_v55  ;;  %v12491_v54 = vcombine.high %v403_v46, %v407_v47  ;;  %v411_v55 = vld [vmem:[#allocation5 + $0x6c8] sm:$0xff] }
 0x144   :  { %3034 = vmatprep.subr.bf16.mxu0 %v12649_v11  ;;  %v12705_v11 = vcombine.high %v618_v0, %v622_v1 }
 0x145   :  { %3117 = vmatpush1.bf16.msra.mxu1 %v12394_v13  ;;  %v12450_v13 = vcombine.low %v363_v2, %v367_v4  ;;  %v423_v2 = vld [vmem:[#allocation5 + $0x728] sm:$0xff] }
 0x146   :  { %3118 = vmatprep.subr.bf16.mxu1 %v12403_v15  ;;  %v12459_v15 = vcombine.high %v371_v10, %v375_v12  ;;  %v431_v10 = vld [vmem:[#allocation5 + $0x768] sm:$0xff] }
 0x147   :  { %3035 = vmatpush1.bf16.msra.mxu0 %v12648_v14  ;;  %v12704_v14 = vcombine.low %v618_v0, %v622_v1  ;;  %v12499_v0 = vcombine.high %v411_v55, %v415_v56  ;;  %v419_v1 = vld [vmem:[#allocation5 + $0x708] sm:$0xff] }
 0x148   :  { %3036 = vmatprep.subr.bf16.mxu0 %v12657_v20  ;;  %v379_v20 = vld [vmem:[#allocation5 + $0x5c8] sm:$0xff] }
 0x149   :  { %3119 = vmatpush1.bf16.msra.mxu1 %v12402_v24  ;;  %v12712_v24 = vcombine.low %v626_v8, %v630_v9  ;;  %v12507_v8 = vcombine.high %v419_v1, %v423_v2  ;;  %v427_v9 = vld [vmem:[#allocation5 + $0x748] sm:$0xff] }
 0x14a   :  { %3129 = vmatprep.subr.bf16.mxu1 %v12411_v26  ;;  %v387_v26 = vld [vmem:[#allocation5 + $0x608] sm:$0xff] }
 0x14b   :  { %3037 = vmatpush1.bf16.msra.mxu0 %v12656_v25  ;;  %v12467_v25 = vcombine.high %v379_v20, %v383_v22 }
 0x14c   :  { %3047 = vmatprep.subr.bf16.mxu0 %v12665_v31  ;;  %3121 = vmatmul.mubr.bf16.vlgmr.msra.gmra.mrb[4].mxu1 %v15444_v16  ;;  %v200_v31 = vld [vmem:[#allocation5 + $0x30] sm:$0xff] }
 0x14d   :  { %3130 = vmatpush1.bf16.msra.mxu1 %v12410_v33  ;;  %3161 = vmatprep.mubr.bf16.mxu1 %v15440_v61  ;;  %v12466_v33 = vcombine.low %v379_v20, %v383_v22  ;;  %v244_v20 = vld [vmem:[#allocation5 + $0x190] sm:$0xff] }
 0x14e   :  { %3039 = vmatmul.mubr.bf16.vlgmr.msra.gmra.mrb[0].mxu0 %v15454_v34  ;;  %3131 = vmatprep.subr.bf16.mxu1 %v12419_v36  ;;  %v12475_v36 = vcombine.high %v387_v26, %v391_v28 }
 0x14f   :  { %3048 = vmatpush1.bf16.msra.mxu0 %v12664_v35  ;;  %3079 = vmatprep.mubr.bf16.mxu0 %v15229_v50  ;;  %v12720_v35 = vcombine.low %v634_v17, %v638_v18  ;;  %v12515_v17 = vcombine.high %v427_v9, %v431_v10  ;;  %v435_v18 = vld [vmem:[#allocation5 + $0x788] sm:$0xff] }
 0x150   :  { %3049 = vmatprep.subr.bf16.mxu0 %v12673_v40  ;;  %v12285_v40 = vcombine.high %v196_v29, %v200_v31 }
 0x151   :  { %3132 = vmatpush1.bf16.msra.mxu1 %v12418_v42  ;;  %v15460_v42 = vpack.c.bf16 %v186_v32, %v186_v32  ;;  %v256_v32 = vld [vmem:[#allocation5 + $0x1f0] sm:$0xff] }
 0x152   :  { %3133 = vmatprep.subr.bf16.mxu1 %v12427_v44  ;;  %v12284_v44 = vcombine.low %v196_v29, %v200_v31  ;;  %v447_v29 = vld [vmem:[#allocation5 + $0x7e8] sm:$0xff] }
 0x153   :  { %3050 = vmatpush1.bf16.msra.mxu0 %v12672_v43  ;;  %v12474_v43 = vcombine.low %v387_v26, %v391_v28  ;;  %v443_v28 = vld [vmem:[#allocation5 + $0x7c8] sm:$0xff] }
 0x154   :  { %3051 = vmatprep.subr.bf16.mxu0 %v12681_v48  ;;  %v212_v48 = vld [vmem:[#allocation5 + $0x90] sm:$0xff] }
 0x155   :  { %3134 = vmatpush1.bf16.msra.mxu1 %v12426_v51  ;;  %v216_v51 = vld [vmem:[#allocation5 + $0xb0] sm:$0xff] }
 0x156   :  { %3135 = vmatprep.subr.bf16.mxu1 %v12435_v53  ;;  %v12292_v53 = vcombine.low %v204_v39, %v208_v41  ;;  %v12301_v59 = vcombine.high %v212_v48, %v216_v51  ;;  %v260_v39 = vld [vmem:[#allocation5 + $0x210] sm:$0xff] }
 0x157   :  { %3052 = vmatpush1.bf16.msra.mxu0 %v12680_v52  ;;  %v12482_v52 = vcombine.low %v395_v37, %v399_v38  ;;  %v451_v37 = vld [vmem:[#allocation5 + $0x808] sm:$0xff]  ;;  %v264_v41 = vld [vmem:[#allocation5 + $0x230] sm:$0xff] }
 0x158   :  { %3053 = vmatprep.subr.bf16.mxu0 %v12689_v58  ;;  %v220_v58 = vld [vmem:[#allocation5 + $0xd0] sm:$0xff]  ;;  %v455_v38 = vld [vmem:[#allocation5 + $0x828] sm:$0xff] }
 0x159   :  { %3136 = vmatpush1.bf16.msra.mxu1 %v12434_v60  ;;  %v224_v60 = vld [vmem:[#allocation5 + $0xf0] sm:$0xff] }
 0x15a   :  { %3137 = vmatprep.subr.bf16.mxu1 %v12443_v63  ;;  %v12300_v63 = vcombine.low %v212_v48, %v216_v51  ;;  %v12309_v4 = vcombine.high %v220_v58, %v224_v60  ;;  %v268_v48 = vld [vmem:[#allocation5 + $0x250] sm:$0xff] }
 0x15b   :  { %3054 = vmatpush1.bf16.msra.mxu0 %v12688_v62  ;;  %v12490_v62 = vcombine.low %v403_v46, %v407_v47  ;;  %v459_v46 = vld [vmem:[#allocation5 + $0x848] sm:$0xff]  ;;  %v272_v51 = vld [vmem:[#allocation5 + $0x270] sm:$0xff] }
 0x15c   :  { %3055 = vmatprep.subr.bf16.mxu0 %v12697_v3  ;;  %v228_v3 = vld [vmem:[#allocation5 + $0x110] sm:$0xff]  ;;  %v463_v47 = vld [vmem:[#allocation5 + $0x868] sm:$0xff] }
 0x15d   :  { %3138 = vmatpush1.bf16.msra.mxu1 %v12442_v5  ;;  %v232_v5 = vld [vmem:[#allocation5 + $0x130] sm:$0xff] }
 0x15e   :  { %3139 = vmatprep.subr.bf16.mxu1 %v12451_v7  ;;  %v12308_v7 = vcombine.low %v220_v58, %v224_v60  ;;  %v12317_v12 = vcombine.high %v228_v3, %v232_v5  ;;  %v276_v58 = vld [vmem:[#allocation5 + $0x290] sm:$0xff] }
 0x15f   :  { %3056 = vmatpush1.bf16.msra.mxu0 %v12696_v6  ;;  %v12498_v6 = vcombine.low %v411_v55, %v415_v56  ;;  %v467_v55 = vld [vmem:[#allocation5 + $0x888] sm:$0xff]  ;;  %v280_v60 = vld [vmem:[#allocation5 + $0x2b0] sm:$0xff] }
 0x160   :  { %3057 = vmatprep.subr.bf16.mxu0 %v12705_v11  ;;  %v236_v11 = vld [vmem:[#allocation5 + $0x150] sm:$0xff]  ;;  %v471_v56 = vld [vmem:[#allocation5 + $0x8a8] sm:$0xff] }
 0x161   :  { %3140 = vmatpush1.bf16.msra.mxu1 %v12450_v13  ;;  %v240_v13 = vld [vmem:[#allocation5 + $0x170] sm:$0xff] }
 0x162   :  { %3141 = vmatprep.subr.bf16.mxu1 %v12459_v15  ;;  %v12316_v15 = vcombine.low %v228_v3, %v232_v5  ;;  %v12325_v22 = vcombine.high %v236_v11, %v240_v13  ;;  %v284_v3 = vld [vmem:[#allocation5 + $0x2d0] sm:$0xff] }
 0x163   :  { %3058 = vmatpush1.bf16.msra.mxu0 %v12704_v14  ;;  %v12506_v14 = vcombine.low %v419_v1, %v423_v2  ;;  %v475_v1 = vld [vmem:[#allocation5 + $0x8c8] sm:$0xff]  ;;  %v288_v5 = vld [vmem:[#allocation5 + $0x2f0] sm:$0xff] }
 0x164   :  { %3059 = vmatprep.subr.bf16.mxu0 %v12713_v19  ;;  %v439_v19 = vld [vmem:[#allocation5 + $0x7a8] sm:$0xff] }
 0x165   :  { %3142 = vmatpush1.bf16.msra.mxu1 %v12458_v23  ;;  %v248_v23 = vld [vmem:[#allocation5 + $0x1b0] sm:$0xff]  ;;  %v12523_v26 = vcombine.high %v435_v18, %v439_v19  ;;  %v479_v2 = vld [vmem:[#allocation5 + $0x8e8] sm:$0xff] }
 0x166   :  { %3143 = vmatprep.subr.bf16.mxu1 %v12467_v25  ;;  %v12324_v25 = vcombine.low %v236_v11, %v240_v13  ;;  %v12333_v31 = vcombine.high %v244_v20, %v248_v23  ;;  %v292_v11 = vld [vmem:[#allocation5 + $0x310] sm:$0xff] }
 0x167   :  { %3060 = vmatpush1.bf16.msra.mxu0 %v12712_v24  ;;  %v12514_v24 = vcombine.low %v427_v9, %v431_v10  ;;  %v483_v9 = vld [vmem:[#allocation5 + $0x908] sm:$0xff]  ;;  %v296_v13 = vld [vmem:[#allocation5 + $0x330] sm:$0xff] }
 0x168   :  { %3061 = vmatprep.subr.bf16.mxu0 %v12721_v30  ;;  %v252_v30 = vld [vmem:[#allocation5 + $0x1d0] sm:$0xff]  ;;  %v487_v10 = vld [vmem:[#allocation5 + $0x928] sm:$0xff] }
 0x169   :  { %3144 = vmatpush1.bf16.msra.mxu1 %v12466_v33  ;;  %v12522_v33 = vcombine.low %v435_v18, %v439_v19  ;;  %v491_v18 = vld [vmem:[#allocation5 + $0x948] sm:$0xff] }
 0x16a   :  { %3145 = vmatprep.subr.bf16.mxu1 %v12475_v36  ;;  %v12531_v36 = vcombine.high %v443_v28, %v447_v29  ;;  %v495_v19 = vld [vmem:[#allocation5 + $0x968] sm:$0xff] }
 0x16b   :  { %3062 = vmatpush1.bf16.msra.mxu0 %v12720_v35  ;;  %v12332_v35 = vcombine.low %v244_v20, %v248_v23  ;;  %v300_v20 = vld [vmem:[#allocation5 + $0x350] sm:$0xff] }
 0x16c   :  { %3252 = vmatprep.subr.bf16.mxu0 %v12285_v40  ;;  %v12341_v40 = vcombine.high %v252_v30, %v256_v32  ;;  %v304_v23 = vld [vmem:[#allocation5 + $0x370] sm:$0xff] }
 0x16d   :  { %3146 = vmatpush1.bf16.msra.mxu1 %v12474_v43  ;;  %v12530_v43 = vcombine.low %v443_v28, %v447_v29  ;;  %v499_v28 = vld [vmem:[#allocation5 + $0x988] sm:$0xff] }
 0x16e   :  { %3080 = vmatmul.mubr.bf16.vlgmr.msra.gmra.mrb[0].mxu0 %v15460_v42  ;;  %3147 = vmatprep.subr.bf16.mxu1 %v12483_v45  ;;  %v12539_v45 = vcombine.high %v451_v37, %v455_v38  ;;  %v503_v29 = vld [vmem:[#allocation5 + $0x9a8] sm:$0xff] }
 0x16f   :  { %3253 = vmatpush1.bf16.msra.mxu0 %v12284_v44  ;;  %3284 = vmatprep.mubr.bf16.mxu0 %v15438_v57  ;;  %v12340_v44 = vcombine.low %v252_v30, %v256_v32  ;;  %v308_v30 = vld [vmem:[#allocation5 + $0x390] sm:$0xff] }
 0x170   :  { %3254 = vmatprep.subr.bf16.mxu0 %v12293_v49  ;;  %v12349_v49 = vcombine.high %v260_v39, %v264_v41  ;;  %v312_v32 = vld [vmem:[#allocation5 + $0x3b0] sm:$0xff] }
 0x171   :  { %3148 = vmatpush1.bf16.msra.mxu1 %v12482_v52  ;;  %v12538_v52 = vcombine.low %v451_v37, %v455_v38  ;;  %v507_v37 = vld [vmem:[#allocation5 + $0x9c8] sm:$0xff] }
 0x172   :  { %3149 = vmatprep.subr.bf16.mxu1 %v12491_v54  ;;  %v12547_v54 = vcombine.high %v459_v46, %v463_v47  ;;  %v511_v38 = vld [vmem:[#allocation5 + $0x9e8] sm:$0xff] }
 0x173   :  { %3255 = vmatpush1.bf16.msra.mxu0 %v12292_v53  ;;  %v12348_v53 = vcombine.low %v260_v39, %v264_v41  ;;  %v316_v39 = vld [vmem:[#allocation5 + $0x3d0] sm:$0xff] }
 0x174   :  { %3256 = vmatprep.subr.bf16.mxu0 %v12301_v59  ;;  %v12357_v59 = vcombine.high %v268_v48, %v272_v51  ;;  %v320_v41 = vld [vmem:[#allocation5 + $0x3f0] sm:$0xff] }
 0x175   :  { %3150 = vmatpush1.bf16.msra.mxu1 %v12490_v62  ;;  %v12546_v62 = vcombine.low %v459_v46, %v463_v47  ;;  %v515_v46 = vld [vmem:[#allocation5 + $0xa08] sm:$0xff] }
 0x176   :  { %3151 = vmatprep.subr.bf16.mxu1 %v12499_v0  ;;  %v12555_v0 = vcombine.high %v467_v55, %v471_v56  ;;  %v519_v47 = vld [vmem:[#allocation5 + $0xa28] sm:$0xff] }
 0x177   :  { %3257 = vmatpush1.bf16.msra.mxu0 %v12300_v63  ;;  %v12356_v63 = vcombine.low %v268_v48, %v272_v51  ;;  %v324_v48 = vld [vmem:[#allocation5 + $0x410] sm:$0xff] }
 0x178   :  { %3258 = vmatprep.subr.bf16.mxu0 %v12309_v4  ;;  %v12365_v4 = vcombine.high %v276_v58, %v280_v60  ;;  %v328_v51 = vld [vmem:[#allocation5 + $0x430] sm:$0xff] }
 0x179   :  { %3152 = vmatpush1.bf16.msra.mxu1 %v12498_v6  ;;  %v12554_v6 = vcombine.low %v467_v55, %v471_v56  ;;  %v523_v55 = vld [vmem:[#allocation5 + $0xa48] sm:$0xff] }
 0x17a   :  { %3153 = vmatprep.subr.bf16.mxu1 %v12507_v8  ;;  %v12563_v8 = vcombine.high %v475_v1, %v479_v2  ;;  %v527_v56 = vld [vmem:[#allocation5 + $0xa68] sm:$0xff] }
 0x17b   :  { %3259 = vmatpush1.bf16.msra.mxu0 %v12308_v7  ;;  %v12364_v7 = vcombine.low %v276_v58, %v280_v60  ;;  %v332_v58 = vld [vmem:[#allocation5 + $0x450] sm:$0xff] }
 0x17c   :  { %3260 = vmatprep.subr.bf16.mxu0 %v12317_v12  ;;  %v12373_v12 = vcombine.high %v284_v3, %v288_v5  ;;  %v336_v60 = vld [vmem:[#allocation5 + $0x470] sm:$0xff] }
 0x17d   :  { %3154 = vmatpush1.bf16.msra.mxu1 %v12506_v14  ;;  %v12562_v14 = vcombine.low %v475_v1, %v479_v2  ;;  %v531_v1 = vld [vmem:[#allocation5 + $0xa88] sm:$0xff] }
 0x17e   :  { %3155 = vmatprep.subr.bf16.mxu1 %v12515_v17  ;;  %v12571_v17 = vcombine.high %v483_v9, %v487_v10  ;;  %v535_v2 = vld [vmem:[#allocation5 + $0xaa8] sm:$0xff] }
 0x17f   :  { %3261 = vmatpush1.bf16.msra.mxu0 %v12316_v15  ;;  %v12372_v15 = vcombine.low %v284_v3, %v288_v5  ;;  %v340_v3 = vld [vmem:[#allocation5 + $0x490] sm:$0xff] }
 0x180   :  { %3262 = vmatprep.subr.bf16.mxu0 %v12325_v22  ;;  %v12381_v22 = vcombine.high %v292_v11, %v296_v13  ;;  %v344_v5 = vld [vmem:[#allocation5 + $0x4b0] sm:$0xff] }
 0x181   :  { %3156 = vmatpush1.bf16.msra.mxu1 %v12514_v24  ;;  %v12570_v24 = vcombine.low %v483_v9, %v487_v10  ;;  %v539_v9 = vld [vmem:[#allocation5 + $0xac8] sm:$0xff] }
 0x182   :  { %3157 = vmatprep.subr.bf16.mxu1 %v12523_v26  ;;  %v12579_v26 = vcombine.high %v491_v18, %v495_v19  ;;  %v543_v10 = vld [vmem:[#allocation5 + $0xae8] sm:$0xff] }
 0x183   :  { %3263 = vmatpush1.bf16.msra.mxu0 %v12324_v25  ;;  %v12380_v25 = vcombine.low %v292_v11, %v296_v13  ;;  %v348_v11 = vld [vmem:[#allocation5 + $0x4d0] sm:$0xff] }
 0x184   :  { %3264 = vmatprep.subr.bf16.mxu0 %v12333_v31  ;;  %v12389_v31 = vcombine.high %v300_v20, %v304_v23  ;;  %v352_v13 = vld [vmem:[#allocation5 + $0x4f0] sm:$0xff] }
 0x185   :  { %3158 = vmatpush1.bf16.msra.mxu1 %v12522_v33  ;;  %v12578_v33 = vcombine.low %v491_v18, %v495_v19  ;;  %v547_v18 = vld [vmem:[#allocation5 + $0xb08] sm:$0xff] }
 0x186   :  { %3159 = vmatprep.subr.bf16.mxu1 %v12531_v36  ;;  %v12587_v36 = vcombine.high %v499_v28, %v503_v29  ;;  %v551_v19 = vld [vmem:[#allocation5 + $0xb28] sm:$0xff] }
 0x187   :  { %3265 = vmatpush1.bf16.msra.mxu0 %v12332_v35  ;;  %v12388_v35 = vcombine.low %v300_v20, %v304_v23  ;;  %v356_v20 = vld [vmem:[#allocation5 + $0x510] sm:$0xff] }
 0x188   :  { %3266 = vmatprep.subr.bf16.mxu0 %v12341_v40  ;;  %v12397_v40 = vcombine.high %v308_v30, %v312_v32  ;;  %v360_v23 = vld [vmem:[#allocation5 + $0x530] sm:$0xff] }
 0x189   :  { %3160 = vmatpush1.bf16.msra.mxu1 %v12530_v43  ;;  %v12586_v43 = vcombine.low %v499_v28, %v503_v29  ;;  %v555_v28 = vld [vmem:[#allocation5 + $0xb48] sm:$0xff] }
 0x18a   :  { %3170 = vmatprep.subr.bf16.mxu1 %v12539_v45  ;;  %v12595_v45 = vcombine.high %v507_v37, %v511_v38  ;;  %v559_v29 = vld [vmem:[#allocation5 + $0xb68] sm:$0xff] }
 0x18b   :  { %3267 = vmatpush1.bf16.msra.mxu0 %v12340_v44  ;;  %v12396_v44 = vcombine.low %v308_v30, %v312_v32  ;;  %v364_v30 = vld [vmem:[#allocation5 + $0x550] sm:$0xff] }
 0x18c   :  { %3268 = vmatprep.subr.bf16.mxu0 %v12349_v49  ;;  %3162 = vmatmul.mubr.bf16.vlgmr.msra.gmra.mrb[4].mxu1 %v15446_v21  ;;  %v12405_v49 = vcombine.high %v316_v39, %v320_v41  ;;  %v368_v32 = vld [vmem:[#allocation5 + $0x570] sm:$0xff] }
 0x18d   :  { %3171 = vmatpush1.bf16.msra.mxu1 %v12538_v52  ;;  %3202 = vmatprep.mubr.bf16.mxu1 %v15448_v27  ;;  %v12594_v52 = vcombine.low %v507_v37, %v511_v38  ;;  %v563_v37 = vld [vmem:[#allocation5 + $0xb88] sm:$0xff] }
 0x18e   :  { %3172 = vmatprep.subr.bf16.mxu1 %v12547_v54  ;;  %v12603_v54 = vcombine.high %v515_v46, %v519_v47  ;;  %v567_v38 = vld [vmem:[#allocation5 + $0xba8] sm:$0xff] }
 0x18f   :  { %3269 = vmatpush1.bf16.msra.mxu0 %v12348_v53  ;;  %v12404_v53 = vcombine.low %v316_v39, %v320_v41  ;;  %v372_v39 = vld [vmem:[#allocation5 + $0x590] sm:$0xff] }
 0x190   :  { %3270 = vmatprep.subr.bf16.mxu0 %v12357_v59  ;;  %v12413_v59 = vcombine.high %v324_v48, %v328_v51  ;;  %v376_v41 = vld [vmem:[#allocation5 + $0x5b0] sm:$0xff] }
 0x191   :  { %3173 = vmatpush1.bf16.msra.mxu1 %v12546_v62  ;;  %v12602_v62 = vcombine.low %v515_v46, %v519_v47  ;;  %v571_v46 = vld [vmem:[#allocation5 + $0xbc8] sm:$0xff] }
 0x192   :  { %3174 = vmatprep.subr.bf16.mxu1 %v12555_v0  ;;  %v12611_v0 = vcombine.high %v523_v55, %v527_v56  ;;  %v575_v47 = vld [vmem:[#allocation5 + $0xbe8] sm:$0xff] }
 0x193   :  { %3271 = vmatpush1.bf16.msra.mxu0 %v12356_v63  ;;  %v12412_v63 = vcombine.low %v324_v48, %v328_v51  ;;  %v380_v48 = vld [vmem:[#allocation5 + $0x5d0] sm:$0xff] }
 0x194   :  { %3272 = vmatprep.subr.bf16.mxu0 %v12365_v4  ;;  %v12421_v4 = vcombine.high %v332_v58, %v336_v60  ;;  %v384_v51 = vld [vmem:[#allocation5 + $0x5f0] sm:$0xff] }
 0x195   :  { %3175 = vmatpush1.bf16.msra.mxu1 %v12554_v6  ;;  %v12610_v6 = vcombine.low %v523_v55, %v527_v56  ;;  %v579_v55 = vld [vmem:[#allocation5 + $0xc08] sm:$0xff] }
 0x196   :  { %3176 = vmatprep.subr.bf16.mxu1 %v12563_v8  ;;  %v12619_v8 = vcombine.high %v531_v1, %v535_v2  ;;  %v583_v56 = vld [vmem:[#allocation5 + $0xc28] sm:$0xff] }
 0x197   :  { %3273 = vmatpush1.bf16.msra.mxu0 %v12364_v7  ;;  %v12420_v7 = vcombine.low %v332_v58, %v336_v60  ;;  %v388_v58 = vld [vmem:[#allocation5 + $0x610] sm:$0xff] }
 0x198   :  { %3274 = vmatprep.subr.bf16.mxu0 %v12373_v12  ;;  %v12429_v12 = vcombine.high %v340_v3, %v344_v5  ;;  %v392_v60 = vld [vmem:[#allocation5 + $0x630] sm:$0xff] }
 0x199   :  { %3177 = vmatpush1.bf16.msra.mxu1 %v12562_v14  ;;  %v12618_v14 = vcombine.low %v531_v1, %v535_v2  ;;  %v587_v1 = vld [vmem:[#allocation5 + $0xc48] sm:$0xff] }
 0x19a   :  { %3178 = vmatprep.subr.bf16.mxu1 %v12571_v17  ;;  %v12627_v17 = vcombine.high %v539_v9, %v543_v10  ;;  %v591_v2 = vld [vmem:[#allocation5 + $0xc68] sm:$0xff] }
 0x19b   :  { %3275 = vmatpush1.bf16.msra.mxu0 %v12372_v15  ;;  %v12428_v15 = vcombine.low %v340_v3, %v344_v5  ;;  %v396_v3 = vld [vmem:[#allocation5 + $0x650] sm:$0xff] }
 0x19c   :  { %3276 = vmatprep.subr.bf16.mxu0 %v12381_v22  ;;  %v12437_v22 = vcombine.high %v348_v11, %v352_v13  ;;  %v400_v5 = vld [vmem:[#allocation5 + $0x670] sm:$0xff] }
 0x19d   :  { %3179 = vmatpush1.bf16.msra.mxu1 %v12570_v24  ;;  %v12626_v24 = vcombine.low %v539_v9, %v543_v10  ;;  %v595_v9 = vld [vmem:[#allocation5 + $0xc88] sm:$0xff] }
 0x19e   :  { %3180 = vmatprep.subr.bf16.mxu1 %v12579_v26  ;;  %v12635_v26 = vcombine.high %v547_v18, %v551_v19  ;;  %v599_v10 = vld [vmem:[#allocation5 + $0xca8] sm:$0xff] }
 0x19f   :  { %3277 = vmatpush1.bf16.msra.mxu0 %v12380_v25  ;;  %v12436_v25 = vcombine.low %v348_v11, %v352_v13  ;;  %v404_v11 = vld [vmem:[#allocation5 + $0x690] sm:$0xff] }
 0x1a0   :  { %3278 = vmatprep.subr.bf16.mxu0 %v12389_v31  ;;  %v12445_v31 = vcombine.high %v356_v20, %v360_v23  ;;  %v408_v13 = vld [vmem:[#allocation5 + $0x6b0] sm:$0xff] }
 0x1a1   :  { %3181 = vmatpush1.bf16.msra.mxu1 %v12578_v33  ;;  %v12634_v33 = vcombine.low %v547_v18, %v551_v19  ;;  %v603_v18 = vld [vmem:[#allocation5 + $0xcc8] sm:$0xff] }
 0x1a2   :  { %3182 = vmatprep.subr.bf16.mxu1 %v12587_v36  ;;  %v12643_v36 = vcombine.high %v555_v28, %v559_v29  ;;  %v607_v19 = vld [vmem:[#allocation5 + $0xce8] sm:$0xff] }
 0x1a3   :  { %3279 = vmatpush1.bf16.msra.mxu0 %v12388_v35  ;;  %v12444_v35 = vcombine.low %v356_v20, %v360_v23  ;;  %v412_v20 = vld [vmem:[#allocation5 + $0x6d0] sm:$0xff] }
 0x1a4   :  { %3280 = vmatprep.subr.bf16.mxu0 %v12397_v40  ;;  %v12453_v40 = vcombine.high %v364_v30, %v368_v32  ;;  %v416_v23 = vld [vmem:[#allocation5 + $0x6f0] sm:$0xff] }
 0x1a5   :  { %3183 = vmatpush1.bf16.msra.mxu1 %v12586_v43  ;;  %v12642_v43 = vcombine.low %v555_v28, %v559_v29  ;;  %v611_v28 = vld [vmem:[#allocation5 + $0xd08] sm:$0xff] }
 0x1a6   :  { %3184 = vmatprep.subr.bf16.mxu1 %v12595_v45  ;;  %v12651_v45 = vcombine.high %v563_v37, %v567_v38  ;;  %v615_v29 = vld [vmem:[#allocation5 + $0xd28] sm:$0xff] }
 0x1a7   :  { %3281 = vmatpush1.bf16.msra.mxu0 %v12396_v44  ;;  %v12452_v44 = vcombine.low %v364_v30, %v368_v32  ;;  %v420_v30 = vld [vmem:[#allocation5 + $0x710] sm:$0xff] }
 0x1a8   :  { %3282 = vmatprep.subr.bf16.mxu0 %v12405_v49  ;;  %v12461_v49 = vcombine.high %v372_v39, %v376_v41  ;;  %v424_v32 = vld [vmem:[#allocation5 + $0x730] sm:$0xff] }
 0x1a9   :  { %3185 = vmatpush1.bf16.msra.mxu1 %v12594_v52  ;;  %v12650_v52 = vcombine.low %v563_v37, %v567_v38  ;;  %v619_v37 = vld [vmem:[#allocation5 + $0xd48] sm:$0xff] }
 0x1aa   :  { %3186 = vmatprep.subr.bf16.mxu1 %v12603_v54  ;;  %v12659_v54 = vcombine.high %v571_v46, %v575_v47  ;;  %v623_v38 = vld [vmem:[#allocation5 + $0xd68] sm:$0xff] }
 0x1ab   :  { %3283 = vmatpush1.bf16.msra.mxu0 %v12404_v53  ;;  %v12460_v53 = vcombine.low %v372_v39, %v376_v41  ;;  %v428_v39 = vld [vmem:[#allocation5 + $0x750] sm:$0xff] }
 0x1ac   :  { %3293 = vmatprep.subr.bf16.mxu0 %v12413_v59  ;;  %v12469_v59 = vcombine.high %v380_v48, %v384_v51  ;;  %v432_v41 = vld [vmem:[#allocation5 + $0x770] sm:$0xff] }
 0x1ad   :  { %3187 = vmatpush1.bf16.msra.mxu1 %v12602_v62  ;;  %v12658_v62 = vcombine.low %v571_v46, %v575_v47  ;;  %v627_v46 = vld [vmem:[#allocation5 + $0xd88] sm:$0xff] }
 0x1ae   :  { %3285 = vmatmul.mubr.bf16.vlgmr.msra.gmra.mrb[4].mxu0 %v15444_v16  ;;  %3188 = vmatprep.subr.bf16.mxu1 %v12611_v0  ;;  %v12667_v0 = vcombine.high %v579_v55, %v583_v56  ;;  %v631_v47 = vld [vmem:[#allocation5 + $0xda8] sm:$0xff] }
 0x1af   :  { %3294 = vmatpush1.bf16.msra.mxu0 %v12412_v63  ;;  %3325 = vmatprep.mubr.bf16.mxu0 %v15440_v61  ;;  %v12468_v63 = vcombine.low %v380_v48, %v384_v51  ;;  %v436_v48 = vld [vmem:[#allocation5 + $0x790] sm:$0xff] }
 0x1b0   :  { %3295 = vmatprep.subr.bf16.mxu0 %v12421_v4  ;;  %v12477_v4 = vcombine.high %v388_v58, %v392_v60  ;;  %v440_v51 = vld [vmem:[#allocation5 + $0x7b0] sm:$0xff] }
 0x1b1   :  { %3189 = vmatpush1.bf16.msra.mxu1 %v12610_v6  ;;  %v12666_v6 = vcombine.low %v579_v55, %v583_v56  ;;  %v635_v55 = vld [vmem:[#allocation5 + $0xdc8] sm:$0xff] }
 0x1b2   :  { %3190 = vmatprep.subr.bf16.mxu1 %v12619_v8  ;;  %v12675_v8 = vcombine.high %v587_v1, %v591_v2  ;;  %v639_v56 = vld [vmem:[#allocation5 + $0xde8] sm:$0xff] }
 0x1b3   :  { %3296 = vmatpush1.bf16.msra.mxu0 %v12420_v7  ;;  %v12476_v7 = vcombine.low %v388_v58, %v392_v60  ;;  %v444_v58 = vld [vmem:[#allocation5 + $0x7d0] sm:$0xff]  ;;  %v12525_v60 = vcombine.high %v436_v48, %v440_v51 }
 0x1b4   :  { %3297 = vmatprep.subr.bf16.mxu0 %v12429_v12  ;;  %v12485_v12 = vcombine.high %v396_v3, %v400_v5 }
 0x1b5   :  { %3191 = vmatpush1.bf16.msra.mxu1 %v12618_v14  ;;  %v12674_v14 = vcombine.low %v587_v1, %v591_v2  ;;  %v12714_v1 = vcombine.low %v627_v46, %v631_v47 }
 0x1b6   :  { %3192 = vmatprep.subr.bf16.mxu1 %v12627_v17  ;;  %v12683_v17 = vcombine.high %v595_v9, %v599_v10 }
 0x1b7   :  { %3298 = vmatpush1.bf16.msra.mxu0 %v12428_v15  ;;  %v12484_v15 = vcombine.low %v396_v3, %v400_v5  ;;  %v12524_v3 = vcombine.low %v436_v48, %v440_v51  ;;  %v452_v5 = vld [vmem:[#allocation5 + $0x810] sm:$0xff] }
 0x1b8   :  { %3299 = vmatprep.subr.bf16.mxu0 %v12437_v22  ;;  %v12493_v22 = vcombine.high %v404_v11, %v408_v13  ;;  %v492_v51 = vld [vmem:[#allocation5 + $0x950] sm:$0xff] }
 0x1b9   :  { %3193 = vmatpush1.bf16.msra.mxu1 %v12626_v24  ;;  %v12682_v24 = vcombine.low %v595_v9, %v599_v10  ;;  %v201_v9 = vld [vmem:[#allocation5 + $0x38] sm:$0xff]  ;;  %v12722_v10 = vcombine.low %v635_v55, %v639_v56 }
 0x1ba   :  { %3194 = vmatprep.subr.bf16.mxu1 %v12635_v26  ;;  %v12691_v26 = vcombine.high %v603_v18, %v607_v19 }
 0x1bb   :  { %3300 = vmatpush1.bf16.msra.mxu0 %v12436_v25  ;;  %v12492_v25 = vcombine.low %v404_v11, %v408_v13  ;;  %v460_v13 = vld [vmem:[#allocation5 + $0x850] sm:$0xff] }
 0x1bc   :  { %3301 = vmatprep.subr.bf16.mxu0 %v12445_v31  ;;  %v12501_v31 = vcombine.high %v412_v20, %v416_v23 }
 0x1bd   :  { %3195 = vmatpush1.bf16.msra.mxu1 %v12634_v33  ;;  %v12690_v33 = vcombine.low %v603_v18, %v607_v19  ;;  %v209_v18 = vld [vmem:[#allocation5 + $0x78] sm:$0xff] }
 0x1be   :  { %3196 = vmatprep.subr.bf16.mxu1 %v12643_v36  ;;  %v12699_v36 = vcombine.high %v611_v28, %v615_v29 }
 0x1bf   :  { %3302 = vmatpush1.bf16.msra.mxu0 %v12444_v35  ;;  %v12500_v35 = vcombine.low %v412_v20, %v416_v23  ;;  %v468_v23 = vld [vmem:[#allocation5 + $0x890] sm:$0xff] }
 0x1c0   :  { %3303 = vmatprep.subr.bf16.mxu0 %v12453_v40  ;;  %v12509_v40 = vcombine.high %v420_v30, %v424_v32 }
 0x1c1   :  { %3197 = vmatpush1.bf16.msra.mxu1 %v12642_v43  ;;  %v12698_v43 = vcombine.low %v611_v28, %v615_v29  ;;  %v217_v28 = vld [vmem:[#allocation5 + $0xb8] sm:$0xff] }
 0x1c2   :  { %3198 = vmatprep.subr.bf16.mxu1 %v12651_v45  ;;  %v12707_v45 = vcombine.high %v619_v37, %v623_v38 }
 0x1c3   :  { %3304 = vmatpush1.bf16.msra.mxu0 %v12452_v44  ;;  %v12508_v44 = vcombine.low %v420_v30, %v424_v32  ;;  %v476_v32 = vld [vmem:[#allocation5 + $0x8d0] sm:$0xff] }
 0x1c4   :  { %3305 = vmatprep.subr.bf16.mxu0 %v12461_v49  ;;  %v12517_v49 = vcombine.high %v428_v39, %v432_v41 }
 0x1c5   :  { %3199 = vmatpush1.bf16.msra.mxu1 %v12650_v52  ;;  %v12706_v52 = vcombine.low %v619_v37, %v623_v38  ;;  %v225_v37 = vld [vmem:[#allocation5 + $0xf8] sm:$0xff] }
 0x1c6   :  { %3200 = vmatprep.subr.bf16.mxu1 %v12659_v54  ;;  %v12715_v54 = vcombine.high %v627_v46, %v631_v47  ;;  %v233_v46 = vld [vmem:[#allocation5 + $0x138] sm:$0xff] }
 0x1c7   :  { %3306 = vmatpush1.bf16.msra.mxu0 %v12460_v53  ;;  %v12516_v53 = vcombine.low %v428_v39, %v432_v41  ;;  %v484_v41 = vld [vmem:[#allocation5 + $0x910] sm:$0xff] }
 0x1c8   :  { %3307 = vmatprep.subr.bf16.mxu0 %v12469_v59 }
 0x1c9   :  { %3201 = vmatpush1.bf16.msra.mxu1 %v12658_v62  ;;  %v448_v62 = vld [vmem:[#allocation5 + $0x7f0] sm:$0xff] }
 0x1ca   :  { %3211 = vmatprep.subr.bf16.mxu1 %v12667_v0  ;;  %v12532_v11 = vcombine.low %v444_v58, %v448_v62 }
 0x1cb   :  { %3308 = vmatpush1.bf16.msra.mxu0 %v12468_v63 }
 0x1cc   :  { %3309 = vmatprep.subr.bf16.mxu0 %v12477_v4  ;;  %3203 = vmatmul.mubr.bf16.vlgmr.msra.gmra.mrb[4].mxu1 %v15454_v34  ;;  %v12723_v4 = vcombine.high %v635_v55, %v639_v56 }
 0x1cd   :  { %3212 = vmatpush1.bf16.msra.mxu1 %v12666_v6  ;;  %3243 = vmatprep.mubr.bf16.mxu1 %v15229_v50  ;;  %v456_v6 = vld [vmem:[#allocation5 + $0x830] sm:$0xff] }
 0x1ce   :  { %3213 = vmatprep.subr.bf16.mxu1 %v12675_v8  ;;  %v12533_v8 = vcombine.high %v444_v58, %v448_v62  ;;  %v12540_v20 = vcombine.low %v452_v5, %v456_v6  ;;  %v504_v62 = vld [vmem:[#allocation5 + $0x9b0] sm:$0xff] }
 0x1cf   :  { %3310 = vmatpush1.bf16.msra.mxu0 %v12476_v7  ;;  %v197_v7 = vld [vmem:[#allocation5 + $0x18] sm:$0xff] }
 0x1d0   :  { %3311 = vmatprep.subr.bf16.mxu0 %v12485_v12  ;;  %v12287_v12 = vcombine.high %v197_v7, %v201_v9  ;;  %v12286_v19 = vcombine.low %v197_v7, %v201_v9  ;;  %v512_v7 = vld [vmem:[#allocation5 + $0x9f0] sm:$0xff] }
 0x1d1   :  { %3214 = vmatpush1.bf16.msra.mxu1 %v12674_v14  ;;  %v464_v14 = vld [vmem:[#allocation5 + $0x870] sm:$0xff] }
 0x1d2   :  { %3215 = vmatprep.subr.bf16.mxu1 %v12683_v17  ;;  %v12541_v17 = vcombine.high %v452_v5, %v456_v6  ;;  %v12548_v30 = vcombine.low %v460_v13, %v464_v14  ;;  %v508_v6 = vld [vmem:[#allocation5 + $0x9d0] sm:$0xff] }
 0x1d3   :  { %3312 = vmatpush1.bf16.msra.mxu0 %v12484_v15  ;;  %v205_v15 = vld [vmem:[#allocation5 + $0x58] sm:$0xff] }
 0x1d4   :  { %3313 = vmatprep.subr.bf16.mxu0 %v12493_v22  ;;  %v12295_v22 = vcombine.high %v205_v15, %v209_v18  ;;  %v12294_v29 = vcombine.low %v205_v15, %v209_v18  ;;  %v520_v15 = vld [vmem:[#allocation5 + $0xa30] sm:$0xff]  ;;  %v12597_v18 = vcombine.high %v508_v6, %v512_v7 }
 0x1d5   :  { %3216 = vmatpush1.bf16.msra.mxu1 %v12682_v24  ;;  %v472_v24 = vld [vmem:[#allocation5 + $0x8b0] sm:$0xff] }
 0x1d6   :  { %3217 = vmatprep.subr.bf16.mxu1 %v12691_v26  ;;  %v12549_v26 = vcombine.high %v460_v13, %v464_v14  ;;  %v12556_v39 = vcombine.low %v468_v23, %v472_v24  ;;  %v516_v14 = vld [vmem:[#allocation5 + $0xa10] sm:$0xff] }
 0x1d7   :  { %3314 = vmatpush1.bf16.msra.mxu0 %v12492_v25  ;;  %v213_v25 = vld [vmem:[#allocation5 + $0x98] sm:$0xff] }
 0x1d8   :  { %3315 = vmatprep.subr.bf16.mxu0 %v12501_v31  ;;  %v12303_v31 = vcombine.high %v213_v25, %v217_v28  ;;  %v12302_v38 = vcombine.low %v213_v25, %v217_v28  ;;  %v528_v25 = vld [vmem:[#allocation5 + $0xa70] sm:$0xff]  ;;  %v12605_v28 = vcombine.high %v516_v14, %v520_v15 }
 0x1d9   :  { %3218 = vmatpush1.bf16.msra.mxu1 %v12690_v33  ;;  %v480_v33 = vld [vmem:[#allocation5 + $0x8f0] sm:$0xff] }
 0x1da   :  { %3219 = vmatprep.subr.bf16.mxu1 %v12699_v36  ;;  %v12557_v36 = vcombine.high %v468_v23, %v472_v24  ;;  %v12564_v48 = vcombine.low %v476_v32, %v480_v33  ;;  %v524_v24 = vld [vmem:[#allocation5 + $0xa50] sm:$0xff] }
 0x1db   :  { %3316 = vmatpush1.bf16.msra.mxu0 %v12500_v35  ;;  %v221_v35 = vld [vmem:[#allocation5 + $0xd8] sm:$0xff] }
 0x1dc   :  { %3317 = vmatprep.subr.bf16.mxu0 %v12509_v40  ;;  %v12311_v40 = vcombine.high %v221_v35, %v225_v37  ;;  %v12310_v47 = vcombine.low %v221_v35, %v225_v37  ;;  %v536_v35 = vld [vmem:[#allocation5 + $0xab0] sm:$0xff]  ;;  %v12613_v37 = vcombine.high %v524_v24, %v528_v25 }
 0x1dd   :  { %3220 = vmatpush1.bf16.msra.mxu1 %v12698_v43  ;;  %v488_v43 = vld [vmem:[#allocation5 + $0x930] sm:$0xff] }
 0x1de   :  { %3221 = vmatprep.subr.bf16.mxu1 %v12707_v45  ;;  %v12565_v45 = vcombine.high %v476_v32, %v480_v33  ;;  %v12572_v56 = vcombine.low %v484_v41, %v488_v43  ;;  %v532_v33 = vld [vmem:[#allocation5 + $0xa90] sm:$0xff] }
 0x1df   :  { %3318 = vmatpush1.bf16.msra.mxu0 %v12508_v44  ;;  %v15470_v59 = vpop.f32.mrb[0].mxu1  ;;  %v229_v44 = vld [vmem:[#allocation5 + $0x118] sm:$0xff] }
 0x1e0   :  { %3319 = vmatprep.subr.bf16.mxu0 %v12517_v49  ;;  %v15472_v63 = vpop.f32.mrb[1].mxu1  ;;  %v12319_v49 = vcombine.high %v229_v44, %v233_v46  ;;  %v12318_v55 = vcombine.low %v229_v44, %v233_v46  ;;  %v544_v44 = vld [vmem:[#allocation5 + $0xaf0] sm:$0xff]  ;;  %v12621_v46 = vcombine.high %v532_v33, %v536_v35 }
 0x1e1   :  { %v2962_v0 = vpop.f32.mrb[2].mxu1  ;;  %3222 = vmatpush1.bf16.msra.mxu1 %v12706_v52  ;;  %v237_v52 = vld [vmem:[#allocation5 + $0x158] sm:$0xff] }
 0x1e2   :  { %v2963_v2 = vpop.f32.mrb[3].mxu1  ;;  %3223 = vmatprep.subr.bf16.mxu1 %v12715_v54  ;;  %v241_v54 = vld [vmem:[#allocation5 + $0x178] sm:$0xff] }
 0x1e3   :  { %3320 = vmatpush1.bf16.msra.mxu0 %v12516_v53  ;;  %v12573_v53 = vcombine.high %v484_v41, %v488_v43  ;;  %v12327_v58 = vcombine.high %v237_v52, %v241_v54  ;;  %v245_v0 = vld [vmem:[#allocation5 + $0x198] sm:$0xff]  ;;  %v540_v43 = vld [vmem:[#allocation5 + $0xad0] sm:$0xff] }
 0x1e4   :  { %3321 = vmatprep.subr.bf16.mxu0 %v12525_v60  ;;  %v500_v60 = vld [vmem:[#allocation5 + $0x990] sm:$0xff]  ;;  %v249_v2 = vld [vmem:[#allocation5 + $0x1b8] sm:$0xff] }
 0x1e5   :  { %3224 = vmatpush1.bf16.msra.mxu1 %v12714_v1  ;;  %v12335_v5 = vcombine.high %v245_v0, %v249_v2  ;;  %v12589_v9 = vcombine.high %v500_v60, %v504_v62 }
 0x1e6   :  { %3225 = vmatprep.subr.bf16.mxu1 %v12723_v4 }
 0x1e7   :  { %3322 = vmatpush1.bf16.msra.mxu0 %v12524_v3  ;;  %v12326_v3 = vcombine.low %v237_v52, %v241_v54  ;;  %v552_v52 = vld [vmem:[#allocation5 + $0xb30] sm:$0xff]  ;;  %v12629_v54 = vcombine.high %v540_v43, %v544_v44 }
 0x1e8   :  { %3323 = vmatprep.subr.bf16.mxu0 %v12533_v8  ;;  %v253_v8 = vld [vmem:[#allocation5 + $0x1d8] sm:$0xff] }
 0x1e9   :  { %3226 = vmatpush1.bf16.msra.mxu1 %v12722_v10  ;;  %v257_v10 = vld [vmem:[#allocation5 + $0x1f8] sm:$0xff] }
 0x1ea   :  { %3416 = vmatprep.subr.bf16.mxu1 %v12287_v12  ;;  %v12588_v12 = vcombine.low %v500_v60, %v504_v62  ;;  %v12343_v13 = vcombine.high %v253_v8, %v257_v10  ;;  %v556_v62 = vld [vmem:[#allocation5 + $0xb50] sm:$0xff] }
 0x1eb   :  { %3324 = vmatpush1.bf16.msra.mxu0 %v12532_v11  ;;  %v12334_v11 = vcombine.low %v245_v0, %v249_v2  ;;  %v560_v0 = vld [vmem:[#allocation5 + $0xb70] sm:$0xff] }
 0x1ec   :  { %3334 = vmatprep.subr.bf16.mxu0 %v12541_v17  ;;  %3244 = vmatmul.mubr.bf16.vlgmr.msra.gmra.mrb[4].mxu1 %v15460_v42  ;;  %v261_v17 = vld [vmem:[#allocation5 + $0x218] sm:$0xff] }
 0x1ed   :  { %3417 = vmatpush1.bf16.msra.mxu1 %v12286_v19  ;;  %3448 = vmatprep.mubr.bf16.mxu1 %v15438_v57  ;;  %v496_v57 = vld [vmem:[#allocation5 + $0x970] sm:$0xff]  ;;  %v265_v19 = vld [vmem:[#allocation5 + $0x238] sm:$0xff] }
 0x1ee   :  { %3326 = vmatmul.mubr.bf16.vlgmr.msra.gmra.mrb[4].mxu0 %v15446_v21  ;;  %3418 = vmatprep.subr.bf16.mxu1 %v12295_v22  ;;  %v12581_v1 = vcombine.high %v492_v51, %v496_v57  ;;  %v12580_v4 = vcombine.low %v492_v51, %v496_v57  ;;  %v12596_v22 = vcombine.low %v508_v6, %v512_v7  ;;  %v548_v57 = vld [vmem:[#allocation5 + $0xb10] sm:$0xff] }
 0x1ef   :  { %3335 = vmatpush1.bf16.msra.mxu0 %v12540_v20  ;;  %3366 = vmatprep.mubr.bf16.mxu0 %v15448_v27  ;;  %v12342_v20 = vcombine.low %v253_v8, %v257_v10  ;;  %v12351_v23 = vcombine.high %v261_v17, %v265_v19  ;;  %v12637_v2 = vcombine.high %v548_v57, %v552_v52  ;;  %v564_v7 = vld [vmem:[#allocation5 + $0xb90] sm:$0xff] }
 0x1f0   :  { %3336 = vmatprep.subr.bf16.mxu0 %v12549_v26  ;;  %v269_v26 = vld [vmem:[#allocation5 + $0x258] sm:$0xff]  ;;  %v568_v8 = vld [vmem:[#allocation5 + $0xbb0] sm:$0xff]  ;;  %v12645_v10 = vcombine.high %v556_v62, %v560_v0 }
 0x1f1   :  { %3419 = vmatpush1.bf16.msra.mxu1 %v12294_v29  ;;  %v273_v29 = vld [vmem:[#allocation5 + $0x278] sm:$0xff] }
 0x1f2   :  { %3420 = vmatprep.subr.bf16.mxu1 %v12303_v31  ;;  %v12604_v31 = vcombine.low %v516_v14, %v520_v15  ;;  %v12359_v32 = vcombine.high %v269_v26, %v273_v29  ;;  %v572_v15 = vld [vmem:[#allocation5 + $0xbd0] sm:$0xff] }
 0x1f3   :  { %3337 = vmatpush1.bf16.msra.mxu0 %v12548_v30  ;;  %v12350_v30 = vcombine.low %v261_v17, %v265_v19  ;;  %v576_v17 = vld [vmem:[#allocation5 + $0xbf0] sm:$0xff]  ;;  %v12653_v19 = vcombine.high %v564_v7, %v568_v8 }
 0x1f4   :  { %3338 = vmatprep.subr.bf16.mxu0 %v12557_v36  ;;  %v277_v36 = vld [vmem:[#allocation5 + $0x298] sm:$0xff] }
 0x1f5   :  { %3421 = vmatpush1.bf16.msra.mxu1 %v12302_v38  ;;  %v281_v38 = vld [vmem:[#allocation5 + $0x2b8] sm:$0xff] }
 0x1f6   :  { %3422 = vmatprep.subr.bf16.mxu1 %v12311_v40  ;;  %v12612_v40 = vcombine.low %v524_v24, %v528_v25  ;;  %v12367_v41 = vcombine.high %v277_v36, %v281_v38  ;;  %v580_v25 = vld [vmem:[#allocation5 + $0xc10] sm:$0xff] }
 0x1f7   :  { %3339 = vmatpush1.bf16.msra.mxu0 %v12556_v39  ;;  %v12358_v39 = vcombine.low %v269_v26, %v273_v29  ;;  %v584_v26 = vld [vmem:[#allocation5 + $0xc30] sm:$0xff]  ;;  %v12661_v29 = vcombine.high %v572_v15, %v576_v17 }
 0x1f8   :  { %3340 = vmatprep.subr.bf16.mxu0 %v12565_v45  ;;  %v285_v45 = vld [vmem:[#allocation5 + $0x2d8] sm:$0xff] }
 0x1f9   :  { %3423 = vmatpush1.bf16.msra.mxu1 %v12310_v47  ;;  %v289_v47 = vld [vmem:[#allocation5 + $0x2f8] sm:$0xff] }
 0x1fa   :  { %3424 = vmatprep.subr.bf16.mxu1 %v12319_v49  ;;  %v12620_v49 = vcombine.low %v532_v33, %v536_v35  ;;  %v12375_v51 = vcombine.high %v285_v45, %v289_v47  ;;  %v588_v35 = vld [vmem:[#allocation5 + $0xc50] sm:$0xff] }
 0x1fb   :  { %3341 = vmatpush1.bf16.msra.mxu0 %v12564_v48  ;;  %v12366_v48 = vcombine.low %v277_v36, %v281_v38  ;;  %v592_v36 = vld [vmem:[#allocation5 + $0xc70] sm:$0xff]  ;;  %v12669_v38 = vcombine.high %v580_v25, %v584_v26 }
 0x1fc   :  { %3342 = vmatprep.subr.bf16.mxu0 %v12573_v53  ;;  %v293_v53 = vld [vmem:[#allocation5 + $0x318] sm:$0xff] }
 0x1fd   :  { %3425 = vmatpush1.bf16.msra.mxu1 %v12318_v55  ;;  %v297_v55 = vld [vmem:[#allocation5 + $0x338] sm:$0xff] }
 0x1fe   :  { %3426 = vmatprep.subr.bf16.mxu1 %v12327_v58  ;;  %v12628_v58 = vcombine.low %v540_v43, %v544_v44  ;;  %v12383_v60 = vcombine.high %v293_v53, %v297_v55  ;;  %v596_v44 = vld [vmem:[#allocation5 + $0xc90] sm:$0xff] }
 0x1ff   :  { %3343 = vmatpush1.bf16.msra.mxu0 %v12572_v56  ;;  %v12374_v56 = vcombine.low %v285_v45, %v289_v47  ;;  %v600_v45 = vld [vmem:[#allocation5 + $0xcb0] sm:$0xff]  ;;  %v12677_v47 = vcombine.high %v588_v35, %v592_v36 }
 0x200   :  { %3344 = vmatprep.subr.bf16.mxu0 %v12581_v1  ;;  %v301_v1 = vld [vmem:[#allocation5 + $0x358] sm:$0xff] }
 0x201   :  { %3427 = vmatpush1.bf16.msra.mxu1 %v12326_v3  ;;  %v305_v3 = vld [vmem:[#allocation5 + $0x378] sm:$0xff] }
 0x202   :  { %3428 = vmatprep.subr.bf16.mxu1 %v12335_v5  ;;  %v12636_v5 = vcombine.low %v548_v57, %v552_v52  ;;  %v12391_v6 = vcombine.high %v301_v1, %v305_v3  ;;  %v604_v52 = vld [vmem:[#allocation5 + $0xcd0] sm:$0xff] }
 0x203   :  { %3345 = vmatpush1.bf16.msra.mxu0 %v12580_v4  ;;  %v12382_v4 = vcombine.low %v293_v53, %v297_v55  ;;  %v608_v53 = vld [vmem:[#allocation5 + $0xcf0] sm:$0xff]  ;;  %v644_v55 = vlaneseq }
 0x204   :  { %3346 = vmatprep.subr.bf16.mxu0 %v12589_v9  ;;  %v309_v9 = vld [vmem:[#allocation5 + $0x398] sm:$0xff] }
 0x205   :  { %3429 = vmatpush1.bf16.msra.mxu1 %v12334_v11  ;;  %v313_v11 = vld [vmem:[#allocation5 + $0x3b8] sm:$0xff] }
 0x206   :  { %3430 = vmatprep.subr.bf16.mxu1 %v12343_v13  ;;  %v12644_v13 = vcombine.low %v556_v62, %v560_v0  ;;  %v12399_v14 = vcombine.high %v309_v9, %v313_v11  ;;  %v612_v0 = vld [vmem:[#allocation5 + $0xd10] sm:$0xff] }
 0x207   :  { %3347 = vmatpush1.bf16.msra.mxu0 %v12588_v12  ;;  %v12390_v12 = vcombine.low %v301_v1, %v305_v3  ;;  %v616_v1 = vld [vmem:[#allocation5 + $0xd30] sm:$0xff]  ;;  %v15483_v3 = vshrl.u32 %v644_v55, 7 }
 0x208   :  { %3348 = vmatprep.subr.bf16.mxu0 %v12597_v18  ;;  %v317_v18 = vld [vmem:[#allocation5 + $0x3d8] sm:$0xff] }
 0x209   :  { %3431 = vmatpush1.bf16.msra.mxu1 %v12342_v20  ;;  %v321_v20 = vld [vmem:[#allocation5 + $0x3f8] sm:$0xff] }
 0x20a   :  { %3432 = vmatprep.subr.bf16.mxu1 %v12351_v23  ;;  %v12652_v23 = vcombine.low %v564_v7, %v568_v8  ;;  %v12407_v24 = vcombine.high %v317_v18, %v321_v20  ;;  %v15485_v7 = vld [vmem:[#allocation7] sm:$0xff] }
 0x20b   :  { %3349 = vmatpush1.bf16.msra.mxu0 %v12596_v22  ;;  %v12398_v22 = vcombine.low %v309_v9, %v313_v11  ;;  %v620_v9 = vld [vmem:[#allocation5 + $0xd50] sm:$0xff]  ;;  %v365_v11 = vld [vmem:[#allocation5 + $0x558] sm:$0xff] }
 0x20c   :  { %3350 = vmatprep.subr.bf16.mxu0 %v12605_v28  ;;  %v325_v28 = vld [vmem:[#allocation5 + $0x418] sm:$0xff] }
 0x20d   :  { %3433 = vmatpush1.bf16.msra.mxu1 %v12350_v30  ;;  %v329_v30 = vld [vmem:[#allocation5 + $0x438] sm:$0xff] }
 0x20e   :  { %3434 = vmatprep.subr.bf16.mxu1 %v12359_v32  ;;  %v12660_v32 = vcombine.low %v572_v15, %v576_v17  ;;  %v12415_v33 = vcombine.high %v325_v28, %v329_v30  ;;  %v15491_v15 = vsub.s32 1, %v15483_v3 }
 0x20f   :  { %3351 = vmatpush1.bf16.msra.mxu0 %v12604_v31  ;;  %v12406_v31 = vcombine.low %v317_v18, %v321_v20  ;;  %v12700_v18 = vcombine.low %v612_v0, %v616_v1  ;;  %v628_v20 = vld [vmem:[#allocation5 + $0xd90] sm:$0xff] }
 0x210   :  { %3352 = vmatprep.subr.bf16.mxu0 %v12613_v37  ;;  %v333_v37 = vld [vmem:[#allocation5 + $0x458] sm:$0xff] }
 0x211   :  { %3435 = vmatpush1.bf16.msra.mxu1 %v12358_v39  ;;  %v337_v39 = vld [vmem:[#allocation5 + $0x478] sm:$0xff] }
 0x212   :  { %3436 = vmatprep.subr.bf16.mxu1 %v12367_v41  ;;  %v12668_v41 = vcombine.low %v580_v25, %v584_v26  ;;  %v12423_v43 = vcombine.high %v333_v37, %v337_v39  ;;  %v377_v26 = vld [vmem:[#allocation5 + $0x5b8] sm:$0xff] }
 0x213   :  { %3353 = vmatpush1.bf16.msra.mxu0 %v12612_v40  ;;  %v12414_v40 = vcombine.low %v325_v28, %v329_v30  ;;  %v651_v28 = vrot.slane %v15485_v7, %v15491_v15 }
 0x214   :  { %3354 = vmatprep.subr.bf16.mxu0 %v12621_v46  ;;  %v341_v46 = vld [vmem:[#allocation5 + $0x498] sm:$0xff] }
 0x215   :  { %3437 = vmatpush1.bf16.msra.mxu1 %v12366_v48  ;;  %v345_v48 = vld [vmem:[#allocation5 + $0x4b8] sm:$0xff] }
 0x216   :  { %3438 = vmatprep.subr.bf16.mxu1 %v12375_v51  ;;  %v12676_v51 = vcombine.low %v588_v35, %v592_v36  ;;  %v12431_v57 = vcombine.high %v341_v46, %v345_v48  ;;  %v381_v35 = vld [vmem:[#allocation5 + $0x5d8] sm:$0xff] }
 0x217   :  { %3355 = vmatpush1.bf16.msra.mxu0 %v12620_v49  ;;  %v12422_v49 = vcombine.low %v333_v37, %v337_v39  ;;  %v2961_v39 = vadd.f32 %v15472_v63, %v651_v28 }
 0x218   :  { %3356 = vmatprep.subr.bf16.mxu0 %v12629_v54  ;;  %v349_v54 = vld [vmem:[#allocation5 + $0x4d8] sm:$0xff] }
 0x219   :  { %3439 = vmatpush1.bf16.msra.mxu1 %v12374_v56  ;;  %v12685_v56 = vcombine.high %v596_v44, %v600_v45 }
 0x21a   :  { %3440 = vmatprep.subr.bf16.mxu1 %v12383_v60  ;;  %v12684_v60 = vcombine.low %v596_v44, %v600_v45 }
 0x21b   :  { %3357 = vmatpush1.bf16.msra.mxu0 %v12628_v58  ;;  %v353_v58 = vld [vmem:[#allocation5 + $0x4f8] sm:$0xff] }
 0x21c   :  { %3358 = vmatprep.subr.bf16.mxu0 %v12637_v2  ;;  %v12439_v62 = vcombine.high %v349_v54, %v353_v58  ;;  %v357_v2 = vld [vmem:[#allocation5 + $0x518] sm:$0xff] }
 0x21d   :  { %3441 = vmatpush1.bf16.msra.mxu1 %v12382_v4  ;;  %v12693_v4 = vcombine.high %v604_v52, %v608_v53 }
 0x21e   :  { %3442 = vmatprep.subr.bf16.mxu1 %v12391_v6  ;;  %v12438_v6 = vcombine.low %v349_v54, %v353_v58  ;;  %v397_v58 = vld [vmem:[#allocation5 + $0x658] sm:$0xff] }
 0x21f   :  { %3359 = vmatpush1.bf16.msra.mxu0 %v12636_v5  ;;  %v361_v5 = vld [vmem:[#allocation5 + $0x538] sm:$0xff] }
 0x220   :  { %3360 = vmatprep.subr.bf16.mxu0 %v12645_v10  ;;  %v12447_v8 = vcombine.high %v357_v2, %v361_v5  ;;  %v624_v10 = vld [vmem:[#allocation5 + $0xd70] sm:$0xff]  ;;  %v12446_v17 = vcombine.low %v357_v2, %v361_v5  ;;  %v405_v5 = vld [vmem:[#allocation5 + $0x698] sm:$0xff] }
 0x221   :  { %3443 = vmatpush1.bf16.msra.mxu1 %v12390_v12  ;;  %v15488_v12 = vsub.s32 0, %v15483_v3  ;;  %v12709_v25 = vcombine.high %v620_v9, %v624_v10  ;;  %v12708_v30 = vcombine.low %v620_v9, %v624_v10  ;;  %v3612_v10 = vld [vmem:[#allocation8 + $0x80] sm:$0xff] }
 0x222   :  { %3444 = vmatprep.subr.bf16.mxu1 %v12399_v14  ;;  %v369_v14 = vld [vmem:[#allocation5 + $0x578] sm:$0xff] }
 0x223   :  { %3361 = vmatpush1.bf16.msra.mxu0 %v12644_v13  ;;  %v12701_v13 = vcombine.high %v612_v0, %v616_v1  ;;  %v3608_v0 = vld [vmem:[#allocation8 + $0x60] sm:$0xff] }
 0x224   :  { %3362 = vmatprep.subr.bf16.mxu0 %v12653_v19  ;;  %v12455_v19 = vcombine.high %v365_v11, %v369_v14 }
 0x225   :  { %3445 = vmatpush1.bf16.msra.mxu1 %v12398_v22  ;;  %v632_v22 = vld [vmem:[#allocation5 + $0xdb0] sm:$0xff] }
 0x226   :  { %3446 = vmatprep.subr.bf16.mxu1 %v12407_v24  ;;  %v647_v24 = vrot.slane %v15485_v7, %v15488_v12  ;;  %v12717_v37 = vcombine.high %v628_v20, %v632_v22 }
 0x227   :  { %3363 = vmatpush1.bf16.msra.mxu0 %v12652_v23  ;;  %v373_v23 = vld [vmem:[#allocation5 + $0x598] sm:$0xff] }
 0x228   :  { %3364 = vmatprep.subr.bf16.mxu0 %v12661_v29  ;;  %v12454_v29 = vcombine.low %v365_v11, %v369_v14  ;;  %v2959_v36 = vadd.f32 %v15470_v59, %v647_v24  ;;  %v12462_v44 = vcombine.low %v373_v23, %v377_v26  ;;  %v3596_v59 = vld [vmem:[#allocation8] sm:$0xff] }
 0x229   :  { %3447 = vmatpush1.bf16.msra.mxu1 %v12406_v31  ;;  %v12463_v31 = vcombine.high %v373_v23, %v377_v26  ;;  %v3616_v11 = vld [vmem:[#allocation8 + $0xa0] sm:$0xff] }
 0x22a   :  { %3457 = vmatprep.subr.bf16.mxu1 %v12415_v33  ;;  %v640_v33 = vld [vmem:[#allocation5 + $0xdf0] sm:$0xff]  ;;  %v3624_v23 = vld [vmem:[#allocation8 + $0xe0] sm:$0xff] }
 0x22b   :  { %3365 = vmatpush1.bf16.msra.mxu0 %v12660_v32  ;;  %v636_v32 = vld [vmem:[#allocation5 + $0xdd0] sm:$0xff] }
 0x22c   :  { %3375 = vmatprep.subr.bf16.mxu0 %v12669_v38  ;;  %3449 = vmatmul.mubr.bf16.vlgmr.msra.gmra.mrb[8].mxu1 %v15444_v16  ;;  %v12430_v16 = vcombine.low %v341_v46, %v345_v48  ;;  %v385_v38 = vld [vmem:[#allocation5 + $0x5f8] sm:$0xff]  ;;  %v12724_v54 = vcombine.low %v636_v32, %v640_v33 }
 0x22d   :  { %3458 = vmatpush1.bf16.msra.mxu1 %v12414_v40  ;;  %3489 = vmatprep.mubr.bf16.mxu1 %v15440_v61  ;;  %v12692_v61 = vcombine.low %v604_v52, %v608_v53  ;;  %v12471_v48 = vcombine.high %v381_v35, %v385_v38  ;;  %v12725_v52 = vcombine.high %v636_v32, %v640_v33  ;;  %v3600_v53 = vld [vmem:[#allocation8 + $0x20] sm:$0xff] }
 0x22e   :  { %3367 = vmatmul.mubr.bf16.vlgmr.msra.gmra.mrb[4].mxu0 %v15454_v34  ;;  %3459 = vmatprep.subr.bf16.mxu1 %v12423_v43  ;;  %v12470_v63 = vcombine.low %v381_v35, %v385_v38  ;;  %v3632_v32 = vld [vmem:[#allocation8 + $0x120] sm:$0xff]  ;;  %v429_v38 = vld [vmem:[#allocation5 + $0x758] sm:$0xff] }
 0x22f   :  { %3376 = vmatpush1.bf16.msra.mxu0 %v12668_v41  ;;  %3407 = vmatprep.mubr.bf16.mxu0 %v15229_v50 }
 0x230   :  { %3377 = vmatprep.subr.bf16.mxu0 %v12677_v47  ;;  %v12716_v47 = vcombine.low %v628_v20, %v632_v22  ;;  %v417_v20 = vld [vmem:[#allocation5 + $0x6f8] sm:$0xff]  ;;  %v3620_v22 = vld [vmem:[#allocation8 + $0xc0] sm:$0xff] }
 0x231   :  { %3460 = vmatpush1.bf16.msra.mxu1 %v12422_v49  ;;  %v389_v49 = vld [vmem:[#allocation5 + $0x618] sm:$0xff]  ;;  %v12753_v28 = vcombine.high %v3620_v22, %v3624_v23  ;;  %v12752_v35 = vcombine.low %v3620_v22, %v3624_v23 }
 0x232   :  { %3461 = vmatprep.subr.bf16.mxu1 %v12431_v57 }
 0x233   :  { %3378 = vmatpush1.bf16.msra.mxu0 %v12676_v51  ;;  %v393_v51 = vld [vmem:[#allocation5 + $0x638] sm:$0xff] }
 0x234   :  { %3379 = vmatprep.subr.bf16.mxu0 %v12685_v56  ;;  %v12479_v56 = vcombine.high %v389_v49, %v393_v51  ;;  %v12478_v2 = vcombine.low %v389_v49, %v393_v51  ;;  %v441_v49 = vld [vmem:[#allocation5 + $0x7b8] sm:$0xff]  ;;  %v3644_v51 = vld [vmem:[#allocation8 + $0x180] sm:$0xff] }
 0x235   :  { %3462 = vmatpush1.bf16.msra.mxu1 %v12430_v16  ;;  %v401_v16 = vld [vmem:[#allocation5 + $0x678] sm:$0xff] }
 0x236   :  { %3463 = vmatprep.subr.bf16.mxu1 %v12439_v62  ;;  %v12729_v62 = vcombine.high %v3596_v59, %v3600_v53 }
 0x237   :  { %3380 = vmatpush1.bf16.msra.mxu0 %v12684_v60  ;;  %v3604_v60 = vld [vmem:[#allocation8 + $0x40] sm:$0xff] }
 0x238   :  { %3381 = vmatprep.subr.bf16.mxu0 %v12693_v4  ;;  %v12728_v4 = vcombine.low %v3596_v59, %v3600_v53  ;;  %v12736_v14 = vcombine.low %v3604_v60, %v3608_v0  ;;  %v3648_v59 = vld [vmem:[#allocation8 + $0x1a0] sm:$0xff] }
 0x239   :  { %3464 = vmatpush1.bf16.msra.mxu1 %v12438_v6  ;;  %v409_v6 = vld [vmem:[#allocation5 + $0x6b8] sm:$0xff] }
 0x23a   :  { %3465 = vmatprep.subr.bf16.mxu1 %v12447_v8  ;;  %v12737_v8 = vcombine.high %v3604_v60, %v3608_v0  ;;  %v12494_v24 = vcombine.low %v405_v5, %v409_v6 }
 0x23b   :  { %3382 = vmatpush1.bf16.msra.mxu0 %v12692_v61  ;;  %v12487_v61 = vcombine.high %v397_v58, %v401_v16 }
 0x23c   :  { %3383 = vmatprep.subr.bf16.mxu0 %v12701_v13  ;;  %v12486_v13 = vcombine.low %v397_v58, %v401_v16  ;;  %v3652_v58 = vld [vmem:[#allocation8 + $0x1c0] sm:$0xff] }
 0x23d   :  { %3466 = vmatpush1.bf16.msra.mxu1 %v12446_v17  ;;  %v12495_v17 = vcombine.high %v405_v5, %v409_v6  ;;  %v3656_v16 = vld [vmem:[#allocation8 + $0x1e0] sm:$0xff] }
 0x23e   :  { %3467 = vmatprep.subr.bf16.mxu1 %v12455_v19  ;;  %v413_v19 = vld [vmem:[#allocation5 + $0x6d8] sm:$0xff]  ;;  %v3660_v5 = vld [vmem:[#allocation8 + $0x200] sm:$0xff] }
 0x23f   :  { %3384 = vmatpush1.bf16.msra.mxu0 %v12700_v18  ;;  %v12745_v18 = vcombine.high %v3612_v10, %v3616_v11  ;;  %v12503_v26 = vcombine.high %v413_v19, %v417_v20  ;;  %v12502_v33 = vcombine.low %v413_v19, %v417_v20  ;;  %v3664_v6 = vld [vmem:[#allocation8 + $0x220] sm:$0xff] }
 0x240   :  { %3385 = vmatprep.subr.bf16.mxu0 %v12709_v25  ;;  %v12744_v25 = vcombine.low %v3612_v10, %v3616_v11  ;;  %v12793_v11 = vcombine.high %v3660_v5, %v3664_v6  ;;  %v12792_v20 = vcombine.low %v3660_v5, %v3664_v6  ;;  %v509_v5 = vld [vmem:[#allocation5 + $0x9d8] sm:$0xff] }
 0x241   :  { %v3081_v40 = vpop.f32.mrb[0].mxu0  ;;  %3468 = vmatpush1.bf16.msra.mxu1 %v12454_v29  ;;  %v421_v29 = vld [vmem:[#allocation5 + $0x718] sm:$0xff] }
 0x242   :  { %v15499_v41 = vadd.f32 %v3081_v40, %v2959_v36  ;;  %v3083_v43 = vpop.f32.mrb[1].mxu0  ;;  %3469 = vmatprep.subr.bf16.mxu1 %v12463_v31  ;;  %v3628_v31 = vld [vmem:[#allocation8 + $0x100] sm:$0xff]  ;;  %v513_v6 = vld [vmem:[#allocation5 + $0x9f8] sm:$0xff] }
 0x243   :  { %v14004_v45 = vadd.f32 %v3083_v43, %v2961_v39  ;;  %3386 = vmatpush1.bf16.msra.mxu0 %v12708_v30  ;;  %v3085_v46 = vpop.f32.mrb[2].mxu0  ;;  %v425_v30 = vld [vmem:[#allocation5 + $0x738] sm:$0xff]  ;;  %v3636_v40 = vld [vmem:[#allocation8 + $0x140] sm:$0xff] }
 0x244   :  { %v3086_v57 = vpop.f32.mrb[3].mxu0  ;;  %3387 = vmatprep.subr.bf16.mxu0 %v12717_v37  ;;  %v12511_v36 = vcombine.high %v421_v29, %v425_v30  ;;  %v12761_v37 = vcombine.high %v3628_v31, %v3632_v32  ;;  %v433_v39 = vld [vmem:[#allocation5 + $0x778] sm:$0xff]  ;;  %v3640_v43 = vld [vmem:[#allocation8 + $0x160] sm:$0xff] }
 0x245   :  { %3470 = vmatpush1.bf16.msra.mxu1 %v12462_v44  ;;  %v3581_v1 = vmax.f32 %v14004_v45, 0.0  ;;  %v12510_v44 = vcombine.low %v421_v29, %v425_v30  ;;  %v12760_v45 = vcombine.low %v3628_v31, %v3632_v32  ;;  %v12519_v46 = vcombine.high %v429_v38, %v433_v39 }
 0x246   :  { %3471 = vmatprep.subr.bf16.mxu1 %v12471_v48  ;;  %v437_v48 = vld [vmem:[#allocation5 + $0x798] sm:$0xff]  ;;  %v12518_v57 = vcombine.low %v429_v38, %v433_v39 }
 0x247   :  { %3388 = vmatpush1.bf16.msra.mxu0 %v12716_v47  ;;  %v15501_v9 = vpack.c.bf16 %v3581_v1, %v3581_v1  ;;  %v12769_v47 = vcombine.high %v3636_v40, %v3640_v43  ;;  %v12527_v53 = vcombine.high %v437_v48, %v441_v49  ;;  %v12526_v60 = vcombine.low %v437_v48, %v441_v49 }
 0x248   :  { %3389 = vmatprep.subr.bf16.mxu0 %v12725_v52  ;;  %v12768_v52 = vcombine.low %v3636_v40, %v3640_v43  ;;  %v12785_v1 = vcombine.high %v3652_v58, %v3656_v16  ;;  %v485_v43 = vld [vmem:[#allocation5 + $0x918] sm:$0xff] }
 0x249   :  { %3472 = vmatpush1.bf16.msra.mxu1 %v12470_v63  ;;  %v12777_v63 = vcombine.high %v3644_v51, %v3648_v59 }
 0x24a   :  { %3473 = vmatprep.subr.bf16.mxu1 %v12479_v56  ;;  %v449_v56 = vld [vmem:[#allocation5 + $0x7f8] sm:$0xff] }
 0x24b   :  { %3390 = vmatpush1.bf16.msra.mxu0 %v12724_v54  ;;  %v445_v54 = vld [vmem:[#allocation5 + $0x7d8] sm:$0xff] }
 0x24c   :  { %6710 = vmatprep.subr.bf16.mxu0 %v12729_v62  ;;  %v12776_v62 = vcombine.low %v3644_v51, %v3648_v59  ;;  %v12535_v0 = vcombine.high %v445_v54, %v449_v56  ;;  %v493_v51 = vld [vmem:[#allocation5 + $0x958] sm:$0xff] }
 0x24d   :  { %3474 = vmatpush1.bf16.msra.mxu1 %v12478_v2  ;;  %v453_v2 = vld [vmem:[#allocation5 + $0x818] sm:$0xff] }
 0x24e   :  { %3408 = vmatmul.mubr.bf16.vlgmr.msra.gmra.mrb[4].mxu0 %v15460_v42  ;;  %3475 = vmatprep.subr.bf16.mxu1 %v12487_v61  ;;  %v12534_v61 = vcombine.low %v445_v54, %v449_v56  ;;  %v497_v59 = vld [vmem:[#allocation5 + $0x978] sm:$0xff] }
 0x24f   :  { %6711 = vmatpush1.bf16.msra.mxu0 %v12728_v4  ;;  %6742 = vmatprep.mubr.bf16.mxu0 %v15501_v9  ;;  %v457_v4 = vld [vmem:[#allocation5 + $0x838] sm:$0xff]  ;;  %v12583_v54 = vcombine.high %v493_v51, %v497_v59 }
 0x250   :  { %6712 = vmatprep.subr.bf16.mxu0 %v12737_v8  ;;  %v12784_v8 = vcombine.low %v3652_v58, %v3656_v16  ;;  %v12543_v10 = vcombine.high %v453_v2, %v457_v4  ;;  %v12542_v19 = vcombine.low %v453_v2, %v457_v4  ;;  %v501_v58 = vld [vmem:[#allocation5 + $0x998] sm:$0xff] }
 0x251   :  { %3476 = vmatpush1.bf16.msra.mxu1 %v12486_v13  ;;  %v461_v13 = vld [vmem:[#allocation5 + $0x858] sm:$0xff] }
 0x252   :  { %3477 = vmatprep.subr.bf16.mxu1 %v12495_v17  ;;  %v3668_v17 = vld [vmem:[#allocation8 + $0x240] sm:$0xff]  ;;  %v505_v16 = vld [vmem:[#allocation5 + $0x9b8] sm:$0xff] }
 0x253   :  { %6713 = vmatpush1.bf16.msra.mxu0 %v12736_v14  ;;  %v465_v14 = vld [vmem:[#allocation5 + $0x878] sm:$0xff]  ;;  %v12591_v2 = vcombine.high %v501_v58, %v505_v16 }
 0x254   :  { %6714 = vmatprep.subr.bf16.mxu0 %v12745_v18  ;;  %v3672_v18 = vld [vmem:[#allocation8 + $0x260] sm:$0xff]  ;;  %v12551_v22 = vcombine.high %v461_v13, %v465_v14  ;;  %v12550_v29 = vcombine.low %v461_v13, %v465_v14  ;;  %v12599_v13 = vcombine.high %v509_v5, %v513_v6 }
 0x255   :  { %3478 = vmatpush1.bf16.msra.mxu1 %v12494_v24  ;;  %v12801_v23 = vcombine.high %v3668_v17, %v3672_v18  ;;  %v469_v24 = vld [vmem:[#allocation5 + $0x898] sm:$0xff]  ;;  %v12800_v30 = vcombine.low %v3668_v17, %v3672_v18 }
 0x256   :  { %3479 = vmatprep.subr.bf16.mxu1 %v12503_v26  ;;  %v3676_v26 = vld [vmem:[#allocation8 + $0x280] sm:$0xff]  ;;  %v517_v17 = vld [vmem:[#allocation5 + $0xa18] sm:$0xff] }
 0x257   :  { %6715 = vmatpush1.bf16.msra.mxu0 %v12744_v25  ;;  %v473_v25 = vld [vmem:[#allocation5 + $0x8b8] sm:$0xff] }
 0x258   :  { %6716 = vmatprep.subr.bf16.mxu0 %v12753_v28  ;;  %v3680_v28 = vld [vmem:[#allocation8 + $0x2a0] sm:$0xff]  ;;  %v12559_v31 = vcombine.high %v469_v24, %v473_v25  ;;  %v12558_v38 = vcombine.low %v469_v24, %v473_v25  ;;  %v521_v18 = vld [vmem:[#allocation5 + $0xa38] sm:$0xff]  ;;  %v3580_v25 = vmax.f32 %v15499_v41, 0.0 }
 0x259   :  { %3480 = vmatpush1.bf16.msra.mxu1 %v12502_v33  ;;  %v12809_v32 = vcombine.high %v3676_v26, %v3680_v28  ;;  %v477_v33 = vld [vmem:[#allocation5 + $0x8d8] sm:$0xff]  ;;  %v12607_v24 = vcombine.high %v517_v17, %v521_v18  ;;  %v3744_v41 = vld [vmem:[#allocation8 + $0x4a0] sm:$0xff] }
 0x25a   :  { %3481 = vmatprep.subr.bf16.mxu1 %v12511_v36  ;;  %v3684_v36 = vld [vmem:[#allocation8 + $0x2c0] sm:$0xff] }
 0x25b   :  { %6717 = vmatpush1.bf16.msra.mxu0 %v12752_v35  ;;  %v481_v35 = vld [vmem:[#allocation5 + $0x8f8] sm:$0xff] }
 0x25c   :  { %6718 = vmatprep.subr.bf16.mxu0 %v12761_v37  ;;  %v3688_v37 = vld [vmem:[#allocation8 + $0x2e0] sm:$0xff]  ;;  %v12567_v39 = vcombine.high %v477_v33, %v481_v35 }
 0x25d   :  { %3482 = vmatpush1.bf16.msra.mxu1 %v12510_v44  ;;  %v12817_v40 = vcombine.high %v3684_v36, %v3688_v37  ;;  %v3692_v44 = vld [vmem:[#allocation8 + $0x300] sm:$0xff] }
 0x25e   :  { %3483 = vmatprep.subr.bf16.mxu1 %v12519_v46  ;;  %v12566_v46 = vcombine.low %v477_v33, %v481_v35 }
 0x25f   :  { %6719 = vmatpush1.bf16.msra.mxu0 %v12760_v45  ;;  %v3696_v45 = vld [vmem:[#allocation8 + $0x320] sm:$0xff] }
 0x260   :  { %6720 = vmatprep.subr.bf16.mxu0 %v12769_v47  ;;  %v12816_v47 = vcombine.low %v3684_v36, %v3688_v37  ;;  %v12825_v49 = vcombine.high %v3692_v44, %v3696_v45  ;;  %v15508_v36 = vpack.c.bf16 %v3580_v25, %v3580_v25 }
 0x261   :  { %3484 = vmatpush1.bf16.msra.mxu1 %v12518_v57  ;;  %v3700_v57 = vld [vmem:[#allocation8 + $0x340] sm:$0xff] }
 0x262   :  { %3485 = vmatprep.subr.bf16.mxu1 %v12527_v53 }
 0x263   :  { %6721 = vmatpush1.bf16.msra.mxu0 %v12768_v52  ;;  %v3704_v52 = vld [vmem:[#allocation8 + $0x360] sm:$0xff] }
 0x264   :  { %6722 = vmatprep.subr.bf16.mxu0 %v12777_v63  ;;  %v12824_v63 = vcombine.low %v3692_v44, %v3696_v45  ;;  %v12833_v56 = vcombine.high %v3700_v57, %v3704_v52  ;;  %v541_v45 = vld [vmem:[#allocation5 + $0xad8] sm:$0xff] }
 0x265   :  { %3486 = vmatpush1.bf16.msra.mxu1 %v12526_v60  ;;  %v3708_v60 = vld [vmem:[#allocation8 + $0x380] sm:$0xff] }
 0x266   :  { %3487 = vmatprep.subr.bf16.mxu1 %v12535_v0  ;;  %v12582_v0 = vcombine.low %v493_v51, %v497_v59 }
 0x267   :  { %6723 = vmatpush1.bf16.msra.mxu0 %v12776_v62  ;;  %v3712_v62 = vld [vmem:[#allocation8 + $0x3a0] sm:$0xff] }
 0x268   :  { %6724 = vmatprep.subr.bf16.mxu0 %v12785_v1  ;;  %v12832_v1 = vcombine.low %v3700_v57, %v3704_v52  ;;  %v12841_v4 = vcombine.high %v3708_v60, %v3712_v62  ;;  %v549_v52 = vld [vmem:[#allocation5 + $0xb18] sm:$0xff] }
 0x269   :  { %3488 = vmatpush1.bf16.msra.mxu1 %v12534_v61  ;;  %v3716_v61 = vld [vmem:[#allocation8 + $0x3c0] sm:$0xff] }
 0x26a   :  { %3498 = vmatprep.subr.bf16.mxu1 %v12543_v10  ;;  %v12590_v10 = vcombine.low %v501_v58, %v505_v16 }
 0x26b   :  { %6725 = vmatpush1.bf16.msra.mxu0 %v12784_v8  ;;  %v3720_v8 = vld [vmem:[#allocation8 + $0x3e0] sm:$0xff] }
 0x26c   :  { %6726 = vmatprep.subr.bf16.mxu0 %v12793_v11  ;;  %3490 = vmatmul.mubr.bf16.vlgmr.msra.gmra.mrb[8].mxu1 %v15446_v21  ;;  %v12808_v21 = vcombine.low %v3676_v26, %v3680_v28  ;;  %v12840_v11 = vcombine.low %v3708_v60, %v3712_v62  ;;  %v12849_v14 = vcombine.high %v3716_v61, %v3720_v8  ;;  %v525_v28 = vld [vmem:[#allocation5 + $0xa58] sm:$0xff] }
 0x26d   :  { %3499 = vmatpush1.bf16.msra.mxu1 %v12542_v19  ;;  %3530 = vmatprep.mubr.bf16.mxu1 %v15448_v27  ;;  %v489_v27 = vld [vmem:[#allocation5 + $0x938] sm:$0xff]  ;;  %v3724_v19 = vld [vmem:[#allocation8 + $0x400] sm:$0xff] }
 0x26e   :  { %3500 = vmatprep.subr.bf16.mxu1 %v12551_v22  ;;  %v12575_v48 = vcombine.high %v485_v43, %v489_v27  ;;  %v12574_v53 = vcombine.low %v485_v43, %v489_v27  ;;  %v12598_v22 = vcombine.low %v509_v5, %v513_v6  ;;  %v557_v62 = vld [vmem:[#allocation5 + $0xb58] sm:$0xff] }
 0x26f   :  { %6727 = vmatpush1.bf16.msra.mxu0 %v12792_v20  ;;  %v3728_v20 = vld [vmem:[#allocation8 + $0x420] sm:$0xff] }
 0x270   :  { %6728 = vmatprep.subr.bf16.mxu0 %v12801_v23  ;;  %v12848_v23 = vcombine.low %v3716_v61, %v3720_v8  ;;  %v12857_v26 = vcombine.high %v3724_v19, %v3728_v20  ;;  %v12856_v33 = vcombine.low %v3724_v19, %v3728_v20  ;;  %v565_v8 = vld [vmem:[#allocation5 + $0xb98] sm:$0xff] }
 0x271   :  { %3501 = vmatpush1.bf16.msra.mxu1 %v12550_v29  ;;  %v529_v29 = vld [vmem:[#allocation5 + $0xa78] sm:$0xff] }
 0x272   :  { %3502 = vmatprep.subr.bf16.mxu1 %v12559_v31  ;;  %v3736_v31 = vld [vmem:[#allocation8 + $0x460] sm:$0xff]  ;;  %v12615_v35 = vcombine.high %v525_v28, %v529_v29  ;;  %v573_v20 = vld [vmem:[#allocation5 + $0xbd8] sm:$0xff] }
 0x273   :  { %6729 = vmatpush1.bf16.msra.mxu0 %v12800_v30  ;;  %v3732_v30 = vld [vmem:[#allocation8 + $0x440] sm:$0xff] }
 0x274   :  { %6730 = vmatprep.subr.bf16.mxu0 %v12809_v32  ;;  %v12606_v32 = vcombine.low %v517_v17, %v521_v18  ;;  %v12865_v37 = vcombine.high %v3732_v30, %v3736_v31  ;;  %v12864_v43 = vcombine.low %v3732_v30, %v3736_v31  ;;  %v581_v30 = vld [vmem:[#allocation5 + $0xc18] sm:$0xff] }
 0x275   :  { %3503 = vmatpush1.bf16.msra.mxu1 %v12558_v38  ;;  %v533_v38 = vld [vmem:[#allocation5 + $0xa98] sm:$0xff] }
 0x276   :  { %3504 = vmatprep.subr.bf16.mxu1 %v12567_v39  ;;  %v3740_v39 = vld [vmem:[#allocation8 + $0x480] sm:$0xff]  ;;  %v585_v31 = vld [vmem:[#allocation5 + $0xc38] sm:$0xff] }
 0x277   :  { %6731 = vmatpush1.bf16.msra.mxu0 %v12808_v21  ;;  %v537_v21 = vld [vmem:[#allocation5 + $0xab8] sm:$0xff]  ;;  %v12873_v44 = vcombine.high %v3740_v39, %v3744_v41  ;;  %v12872_v51 = vcombine.low %v3740_v39, %v3744_v41 }
 0x278   :  { %6732 = vmatprep.subr.bf16.mxu0 %v12817_v40  ;;  %v12614_v40 = vcombine.low %v525_v28, %v529_v29  ;;  %v12623_v27 = vcombine.high %v533_v38, %v537_v21  ;;  %v589_v39 = vld [vmem:[#allocation5 + $0xc58] sm:$0xff] }
 0x279   :  { %3505 = vmatpush1.bf16.msra.mxu1 %v12566_v46  ;;  %v545_v46 = vld [vmem:[#allocation5 + $0xaf8] sm:$0xff] }
 0x27a   :  { %3506 = vmatprep.subr.bf16.mxu1 %v12575_v48  ;;  %v3752_v48 = vld [vmem:[#allocation8 + $0x4e0] sm:$0xff]  ;;  %v12631_v59 = vcombine.high %v541_v45, %v545_v46  ;;  %v593_v41 = vld [vmem:[#allocation5 + $0xc78] sm:$0xff] }
 0x27b   :  { %6733 = vmatpush1.bf16.msra.mxu0 %v12816_v47  ;;  %v3748_v47 = vld [vmem:[#allocation8 + $0x4c0] sm:$0xff] }
 0x27c   :  { %6734 = vmatprep.subr.bf16.mxu0 %v12825_v49  ;;  %v12622_v49 = vcombine.low %v533_v38, %v537_v21  ;;  %v12881_v57 = vcombine.high %v3748_v47, %v3752_v48  ;;  %v12880_v58 = vcombine.low %v3748_v47, %v3752_v48  ;;  %v12671_v38 = vcombine.high %v581_v30, %v585_v31  ;;  %v597_v47 = vld [vmem:[#allocation5 + $0xc98] sm:$0xff] }
 0x27d   :  { %3507 = vmatpush1.bf16.msra.mxu1 %v12574_v53  ;;  %v553_v53 = vld [vmem:[#allocation5 + $0xb38] sm:$0xff] }
 0x27e   :  { %3508 = vmatprep.subr.bf16.mxu1 %v12583_v54  ;;  %v3760_v54 = vld [vmem:[#allocation8 + $0x520] sm:$0xff]  ;;  %v12639_v16 = vcombine.high %v549_v52, %v553_v53  ;;  %v601_v48 = vld [vmem:[#allocation5 + $0xcb8] sm:$0xff] }
 0x27f   :  { %6735 = vmatpush1.bf16.msra.mxu0 %v12824_v63  ;;  %v3756_v63 = vld [vmem:[#allocation8 + $0x500] sm:$0xff] }
 0x280   :  { %6736 = vmatprep.subr.bf16.mxu0 %v12833_v56  ;;  %v12630_v56 = vcombine.low %v541_v45, %v545_v46  ;;  %v12889_v60 = vcombine.high %v3756_v63, %v3760_v54  ;;  %v12888_v5 = vcombine.low %v3756_v63, %v3760_v54  ;;  %v12679_v45 = vcombine.high %v589_v39, %v593_v41  ;;  %v605_v63 = vld [vmem:[#allocation5 + $0xcd8] sm:$0xff] }
 0x281   :  { %3509 = vmatpush1.bf16.msra.mxu1 %v12582_v0  ;;  %v561_v0 = vld [vmem:[#allocation5 + $0xb78] sm:$0xff] }
 0x282   :  { %3510 = vmatprep.subr.bf16.mxu1 %v12591_v2  ;;  %v3768_v2 = vld [vmem:[#allocation8 + $0x560] sm:$0xff]  ;;  %v12647_v6 = vcombine.high %v557_v62, %v561_v0  ;;  %v609_v54 = vld [vmem:[#allocation5 + $0xcf8] sm:$0xff] }
 0x283   :  { %6737 = vmatpush1.bf16.msra.mxu0 %v12832_v1  ;;  %v3764_v1 = vld [vmem:[#allocation8 + $0x540] sm:$0xff] }
 0x284   :  { %6738 = vmatprep.subr.bf16.mxu0 %v12841_v4  ;;  %v12638_v4 = vcombine.low %v549_v52, %v553_v53  ;;  %v12897_v61 = vcombine.high %v3764_v1, %v3768_v2  ;;  %v12896_v17 = vcombine.low %v3764_v1, %v3768_v2  ;;  %v12687_v52 = vcombine.high %v597_v47, %v601_v48  ;;  %v617_v1 = vld [vmem:[#allocation5 + $0xd38] sm:$0xff]  ;;  %v3820_v2 = vld [vmem:[#allocation8 + $0x700] sm:$0xff] }
 0x285   :  { %3511 = vmatpush1.bf16.msra.mxu1 %v12590_v10  ;;  %v569_v10 = vld [vmem:[#allocation5 + $0xbb8] sm:$0xff] }
 0x286   :  { %3512 = vmatprep.subr.bf16.mxu1 %v12599_v13  ;;  %v3776_v13 = vld [vmem:[#allocation8 + $0x5a0] sm:$0xff]  ;;  %v12655_v18 = vcombine.high %v565_v8, %v569_v10  ;;  %v12654_v25 = vcombine.low %v565_v8, %v569_v10  ;;  %v621_v10 = vld [vmem:[#allocation5 + $0xd58] sm:$0xff] }
 0x287   :  { %6739 = vmatpush1.bf16.msra.mxu0 %v12840_v11  ;;  %v3772_v11 = vld [vmem:[#allocation8 + $0x580] sm:$0xff] }
 0x288   :  { %6740 = vmatprep.subr.bf16.mxu0 %v12849_v14  ;;  %v12646_v14 = vcombine.low %v557_v62, %v561_v0  ;;  %v12905_v19 = vcombine.high %v3772_v11, %v3776_v13  ;;  %v613_v0 = vld [vmem:[#allocation5 + $0xd18] sm:$0xff] }
 0x289   :  { %3513 = vmatpush1.bf16.msra.mxu1 %v12598_v22  ;;  %v577_v22 = vld [vmem:[#allocation5 + $0xbf8] sm:$0xff] }
 0x28a   :  { %3514 = vmatprep.subr.bf16.mxu1 %v12607_v24  ;;  %v3784_v24 = vld [vmem:[#allocation8 + $0x5e0] sm:$0xff]  ;;  %v12663_v28 = vcombine.high %v573_v20, %v577_v22 }
 0x28b   :  { %6741 = vmatpush1.bf16.msra.mxu0 %v12848_v23  ;;  %v3780_v23 = vld [vmem:[#allocation8 + $0x5c0] sm:$0xff] }
 0x28c   :  { %6751 = vmatprep.subr.bf16.mxu0 %v12857_v26  ;;  %v12904_v26 = vcombine.low %v3772_v11, %v3776_v13  ;;  %v12913_v29 = vcombine.high %v3780_v23, %v3784_v24  ;;  %v625_v11 = vld [vmem:[#allocation5 + $0xd78] sm:$0xff]  ;;  %v3828_v13 = vld [vmem:[#allocation8 + $0x740] sm:$0xff] }
 0x28d   :  { %3515 = vmatpush1.bf16.msra.mxu1 %v12606_v32  ;;  %v3788_v32 = vld [vmem:[#allocation8 + $0x600] sm:$0xff] }
 0x28e   :  { %6743 = vmatmul.mubr.bf16.vlgmr.msra.gmra.mrb[8].mxu0 %v15508_v36  ;;  %3516 = vmatprep.subr.bf16.mxu1 %v12615_v35  ;;  %v12662_v35 = vcombine.low %v573_v20, %v577_v22  ;;  %v12711_v20 = vcombine.high %v621_v10, %v625_v11  ;;  %v15517_v22 = vsub.s32 2, %v15483_v3 }
 0x28f   :  { %6752 = vmatpush1.bf16.msra.mxu0 %v12856_v33  ;;  %v3792_v33 = vld [vmem:[#allocation8 + $0x620] sm:$0xff] }
 0x290   :  { %6753 = vmatprep.subr.bf16.mxu0 %v12865_v37  ;;  %v12912_v37 = vcombine.low %v3780_v23, %v3784_v24  ;;  %v12921_v21 = vcombine.high %v3788_v32, %v3792_v33  ;;  %v629_v24 = vld [vmem:[#allocation5 + $0xd98] sm:$0xff] }
 0x291   :  { %3517 = vmatpush1.bf16.msra.mxu1 %v12614_v40  ;;  %v3796_v40 = vld [vmem:[#allocation8 + $0x640] sm:$0xff] }
 0x292   :  { %3518 = vmatprep.subr.bf16.mxu1 %v12623_v27  ;;  %v12670_v27 = vcombine.low %v581_v30, %v585_v31  ;;  %v12710_v30 = vcombine.low %v621_v10, %v625_v11  ;;  %v3868_v11 = vld [vmem:[#allocation8 + $0x880] sm:$0xff] }
 0x293   :  { %6754 = vmatpush1.bf16.msra.mxu0 %v12864_v43  ;;  %v3800_v43 = vld [vmem:[#allocation8 + $0x660] sm:$0xff] }
 0x294   :  { %6755 = vmatprep.subr.bf16.mxu0 %v12873_v44  ;;  %v12920_v44 = vcombine.low %v3788_v32, %v3792_v33  ;;  %v12929_v46 = vcombine.high %v3796_v40, %v3800_v43  ;;  %v655_v33 = vrot.slane %v15485_v7, %v15517_v22 }
 0x295   :  { %3519 = vmatpush1.bf16.msra.mxu1 %v12622_v49  ;;  %v3804_v49 = vld [vmem:[#allocation8 + $0x680] sm:$0xff] }
 0x296   :  { %3520 = vmatprep.subr.bf16.mxu1 %v12631_v59  ;;  %v12678_v59 = vcombine.low %v589_v39, %v593_v41  ;;  %v3844_v41 = vld [vmem:[#allocation8 + $0x7c0] sm:$0xff] }
 0x297   :  { %6756 = vmatpush1.bf16.msra.mxu0 %v12872_v51  ;;  %v3808_v51 = vld [vmem:[#allocation8 + $0x6a0] sm:$0xff] }
 0x298   :  { %6757 = vmatprep.subr.bf16.mxu0 %v12881_v57  ;;  %v12928_v57 = vcombine.low %v3796_v40, %v3800_v43  ;;  %v12937_v53 = vcombine.high %v3804_v49, %v3808_v51  ;;  %v3848_v40 = vld [vmem:[#allocation8 + $0x7e0] sm:$0xff] }
 0x299   :  { %3521 = vmatpush1.bf16.msra.mxu1 %v12630_v56  ;;  %v3812_v56 = vld [vmem:[#allocation8 + $0x6c0] sm:$0xff] }
 0x29a   :  { %3522 = vmatprep.subr.bf16.mxu1 %v12639_v16  ;;  %v12686_v16 = vcombine.low %v597_v47, %v601_v48 }
 0x29b   :  { %6758 = vmatpush1.bf16.msra.mxu0 %v12880_v58  ;;  %v3816_v58 = vld [vmem:[#allocation8 + $0x6e0] sm:$0xff] }
 0x29c   :  { %6759 = vmatprep.subr.bf16.mxu0 %v12889_v60  ;;  %v12695_v60 = vcombine.high %v605_v63, %v609_v54  ;;  %v12945_v62 = vcombine.high %v3812_v56, %v3816_v58 }
 0x29d   :  { %3523 = vmatpush1.bf16.msra.mxu1 %v12638_v4  ;;  %v3824_v4 = vld [vmem:[#allocation8 + $0x720] sm:$0xff] }
 0x29e   :  { %3524 = vmatprep.subr.bf16.mxu1 %v12647_v6  ;;  %v12944_v6 = vcombine.low %v3812_v56, %v3816_v58  ;;  %v12953_v8 = vcombine.high %v3820_v2, %v3824_v4 }
 0x29f   :  { %6760 = vmatpush1.bf16.msra.mxu0 %v12888_v5  ;;  %v12694_v5 = vcombine.low %v605_v63, %v609_v54  ;;  %v12976_v54 = vcombine.low %v3844_v41, %v3848_v40 }
 0x2a0   :  { %6761 = vmatprep.subr.bf16.mxu0 %v12897_v61  ;;  %v12703_v61 = vcombine.high %v613_v0, %v617_v1 }
 0x2a1   :  { %3525 = vmatpush1.bf16.msra.mxu1 %v12646_v14  ;;  %v3832_v14 = vld [vmem:[#allocation8 + $0x760] sm:$0xff] }
 0x2a2   :  { %3526 = vmatprep.subr.bf16.mxu1 %v12655_v18  ;;  %v15514_v18 = vsub.s32 3, %v15483_v3  ;;  %v12961_v23 = vcombine.high %v3828_v13, %v3832_v14  ;;  %v12960_v31 = vcombine.low %v3828_v13, %v3832_v14  ;;  %v3872_v13 = vld [vmem:[#allocation8 + $0x8a0] sm:$0xff] }
 0x2a3   :  { %6762 = vmatpush1.bf16.msra.mxu0 %v12896_v17  ;;  %v12702_v17 = vcombine.low %v613_v0, %v617_v1  ;;  %v3860_v0 = vld [vmem:[#allocation8 + $0x840] sm:$0xff] }
 0x2a4   :  { %6763 = vmatprep.subr.bf16.mxu0 %v12905_v19  ;;  %v12952_v19 = vcombine.low %v3820_v2, %v3824_v4  ;;  %v3864_v1 = vld [vmem:[#allocation8 + $0x860] sm:$0xff] }
 0x2a5   :  { %3527 = vmatpush1.bf16.msra.mxu1 %v12654_v25  ;;  %v633_v25 = vld [vmem:[#allocation5 + $0xdb8] sm:$0xff] }
 0x2a6   :  { %3528 = vmatprep.subr.bf16.mxu1 %v12663_v28  ;;  %v3840_v28 = vld [vmem:[#allocation8 + $0x7a0] sm:$0xff]  ;;  %v12719_v32 = vcombine.high %v629_v24, %v633_v25 }
 0x2a7   :  { %6764 = vmatpush1.bf16.msra.mxu0 %v12904_v26  ;;  %v3836_v26 = vld [vmem:[#allocation8 + $0x780] sm:$0xff] }
 0x2a8   :  { %6765 = vmatprep.subr.bf16.mxu0 %v12913_v29  ;;  %v659_v29 = vrot.slane %v15485_v7, %v15514_v18  ;;  %v12977_v7 = vcombine.high %v3844_v41, %v3848_v40 }
 0x2a9   :  { %3529 = vmatpush1.bf16.msra.mxu1 %v12662_v35 }
 0x2aa   :  { %3539 = vmatprep.subr.bf16.mxu1 %v12671_v38  ;;  %v637_v38 = vld [vmem:[#allocation5 + $0xdd8] sm:$0xff] }
 0x2ab   :  { %6766 = vmatpush1.bf16.msra.mxu0 %v12912_v37  ;;  %v12969_v37 = vcombine.high %v3836_v26, %v3840_v28 }
 0x2ac   :  { %6767 = vmatprep.subr.bf16.mxu0 %v12921_v21  ;;  %3531 = vmatmul.mubr.bf16.vlgmr.msra.gmra.mrb[8].mxu1 %v15454_v34  ;;  %v12936_v34 = vcombine.low %v3804_v49, %v3808_v51  ;;  %v641_v21 = vld [vmem:[#allocation5 + $0xdf8] sm:$0xff]  ;;  %v3597_v51 = vld [vmem:[#allocation8 + $0x8] sm:$0xff] }
 0x2ad   :  { %3540 = vmatpush1.bf16.msra.mxu1 %v12670_v27  ;;  %3571 = vmatprep.mubr.bf16.mxu1 %v15229_v50  ;;  %v12727_v47 = vcombine.high %v637_v38, %v641_v21  ;;  %v12726_v63 = vcombine.low %v637_v38, %v641_v21  ;;  %v3637_v38 = vld [vmem:[#allocation8 + $0x148] sm:$0xff] }
 0x2ae   :  { %3541 = vmatprep.subr.bf16.mxu1 %v12679_v45  ;;  %v3641_v21 = vld [vmem:[#allocation8 + $0x168] sm:$0xff] }
 0x2af   :  { %6768 = vmatpush1.bf16.msra.mxu0 %v12920_v44  ;;  %v12718_v44 = vcombine.low %v629_v24, %v633_v25  ;;  %v3880_v25 = vld [vmem:[#allocation8 + $0x8e0] sm:$0xff] }
 0x2b0   :  { %6769 = vmatprep.subr.bf16.mxu0 %v12929_v46  ;;  %v12968_v46 = vcombine.low %v3836_v26, %v3840_v28  ;;  %v3629_v28 = vld [vmem:[#allocation8 + $0x108] sm:$0xff] }
 0x2b1   :  { %3542 = vmatpush1.bf16.msra.mxu1 %v12678_v59  ;;  %v3601_v59 = vld [vmem:[#allocation8 + $0x28] sm:$0xff] }
 0x2b2   :  { %3543 = vmatprep.subr.bf16.mxu1 %v12687_v52  ;;  %v3856_v52 = vld [vmem:[#allocation8 + $0x820] sm:$0xff]  ;;  %v12731_v56 = vcombine.high %v3597_v51, %v3601_v59 }
 0x2b3   :  { %6770 = vmatpush1.bf16.msra.mxu0 %v12928_v57  ;;  %v3852_v57 = vld [vmem:[#allocation8 + $0x800] sm:$0xff] }
 0x2b4   :  { %6771 = vmatprep.subr.bf16.mxu0 %v12937_v53 }
 0x2b5   :  { %3544 = vmatpush1.bf16.msra.mxu1 %v12686_v16  ;;  %v3605_v16 = vld [vmem:[#allocation8 + $0x48] sm:$0xff] }
 0x2b6   :  { %3545 = vmatprep.subr.bf16.mxu1 %v12695_v60  ;;  %v12985_v60 = vcombine.high %v3852_v57, %v3856_v52 }
 0x2b7   :  { %6772 = vmatpush1.bf16.msra.mxu0 %v12936_v34  ;;  %v3609_v34 = vld [vmem:[#allocation8 + $0x68] sm:$0xff] }
 0x2b8   :  { %6773 = vmatprep.subr.bf16.mxu0 %v12945_v62  ;;  %v12730_v62 = vcombine.low %v3597_v51, %v3601_v59  ;;  %v12739_v2 = vcombine.high %v3605_v16, %v3609_v34  ;;  %v12738_v10 = vcombine.low %v3605_v16, %v3609_v34  ;;  %v3904_v51 = vld [vmem:[#allocation8 + $0x9a0] sm:$0xff] }
 0x2b9   :  { %3546 = vmatpush1.bf16.msra.mxu1 %v12694_v5  ;;  %v3613_v5 = vld [vmem:[#allocation8 + $0x88] sm:$0xff]  ;;  %v3912_v16 = vld [vmem:[#allocation8 + $0x9e0] sm:$0xff] }
 0x2ba   :  { %3547 = vmatprep.subr.bf16.mxu1 %v12703_v61  ;;  %v12984_v61 = vcombine.low %v3852_v57, %v3856_v52  ;;  %v3653_v57 = vld [vmem:[#allocation8 + $0x1c8] sm:$0xff] }
 0x2bb   :  { %6774 = vmatpush1.bf16.msra.mxu0 %v12944_v6  ;;  %v3617_v6 = vld [vmem:[#allocation8 + $0xa8] sm:$0xff] }
 0x2bc   :  { %6775 = vmatprep.subr.bf16.mxu0 %v12953_v8  ;;  %v12993_v8 = vcombine.high %v3860_v0, %v3864_v1  ;;  %v12747_v14 = vcombine.high %v3613_v5, %v3617_v6  ;;  %v12746_v24 = vcombine.low %v3613_v5, %v3617_v6  ;;  %v3657_v52 = vld [vmem:[#allocation8 + $0x1e8] sm:$0xff]  ;;  %v3916_v5 = vld [vmem:[#allocation8 + $0xa00] sm:$0xff] }
 0x2bd   :  { %3548 = vmatpush1.bf16.msra.mxu1 %v12702_v17  ;;  %v3621_v17 = vld [vmem:[#allocation8 + $0xc8] sm:$0xff]  ;;  %v12787_v34 = vcombine.high %v3653_v57, %v3657_v52  ;;  %v3920_v6 = vld [vmem:[#allocation8 + $0xa20] sm:$0xff] }
 0x2be   :  { %3549 = vmatprep.subr.bf16.mxu1 %v12711_v20  ;;  %v12992_v20 = vcombine.low %v3860_v0, %v3864_v1 }
 0x2bf   :  { %6776 = vmatpush1.bf16.msra.mxu0 %v12952_v19  ;;  %v3245_v35 = vpop.f32.mrb[4].mxu1  ;;  %v3625_v19 = vld [vmem:[#allocation8 + $0xe8] sm:$0xff] }
 0x2c0   :  { %6777 = vmatprep.subr.bf16.mxu0 %v12961_v23  ;;  %v3247_v39 = vpop.f32.mrb[5].mxu1  ;;  %v14005_v48 = vadd.f32 %v3245_v35, %v655_v33  ;;  %v13001_v23 = vcombine.high %v3868_v11, %v3872_v13  ;;  %v12755_v26 = vcombine.high %v3621_v17, %v3625_v19  ;;  %v3884_v33 = vld [vmem:[#allocation8 + $0x900] sm:$0xff] }
 0x2c1   :  { %v14006_v43 = vadd.f32 %v3247_v39, %v659_v29  ;;  %v3249_v27 = vpop.f32.mrb[6].mxu1  ;;  %3550 = vmatpush1.bf16.msra.mxu1 %v12710_v30  ;;  %v3633_v29 = vld [vmem:[#allocation8 + $0x128] sm:$0xff]  ;;  %v13000_v30 = vcombine.low %v3868_v11, %v3872_v13  ;;  %v3888_v35 = vld [vmem:[#allocation8 + $0x920] sm:$0xff]  ;;  %v13049_v13 = vcombine.high %v3916_v5, %v3920_v6 }
 0x2c2   :  { %v3250_v45 = vpop.f32.mrb[7].mxu1  ;;  %3551 = vmatprep.subr.bf16.mxu1 %v12719_v32  ;;  %v3582_v58 = vmax.f32 %v14005_v48, 0.0  ;;  %v12754_v32 = vcombine.low %v3621_v17, %v3625_v19  ;;  %v13017_v41 = vcombine.high %v3884_v33, %v3888_v35  ;;  %v12762_v40 = vcombine.low %v3629_v28, %v3633_v29  ;;  %v3896_v27 = vld [vmem:[#allocation8 + $0x960] sm:$0xff] }
 0x2c3   :  { %6778 = vmatpush1.bf16.msra.mxu0 %v12960_v31  ;;  %v3583_v49 = vmax.f32 %v14006_v43, 0.0  ;;  %v3892_v43 = vld [vmem:[#allocation8 + $0x940] sm:$0xff]  ;;  %v3645_v45 = vld [vmem:[#allocation8 + $0x188] sm:$0xff] }
 0x2c4   :  { %6779 = vmatprep.subr.bf16.mxu0 %v12969_v37  ;;  %v15526_v4 = vpack.c.bf16 %v3582_v58, %v3582_v58  ;;  %v12763_v37 = vcombine.high %v3629_v28, %v3633_v29  ;;  %v13025_v48 = vcombine.high %v3892_v43, %v3896_v27  ;;  %v3908_v58 = vld [vmem:[#allocation8 + $0x9c0] sm:$0xff] }
 0x2c5   :  { %v15523_v53 = vpack.c.bf16 %v3583_v49, %v3583_v49  ;;  %3552 = vmatpush1.bf16.msra.mxu1 %v12718_v44  ;;  %v12771_v44 = vcombine.high %v3637_v38, %v3641_v21  ;;  %v12770_v49 = vcombine.low %v3637_v38, %v3641_v21  ;;  %v13041_v1 = vcombine.high %v3908_v58, %v3912_v16  ;;  %v3924_v17 = vld [vmem:[#allocation8 + $0xa40] sm:$0xff] }
 0x2c6   :  { %3553 = vmatprep.subr.bf16.mxu1 %v12727_v47  ;;  %v13016_v47 = vcombine.low %v3884_v33, %v3888_v35  ;;  %v13040_v11 = vcombine.low %v3908_v58, %v3912_v16  ;;  %v3928_v19 = vld [vmem:[#allocation8 + $0xa60] sm:$0xff] }
 0x2c7   :  { %6780 = vmatpush1.bf16.msra.mxu0 %v12968_v46  ;;  %6783 = vmatprep.mubr.bf16.mxu0 %v15523_v53  ;;  %v3649_v46 = vld [vmem:[#allocation8 + $0x1a8] sm:$0xff]  ;;  %v3932_v28 = vld [vmem:[#allocation8 + $0xa80] sm:$0xff]  ;;  %v13056_v33 = vcombine.low %v3924_v17, %v3928_v19 }
 0x2c8   :  { %6781 = vmatprep.subr.bf16.mxu0 %v12977_v7  ;;  %v3900_v7 = vld [vmem:[#allocation8 + $0x980] sm:$0xff]  ;;  %v12779_v59 = vcombine.high %v3645_v45, %v3649_v46 }
 0x2c9   :  { %3554 = vmatpush1.bf16.msra.mxu1 %v12726_v63  ;;  %v13024_v63 = vcombine.low %v3892_v43, %v3896_v27  ;;  %v13032_v0 = vcombine.low %v3900_v7, %v3904_v51  ;;  %v3936_v29 = vld [vmem:[#allocation8 + $0xaa0] sm:$0xff] }
 0x2ca   :  { %6874 = vmatprep.subr.bf16.mxu1 %v12731_v56  ;;  %v12778_v56 = vcombine.low %v3645_v45, %v3649_v46  ;;  %v13065_v35 = vcombine.high %v3932_v28, %v3936_v29  ;;  %v3940_v38 = vld [vmem:[#allocation8 + $0xac0] sm:$0xff]  ;;  %v13064_v43 = vcombine.low %v3932_v28, %v3936_v29 }
 0x2cb   :  { %6782 = vmatpush1.bf16.msra.mxu0 %v12976_v54  ;;  %v13033_v54 = vcombine.high %v3900_v7, %v3904_v51  ;;  %v3944_v21 = vld [vmem:[#allocation8 + $0xae0] sm:$0xff] }
 0x2cc   :  { %6792 = vmatprep.subr.bf16.mxu0 %v12985_v60  ;;  %3572 = vmatmul.mubr.bf16.vlgmr.msra.gmra.mrb[8].mxu1 %v15460_v42  ;;  %v3876_v42 = vld [vmem:[#allocation8 + $0x8c0] sm:$0xff]  ;;  %v3661_v60 = vld [vmem:[#allocation8 + $0x208] sm:$0xff]  ;;  %v13073_v27 = vcombine.high %v3940_v38, %v3944_v21  ;;  %v13072_v7 = vcombine.low %v3940_v38, %v3944_v21 }
 0x2cd   :  { %6875 = vmatpush1.bf16.msra.mxu1 %v12730_v62  ;;  %6906 = vmatprep.mubr.bf16.mxu1 %v15501_v9  ;;  %v13009_v31 = vcombine.high %v3876_v42, %v3880_v25  ;;  %v13008_v39 = vcombine.low %v3876_v42, %v3880_v25  ;;  %v3665_v62 = vld [vmem:[#allocation8 + $0x228] sm:$0xff]  ;;  %v13048_v42 = vcombine.low %v3916_v5, %v3920_v6  ;;  %v3948_v45 = vld [vmem:[#allocation8 + $0xb00] sm:$0xff] }
 0x2ce   :  { %6784 = vmatmul.mubr.bf16.vlgmr.msra.gmra.mrb[8].mxu0 %v15526_v4  ;;  %6876 = vmatprep.subr.bf16.mxu1 %v12739_v2  ;;  %v12786_v2 = vcombine.low %v3653_v57, %v3657_v52  ;;  %v13057_v25 = vcombine.high %v3924_v17, %v3928_v19  ;;  %v3952_v46 = vld [vmem:[#allocation8 + $0xb20] sm:$0xff]  ;;  %v3749_v38 = vld [vmem:[#allocation8 + $0x4c8] sm:$0xff] }
 0x2cf   :  { %6793 = vmatpush1.bf16.msra.mxu0 %v12984_v61  ;;  %v12795_v61 = vcombine.high %v3661_v60, %v3665_v62  ;;  %v13081_v51 = vcombine.high %v3948_v45, %v3952_v46  ;;  %v3956_v57 = vld [vmem:[#allocation8 + $0xb40] sm:$0xff]  ;;  %v13080_v58 = vcombine.low %v3948_v45, %v3952_v46  ;;  %v3753_v21 = vld [vmem:[#allocation8 + $0x4e8] sm:$0xff] }
 0x2d0   :  { %6794 = vmatprep.subr.bf16.mxu0 %v12993_v8  ;;  %v3669_v8 = vld [vmem:[#allocation8 + $0x248] sm:$0xff]  ;;  %v3960_v52 = vld [vmem:[#allocation8 + $0xb60] sm:$0xff] }
 0x2d1   :  { %6877 = vmatpush1.bf16.msra.mxu1 %v12738_v10  ;;  %v3673_v10 = vld [vmem:[#allocation8 + $0x268] sm:$0xff]  ;;  %v13089_v16 = vcombine.high %v3956_v57, %v3960_v52  ;;  %v13088_v5 = vcombine.low %v3956_v57, %v3960_v52  ;;  %v15545_v57 = vld [vmem:[#allocation7] sm:$0xff] }
 0x2d2   :  { %6878 = vmatprep.subr.bf16.mxu1 %v12747_v14  ;;  %v12794_v14 = vcombine.low %v3661_v60, %v3665_v62  ;;  %v3964_v60 = vld [vmem:[#allocation8 + $0xb80] sm:$0xff]  ;;  %v3765_v45 = vld [vmem:[#allocation8 + $0x548] sm:$0xff] }
 0x2d3   :  { %6795 = vmatpush1.bf16.msra.mxu0 %v12992_v20  ;;  %v12803_v20 = vcombine.high %v3669_v8, %v3673_v10  ;;  %v3968_v62 = vld [vmem:[#allocation8 + $0xba0] sm:$0xff]  ;;  %v3769_v46 = vld [vmem:[#allocation8 + $0x568] sm:$0xff] }
 0x2d4   :  { %6796 = vmatprep.subr.bf16.mxu0 %v13001_v23  ;;  %v3677_v23 = vld [vmem:[#allocation8 + $0x288] sm:$0xff]  ;;  %v13097_v6 = vcombine.high %v3964_v60, %v3968_v62  ;;  %v13096_v17 = vcombine.low %v3964_v60, %v3968_v62 }
 0x2d5   :  { %6879 = vmatpush1.bf16.msra.mxu1 %v12746_v24  ;;  %v3681_v24 = vld [vmem:[#allocation8 + $0x2a8] sm:$0xff] }
 0x2d6   :  { %6880 = vmatprep.subr.bf16.mxu1 %v12755_v26  ;;  %v12802_v26 = vcombine.low %v3669_v8, %v3673_v10  ;;  %v3972_v8 = vld [vmem:[#allocation8 + $0xbc0] sm:$0xff] }
 0x2d7   :  { %6797 = vmatpush1.bf16.msra.mxu0 %v13000_v30  ;;  %v12811_v30 = vcombine.high %v3677_v23, %v3681_v24  ;;  %v3976_v10 = vld [vmem:[#allocation8 + $0xbe0] sm:$0xff] }
 0x2d8   :  { %6798 = vmatprep.subr.bf16.mxu0 %v13009_v31  ;;  %v3685_v31 = vld [vmem:[#allocation8 + $0x2c8] sm:$0xff]  ;;  %v13105_v19 = vcombine.high %v3972_v8, %v3976_v10  ;;  %v13104_v28 = vcombine.low %v3972_v8, %v3976_v10 }
 0x2d9   :  { %6881 = vmatpush1.bf16.msra.mxu1 %v12754_v32  ;;  %v3689_v32 = vld [vmem:[#allocation8 + $0x2e8] sm:$0xff] }
 0x2da   :  { %6882 = vmatprep.subr.bf16.mxu1 %v12763_v37  ;;  %v12810_v37 = vcombine.low %v3677_v23, %v3681_v24  ;;  %v15531_v23 = vld [vmem:[#allocation8 + $0xc00] sm:$0xff]  ;;  %v3789_v8 = vld [vmem:[#allocation8 + $0x608] sm:$0xff] }
 0x2db   :  { %6799 = vmatpush1.bf16.msra.mxu0 %v13008_v39  ;;  %v12819_v39 = vcombine.high %v3685_v31, %v3689_v32  ;;  %v15533_v24 = vld [vmem:[#allocation8 + $0xc20] sm:$0xff]  ;;  %v3793_v10 = vld [vmem:[#allocation8 + $0x628] sm:$0xff] }
 0x2dc   :  { %6800 = vmatprep.subr.bf16.mxu0 %v13017_v41  ;;  %v3693_v41 = vld [vmem:[#allocation8 + $0x308] sm:$0xff]  ;;  %v13113_v29 = vcombine.high %v15531_v23, %v15533_v24 }
 0x2dd   :  { %6883 = vmatpush1.bf16.msra.mxu1 %v12762_v40  ;;  %v3697_v40 = vld [vmem:[#allocation8 + $0x328] sm:$0xff] }
 0x2de   :  { %6884 = vmatprep.subr.bf16.mxu1 %v12771_v44  ;;  %v12818_v44 = vcombine.low %v3685_v31, %v3689_v32  ;;  %v3741_v32 = vld [vmem:[#allocation8 + $0x488] sm:$0xff] }
 0x2df   :  { %6801 = vmatpush1.bf16.msra.mxu0 %v13016_v47  ;;  %v12827_v47 = vcombine.high %v3693_v41, %v3697_v40 }
 0x2e0   :  { %6802 = vmatprep.subr.bf16.mxu0 %v13025_v48  ;;  %v3701_v48 = vld [vmem:[#allocation8 + $0x348] sm:$0xff] }
 0x2e1   :  { %6885 = vmatpush1.bf16.msra.mxu1 %v12770_v49  ;;  %v3705_v49 = vld [vmem:[#allocation8 + $0x368] sm:$0xff] }
 0x2e2   :  { %6886 = vmatprep.subr.bf16.mxu1 %v12779_v59  ;;  %v12826_v59 = vcombine.low %v3693_v41, %v3697_v40  ;;  %v12883_v41 = vcombine.high %v3749_v38, %v3753_v21  ;;  %v3757_v40 = vld [vmem:[#allocation8 + $0x508] sm:$0xff] }
 0x2e3   :  { %6803 = vmatpush1.bf16.msra.mxu0 %v13024_v63  ;;  %v12835_v63 = vcombine.high %v3701_v48, %v3705_v49 }
 0x2e4   :  { %6804 = vmatprep.subr.bf16.mxu0 %v13033_v54  ;;  %v3709_v54 = vld [vmem:[#allocation8 + $0x388] sm:$0xff] }
 0x2e5   :  { %6887 = vmatpush1.bf16.msra.mxu1 %v12778_v56  ;;  %v3713_v56 = vld [vmem:[#allocation8 + $0x3a8] sm:$0xff] }
 0x2e6   :  { %6888 = vmatprep.subr.bf16.mxu1 %v12787_v34  ;;  %v12834_v34 = vcombine.low %v3701_v48, %v3705_v49  ;;  %v15540_v48 = vsub.s32 4, %v15483_v3  ;;  %v15543_v49 = vsub.s32 5, %v15483_v3 }
 0x2e7   :  { %6805 = vmatpush1.bf16.msra.mxu0 %v13032_v0  ;;  %v12843_v0 = vcombine.high %v3709_v54, %v3713_v56 }
 0x2e8   :  { %6806 = vmatprep.subr.bf16.mxu0 %v13041_v1  ;;  %v3717_v1 = vld [vmem:[#allocation8 + $0x3c8] sm:$0xff]  ;;  %v663_v52 = vrot.slane %v15545_v57, %v15540_v48 }
 0x2e9   :  { %6889 = vmatpush1.bf16.msra.mxu1 %v12786_v2  ;;  %v3721_v2 = vld [vmem:[#allocation8 + $0x3e8] sm:$0xff] }
 0x2ea   :  { %6890 = vmatprep.subr.bf16.mxu1 %v12795_v61  ;;  %v12842_v61 = vcombine.low %v3709_v54, %v3713_v56  ;;  %v667_v54 = vrot.slane %v15545_v57, %v15543_v49 }
 0x2eb   :  { %6807 = vmatpush1.bf16.msra.mxu0 %v13040_v11  ;;  %v12851_v11 = vcombine.high %v3717_v1, %v3721_v2 }
 0x2ec   :  { %6808 = vmatprep.subr.bf16.mxu0 %v13049_v13  ;;  %v3725_v13 = vld [vmem:[#allocation8 + $0x408] sm:$0xff] }
 0x2ed   :  { %6891 = vmatpush1.bf16.msra.mxu1 %v12794_v14  ;;  %v3729_v14 = vld [vmem:[#allocation8 + $0x428] sm:$0xff] }
 0x2ee   :  { %6892 = vmatprep.subr.bf16.mxu1 %v12803_v20  ;;  %v12850_v20 = vcombine.low %v3717_v1, %v3721_v2 }
 0x2ef   :  { %6809 = vmatpush1.bf16.msra.mxu0 %v13048_v42  ;;  %v12859_v42 = vcombine.high %v3725_v13, %v3729_v14 }
 0x2f0   :  { %6810 = vmatprep.subr.bf16.mxu0 %v13057_v25  ;;  %v3733_v25 = vld [vmem:[#allocation8 + $0x448] sm:$0xff] }
 0x2f1   :  { %6893 = vmatpush1.bf16.msra.mxu1 %v12802_v26  ;;  %v3737_v26 = vld [vmem:[#allocation8 + $0x468] sm:$0xff] }
 0x2f2   :  { %6894 = vmatprep.subr.bf16.mxu1 %v12811_v30  ;;  %v12858_v30 = vcombine.low %v3725_v13, %v3729_v14  ;;  %v12867_v31 = vcombine.high %v3733_v25, %v3737_v26  ;;  %v3988_v13 = vld [vmem:[#allocation8 + $0xc40] sm:$0xff] }
 0x2f3   :  { %6811 = vmatpush1.bf16.msra.mxu0 %v13056_v33  ;;  %v3745_v33 = vld [vmem:[#allocation8 + $0x4a8] sm:$0xff]  ;;  %v3992_v14 = vld [vmem:[#allocation8 + $0xc60] sm:$0xff] }
 0x2f4   :  { %6812 = vmatprep.subr.bf16.mxu0 %v13065_v35  ;;  %v12866_v35 = vcombine.low %v3733_v25, %v3737_v26  ;;  %v12923_v25 = vcombine.high %v3789_v8, %v3793_v10  ;;  %v13112_v26 = vcombine.low %v15531_v23, %v15533_v24  ;;  %v13120_v23 = vcombine.low %v3988_v13, %v3992_v14  ;;  %v3805_v24 = vld [vmem:[#allocation8 + $0x688] sm:$0xff] }
 0x2f5   :  { %6895 = vmatpush1.bf16.msra.mxu1 %v12810_v37  ;;  %v12875_v37 = vcombine.high %v3741_v32, %v3745_v33 }
 0x2f6   :  { %6896 = vmatprep.subr.bf16.mxu1 %v12819_v39  ;;  %v12874_v39 = vcombine.low %v3741_v32, %v3745_v33  ;;  %v3996_v33 = vld [vmem:[#allocation8 + $0xc80] sm:$0xff] }
 0x2f7   :  { %6813 = vmatpush1.bf16.msra.mxu0 %v13064_v43  ;;  %v3761_v43 = vld [vmem:[#allocation8 + $0x528] sm:$0xff] }
 0x2f8   :  { %6814 = vmatprep.subr.bf16.mxu0 %v13073_v27  ;;  %v12882_v27 = vcombine.low %v3749_v38, %v3753_v21  ;;  %v3809_v21 = vld [vmem:[#allocation8 + $0x6a8] sm:$0xff] }
 0x2f9   :  { %6897 = vmatpush1.bf16.msra.mxu1 %v12818_v44  ;;  %v12891_v44 = vcombine.high %v3757_v40, %v3761_v43 }
 0x2fa   :  { %6898 = vmatprep.subr.bf16.mxu1 %v12827_v47  ;;  %v12890_v47 = vcombine.low %v3757_v40, %v3761_v43  ;;  %v4008_v40 = vld [vmem:[#allocation8 + $0xce0] sm:$0xff] }
 0x2fb   :  { %6815 = vmatpush1.bf16.msra.mxu0 %v13072_v7  ;;  %v12899_v7 = vcombine.high %v3765_v45, %v3769_v46 }
 0x2fc   :  { %6816 = vmatprep.subr.bf16.mxu0 %v13081_v51  ;;  %v3773_v51 = vld [vmem:[#allocation8 + $0x588] sm:$0xff] }
 0x2fd   :  { %6899 = vmatpush1.bf16.msra.mxu1 %v12826_v59  ;;  %v3777_v59 = vld [vmem:[#allocation8 + $0x5a8] sm:$0xff] }
 0x2fe   :  { %6900 = vmatprep.subr.bf16.mxu1 %v12835_v63  ;;  %v12898_v63 = vcombine.low %v3765_v45, %v3769_v46  ;;  %v12907_v56 = vcombine.high %v3773_v51, %v3777_v59  ;;  %v3813_v45 = vld [vmem:[#allocation8 + $0x6c8] sm:$0xff] }
 0x2ff   :  { %6817 = vmatpush1.bf16.msra.mxu0 %v13080_v58  ;;  %v3781_v58 = vld [vmem:[#allocation8 + $0x5c8] sm:$0xff] }
 0x300   :  { %6818 = vmatprep.subr.bf16.mxu0 %v13089_v16  ;;  %v3785_v16 = vld [vmem:[#allocation8 + $0x5e8] sm:$0xff] }
 0x301   :  { %6901 = vmatpush1.bf16.msra.mxu1 %v12834_v34  ;;  %v3817_v46 = vld [vmem:[#allocation8 + $0x6e8] sm:$0xff] }
 0x302   :  { %6902 = vmatprep.subr.bf16.mxu1 %v12843_v0  ;;  %v12906_v0 = vcombine.low %v3773_v51, %v3777_v59  ;;  %v4016_v51 = vld [vmem:[#allocation8 + $0xd20] sm:$0xff]  ;;  %v12938_v59 = vcombine.low %v3805_v24, %v3809_v21 }
 0x303   :  { %6819 = vmatpush1.bf16.msra.mxu0 %v13088_v5  ;;  %v12915_v5 = vcombine.high %v3781_v58, %v3785_v16 }
 0x304   :  { %6820 = vmatprep.subr.bf16.mxu0 %v13097_v6 }
 0x305   :  { %6903 = vmatpush1.bf16.msra.mxu1 %v12842_v61 }
 0x306   :  { %6904 = vmatprep.subr.bf16.mxu1 %v12851_v11 }
 0x307   :  { %6821 = vmatpush1.bf16.msra.mxu0 %v13096_v17  ;;  %v12914_v17 = vcombine.low %v3781_v58, %v3785_v16  ;;  %v4020_v16 = vld [vmem:[#allocation8 + $0xd40] sm:$0xff] }
 0x308   :  { %6822 = vmatprep.subr.bf16.mxu0 %v13105_v19  ;;  %v15551_v19 = vld [vmem:[#allocation8 + $0x10] sm:$0xff] }
 0x309   :  { %6905 = vmatpush1.bf16.msra.mxu1 %v12850_v20  ;;  %v15553_v20 = vld [vmem:[#allocation8 + $0x30] sm:$0xff] }
 0x30a   :  { %6915 = vmatprep.subr.bf16.mxu1 %v12859_v42  ;;  %v12732_v32 = vcombine.low %v15551_v19, %v15553_v20 }
 0x30b   :  { %6823 = vmatpush1.bf16.msra.mxu0 %v13104_v28 }
 0x30c   :  { %6907 = vmatmul.mubr.bf16.vlgmr.msra.gmra.mrb[12].mxu1 %v15508_v36  ;;  %6833 = vmatprep.subr.bf16.mxu0 %v13113_v29  ;;  %v3797_v29 = vld [vmem:[#allocation8 + $0x648] sm:$0xff] }
 0x30d   :  { %6916 = vmatpush1.bf16.msra.mxu1 %v12858_v30  ;;  %6947 = vmatprep.mubr.bf16.mxu1 %v15523_v53  ;;  %v3801_v30 = vld [vmem:[#allocation8 + $0x668] sm:$0xff] }
 0x30e   :  { %6917 = vmatprep.subr.bf16.mxu1 %v12867_v31  ;;  %v13121_v31 = vcombine.high %v3988_v13, %v3992_v14  ;;  %v12931_v38 = vcombine.high %v3797_v29, %v3801_v30  ;;  %v12930_v43 = vcombine.low %v3797_v29, %v3801_v30  ;;  %v3837_v13 = vld [vmem:[#allocation8 + $0x788] sm:$0xff] }
 0x30f   :  { %v3841_v14 = vld [vmem:[#allocation8 + $0x7a8] sm:$0xff] }
 0x310   :  { %v12971_v30 = vcombine.high %v3837_v13, %v3841_v14 }
 0x311   :  { %6918 = vmatpush1.bf16.msra.mxu1 %v12866_v35  ;;  %v4000_v35 = vld [vmem:[#allocation8 + $0xca0] sm:$0xff] }
 0x312   :  { %6919 = vmatprep.subr.bf16.mxu1 %v12875_v37  ;;  %v12922_v37 = vcombine.low %v3789_v8, %v3793_v10 }
 0x315   :  { %6920 = vmatpush1.bf16.msra.mxu1 %v12874_v39  ;;  %v13129_v39 = vcombine.high %v3996_v33, %v4000_v35 }
 0x316   :  { %6921 = vmatprep.subr.bf16.mxu1 %v12883_v41  ;;  %v4004_v41 = vld [vmem:[#allocation8 + $0xcc0] sm:$0xff] }
 0x319   :  { %6922 = vmatpush1.bf16.msra.mxu1 %v12882_v27  ;;  %v12939_v27 = vcombine.high %v3805_v24, %v3809_v21  ;;  %v12970_v24 = vcombine.low %v3837_v13, %v3841_v14 }
 0x31a   :  { %6923 = vmatprep.subr.bf16.mxu1 %v12891_v44  ;;  %v13128_v44 = vcombine.low %v3996_v33, %v4000_v35  ;;  %v3845_v33 = vld [vmem:[#allocation8 + $0x7c8] sm:$0xff] }
 0x31b   :  { %v3849_v35 = vld [vmem:[#allocation8 + $0x7e8] sm:$0xff] }
 0x31c   :  { %v12979_v21 = vcombine.high %v3845_v33, %v3849_v35 }
 0x31d   :  { %6924 = vmatpush1.bf16.msra.mxu1 %v12890_v47  ;;  %v13137_v47 = vcombine.high %v4004_v41, %v4008_v40 }
 0x31e   :  { %6925 = vmatprep.subr.bf16.mxu1 %v12899_v7  ;;  %v4012_v7 = vld [vmem:[#allocation8 + $0xd00] sm:$0xff] }
 0x31f   :  { %v13145_v58 = vcombine.high %v4012_v7, %v4016_v51 }
 0x321   :  { %v3409_v34 = vpop.f32.mrb[4].mxu0  ;;  %6926 = vmatpush1.bf16.msra.mxu1 %v12898_v63  ;;  %v13136_v63 = vcombine.low %v4004_v41, %v4008_v40  ;;  %v3853_v41 = vld [vmem:[#allocation8 + $0x808] sm:$0xff] }
 0x322   :  { %v14007_v60 = vadd.f32 %v3409_v34, %v663_v52  ;;  %v3411_v62 = vpop.f32.mrb[5].mxu0  ;;  %6927 = vmatprep.subr.bf16.mxu1 %v12907_v56  ;;  %v12947_v52 = vcombine.high %v3813_v45, %v3817_v46  ;;  %v3825_v56 = vld [vmem:[#allocation8 + $0x728] sm:$0xff]  ;;  %v4024_v34 = vld [vmem:[#allocation8 + $0xd60] sm:$0xff] }
 0x323   :  { %v14008_v1 = vadd.f32 %v3411_v62, %v667_v54  ;;  %v3413_v2 = vpop.f32.mrb[6].mxu0  ;;  %v3821_v54 = vld [vmem:[#allocation8 + $0x708] sm:$0xff] }
 0x324   :  { %v3584_v6 = vmax.f32 %v14007_v60, 0.0  ;;  %v3414_v61 = vpop.f32.mrb[7].mxu0  ;;  %v12946_v60 = vcombine.low %v3813_v45, %v3817_v46  ;;  %v12955_v62 = vcombine.high %v3821_v54, %v3825_v56  ;;  %v3833_v2 = vld [vmem:[#allocation8 + $0x768] sm:$0xff]  ;;  %v12954_v8 = vcombine.low %v3821_v54, %v3825_v56 }
 0x325   :  { %v3585_v11 = vmax.f32 %v14008_v1, 0.0  ;;  %6928 = vmatpush1.bf16.msra.mxu1 %v12906_v0  ;;  %v13144_v0 = vcombine.low %v4012_v7, %v4016_v51  ;;  %v3829_v1 = vld [vmem:[#allocation8 + $0x748] sm:$0xff]  ;;  %v4032_v61 = vld [vmem:[#allocation8 + $0xda0] sm:$0xff]  ;;  %v12978_v45 = vcombine.low %v3845_v33, %v3849_v35 }
 0x326   :  { %6929 = vmatprep.subr.bf16.mxu1 %v12915_v5  ;;  %v15559_v28 = vpack.c.bf16 %v3584_v6, %v3584_v6  ;;  %v13153_v5 = vcombine.high %v4020_v16, %v4024_v34  ;;  %v4028_v6 = vld [vmem:[#allocation8 + $0xd80] sm:$0xff]  ;;  %v12963_v10 = vcombine.high %v3829_v1, %v3833_v2  ;;  %v12962_v29 = vcombine.low %v3829_v1, %v3833_v2  ;;  %v3857_v40 = vld [vmem:[#allocation8 + $0x828] sm:$0xff] }
 0x327   :  { %v15555_v42 = vpack.c.bf16 %v3585_v11, %v3585_v11  ;;  %v13152_v11 = vcombine.low %v4020_v16, %v4024_v34  ;;  %v12987_v46 = vcombine.high %v3853_v41, %v3857_v40  ;;  %v3861_v7 = vld [vmem:[#allocation8 + $0x848] sm:$0xff]  ;;  %v12986_v54 = vcombine.low %v3853_v41, %v3857_v40 }
 0x328   :  { %v3865_v51 = vld [vmem:[#allocation8 + $0x868] sm:$0xff] }
 0x329   :  { %6824 = vmatprep.mubr.bf16.mxu0 %v15555_v42  ;;  %6930 = vmatpush1.bf16.msra.mxu1 %v12914_v17  ;;  %v13161_v17 = vcombine.high %v4028_v6, %v4032_v61  ;;  %v12995_v56 = vcombine.high %v3861_v7, %v3865_v51  ;;  %v3869_v16 = vld [vmem:[#allocation8 + $0x888] sm:$0xff]  ;;  %v12994_v1 = vcombine.low %v3861_v7, %v3865_v51 }
 0x32a   :  { %6825 = vmatmul.mubr.bf16.vlgmr.msra.gmra.mrb[8].mxu0 %v15559_v28  ;;  %6931 = vmatprep.subr.bf16.mxu1 %v12923_v25  ;;  %v4036_v25 = vld [vmem:[#allocation8 + $0xdc0] sm:$0xff]  ;;  %v3873_v34 = vld [vmem:[#allocation8 + $0x8a8] sm:$0xff] }
 0x32b   :  { %6834 = vmatpush1.bf16.msra.mxu0 %v13112_v26  ;;  %v4040_v26 = vld [vmem:[#allocation8 + $0xde0] sm:$0xff]  ;;  %v13003_v2 = vcombine.high %v3869_v16, %v3873_v34  ;;  %v13002_v13 = vcombine.low %v3869_v16, %v3873_v34  ;;  %v3917_v34 = vld [vmem:[#allocation8 + $0xa08] sm:$0xff] }
 0x32c   :  { %6835 = vmatprep.subr.bf16.mxu0 %v13121_v31  ;;  %v13160_v31 = vcombine.low %v4028_v6, %v4032_v61  ;;  %v3877_v6 = vld [vmem:[#allocation8 + $0x8c8] sm:$0xff] }
 0x32d   :  { %6932 = vmatpush1.bf16.msra.mxu1 %v12922_v37  ;;  %v13169_v37 = vcombine.high %v4036_v25, %v4040_v26  ;;  %v3881_v61 = vld [vmem:[#allocation8 + $0x8e8] sm:$0xff] }
 0x32e   :  { %6933 = vmatprep.subr.bf16.mxu1 %v12931_v38  ;;  %v4044_v38 = vld [vmem:[#allocation8 + $0xe00] sm:$0xff]  ;;  %v13011_v14 = vcombine.high %v3877_v6, %v3881_v61  ;;  %v13010_v33 = vcombine.low %v3877_v6, %v3881_v61 }
 0x32f   :  { %6836 = vmatpush1.bf16.msra.mxu0 %v13120_v23  ;;  %v4048_v23 = vld [vmem:[#allocation8 + $0xe20] sm:$0xff] }
 0x330   :  { %6837 = vmatprep.subr.bf16.mxu0 %v13129_v39  ;;  %v13168_v39 = vcombine.low %v4036_v25, %v4040_v26  ;;  %v3885_v25 = vld [vmem:[#allocation8 + $0x908] sm:$0xff] }
 0x331   :  { %6934 = vmatpush1.bf16.msra.mxu1 %v12930_v43  ;;  %v13177_v43 = vcombine.high %v4044_v38, %v4048_v23  ;;  %v3889_v26 = vld [vmem:[#allocation8 + $0x928] sm:$0xff] }
 0x332   :  { %6935 = vmatprep.subr.bf16.mxu1 %v12939_v27  ;;  %v4052_v27 = vld [vmem:[#allocation8 + $0xe40] sm:$0xff]  ;;  %v13019_v35 = vcombine.high %v3885_v25, %v3889_v26  ;;  %v13018_v41 = vcombine.low %v3885_v25, %v3889_v26 }
 0x333   :  { %6838 = vmatpush1.bf16.msra.mxu0 %v13128_v44  ;;  %v4056_v44 = vld [vmem:[#allocation8 + $0xe60] sm:$0xff] }
 0x334   :  { %6839 = vmatprep.subr.bf16.mxu0 %v13137_v47  ;;  %v13176_v47 = vcombine.low %v4044_v38, %v4048_v23  ;;  %v3893_v38 = vld [vmem:[#allocation8 + $0x948] sm:$0xff] }
 0x335   :  { %6936 = vmatpush1.bf16.msra.mxu1 %v12938_v59  ;;  %v13185_v59 = vcombine.high %v4052_v27, %v4056_v44  ;;  %v3897_v23 = vld [vmem:[#allocation8 + $0x968] sm:$0xff] }
 0x336   :  { %6937 = vmatprep.subr.bf16.mxu1 %v12947_v52  ;;  %v4060_v52 = vld [vmem:[#allocation8 + $0xe80] sm:$0xff]  ;;  %v13027_v40 = vcombine.high %v3893_v38, %v3897_v23  ;;  %v13026_v7 = vcombine.low %v3893_v38, %v3897_v23 }
 0x337   :  { %6840 = vmatpush1.bf16.msra.mxu0 %v13136_v63  ;;  %v4064_v63 = vld [vmem:[#allocation8 + $0xea0] sm:$0xff] }
 0x338   :  { %6841 = vmatprep.subr.bf16.mxu0 %v13145_v58  ;;  %v13184_v58 = vcombine.low %v4052_v27, %v4056_v44  ;;  %v3901_v27 = vld [vmem:[#allocation8 + $0x988] sm:$0xff] }
 0x339   :  { %6938 = vmatpush1.bf16.msra.mxu1 %v12946_v60  ;;  %v13193_v60 = vcombine.high %v4060_v52, %v4064_v63  ;;  %v3905_v44 = vld [vmem:[#allocation8 + $0x9a8] sm:$0xff] }
 0x33a   :  { %6939 = vmatprep.subr.bf16.mxu1 %v12955_v62  ;;  %v4068_v62 = vld [vmem:[#allocation8 + $0xec0] sm:$0xff]  ;;  %v13035_v51 = vcombine.high %v3901_v27, %v3905_v44 }
 0x33b   :  { %6842 = vmatpush1.bf16.msra.mxu0 %v13144_v0  ;;  %v4072_v0 = vld [vmem:[#allocation8 + $0xee0] sm:$0xff] }
 0x33c   :  { %6843 = vmatprep.subr.bf16.mxu0 %v13153_v5  ;;  %v13192_v5 = vcombine.low %v4060_v52, %v4064_v63  ;;  %v3909_v52 = vld [vmem:[#allocation8 + $0x9c8] sm:$0xff] }
 0x33d   :  { %6940 = vmatpush1.bf16.msra.mxu1 %v12954_v8  ;;  %v13201_v8 = vcombine.high %v4068_v62, %v4072_v0  ;;  %v3913_v63 = vld [vmem:[#allocation8 + $0x9e8] sm:$0xff] }
 0x33e   :  { %6941 = vmatprep.subr.bf16.mxu1 %v12963_v10  ;;  %v4076_v10 = vld [vmem:[#allocation8 + $0xf00] sm:$0xff] }
 0x33f   :  { %6844 = vmatpush1.bf16.msra.mxu0 %v13152_v11  ;;  %v4080_v11 = vld [vmem:[#allocation8 + $0xf20] sm:$0xff] }
 0x340   :  { %6845 = vmatprep.subr.bf16.mxu0 %v13161_v17  ;;  %v13200_v17 = vcombine.low %v4068_v62, %v4072_v0  ;;  %v12733_v62 = vcombine.high %v15551_v19, %v15553_v20  ;;  %v13042_v0 = vcombine.low %v3909_v52, %v3913_v63 }
 0x341   :  { %6942 = vmatpush1.bf16.msra.mxu1 %v12962_v29  ;;  %v13209_v29 = vcombine.high %v4076_v10, %v4080_v11 }
 0x342   :  { %6943 = vmatprep.subr.bf16.mxu1 %v12971_v30  ;;  %v4084_v30 = vld [vmem:[#allocation8 + $0xf40] sm:$0xff] }
 0x343   :  { %6846 = vmatpush1.bf16.msra.mxu0 %v13160_v31  ;;  %v4088_v31 = vld [vmem:[#allocation8 + $0xf60] sm:$0xff] }
 0x344   :  { %6847 = vmatprep.subr.bf16.mxu0 %v13169_v37  ;;  %v13208_v37 = vcombine.low %v4076_v10, %v4080_v11  ;;  %v3937_v10 = vld [vmem:[#allocation8 + $0xaa8] sm:$0xff] }
 0x345   :  { %6944 = vmatpush1.bf16.msra.mxu1 %v12970_v24  ;;  %v13217_v24 = vcombine.high %v4084_v30, %v4088_v31 }
 0x346   :  { %6945 = vmatprep.subr.bf16.mxu1 %v12979_v21  ;;  %v4092_v21 = vld [vmem:[#allocation8 + $0xf80] sm:$0xff] }
 0x347   :  { %6848 = vmatpush1.bf16.msra.mxu0 %v13168_v39  ;;  %v4096_v39 = vld [vmem:[#allocation8 + $0xfa0] sm:$0xff] }
 0x348   :  { %6849 = vmatprep.subr.bf16.mxu0 %v13177_v43  ;;  %v13216_v43 = vcombine.low %v4084_v30, %v4088_v31  ;;  %v3953_v30 = vld [vmem:[#allocation8 + $0xb28] sm:$0xff] }
 0x349   :  { %6946 = vmatpush1.bf16.msra.mxu1 %v12978_v45  ;;  %v13225_v45 = vcombine.high %v4092_v21, %v4096_v39 }
 0x34a   :  { %6956 = vmatprep.subr.bf16.mxu1 %v12987_v46  ;;  %v4100_v46 = vld [vmem:[#allocation8 + $0xfc0] sm:$0xff] }
 0x34b   :  { %6850 = vmatpush1.bf16.msra.mxu0 %v13176_v47  ;;  %v4104_v47 = vld [vmem:[#allocation8 + $0xfe0] sm:$0xff] }
 0x34c   :  { %6851 = vmatprep.subr.bf16.mxu0 %v13185_v59  ;;  %6948 = vmatmul.mubr.bf16.vlgmr.msra.gmra.mrb[12].mxu1 %v15526_v4  ;;  %v13224_v59 = vcombine.low %v4092_v21, %v4096_v39  ;;  %v13232_v16 = vcombine.low %v4100_v46, %v4104_v47  ;;  %v3969_v21 = vld [vmem:[#allocation8 + $0xba8] sm:$0xff] }
 0x34d   :  { %6957 = vmatpush1.bf16.msra.mxu1 %v12986_v54  ;;  %6988 = vmatprep.mubr.bf16.mxu1 %v15555_v42  ;;  %v13233_v54 = vcombine.high %v4100_v46, %v4104_v47  ;;  %v3985_v46 = vld [vmem:[#allocation8 + $0xc28] sm:$0xff] }
 0x34e   :  { %6958 = vmatprep.subr.bf16.mxu1 %v12995_v56  ;;  %v13034_v56 = vcombine.low %v3901_v27, %v3905_v44 }
 0x34f   :  { %6852 = vmatpush1.bf16.msra.mxu0 %v13184_v58  ;;  %v13043_v58 = vcombine.high %v3909_v52, %v3913_v63 }
 0x350   :  { %6853 = vmatprep.subr.bf16.mxu0 %v13193_v60  ;;  %v3921_v60 = vld [vmem:[#allocation8 + $0xa28] sm:$0xff] }
 0x351   :  { %6959 = vmatpush1.bf16.msra.mxu1 %v12994_v1  ;;  %v13051_v1 = vcombine.high %v3917_v34, %v3921_v60  ;;  %v13050_v6 = vcombine.low %v3917_v34, %v3921_v60  ;;  %v4005_v34 = vld [vmem:[#allocation8 + $0xcc8] sm:$0xff] }
 0x352   :  { %6960 = vmatprep.subr.bf16.mxu1 %v13003_v2  ;;  %v3925_v2 = vld [vmem:[#allocation8 + $0xa48] sm:$0xff] }
 0x353   :  { %6854 = vmatpush1.bf16.msra.mxu0 %v13192_v5  ;;  %v3929_v5 = vld [vmem:[#allocation8 + $0xa68] sm:$0xff] }
 0x354   :  { %6855 = vmatprep.subr.bf16.mxu0 %v13201_v8  ;;  %v13059_v61 = vcombine.high %v3925_v2, %v3929_v5  ;;  %v3933_v8 = vld [vmem:[#allocation8 + $0xa88] sm:$0xff]  ;;  %v13058_v11 = vcombine.low %v3925_v2, %v3929_v5 }
 0x355   :  { %6961 = vmatpush1.bf16.msra.mxu1 %v13002_v13  ;;  %v13067_v13 = vcombine.high %v3933_v8, %v3937_v10  ;;  %v13066_v25 = vcombine.low %v3933_v8, %v3937_v10  ;;  %v4009_v60 = vld [vmem:[#allocation8 + $0xce8] sm:$0xff]  ;;  %v15571_v10 = vsub.s32 6, %v15483_v3 }
 0x356   :  { %6962 = vmatprep.subr.bf16.mxu1 %v13011_v14  ;;  %v3941_v14 = vld [vmem:[#allocation8 + $0xac8] sm:$0xff]  ;;  %v13138_v5 = vcombine.low %v4005_v34, %v4009_v60 }
 0x357   :  { %6856 = vmatpush1.bf16.msra.mxu0 %v13200_v17  ;;  %v3945_v17 = vld [vmem:[#allocation8 + $0xae8] sm:$0xff] }
 0x358   :  { %6857 = vmatprep.subr.bf16.mxu0 %v13209_v29  ;;  %v13075_v26 = vcombine.high %v3941_v14, %v3945_v17  ;;  %v3949_v29 = vld [vmem:[#allocation8 + $0xb08] sm:$0xff]  ;;  %v13074_v31 = vcombine.low %v3941_v14, %v3945_v17 }
 0x359   :  { %6963 = vmatpush1.bf16.msra.mxu1 %v13010_v33  ;;  %v13083_v33 = vcombine.high %v3949_v29, %v3953_v30  ;;  %v13082_v38 = vcombine.low %v3949_v29, %v3953_v30  ;;  %v4017_v2 = vld [vmem:[#allocation8 + $0xd28] sm:$0xff] }
 0x35a   :  { %6964 = vmatprep.subr.bf16.mxu1 %v13019_v35  ;;  %v3957_v35 = vld [vmem:[#allocation8 + $0xb48] sm:$0xff] }
 0x35b   :  { %6858 = vmatpush1.bf16.msra.mxu0 %v13208_v37  ;;  %v3961_v37 = vld [vmem:[#allocation8 + $0xb68] sm:$0xff] }
 0x35c   :  { %6859 = vmatprep.subr.bf16.mxu0 %v13217_v24  ;;  %v13091_v23 = vcombine.high %v3957_v35, %v3961_v37  ;;  %v3965_v24 = vld [vmem:[#allocation8 + $0xb88] sm:$0xff]  ;;  %v13090_v39 = vcombine.low %v3957_v35, %v3961_v37 }
 0x35d   :  { %6965 = vmatpush1.bf16.msra.mxu1 %v13018_v41  ;;  %v13099_v41 = vcombine.high %v3965_v24, %v3969_v21  ;;  %v13098_v27 = vcombine.low %v3965_v24, %v3969_v21  ;;  %v4025_v8 = vld [vmem:[#allocation8 + $0xd68] sm:$0xff] }
 0x35e   :  { %6966 = vmatprep.subr.bf16.mxu1 %v13027_v40  ;;  %v3973_v40 = vld [vmem:[#allocation8 + $0xbc8] sm:$0xff] }
 0x35f   :  { %6860 = vmatpush1.bf16.msra.mxu0 %v13216_v43  ;;  %v3977_v43 = vld [vmem:[#allocation8 + $0xbe8] sm:$0xff] }
 0x360   :  { %6861 = vmatprep.subr.bf16.mxu0 %v13225_v45  ;;  %v13107_v44 = vcombine.high %v3973_v40, %v3977_v43  ;;  %v3981_v45 = vld [vmem:[#allocation8 + $0xc08] sm:$0xff]  ;;  %v13106_v47 = vcombine.low %v3973_v40, %v3977_v43 }
 0x361   :  { %6967 = vmatpush1.bf16.msra.mxu1 %v13026_v7  ;;  %v13115_v7 = vcombine.high %v3981_v45, %v3985_v46  ;;  %v13114_v52 = vcombine.low %v3981_v45, %v3985_v46  ;;  %v4029_v17 = vld [vmem:[#allocation8 + $0xd88] sm:$0xff] }
 0x362   :  { %6968 = vmatprep.subr.bf16.mxu1 %v13035_v51  ;;  %v3989_v51 = vld [vmem:[#allocation8 + $0xc48] sm:$0xff] }
 0x363   :  { %6862 = vmatpush1.bf16.msra.mxu0 %v13224_v59  ;;  %v3993_v59 = vld [vmem:[#allocation8 + $0xc68] sm:$0xff] }
 0x364   :  { %6863 = vmatprep.subr.bf16.mxu0 %v13233_v54  ;;  %v13123_v63 = vcombine.high %v3989_v51, %v3993_v59  ;;  %v3997_v54 = vld [vmem:[#allocation8 + $0xc88] sm:$0xff] }
 0x365   :  { %6969 = vmatpush1.bf16.msra.mxu1 %v13034_v56  ;;  %v4001_v56 = vld [vmem:[#allocation8 + $0xca8] sm:$0xff] }
 0x366   :  { %6970 = vmatprep.subr.bf16.mxu1 %v13043_v58  ;;  %v13122_v58 = vcombine.low %v3989_v51, %v3993_v59  ;;  %v4037_v35 = vld [vmem:[#allocation8 + $0xdc8] sm:$0xff]  ;;  %v3614_v59 = vld [vmem:[#allocation8 + $0x90] sm:$0xff] }
 0x367   :  { %6864 = vmatpush1.bf16.msra.mxu0 %v13232_v16  ;;  %v13131_v16 = vcombine.high %v3997_v54, %v4001_v56  ;;  %v4041_v37 = vld [vmem:[#allocation8 + $0xde8] sm:$0xff] }
 0x368   :  { %7038 = vmatprep.subr.bf16.mxu0 %v12733_v62  ;;  %v13130_v62 = vcombine.low %v3997_v54, %v4001_v56  ;;  %v13171_v40 = vcombine.high %v4037_v35, %v4041_v37  ;;  %v4049_v45 = vld [vmem:[#allocation8 + $0xe28] sm:$0xff] }
 0x369   :  { %6971 = vmatpush1.bf16.msra.mxu1 %v13042_v0  ;;  %v13139_v0 = vcombine.high %v4005_v34, %v4009_v60  ;;  %v4053_v54 = vld [vmem:[#allocation8 + $0xe48] sm:$0xff] }
 0x36a   :  { %6972 = vmatprep.subr.bf16.mxu1 %v13051_v1  ;;  %v4013_v1 = vld [vmem:[#allocation8 + $0xd08] sm:$0xff] }
 0x36b   :  { %v4057_v56 = vld [vmem:[#allocation8 + $0xe68] sm:$0xff] }
 0x36c   :  { %v13187_v60 = vcombine.high %v4053_v54, %v4057_v56 }
 0x36d   :  { %6973 = vmatpush1.bf16.msra.mxu1 %v13050_v6  ;;  %v13147_v6 = vcombine.high %v4013_v1, %v4017_v2 }
 0x36e   :  { %6974 = vmatprep.subr.bf16.mxu1 %v13059_v61  ;;  %v4021_v61 = vld [vmem:[#allocation8 + $0xd48] sm:$0xff] }
 0x36f   :  { %v13155_v14 = vcombine.high %v4021_v61, %v4025_v8  ;;  %v13154_v30 = vcombine.low %v4021_v61, %v4025_v8  ;;  %v3634_v61 = vld [vmem:[#allocation8 + $0x130] sm:$0xff]  ;;  %v4069_v8 = vld [vmem:[#allocation8 + $0xec8] sm:$0xff] }
 0x371   :  { %6975 = vmatpush1.bf16.msra.mxu1 %v13058_v11  ;;  %v13146_v11 = vcombine.low %v4013_v1, %v4017_v2  ;;  %v4061_v1 = vld [vmem:[#allocation8 + $0xe88] sm:$0xff] }
 0x372   :  { %6976 = vmatprep.subr.bf16.mxu1 %v13067_v13  ;;  %v15574_v13 = vsub.s32 7, %v15483_v3  ;;  %v4065_v2 = vld [vmem:[#allocation8 + $0xea8] sm:$0xff] }
 0x373   :  { %v13195_v20 = vcombine.high %v4061_v1, %v4065_v2 }
 0x374   :  { %v675_v29 = vrot.slane %v15545_v57, %v15574_v13 }
 0x375   :  { %6977 = vmatpush1.bf16.msra.mxu1 %v13066_v25  ;;  %v4033_v25 = vld [vmem:[#allocation8 + $0xda8] sm:$0xff] }
 0x376   :  { %6978 = vmatprep.subr.bf16.mxu1 %v13075_v26  ;;  %v671_v26 = vrot.slane %v15545_v57, %v15571_v10  ;;  %v13162_v21 = vcombine.low %v4029_v17, %v4033_v25  ;;  %v4045_v57 = vld [vmem:[#allocation8 + $0xe08] sm:$0xff] }
 0x379   :  { %6979 = vmatpush1.bf16.msra.mxu1 %v13074_v31  ;;  %v13163_v31 = vcombine.high %v4029_v17, %v4033_v25  ;;  %v13194_v17 = vcombine.low %v4061_v1, %v4065_v2  ;;  %v3670_v1 = vld [vmem:[#allocation8 + $0x250] sm:$0xff] }
 0x37a   :  { %6980 = vmatprep.subr.bf16.mxu1 %v13083_v33  ;;  %v3674_v2 = vld [vmem:[#allocation8 + $0x270] sm:$0xff] }
 0x37d   :  { %6981 = vmatpush1.bf16.msra.mxu1 %v13082_v38 }
 0x37e   :  { %6982 = vmatprep.subr.bf16.mxu1 %v13091_v23 }
 0x381   :  { %6983 = vmatpush1.bf16.msra.mxu1 %v13090_v39 }
 0x382   :  { %6984 = vmatprep.subr.bf16.mxu1 %v13099_v41 }
 0x385   :  { %6985 = vmatpush1.bf16.msra.mxu1 %v13098_v27  ;;  %v3606_v27 = vld [vmem:[#allocation8 + $0x50] sm:$0xff] }
 0x386   :  { %6986 = vmatprep.subr.bf16.mxu1 %v13107_v44  ;;  %v3610_v44 = vld [vmem:[#allocation8 + $0x70] sm:$0xff] }
 0x387   :  { %v12741_v51 = vcombine.high %v3606_v27, %v3610_v44 }
 0x389   :  { %6987 = vmatpush1.bf16.msra.mxu1 %v13106_v47  ;;  %v13170_v47 = vcombine.low %v4037_v35, %v4041_v37 }
 0x38a   :  { %6997 = vmatprep.subr.bf16.mxu1 %v13115_v7 }
 0x38c   :  { %6989 = vmatmul.mubr.bf16.vlgmr.msra.gmra.mrb[12].mxu1 %v15559_v28 }
 0x38d   :  { %6998 = vmatpush1.bf16.msra.mxu1 %v13114_v52  ;;  %v13179_v52 = vcombine.high %v4045_v57, %v4049_v45 }
 0x38e   :  { %6999 = vmatprep.subr.bf16.mxu1 %v13123_v63  ;;  %v3618_v63 = vld [vmem:[#allocation8 + $0xb0] sm:$0xff] }
 0x38f   :  { %v12749_v34 = vcombine.high %v3614_v59, %v3618_v63 }
 0x391   :  { %7000 = vmatpush1.bf16.msra.mxu1 %v13122_v58  ;;  %v12740_v58 = vcombine.low %v3606_v27, %v3610_v44  ;;  %v3654_v44 = vld [vmem:[#allocation8 + $0x1d0] sm:$0xff] }
 0x392   :  { %7001 = vmatprep.subr.bf16.mxu1 %v13131_v16  ;;  %v13178_v16 = vcombine.low %v4045_v57, %v4049_v45  ;;  %v3658_v57 = vld [vmem:[#allocation8 + $0x1f0] sm:$0xff]  ;;  %v4093_v45 = vld [vmem:[#allocation8 + $0xf88] sm:$0xff] }
 0x395   :  { %7002 = vmatpush1.bf16.msra.mxu1 %v13130_v62  ;;  %v3622_v62 = vld [vmem:[#allocation8 + $0xd0] sm:$0xff] }
 0x396   :  { %7003 = vmatprep.subr.bf16.mxu1 %v13139_v0  ;;  %v3626_v0 = vld [vmem:[#allocation8 + $0xf0] sm:$0xff] }
 0x397   :  { %v12757_v19 = vcombine.high %v3622_v62, %v3626_v0 }
 0x399   :  { %7004 = vmatpush1.bf16.msra.mxu1 %v13138_v5  ;;  %v12748_v5 = vcombine.low %v3614_v59, %v3618_v63 }
 0x39a   :  { %7005 = vmatprep.subr.bf16.mxu1 %v13147_v6  ;;  %v13186_v6 = vcombine.low %v4053_v54, %v4057_v56  ;;  %v3662_v54 = vld [vmem:[#allocation8 + $0x210] sm:$0xff] }
 0x39b   :  { %v3666_v56 = vld [vmem:[#allocation8 + $0x230] sm:$0xff] }
 0x39d   :  { %7006 = vmatpush1.bf16.msra.mxu1 %v13146_v11  ;;  %v4073_v11 = vld [vmem:[#allocation8 + $0xee8] sm:$0xff] }
 0x39e   :  { %7007 = vmatprep.subr.bf16.mxu1 %v13155_v14  ;;  %v12756_v14 = vcombine.low %v3622_v62, %v3626_v0  ;;  %v13202_v37 = vcombine.low %v4069_v8, %v4073_v11  ;;  %v12797_v62 = vcombine.high %v3662_v54, %v3666_v56 }
 0x39f   :  { %v3573_v33 = vpop.f32.mrb[8].mxu1 }
 0x3a0   :  { %v14009_v38 = vadd.f32 %v3573_v33, %v671_v26  ;;  %v3575_v3 = vpop.f32.mrb[9].mxu1  ;;  %v13203_v26 = vcombine.high %v4069_v8, %v4073_v11  ;;  %v4081_v33 = vld [vmem:[#allocation8 + $0xf28] sm:$0xff]  ;;  %v3678_v8 = vld [vmem:[#allocation8 + $0x290] sm:$0xff] }
 0x3a1   :  { %v14010_v23 = vadd.f32 %v3575_v3, %v675_v29  ;;  %v3577_v24 = vpop.f32.mrb[10].mxu1  ;;  %7008 = vmatpush1.bf16.msra.mxu1 %v13154_v30  ;;  %v3638_v29 = vld [vmem:[#allocation8 + $0x150] sm:$0xff] }
 0x3a2   :  { %v3586_v39 = vmax.f32 %v14009_v38, 0.0  ;;  %v3578_v41 = vpop.f32.mrb[11].mxu1  ;;  %7009 = vmatprep.subr.bf16.mxu1 %v13163_v31  ;;  %v3642_v30 = vld [vmem:[#allocation8 + $0x170] sm:$0xff]  ;;  %v4077_v31 = vld [vmem:[#allocation8 + $0xf08] sm:$0xff] }
 0x3a3   :  { %v3587_v43 = vmax.f32 %v14010_v23, 0.0  ;;  %v12773_v38 = vcombine.high %v3638_v29, %v3642_v30  ;;  %v13211_v3 = vcombine.high %v4077_v31, %v4081_v33  ;;  %v3646_v23 = vld [vmem:[#allocation8 + $0x190] sm:$0xff]  ;;  %v12772_v41 = vcombine.low %v3638_v29, %v3642_v30 }
 0x3a4   :  { %v15582_v7 = vpack.c.bf16 %v3586_v39, %v3586_v39  ;;  %v3650_v24 = vld [vmem:[#allocation8 + $0x1b0] sm:$0xff]  ;;  %v4089_v39 = vld [vmem:[#allocation8 + $0xf68] sm:$0xff] }
 0x3a5   :  { %v15580_v46 = vpack.c.bf16 %v3587_v43, %v3587_v43  ;;  %7010 = vmatpush1.bf16.msra.mxu1 %v13162_v21  ;;  %v4085_v21 = vld [vmem:[#allocation8 + $0xf48] sm:$0xff]  ;;  %v12781_v43 = vcombine.high %v3646_v23, %v3650_v24  ;;  %v3682_v11 = vld [vmem:[#allocation8 + $0x2b0] sm:$0xff] }
 0x3a6   :  { %7011 = vmatprep.subr.bf16.mxu1 %v13171_v40  ;;  %v13210_v40 = vcombine.low %v4077_v31, %v4081_v33  ;;  %v13219_v27 = vcombine.high %v4085_v21, %v4089_v39  ;;  %v13218_v59 = vcombine.low %v4085_v21, %v4089_v39  ;;  %v12813_v29 = vcombine.high %v3678_v8, %v3682_v11  ;;  %v3686_v30 = vld [vmem:[#allocation8 + $0x2d0] sm:$0xff] }
 0x3a7   :  { %6865 = vmatprep.mubr.bf16.mxu0 %v15580_v46  ;;  %7029 = vmatprep.mubr.bf16.mxu1 %v15580_v46  ;;  %v3690_v33 = vld [vmem:[#allocation8 + $0x2f0] sm:$0xff] }
 0x3a8   :  { %6866 = vmatmul.mubr.bf16.vlgmr.msra.gmra.mrb[8].mxu0 %v15582_v7  ;;  %v3694_v21 = vld [vmem:[#allocation8 + $0x310] sm:$0xff] }
 0x3a9   :  { %7039 = vmatpush1.bf16.msra.mxu0 %v12732_v32  ;;  %7012 = vmatpush1.bf16.msra.mxu1 %v13170_v47  ;;  %v3630_v32 = vld [vmem:[#allocation8 + $0x110] sm:$0xff]  ;;  %v4097_v47 = vld [vmem:[#allocation8 + $0xfa8] sm:$0xff] }
 0x3aa   :  { %7070 = vmatprep.mubr.bf16.mxu0 %v15501_v9  ;;  %7040 = vmatprep.subr.bf16.mxu0 %v12741_v51  ;;  %v12765_v25 = vcombine.high %v3630_v32, %v3634_v61  ;;  %v12764_v35 = vcombine.low %v3630_v32, %v3634_v61  ;;  %v12780_v51 = vcombine.low %v3646_v23, %v3650_v24  ;;  %v3698_v39 = vld [vmem:[#allocation8 + $0x330] sm:$0xff] }
 0x3ab   :  { %7013 = vmatprep.subr.bf16.mxu1 %v13179_v52  ;;  %v12789_v52 = vcombine.high %v3654_v44, %v3658_v57  ;;  %v13227_v63 = vcombine.high %v4093_v45, %v4097_v47  ;;  %v12805_v32 = vcombine.high %v3670_v1, %v3674_v2  ;;  %v12821_v23 = vcombine.high %v3686_v30, %v3690_v33 }
 0x3ad   :  { %7041 = vmatpush1.bf16.msra.mxu0 %v12740_v58  ;;  %7014 = vmatpush1.bf16.msra.mxu1 %v13178_v16  ;;  %v4101_v58 = vld [vmem:[#allocation8 + $0xfc8] sm:$0xff] }
 0x3ae   :  { %7042 = vmatprep.subr.bf16.mxu0 %v12749_v34  ;;  %7015 = vmatprep.subr.bf16.mxu1 %v13187_v60  ;;  %v4105_v16 = vld [vmem:[#allocation8 + $0xfe8] sm:$0xff]  ;;  %v12788_v34 = vcombine.low %v3654_v44, %v3658_v57  ;;  %v13226_v60 = vcombine.low %v4093_v45, %v4097_v47  ;;  %v12829_v44 = vcombine.high %v3694_v21, %v3698_v39  ;;  %v3702_v45 = vld [vmem:[#allocation8 + $0x350] sm:$0xff] }
 0x3af   :  { %v13235_v0 = vcombine.high %v4101_v58, %v4105_v16  ;;  %v3706_v47 = vld [vmem:[#allocation8 + $0x370] sm:$0xff] }
 0x3b1   :  { %7043 = vmatpush1.bf16.msra.mxu0 %v12748_v5  ;;  %7016 = vmatpush1.bf16.msra.mxu1 %v13186_v6  ;;  %v3599_v5 = vld [vmem:[#allocation8 + $0x18] sm:$0xff] }
 0x3b2   :  { %7044 = vmatprep.subr.bf16.mxu0 %v12757_v19  ;;  %7017 = vmatprep.subr.bf16.mxu1 %v13195_v20  ;;  %v3603_v6 = vld [vmem:[#allocation8 + $0x38] sm:$0xff]  ;;  %v12796_v19 = vcombine.low %v3662_v54, %v3666_v56  ;;  %v13234_v20 = vcombine.low %v4101_v58, %v4105_v16  ;;  %v3710_v56 = vld [vmem:[#allocation8 + $0x390] sm:$0xff] }
 0x3b3   :  { %v12735_v61 = vcombine.high %v3599_v5, %v3603_v6  ;;  %v3714_v58 = vld [vmem:[#allocation8 + $0x3b0] sm:$0xff]  ;;  %v3639_v16 = vld [vmem:[#allocation8 + $0x158] sm:$0xff] }
 0x3b5   :  { %7045 = vmatpush1.bf16.msra.mxu0 %v12756_v14  ;;  %7018 = vmatpush1.bf16.msra.mxu1 %v13194_v17  ;;  %v3607_v14 = vld [vmem:[#allocation8 + $0x58] sm:$0xff] }
 0x3b6   :  { %7046 = vmatprep.subr.bf16.mxu0 %v12765_v25  ;;  %7019 = vmatprep.subr.bf16.mxu1 %v13203_v26  ;;  %v3611_v17 = vld [vmem:[#allocation8 + $0x78] sm:$0xff]  ;;  %v12804_v25 = vcombine.low %v3670_v1, %v3674_v2  ;;  %v12734_v26 = vcombine.low %v3599_v5, %v3603_v6  ;;  %v3718_v2 = vld [vmem:[#allocation8 + $0x3d0] sm:$0xff] }
 0x3b7   :  { %v12743_v31 = vcombine.high %v3607_v14, %v3611_v17  ;;  %v3722_v5 = vld [vmem:[#allocation8 + $0x3f0] sm:$0xff]  ;;  %v3647_v6 = vld [vmem:[#allocation8 + $0x198] sm:$0xff] }
 0x3b9   :  { %7047 = vmatpush1.bf16.msra.mxu0 %v12764_v35  ;;  %7020 = vmatpush1.bf16.msra.mxu1 %v13202_v37  ;;  %v3615_v35 = vld [vmem:[#allocation8 + $0x98] sm:$0xff] }
 0x3ba   :  { %7048 = vmatprep.subr.bf16.mxu0 %v12773_v38  ;;  %7021 = vmatprep.subr.bf16.mxu1 %v13211_v3  ;;  %v3619_v37 = vld [vmem:[#allocation8 + $0xb8] sm:$0xff]  ;;  %v12812_v38 = vcombine.low %v3678_v8, %v3682_v11  ;;  %v12742_v3 = vcombine.low %v3607_v14, %v3611_v17  ;;  %v3726_v11 = vld [vmem:[#allocation8 + $0x410] sm:$0xff] }
 0x3bb   :  { %v12751_v24 = vcombine.high %v3615_v35, %v3619_v37  ;;  %v3730_v14 = vld [vmem:[#allocation8 + $0x430] sm:$0xff]  ;;  %v3655_v17 = vld [vmem:[#allocation8 + $0x1d8] sm:$0xff] }
 0x3bd   :  { %7049 = vmatpush1.bf16.msra.mxu0 %v12772_v41  ;;  %7022 = vmatpush1.bf16.msra.mxu1 %v13210_v40  ;;  %v3623_v41 = vld [vmem:[#allocation8 + $0xd8] sm:$0xff] }
 0x3be   :  { %7050 = vmatprep.subr.bf16.mxu0 %v12781_v43  ;;  %7023 = vmatprep.subr.bf16.mxu1 %v13219_v27  ;;  %v3627_v40 = vld [vmem:[#allocation8 + $0xf8] sm:$0xff]  ;;  %v12820_v43 = vcombine.low %v3686_v30, %v3690_v33  ;;  %v12750_v27 = vcombine.low %v3615_v35, %v3619_v37  ;;  %v12861_v30 = vcombine.high %v3726_v11, %v3730_v14  ;;  %v3734_v33 = vld [vmem:[#allocation8 + $0x450] sm:$0xff] }
 0x3bf   :  { %v12759_v57 = vcombine.high %v3623_v41, %v3627_v40  ;;  %v3738_v35 = vld [vmem:[#allocation8 + $0x470] sm:$0xff]  ;;  %v3663_v37 = vld [vmem:[#allocation8 + $0x218] sm:$0xff] }
 0x3c1   :  { %7051 = vmatpush1.bf16.msra.mxu0 %v12780_v51  ;;  %7024 = vmatpush1.bf16.msra.mxu1 %v13218_v59  ;;  %v3631_v51 = vld [vmem:[#allocation8 + $0x118] sm:$0xff]  ;;  %v12828_v59 = vcombine.low %v3694_v21, %v3698_v39  ;;  %v3742_v39 = vld [vmem:[#allocation8 + $0x490] sm:$0xff] }
 0x3c2   :  { %7052 = vmatprep.subr.bf16.mxu0 %v12789_v52  ;;  %7025 = vmatprep.subr.bf16.mxu1 %v13227_v63  ;;  %v12758_v52 = vcombine.low %v3623_v41, %v3627_v40  ;;  %v12837_v63 = vcombine.high %v3702_v45, %v3706_v47  ;;  %v3746_v41 = vld [vmem:[#allocation8 + $0x4b0] sm:$0xff]  ;;  %v3671_v40 = vld [vmem:[#allocation8 + $0x258] sm:$0xff] }
 0x3c5   :  { %7053 = vmatpush1.bf16.msra.mxu0 %v12788_v34  ;;  %7026 = vmatpush1.bf16.msra.mxu1 %v13226_v60  ;;  %v3643_v34 = vld [vmem:[#allocation8 + $0x178] sm:$0xff]  ;;  %v12836_v60 = vcombine.low %v3702_v45, %v3706_v47  ;;  %v3750_v47 = vld [vmem:[#allocation8 + $0x4d0] sm:$0xff] }
 0x3c6   :  { %7054 = vmatprep.subr.bf16.mxu0 %v12797_v62  ;;  %7027 = vmatprep.subr.bf16.mxu1 %v13235_v0  ;;  %v12845_v0 = vcombine.high %v3710_v56, %v3714_v58  ;;  %v12775_v1 = vcombine.high %v3639_v16, %v3643_v34 }
 0x3c9   :  { %7055 = vmatpush1.bf16.msra.mxu0 %v12796_v19  ;;  %7028 = vmatpush1.bf16.msra.mxu1 %v13234_v20  ;;  %v3651_v19 = vld [vmem:[#allocation8 + $0x1b8] sm:$0xff]  ;;  %v12844_v20 = vcombine.low %v3710_v56, %v3714_v58  ;;  %v3758_v58 = vld [vmem:[#allocation8 + $0x510] sm:$0xff] }
 0x3ca   :  { %7056 = vmatprep.subr.bf16.mxu0 %v12805_v32  ;;  %7202 = vmatprep.subr.bf16.mxu1 %v12735_v61  ;;  %v12774_v32 = vcombine.low %v3639_v16, %v3643_v34  ;;  %v12853_v61 = vcombine.high %v3718_v2, %v3722_v5  ;;  %v12783_v8 = vcombine.high %v3647_v6, %v3651_v19  ;;  %v3762_v16 = vld [vmem:[#allocation8 + $0x530] sm:$0xff]  ;;  %v3687_v34 = vld [vmem:[#allocation8 + $0x2d8] sm:$0xff] }
 0x3cc   :  { %7030 = vmatmul.mubr.bf16.vlgmr.msra.gmra.mrb[12].mxu1 %v15582_v7 }
 0x3cd   :  { %7057 = vmatpush1.bf16.msra.mxu0 %v12804_v25  ;;  %7203 = vmatpush1.bf16.msra.mxu1 %v12734_v26  ;;  %v3659_v25 = vld [vmem:[#allocation8 + $0x1f8] sm:$0xff]  ;;  %v12852_v26 = vcombine.low %v3718_v2, %v3722_v5  ;;  %v3766_v5 = vld [vmem:[#allocation8 + $0x550] sm:$0xff] }
 0x3ce   :  { %7234 = vmatprep.mubr.bf16.mxu1 %v15501_v9  ;;  %7058 = vmatprep.subr.bf16.mxu0 %v12813_v29  ;;  %v3635_v9 = vld [vmem:[#allocation8 + $0x138] sm:$0xff]  ;;  %v12782_v29 = vcombine.low %v3647_v6, %v3651_v19  ;;  %v3770_v6 = vld [vmem:[#allocation8 + $0x570] sm:$0xff] }
 0x3cf   :  { %7204 = vmatprep.subr.bf16.mxu1 %v12743_v31  ;;  %v12767_v54 = vcombine.high %v3631_v51, %v3635_v9  ;;  %v12766_v62 = vcombine.low %v3631_v51, %v3635_v9  ;;  %v12791_v31 = vcombine.high %v3655_v17, %v3659_v25  ;;  %v3754_v51 = vld [vmem:[#allocation8 + $0x4f0] sm:$0xff]  ;;  %v3679_v9 = vld [vmem:[#allocation8 + $0x298] sm:$0xff] }
 0x3d0   :  { %v3695_v19 = vld [vmem:[#allocation8 + $0x318] sm:$0xff] }
 0x3d1   :  { %7059 = vmatpush1.bf16.msra.mxu0 %v12812_v38  ;;  %7205 = vmatpush1.bf16.msra.mxu1 %v12742_v3  ;;  %v3667_v38 = vld [vmem:[#allocation8 + $0x238] sm:$0xff]  ;;  %v12860_v3 = vcombine.low %v3726_v11, %v3730_v14  ;;  %v3774_v14 = vld [vmem:[#allocation8 + $0x590] sm:$0xff] }
 0x3d2   :  { %7060 = vmatprep.subr.bf16.mxu0 %v12821_v23  ;;  %7206 = vmatprep.subr.bf16.mxu1 %v12751_v24  ;;  %v12790_v23 = vcombine.low %v3655_v17, %v3659_v25  ;;  %v12869_v24 = vcombine.high %v3734_v33, %v3738_v35  ;;  %v12799_v21 = vcombine.high %v3663_v37, %v3667_v38  ;;  %v3778_v17 = vld [vmem:[#allocation8 + $0x5b0] sm:$0xff]  ;;  %v3703_v25 = vld [vmem:[#allocation8 + $0x358] sm:$0xff] }
 0x3d5   :  { %7061 = vmatpush1.bf16.msra.mxu0 %v12820_v43  ;;  %7207 = vmatpush1.bf16.msra.mxu1 %v12750_v27  ;;  %v3675_v43 = vld [vmem:[#allocation8 + $0x278] sm:$0xff]  ;;  %v12868_v27 = vcombine.low %v3734_v33, %v3738_v35  ;;  %v3782_v35 = vld [vmem:[#allocation8 + $0x5d0] sm:$0xff] }
 0x3d6   :  { %7062 = vmatprep.subr.bf16.mxu0 %v12829_v44  ;;  %7208 = vmatprep.subr.bf16.mxu1 %v12759_v57  ;;  %v12798_v44 = vcombine.low %v3663_v37, %v3667_v38  ;;  %v12877_v57 = vcombine.high %v3742_v39, %v3746_v41  ;;  %v12807_v45 = vcombine.high %v3671_v40, %v3675_v43  ;;  %v3786_v37 = vld [vmem:[#allocation8 + $0x5f0] sm:$0xff]  ;;  %v3711_v38 = vld [vmem:[#allocation8 + $0x398] sm:$0xff] }
 0x3d9   :  { %7063 = vmatpush1.bf16.msra.mxu0 %v12828_v59  ;;  %7209 = vmatpush1.bf16.msra.mxu1 %v12758_v52  ;;  %v3683_v59 = vld [vmem:[#allocation8 + $0x2b8] sm:$0xff]  ;;  %v12876_v52 = vcombine.low %v3742_v39, %v3746_v41  ;;  %v3790_v41 = vld [vmem:[#allocation8 + $0x610] sm:$0xff] }
 0x3da   :  { %7064 = vmatprep.subr.bf16.mxu0 %v12837_v63  ;;  %7210 = vmatprep.subr.bf16.mxu1 %v12767_v54  ;;  %v12806_v63 = vcombine.low %v3671_v40, %v3675_v43  ;;  %v12885_v54 = vcombine.high %v3750_v47, %v3754_v51  ;;  %v12815_v56 = vcombine.high %v3679_v9, %v3683_v59  ;;  %v3794_v40 = vld [vmem:[#allocation8 + $0x630] sm:$0xff]  ;;  %v3719_v43 = vld [vmem:[#allocation8 + $0x3d8] sm:$0xff] }
 0x3dd   :  { %7065 = vmatpush1.bf16.msra.mxu0 %v12836_v60  ;;  %7211 = vmatpush1.bf16.msra.mxu1 %v12766_v62  ;;  %v3691_v60 = vld [vmem:[#allocation8 + $0x2f8] sm:$0xff]  ;;  %v12884_v62 = vcombine.low %v3750_v47, %v3754_v51  ;;  %v3798_v51 = vld [vmem:[#allocation8 + $0x650] sm:$0xff] }
 0x3de   :  { %7066 = vmatprep.subr.bf16.mxu0 %v12845_v0  ;;  %7212 = vmatprep.subr.bf16.mxu1 %v12775_v1  ;;  %v12814_v0 = vcombine.low %v3679_v9, %v3683_v59  ;;  %v12893_v1 = vcombine.high %v3758_v58, %v3762_v16  ;;  %v12823_v2 = vcombine.high %v3687_v34, %v3691_v60  ;;  %v3802_v9 = vld [vmem:[#allocation8 + $0x670] sm:$0xff]  ;;  %v3727_v59 = vld [vmem:[#allocation8 + $0x418] sm:$0xff] }
 0x3e1   :  { %7067 = vmatpush1.bf16.msra.mxu0 %v12844_v20  ;;  %7213 = vmatpush1.bf16.msra.mxu1 %v12774_v32  ;;  %v3699_v20 = vld [vmem:[#allocation8 + $0x338] sm:$0xff]  ;;  %v12892_v32 = vcombine.low %v3758_v58, %v3762_v16  ;;  %v3806_v16 = vld [vmem:[#allocation8 + $0x690] sm:$0xff] }
 0x3e2   :  { %7068 = vmatprep.subr.bf16.mxu0 %v12853_v61  ;;  %7214 = vmatprep.subr.bf16.mxu1 %v12783_v8  ;;  %v12822_v61 = vcombine.low %v3687_v34, %v3691_v60  ;;  %v12901_v8 = vcombine.high %v3766_v5, %v3770_v6  ;;  %v12831_v11 = vcombine.high %v3695_v19, %v3699_v20  ;;  %v3810_v34 = vld [vmem:[#allocation8 + $0x6b0] sm:$0xff]  ;;  %v3735_v60 = vld [vmem:[#allocation8 + $0x458] sm:$0xff] }
 0x3e5   :  { %7069 = vmatpush1.bf16.msra.mxu0 %v12852_v26  ;;  %7215 = vmatpush1.bf16.msra.mxu1 %v12782_v29  ;;  %v3707_v26 = vld [vmem:[#allocation8 + $0x378] sm:$0xff]  ;;  %v12900_v29 = vcombine.low %v3766_v5, %v3770_v6  ;;  %v3814_v6 = vld [vmem:[#allocation8 + $0x6d0] sm:$0xff] }
 0x3e6   :  { %7079 = vmatprep.subr.bf16.mxu0 %v12861_v30  ;;  %7216 = vmatprep.subr.bf16.mxu1 %v12791_v31  ;;  %v12830_v30 = vcombine.low %v3695_v19, %v3699_v20  ;;  %v12909_v31 = vcombine.high %v3774_v14, %v3778_v17  ;;  %v12839_v33 = vcombine.high %v3703_v25, %v3707_v26  ;;  %v3818_v19 = vld [vmem:[#allocation8 + $0x6f0] sm:$0xff]  ;;  %v3743_v20 = vld [vmem:[#allocation8 + $0x498] sm:$0xff] }
 0x3e8   :  { %7071 = vmatmul.mubr.bf16.vlgmr.msra.gmra.mrb[12].mxu0 %v15508_v36 }
 0x3e9   :  { %7080 = vmatpush1.bf16.msra.mxu0 %v12860_v3  ;;  %7111 = vmatprep.mubr.bf16.mxu0 %v15523_v53  ;;  %v3715_v3 = vld [vmem:[#allocation8 + $0x3b8] sm:$0xff] }
 0x3ea   :  { %7217 = vmatpush1.bf16.msra.mxu1 %v12790_v23  ;;  %7081 = vmatprep.subr.bf16.mxu0 %v12869_v24  ;;  %v12908_v23 = vcombine.low %v3774_v14, %v3778_v17  ;;  %v12838_v24 = vcombine.low %v3703_v25, %v3707_v26  ;;  %v12847_v39 = vcombine.high %v3711_v38, %v3715_v3  ;;  %v3822_v17 = vld [vmem:[#allocation8 + $0x710] sm:$0xff]  ;;  %v3751_v26 = vld [vmem:[#allocation8 + $0x4d8] sm:$0xff] }
 0x3eb   :  { %7218 = vmatprep.subr.bf16.mxu1 %v12799_v21  ;;  %v12917_v21 = vcombine.high %v3782_v35, %v3786_v37  ;;  %v3826_v25 = vld [vmem:[#allocation8 + $0x730] sm:$0xff] }
 0x3ed   :  { %7082 = vmatpush1.bf16.msra.mxu0 %v12868_v27  ;;  %v3723_v27 = vld [vmem:[#allocation8 + $0x3f8] sm:$0xff] }
 0x3ee   :  { %7219 = vmatpush1.bf16.msra.mxu1 %v12798_v44  ;;  %7083 = vmatprep.subr.bf16.mxu0 %v12877_v57  ;;  %v12916_v44 = vcombine.low %v3782_v35, %v3786_v37  ;;  %v12846_v57 = vcombine.low %v3711_v38, %v3715_v3  ;;  %v12855_v47 = vcombine.high %v3719_v43, %v3723_v27  ;;  %v3830_v35 = vld [vmem:[#allocation8 + $0x750] sm:$0xff]  ;;  %v3763_v38 = vld [vmem:[#allocation8 + $0x538] sm:$0xff] }
 0x3ef   :  { %7220 = vmatprep.subr.bf16.mxu1 %v12807_v45  ;;  %v12925_v45 = vcombine.high %v3790_v41, %v3794_v40  ;;  %v3834_v37 = vld [vmem:[#allocation8 + $0x770] sm:$0xff]  ;;  %v12956_v3 = vcombine.low %v3822_v17, %v3826_v25 }
 0x3f1   :  { %7084 = vmatpush1.bf16.msra.mxu0 %v12876_v52  ;;  %v3731_v52 = vld [vmem:[#allocation8 + $0x438] sm:$0xff] }
 0x3f2   :  { %7221 = vmatpush1.bf16.msra.mxu1 %v12806_v63  ;;  %7085 = vmatprep.subr.bf16.mxu0 %v12885_v54  ;;  %v12924_v63 = vcombine.low %v3790_v41, %v3794_v40  ;;  %v12854_v54 = vcombine.low %v3719_v43, %v3723_v27  ;;  %v12863_v58 = vcombine.high %v3727_v59, %v3731_v52  ;;  %v3842_v41 = vld [vmem:[#allocation8 + $0x7b0] sm:$0xff]  ;;  %v3767_v40 = vld [vmem:[#allocation8 + $0x558] sm:$0xff] }
 0x3f3   :  { %7222 = vmatprep.subr.bf16.mxu1 %v12815_v56  ;;  %v12933_v56 = vcombine.high %v3798_v51, %v3802_v9  ;;  %v3771_v43 = vld [vmem:[#allocation8 + $0x578] sm:$0xff]  ;;  %v12964_v27 = vcombine.low %v3830_v35, %v3834_v37 }
 0x3f5   :  { %7086 = vmatpush1.bf16.msra.mxu0 %v12884_v62  ;;  %v3739_v62 = vld [vmem:[#allocation8 + $0x478] sm:$0xff] }
 0x3f6   :  { %7223 = vmatpush1.bf16.msra.mxu1 %v12814_v0  ;;  %7087 = vmatprep.subr.bf16.mxu0 %v12893_v1  ;;  %v12932_v0 = vcombine.low %v3798_v51, %v3802_v9  ;;  %v12862_v1 = vcombine.low %v3727_v59, %v3731_v52  ;;  %v12871_v5 = vcombine.high %v3735_v60, %v3739_v62  ;;  %v3850_v51 = vld [vmem:[#allocation8 + $0x7f0] sm:$0xff]  ;;  %v3775_v9 = vld [vmem:[#allocation8 + $0x598] sm:$0xff] }
 0x3f7   :  { %7224 = vmatprep.subr.bf16.mxu1 %v12823_v2  ;;  %v12941_v2 = vcombine.high %v3806_v16, %v3810_v34  ;;  %v3779_v59 = vld [vmem:[#allocation8 + $0x5b8] sm:$0xff] }
 0x3f9   :  { %7088 = vmatpush1.bf16.msra.mxu0 %v12892_v32  ;;  %v3747_v32 = vld [vmem:[#allocation8 + $0x4b8] sm:$0xff] }
 0x3fa   :  { %7225 = vmatpush1.bf16.msra.mxu1 %v12822_v61  ;;  %7089 = vmatprep.subr.bf16.mxu0 %v12901_v8  ;;  %v12940_v61 = vcombine.low %v3806_v16, %v3810_v34  ;;  %v12870_v8 = vcombine.low %v3735_v60, %v3739_v62  ;;  %v12879_v14 = vcombine.high %v3743_v20, %v3747_v32  ;;  %v3858_v16 = vld [vmem:[#allocation8 + $0x830] sm:$0xff]  ;;  %v3783_v34 = vld [vmem:[#allocation8 + $0x5d8] sm:$0xff] }
 0x3fb   :  { %7226 = vmatprep.subr.bf16.mxu1 %v12831_v11  ;;  %v12949_v11 = vcombine.high %v3814_v6, %v3818_v19  ;;  %v3787_v60 = vld [vmem:[#allocation8 + $0x5f8] sm:$0xff] }
 0x3fd   :  { %7090 = vmatpush1.bf16.msra.mxu0 %v12900_v29  ;;  %v3755_v29 = vld [vmem:[#allocation8 + $0x4f8] sm:$0xff] }
 0x3fe   :  { %7227 = vmatpush1.bf16.msra.mxu1 %v12830_v30  ;;  %7091 = vmatprep.subr.bf16.mxu0 %v12909_v31  ;;  %v12948_v30 = vcombine.low %v3814_v6, %v3818_v19  ;;  %v12878_v31 = vcombine.low %v3743_v20, %v3747_v32  ;;  %v3866_v6 = vld [vmem:[#allocation8 + $0x870] sm:$0xff]  ;;  %v3791_v19 = vld [vmem:[#allocation8 + $0x618] sm:$0xff] }
 0x3ff   :  { %7228 = vmatprep.subr.bf16.mxu1 %v12839_v33  ;;  %v12957_v33 = vcombine.high %v3822_v17, %v3826_v25  ;;  %v3795_v20 = vld [vmem:[#allocation8 + $0x638] sm:$0xff]  ;;  %v3874_v17 = vld [vmem:[#allocation8 + $0x8b0] sm:$0xff] }
 0x400   :  { %v3799_v25 = vld [vmem:[#allocation8 + $0x658] sm:$0xff] }
 0x401   :  { %7092 = vmatpush1.bf16.msra.mxu0 %v12908_v23  ;;  %v12886_v23 = vcombine.low %v3751_v26, %v3755_v29 }
 0x402   :  { %7229 = vmatpush1.bf16.msra.mxu1 %v12838_v24  ;;  %7093 = vmatprep.subr.bf16.mxu0 %v12917_v21  ;;  %v12965_v24 = vcombine.high %v3830_v35, %v3834_v37  ;;  %v3882_v35 = vld [vmem:[#allocation8 + $0x8f0] sm:$0xff]  ;;  %v3807_v37 = vld [vmem:[#allocation8 + $0x698] sm:$0xff] }
 0x403   :  { %7230 = vmatprep.subr.bf16.mxu1 %v12847_v39  ;;  %v3838_v39 = vld [vmem:[#allocation8 + $0x790] sm:$0xff] }
 0x404   :  { %v12972_v52 = vcombine.low %v3838_v39, %v3842_v41 }
 0x405   :  { %7094 = vmatpush1.bf16.msra.mxu0 %v12916_v44 }
 0x406   :  { %7231 = vmatpush1.bf16.msra.mxu1 %v12846_v57  ;;  %7095 = vmatprep.subr.bf16.mxu0 %v12925_v45  ;;  %v12973_v57 = vcombine.high %v3838_v39, %v3842_v41  ;;  %v12903_v45 = vcombine.high %v3767_v40, %v3771_v43  ;;  %v3890_v39 = vld [vmem:[#allocation8 + $0x930] sm:$0xff]  ;;  %v3815_v41 = vld [vmem:[#allocation8 + $0x6d8] sm:$0xff] }
 0x407   :  { %7232 = vmatprep.subr.bf16.mxu1 %v12855_v47  ;;  %v3846_v47 = vld [vmem:[#allocation8 + $0x7d0] sm:$0xff] }
 0x408   :  { %v12980_v62 = vcombine.low %v3846_v47, %v3850_v51 }
 0x409   :  { %7096 = vmatpush1.bf16.msra.mxu0 %v12924_v63  ;;  %v12902_v63 = vcombine.low %v3767_v40, %v3771_v43  ;;  %v3819_v40 = vld [vmem:[#allocation8 + $0x6f8] sm:$0xff] }
 0x40a   :  { %7233 = vmatpush1.bf16.msra.mxu1 %v12854_v54  ;;  %7097 = vmatprep.subr.bf16.mxu0 %v12933_v56  ;;  %v12981_v54 = vcombine.high %v3846_v47, %v3850_v51  ;;  %v12911_v56 = vcombine.high %v3775_v9, %v3779_v59  ;;  %v3898_v47 = vld [vmem:[#allocation8 + $0x970] sm:$0xff]  ;;  %v3823_v51 = vld [vmem:[#allocation8 + $0x718] sm:$0xff] }
 0x40b   :  { %7243 = vmatprep.subr.bf16.mxu1 %v12863_v58  ;;  %v3854_v58 = vld [vmem:[#allocation8 + $0x810] sm:$0xff] }
 0x40c   :  { %v12988_v32 = vcombine.low %v3854_v58, %v3858_v16 }
 0x40d   :  { %7098 = vmatpush1.bf16.msra.mxu0 %v12932_v0  ;;  %7235 = vmatmul.mubr.bf16.vlgmr.msra.gmra.mrb[16].mxu1 %v15508_v36  ;;  %v12887_v36 = vcombine.high %v3751_v26, %v3755_v29  ;;  %v12910_v0 = vcombine.low %v3775_v9, %v3779_v59  ;;  %v3803_v26 = vld [vmem:[#allocation8 + $0x678] sm:$0xff] }
 0x40e   :  { %7244 = vmatpush1.bf16.msra.mxu1 %v12862_v1  ;;  %7275 = vmatprep.mubr.bf16.mxu1 %v15523_v53  ;;  %v3759_v53 = vld [vmem:[#allocation8 + $0x518] sm:$0xff]  ;;  %v12989_v1 = vcombine.high %v3854_v58, %v3858_v16  ;;  %v3906_v58 = vld [vmem:[#allocation8 + $0x9b0] sm:$0xff] }
 0x40f   :  { %7099 = vmatprep.subr.bf16.mxu0 %v12941_v2  ;;  %7245 = vmatprep.subr.bf16.mxu1 %v12871_v5  ;;  %v12895_v21 = vcombine.high %v3759_v53, %v3763_v38  ;;  %v12894_v44 = vcombine.low %v3759_v53, %v3763_v38  ;;  %v12919_v2 = vcombine.high %v3783_v34, %v3787_v60  ;;  %v3862_v5 = vld [vmem:[#allocation8 + $0x850] sm:$0xff]  ;;  %v3811_v53 = vld [vmem:[#allocation8 + $0x6b8] sm:$0xff] }
 0x410   :  { %v12996_v29 = vcombine.low %v3862_v5, %v3866_v6  ;;  %v3827_v9 = vld [vmem:[#allocation8 + $0x738] sm:$0xff] }
 0x411   :  { %7100 = vmatpush1.bf16.msra.mxu0 %v12940_v61  ;;  %v12918_v61 = vcombine.low %v3783_v34, %v3787_v60  ;;  %v3831_v16 = vld [vmem:[#allocation8 + $0x758] sm:$0xff] }
 0x412   :  { %7246 = vmatpush1.bf16.msra.mxu1 %v12870_v8  ;;  %7101 = vmatprep.subr.bf16.mxu0 %v12949_v11  ;;  %v12997_v8 = vcombine.high %v3862_v5, %v3866_v6  ;;  %v12927_v11 = vcombine.high %v3791_v19, %v3795_v20  ;;  %v3835_v34 = vld [vmem:[#allocation8 + $0x778] sm:$0xff]  ;;  %v3914_v5 = vld [vmem:[#allocation8 + $0x9f0] sm:$0xff] }
 0x413   :  { %7247 = vmatprep.subr.bf16.mxu1 %v12879_v14  ;;  %v3870_v14 = vld [vmem:[#allocation8 + $0x890] sm:$0xff]  ;;  %v3839_v6 = vld [vmem:[#allocation8 + $0x798] sm:$0xff] }
 0x414   :  { %v13004_v38 = vcombine.low %v3870_v14, %v3874_v17 }
 0x415   :  { %7102 = vmatpush1.bf16.msra.mxu0 %v12948_v30  ;;  %v12926_v30 = vcombine.low %v3791_v19, %v3795_v20  ;;  %v3843_v19 = vld [vmem:[#allocation8 + $0x7b8] sm:$0xff] }
 0x416   :  { %7248 = vmatpush1.bf16.msra.mxu1 %v12878_v31  ;;  %7103 = vmatprep.subr.bf16.mxu0 %v12957_v33  ;;  %v13005_v31 = vcombine.high %v3870_v14, %v3874_v17  ;;  %v12935_v33 = vcombine.high %v3799_v25, %v3803_v26  ;;  %v3922_v14 = vld [vmem:[#allocation8 + $0xa30] sm:$0xff]  ;;  %v3847_v17 = vld [vmem:[#allocation8 + $0x7d8] sm:$0xff] }
 0x417   :  { %7249 = vmatprep.subr.bf16.mxu1 %v12887_v36  ;;  %v3878_v36 = vld [vmem:[#allocation8 + $0x8d0] sm:$0xff] }
 0x418   :  { %v13012_v43 = vcombine.low %v3878_v36, %v3882_v35 }
 0x419   :  { %7104 = vmatpush1.bf16.msra.mxu0 %v12956_v3  ;;  %v12934_v3 = vcombine.low %v3799_v25, %v3803_v26  ;;  %v3851_v25 = vld [vmem:[#allocation8 + $0x7f8] sm:$0xff] }
 0x41a   :  { %7250 = vmatpush1.bf16.msra.mxu1 %v12886_v23  ;;  %7105 = vmatprep.subr.bf16.mxu0 %v12965_v24  ;;  %v13013_v23 = vcombine.high %v3878_v36, %v3882_v35  ;;  %v12943_v24 = vcombine.high %v3807_v37, %v3811_v53  ;;  %v3930_v36 = vld [vmem:[#allocation8 + $0xa70] sm:$0xff]  ;;  %v3855_v35 = vld [vmem:[#allocation8 + $0x818] sm:$0xff] }
 0x41b   :  { %7251 = vmatprep.subr.bf16.mxu1 %v12895_v21  ;;  %v3886_v21 = vld [vmem:[#allocation8 + $0x910] sm:$0xff] }
 0x41c   :  { %v13020_v59 = vcombine.low %v3886_v21, %v3890_v39 }
 0x41d   :  { %7106 = vmatpush1.bf16.msra.mxu0 %v12964_v27  ;;  %v12942_v27 = vcombine.low %v3807_v37, %v3811_v53  ;;  %v3859_v37 = vld [vmem:[#allocation8 + $0x838] sm:$0xff] }
 0x41e   :  { %7252 = vmatpush1.bf16.msra.mxu1 %v12894_v44  ;;  %7107 = vmatprep.subr.bf16.mxu0 %v12973_v57  ;;  %v13021_v44 = vcombine.high %v3886_v21, %v3890_v39  ;;  %v12951_v57 = vcombine.high %v3815_v41, %v3819_v40  ;;  %v3938_v21 = vld [vmem:[#allocation8 + $0xab0] sm:$0xff]  ;;  %v3863_v39 = vld [vmem:[#allocation8 + $0x858] sm:$0xff] }
 0x41f   :  { %7253 = vmatprep.subr.bf16.mxu1 %v12903_v45  ;;  %v3894_v45 = vld [vmem:[#allocation8 + $0x950] sm:$0xff] }
 0x420   :  { %v13028_v60 = vcombine.low %v3894_v45, %v3898_v47 }
 0x421   :  { %7108 = vmatpush1.bf16.msra.mxu0 %v12972_v52  ;;  %v12950_v52 = vcombine.low %v3815_v41, %v3819_v40  ;;  %v3867_v41 = vld [vmem:[#allocation8 + $0x878] sm:$0xff] }
 0x422   :  { %7254 = vmatpush1.bf16.msra.mxu1 %v12902_v63  ;;  %7109 = vmatprep.subr.bf16.mxu0 %v12981_v54  ;;  %v13029_v63 = vcombine.high %v3894_v45, %v3898_v47  ;;  %v12959_v54 = vcombine.high %v3823_v51, %v3827_v9  ;;  %v3946_v45 = vld [vmem:[#allocation8 + $0xaf0] sm:$0xff]  ;;  %v3871_v47 = vld [vmem:[#allocation8 + $0x898] sm:$0xff] }
 0x423   :  { %7255 = vmatprep.subr.bf16.mxu1 %v12911_v56  ;;  %v3902_v56 = vld [vmem:[#allocation8 + $0x990] sm:$0xff] }
 0x424   :  { %v13036_v20 = vcombine.low %v3902_v56, %v3906_v58 }
 0x425   :  { %7110 = vmatpush1.bf16.msra.mxu0 %v12980_v62  ;;  %v12958_v62 = vcombine.low %v3823_v51, %v3827_v9  ;;  %v3875_v51 = vld [vmem:[#allocation8 + $0x8b8] sm:$0xff] }
 0x426   :  { %7256 = vmatpush1.bf16.msra.mxu1 %v12910_v0  ;;  %7120 = vmatprep.subr.bf16.mxu0 %v12989_v1  ;;  %v13037_v0 = vcombine.high %v3902_v56, %v3906_v58  ;;  %v12967_v1 = vcombine.high %v3831_v16, %v3835_v34  ;;  %v3954_v56 = vld [vmem:[#allocation8 + $0xb30] sm:$0xff]  ;;  %v3879_v58 = vld [vmem:[#allocation8 + $0x8d8] sm:$0xff] }
 0x427   :  { %7257 = vmatprep.subr.bf16.mxu1 %v12919_v2  ;;  %v3910_v2 = vld [vmem:[#allocation8 + $0x9d0] sm:$0xff] }
 0x428   :  { %7112 = vmatmul.mubr.bf16.vlgmr.msra.gmra.mrb[12].mxu0 %v15526_v4  ;;  %v13044_v26 = vcombine.low %v3910_v2, %v3914_v5 }
 0x429   :  { %7121 = vmatpush1.bf16.msra.mxu0 %v12988_v32  ;;  %7152 = vmatprep.mubr.bf16.mxu0 %v15555_v42  ;;  %v12966_v32 = vcombine.low %v3831_v16, %v3835_v34  ;;  %v3883_v16 = vld [vmem:[#allocation8 + $0x8f8] sm:$0xff] }
 0x42a   :  { %7258 = vmatpush1.bf16.msra.mxu1 %v12918_v61  ;;  %7122 = vmatprep.subr.bf16.mxu0 %v12997_v8  ;;  %v13045_v61 = vcombine.high %v3910_v2, %v3914_v5  ;;  %v12975_v8 = vcombine.high %v3839_v6, %v3843_v19  ;;  %v3891_v2 = vld [vmem:[#allocation8 + $0x938] sm:$0xff] }
 0x42b   :  { %7259 = vmatprep.subr.bf16.mxu1 %v12927_v11  ;;  %v3918_v11 = vld [vmem:[#allocation8 + $0xa10] sm:$0xff] }
 0x42c   :  { %v13052_v53 = vcombine.low %v3918_v11, %v3922_v14 }
 0x42d   :  { %7123 = vmatpush1.bf16.msra.mxu0 %v12996_v29  ;;  %v12974_v29 = vcombine.low %v3839_v6, %v3843_v19  ;;  %v13014_v6 = vcombine.low %v3879_v58, %v3883_v16 }
 0x42e   :  { %7260 = vmatpush1.bf16.msra.mxu1 %v12926_v30  ;;  %7124 = vmatprep.subr.bf16.mxu0 %v13005_v31  ;;  %v13053_v30 = vcombine.high %v3918_v11, %v3922_v14  ;;  %v12983_v31 = vcombine.high %v3847_v17, %v3851_v25  ;;  %v3899_v11 = vld [vmem:[#allocation8 + $0x978] sm:$0xff] }
 0x42f   :  { %7261 = vmatprep.subr.bf16.mxu1 %v12935_v33  ;;  %v3926_v33 = vld [vmem:[#allocation8 + $0xa50] sm:$0xff] }
 0x430   :  { %v13060_v40 = vcombine.low %v3926_v33, %v3930_v36 }
 0x431   :  { %7125 = vmatpush1.bf16.msra.mxu0 %v13004_v38  ;;  %v12982_v38 = vcombine.low %v3847_v17, %v3851_v25 }
 0x432   :  { %7262 = vmatpush1.bf16.msra.mxu1 %v12934_v3  ;;  %7126 = vmatprep.subr.bf16.mxu0 %v13013_v23  ;;  %v13061_v3 = vcombine.high %v3926_v33, %v3930_v36  ;;  %v12991_v23 = vcombine.high %v3855_v35, %v3859_v37  ;;  %v3907_v33 = vld [vmem:[#allocation8 + $0x9b8] sm:$0xff] }
 0x433   :  { %7263 = vmatprep.subr.bf16.mxu1 %v12943_v24  ;;  %v3934_v24 = vld [vmem:[#allocation8 + $0xa90] sm:$0xff] }
 0x434   :  { %v13068_v9 = vcombine.low %v3934_v24, %v3938_v21 }
 0x435   :  { %7127 = vmatpush1.bf16.msra.mxu0 %v13012_v43  ;;  %v12990_v43 = vcombine.low %v3855_v35, %v3859_v37 }
 0x436   :  { %7264 = vmatpush1.bf16.msra.mxu1 %v12942_v27  ;;  %7128 = vmatprep.subr.bf16.mxu0 %v13021_v44  ;;  %v13069_v27 = vcombine.high %v3934_v24, %v3938_v21  ;;  %v12999_v44 = vcombine.high %v3863_v39, %v3867_v41  ;;  %v3915_v24 = vld [vmem:[#allocation8 + $0x9f8] sm:$0xff] }
 0x437   :  { %7265 = vmatprep.subr.bf16.mxu1 %v12951_v57  ;;  %v3942_v57 = vld [vmem:[#allocation8 + $0xad0] sm:$0xff] }
 0x438   :  { %v13076_v34 = vcombine.low %v3942_v57, %v3946_v45 }
 0x439   :  { %7129 = vmatpush1.bf16.msra.mxu0 %v13020_v59  ;;  %v12998_v59 = vcombine.low %v3863_v39, %v3867_v41 }
 0x43a   :  { %7266 = vmatpush1.bf16.msra.mxu1 %v12950_v52  ;;  %7130 = vmatprep.subr.bf16.mxu0 %v13029_v63  ;;  %v13077_v52 = vcombine.high %v3942_v57, %v3946_v45  ;;  %v13007_v63 = vcombine.high %v3871_v47, %v3875_v51  ;;  %v3923_v57 = vld [vmem:[#allocation8 + $0xa38] sm:$0xff] }
 0x43b   :  { %7267 = vmatprep.subr.bf16.mxu1 %v12959_v54  ;;  %v3950_v54 = vld [vmem:[#allocation8 + $0xb10] sm:$0xff] }
 0x43c   :  { %v13084_v5 = vcombine.low %v3950_v54, %v3954_v56 }
 0x43d   :  { %7131 = vmatpush1.bf16.msra.mxu0 %v13028_v60  ;;  %v13006_v60 = vcombine.low %v3871_v47, %v3875_v51 }
 0x43e   :  { %7268 = vmatpush1.bf16.msra.mxu1 %v12958_v62  ;;  %7132 = vmatprep.subr.bf16.mxu0 %v13037_v0  ;;  %v13085_v62 = vcombine.high %v3950_v54, %v3954_v56  ;;  %v3958_v0 = vld [vmem:[#allocation8 + $0xb50] sm:$0xff]  ;;  %v3931_v54 = vld [vmem:[#allocation8 + $0xa78] sm:$0xff] }
 0x43f   :  { %7269 = vmatprep.subr.bf16.mxu1 %v12967_v1  ;;  %v3962_v1 = vld [vmem:[#allocation8 + $0xb70] sm:$0xff] }
 0x440   :  { %v13093_v19 = vcombine.high %v3958_v0, %v3962_v1  ;;  %v13092_v14 = vcombine.low %v3958_v0, %v3962_v1  ;;  %v3939_v0 = vld [vmem:[#allocation8 + $0xab8] sm:$0xff] }
 0x441   :  { %7133 = vmatpush1.bf16.msra.mxu0 %v13036_v20 }
 0x442   :  { %7270 = vmatpush1.bf16.msra.mxu1 %v12966_v32  ;;  %7134 = vmatprep.subr.bf16.mxu0 %v13045_v61  ;;  %v3966_v32 = vld [vmem:[#allocation8 + $0xb90] sm:$0xff] }
 0x443   :  { %7271 = vmatprep.subr.bf16.mxu1 %v12975_v8  ;;  %v3970_v61 = vld [vmem:[#allocation8 + $0xbb0] sm:$0xff]  ;;  %v3895_v8 = vld [vmem:[#allocation8 + $0x958] sm:$0xff] }
 0x444   :  { %v13101_v25 = vcombine.high %v3966_v32, %v3970_v61  ;;  %v13100_v36 = vcombine.low %v3966_v32, %v3970_v61  ;;  %v13030_v35 = vcombine.low %v3895_v8, %v3899_v11  ;;  %v3947_v32 = vld [vmem:[#allocation8 + $0xaf8] sm:$0xff] }
 0x445   :  { %7135 = vmatpush1.bf16.msra.mxu0 %v13044_v26  ;;  %v13031_v26 = vcombine.high %v3895_v8, %v3899_v11 }
 0x446   :  { %7272 = vmatpush1.bf16.msra.mxu1 %v12974_v29  ;;  %7136 = vmatprep.subr.bf16.mxu0 %v13053_v30  ;;  %v3974_v29 = vld [vmem:[#allocation8 + $0xbd0] sm:$0xff] }
 0x447   :  { %7273 = vmatprep.subr.bf16.mxu1 %v12983_v31  ;;  %v3978_v30 = vld [vmem:[#allocation8 + $0xbf0] sm:$0xff]  ;;  %v3903_v31 = vld [vmem:[#allocation8 + $0x998] sm:$0xff] }
 0x448   :  { %v13109_v37 = vcombine.high %v3974_v29, %v3978_v30  ;;  %v13108_v21 = vcombine.low %v3974_v29, %v3978_v30  ;;  %v13038_v39 = vcombine.low %v3903_v31, %v3907_v33  ;;  %v3955_v29 = vld [vmem:[#allocation8 + $0xb38] sm:$0xff] }
 0x449   :  { %7137 = vmatpush1.bf16.msra.mxu0 %v13052_v53  ;;  %v13039_v53 = vcombine.high %v3903_v31, %v3907_v33 }
 0x44a   :  { %7274 = vmatpush1.bf16.msra.mxu1 %v12982_v38  ;;  %7138 = vmatprep.subr.bf16.mxu0 %v13061_v3  ;;  %v3982_v38 = vld [vmem:[#allocation8 + $0xc10] sm:$0xff] }
 0x44b   :  { %7284 = vmatprep.subr.bf16.mxu1 %v12991_v23  ;;  %v3986_v3 = vld [vmem:[#allocation8 + $0xc30] sm:$0xff]  ;;  %v3911_v23 = vld [vmem:[#allocation8 + $0x9d8] sm:$0xff] }
 0x44c   :  { %v13117_v41 = vcombine.high %v3982_v38, %v3986_v3  ;;  %v13116_v45 = vcombine.low %v3982_v38, %v3986_v3  ;;  %v13046_v47 = vcombine.low %v3911_v23, %v3915_v24  ;;  %v3963_v38 = vld [vmem:[#allocation8 + $0xb78] sm:$0xff] }
 0x44d   :  { %7139 = vmatpush1.bf16.msra.mxu0 %v13060_v40  ;;  %7276 = vmatmul.mubr.bf16.vlgmr.msra.gmra.mrb[16].mxu1 %v15526_v4  ;;  %v13015_v4 = vcombine.high %v3879_v58, %v3883_v16  ;;  %v13047_v40 = vcombine.high %v3911_v23, %v3915_v24 }
 0x44e   :  { %7285 = vmatpush1.bf16.msra.mxu1 %v12990_v43  ;;  %7316 = vmatprep.mubr.bf16.mxu1 %v15555_v42  ;;  %v3887_v42 = vld [vmem:[#allocation8 + $0x918] sm:$0xff]  ;;  %v3990_v43 = vld [vmem:[#allocation8 + $0xc50] sm:$0xff] }
 0x44f   :  { %7140 = vmatprep.subr.bf16.mxu0 %v13069_v27  ;;  %7286 = vmatprep.subr.bf16.mxu1 %v12999_v44  ;;  %v13023_v20 = vcombine.high %v3887_v42, %v3891_v2  ;;  %v13022_v17 = vcombine.low %v3887_v42, %v3891_v2  ;;  %v3994_v27 = vld [vmem:[#allocation8 + $0xc70] sm:$0xff]  ;;  %v3919_v44 = vld [vmem:[#allocation8 + $0xa18] sm:$0xff] }
 0x450   :  { %v13125_v51 = vcombine.high %v3990_v43, %v3994_v27  ;;  %v13124_v56 = vcombine.low %v3990_v43, %v3994_v27  ;;  %v13054_v58 = vcombine.low %v3919_v44, %v3923_v57  ;;  %v3967_v27 = vld [vmem:[#allocation8 + $0xb98] sm:$0xff] }
 0x451   :  { %7141 = vmatpush1.bf16.msra.mxu0 %v13068_v9  ;;  %v13055_v9 = vcombine.high %v3919_v44, %v3923_v57  ;;  %v3971_v44 = vld [vmem:[#allocation8 + $0xbb8] sm:$0xff] }
 0x452   :  { %7287 = vmatpush1.bf16.msra.mxu1 %v12998_v59  ;;  %7142 = vmatprep.subr.bf16.mxu0 %v13077_v52  ;;  %v3998_v59 = vld [vmem:[#allocation8 + $0xc90] sm:$0xff] }
 0x453   :  { %7288 = vmatprep.subr.bf16.mxu1 %v13007_v63  ;;  %v4002_v52 = vld [vmem:[#allocation8 + $0xcb0] sm:$0xff]  ;;  %v3927_v63 = vld [vmem:[#allocation8 + $0xa58] sm:$0xff] }
 0x454   :  { %v13133_v16 = vcombine.high %v3998_v59, %v4002_v52  ;;  %v13132_v1 = vcombine.low %v3998_v59, %v4002_v52  ;;  %v13062_v42 = vcombine.low %v3927_v63, %v3931_v54  ;;  %v13103_v59 = vcombine.high %v3967_v27, %v3971_v44  ;;  %v4046_v52 = vld [vmem:[#allocation8 + $0xe10] sm:$0xff] }
 0x455   :  { %7143 = vmatpush1.bf16.msra.mxu0 %v13076_v34  ;;  %v13063_v34 = vcombine.high %v3927_v63, %v3931_v54  ;;  %v4050_v63 = vld [vmem:[#allocation8 + $0xe30] sm:$0xff]  ;;  %v3975_v54 = vld [vmem:[#allocation8 + $0xbd8] sm:$0xff] }
 0x456   :  { %7289 = vmatpush1.bf16.msra.mxu1 %v13006_v60  ;;  %7144 = vmatprep.subr.bf16.mxu0 %v13085_v62  ;;  %v4006_v60 = vld [vmem:[#allocation8 + $0xcd0] sm:$0xff] }
 0x457   :  { %7290 = vmatprep.subr.bf16.mxu1 %v13015_v4  ;;  %v4010_v62 = vld [vmem:[#allocation8 + $0xcf0] sm:$0xff]  ;;  %v3935_v4 = vld [vmem:[#allocation8 + $0xa98] sm:$0xff] }
 0x458   :  { %v13141_v2 = vcombine.high %v4006_v60, %v4010_v62  ;;  %v13140_v61 = vcombine.low %v4006_v60, %v4010_v62  ;;  %v13070_v8 = vcombine.low %v3935_v4, %v3939_v0  ;;  %v4054_v62 = vld [vmem:[#allocation8 + $0xe50] sm:$0xff] }
 0x459   :  { %7145 = vmatpush1.bf16.msra.mxu0 %v13084_v5  ;;  %v13071_v5 = vcombine.high %v3935_v4, %v3939_v0  ;;  %v4058_v4 = vld [vmem:[#allocation8 + $0xe70] sm:$0xff]  ;;  %v3983_v0 = vld [vmem:[#allocation8 + $0xc18] sm:$0xff] }
 0x45a   :  { %7291 = vmatpush1.bf16.msra.mxu1 %v13014_v6  ;;  %7146 = vmatprep.subr.bf16.mxu0 %v13093_v19  ;;  %v4014_v6 = vld [vmem:[#allocation8 + $0xd10] sm:$0xff] }
 0x45b   :  { %7292 = vmatprep.subr.bf16.mxu1 %v13023_v20  ;;  %v4018_v19 = vld [vmem:[#allocation8 + $0xd30] sm:$0xff]  ;;  %v3943_v20 = vld [vmem:[#allocation8 + $0xad8] sm:$0xff] }
 0x45c   :  { %v13149_v11 = vcombine.high %v4014_v6, %v4018_v19  ;;  %v13148_v30 = vcombine.low %v4014_v6, %v4018_v19  ;;  %v13078_v31 = vcombine.low %v3943_v20, %v3947_v32  ;;  %v4062_v19 = vld [vmem:[#allocation8 + $0xe90] sm:$0xff] }
 0x45d   :  { %7147 = vmatpush1.bf16.msra.mxu0 %v13092_v14  ;;  %v13079_v14 = vcombine.high %v3943_v20, %v3947_v32  ;;  %v4066_v20 = vld [vmem:[#allocation8 + $0xeb0] sm:$0xff]  ;;  %v3991_v32 = vld [vmem:[#allocation8 + $0xc58] sm:$0xff] }
 0x45e   :  { %7293 = vmatpush1.bf16.msra.mxu1 %v13022_v17  ;;  %7148 = vmatprep.subr.bf16.mxu0 %v13101_v25  ;;  %v4022_v17 = vld [vmem:[#allocation8 + $0xd50] sm:$0xff] }
 0x45f   :  { %7294 = vmatprep.subr.bf16.mxu1 %v13031_v26  ;;  %v4026_v25 = vld [vmem:[#allocation8 + $0xd70] sm:$0xff]  ;;  %v3951_v26 = vld [vmem:[#allocation8 + $0xb18] sm:$0xff] }
 0x460   :  { %v13157_v33 = vcombine.high %v4022_v17, %v4026_v25  ;;  %v13156_v3 = vcombine.low %v4022_v17, %v4026_v25  ;;  %v13086_v23 = vcombine.low %v3951_v26, %v3955_v29  ;;  %v4070_v25 = vld [vmem:[#allocation8 + $0xed0] sm:$0xff] }
 0x461   :  { %7149 = vmatpush1.bf16.msra.mxu0 %v13100_v36  ;;  %v13087_v36 = vcombine.high %v3951_v26, %v3955_v29  ;;  %v4074_v26 = vld [vmem:[#allocation8 + $0xef0] sm:$0xff]  ;;  %v3999_v29 = vld [vmem:[#allocation8 + $0xc98] sm:$0xff] }
 0x462   :  { %7295 = vmatpush1.bf16.msra.mxu1 %v13030_v35  ;;  %7150 = vmatprep.subr.bf16.mxu0 %v13109_v37  ;;  %v4030_v35 = vld [vmem:[#allocation8 + $0xd90] sm:$0xff] }
 0x463   :  { %7296 = vmatprep.subr.bf16.mxu1 %v13039_v53  ;;  %v4034_v37 = vld [vmem:[#allocation8 + $0xdb0] sm:$0xff]  ;;  %v3959_v53 = vld [vmem:[#allocation8 + $0xb58] sm:$0xff] }
 0x464   :  { %v13165_v24 = vcombine.high %v4030_v35, %v4034_v37 }
 0x465   :  { %7151 = vmatpush1.bf16.msra.mxu0 %v13108_v21 }
 0x466   :  { %7297 = vmatpush1.bf16.msra.mxu1 %v13038_v39  ;;  %7161 = vmatprep.subr.bf16.mxu0 %v13117_v41  ;;  %v13095_v39 = vcombine.high %v3959_v53, %v3963_v38  ;;  %v4038_v41 = vld [vmem:[#allocation8 + $0xdd0] sm:$0xff] }
 0x467   :  { %7298 = vmatprep.subr.bf16.mxu1 %v13047_v40  ;;  %v4042_v40 = vld [vmem:[#allocation8 + $0xdf0] sm:$0xff] }
 0x468   :  { %7153 = vmatmul.mubr.bf16.vlgmr.msra.gmra.mrb[12].mxu0 %v15559_v28 }
 0x469   :  { %7162 = vmatpush1.bf16.msra.mxu0 %v13116_v45  ;;  %7193 = vmatprep.mubr.bf16.mxu0 %v15580_v46  ;;  %v13164_v45 = vcombine.low %v4030_v35, %v4034_v37  ;;  %v4078_v37 = vld [vmem:[#allocation8 + $0xf10] sm:$0xff] }
 0x46a   :  { %7299 = vmatpush1.bf16.msra.mxu1 %v13046_v47  ;;  %7163 = vmatprep.subr.bf16.mxu0 %v13125_v51  ;;  %v13094_v51 = vcombine.low %v3959_v53, %v3963_v38  ;;  %v4082_v53 = vld [vmem:[#allocation8 + $0xf30] sm:$0xff]  ;;  %v4007_v38 = vld [vmem:[#allocation8 + $0xcd8] sm:$0xff] }
 0x46b   :  { %7300 = vmatprep.subr.bf16.mxu1 %v13055_v9  ;;  %v13173_v9 = vcombine.high %v4038_v41, %v4042_v40 }
 0x46d   :  { %7164 = vmatpush1.bf16.msra.mxu0 %v13124_v56  ;;  %v3979_v56 = vld [vmem:[#allocation8 + $0xbf8] sm:$0xff] }
 0x46e   :  { %7301 = vmatpush1.bf16.msra.mxu1 %v13054_v58  ;;  %7165 = vmatprep.subr.bf16.mxu0 %v13133_v16  ;;  %v13172_v58 = vcombine.low %v4038_v41, %v4042_v40  ;;  %v13102_v16 = vcombine.low %v3967_v27, %v3971_v44  ;;  %v13111_v60 = vcombine.high %v3975_v54, %v3979_v56  ;;  %v4086_v41 = vld [vmem:[#allocation8 + $0xf50] sm:$0xff]  ;;  %v4019_v27 = vld [vmem:[#allocation8 + $0xd38] sm:$0xff] }
 0x46f   :  { %7302 = vmatprep.subr.bf16.mxu1 %v13063_v34  ;;  %v13181_v34 = vcombine.high %v4046_v52, %v4050_v63  ;;  %v4090_v40 = vld [vmem:[#allocation8 + $0xf70] sm:$0xff]  ;;  %v13212_v44 = vcombine.low %v4078_v37, %v4082_v53 }
 0x471   :  { %7166 = vmatpush1.bf16.msra.mxu0 %v13132_v1  ;;  %v3987_v1 = vld [vmem:[#allocation8 + $0xc38] sm:$0xff] }
 0x472   :  { %7303 = vmatpush1.bf16.msra.mxu1 %v13062_v42  ;;  %7167 = vmatprep.subr.bf16.mxu0 %v13141_v2  ;;  %v13180_v42 = vcombine.low %v4046_v52, %v4050_v63  ;;  %v13110_v2 = vcombine.low %v3975_v54, %v3979_v56  ;;  %v13119_v6 = vcombine.high %v3983_v0, %v3987_v1  ;;  %v4023_v52 = vld [vmem:[#allocation8 + $0xd58] sm:$0xff] }
 0x473   :  { %7304 = vmatprep.subr.bf16.mxu1 %v13071_v5  ;;  %v13189_v5 = vcombine.high %v4054_v62, %v4058_v4  ;;  %v4027_v63 = vld [vmem:[#allocation8 + $0xd78] sm:$0xff]  ;;  %v13220_v54 = vcombine.low %v4086_v41, %v4090_v40 }
 0x475   :  { %7168 = vmatpush1.bf16.msra.mxu0 %v13140_v61  ;;  %v3995_v61 = vld [vmem:[#allocation8 + $0xc78] sm:$0xff] }
 0x476   :  { %7305 = vmatpush1.bf16.msra.mxu1 %v13070_v8  ;;  %7169 = vmatprep.subr.bf16.mxu0 %v13149_v11  ;;  %v13188_v8 = vcombine.low %v4054_v62, %v4058_v4  ;;  %v13118_v11 = vcombine.low %v3983_v0, %v3987_v1  ;;  %v13127_v17 = vcombine.high %v3991_v32, %v3995_v61  ;;  %v4106_v62 = vld [vmem:[#allocation8 + $0xff0] sm:$0xff]  ;;  %v4031_v4 = vld [vmem:[#allocation8 + $0xd98] sm:$0xff] }
 0x477   :  { %7306 = vmatprep.subr.bf16.mxu1 %v13079_v14  ;;  %v13197_v14 = vcombine.high %v4062_v19, %v4066_v20  ;;  %v4035_v0 = vld [vmem:[#allocation8 + $0xdb8] sm:$0xff] }
 0x479   :  { %7170 = vmatpush1.bf16.msra.mxu0 %v13148_v30  ;;  %v4003_v30 = vld [vmem:[#allocation8 + $0xcb8] sm:$0xff] }
 0x47a   :  { %7307 = vmatpush1.bf16.msra.mxu1 %v13078_v31  ;;  %7171 = vmatprep.subr.bf16.mxu0 %v13157_v33  ;;  %v13196_v31 = vcombine.low %v4062_v19, %v4066_v20  ;;  %v13126_v33 = vcombine.low %v3991_v32, %v3995_v61  ;;  %v13135_v35 = vcombine.high %v3999_v29, %v4003_v30  ;;  %v4039_v32 = vld [vmem:[#allocation8 + $0xdd8] sm:$0xff] }
 0x47b   :  { %v15603_v21 = vpop.f32.mrb[8].mxu0  ;;  %7308 = vmatprep.subr.bf16.mxu1 %v13087_v36  ;;  %v13205_v36 = vcombine.high %v4070_v25, %v4074_v26  ;;  %v13167_v19 = vcombine.high %v4031_v4, %v4035_v0  ;;  %v4043_v61 = vld [vmem:[#allocation8 + $0xdf8] sm:$0xff] }
 0x47c   :  { %v15605_v43 = vpop.f32.mrb[9].mxu0 }
 0x47d   :  { %7172 = vmatpush1.bf16.msra.mxu0 %v13156_v3  ;;  %v6871_v57 = vpop.f32.mrb[10].mxu0  ;;  %v4011_v3 = vld [vmem:[#allocation8 + $0xcf8] sm:$0xff] }
 0x47e   :  { %7309 = vmatpush1.bf16.msra.mxu1 %v13086_v23  ;;  %v6872_v47 = vpop.f32.mrb[11].mxu0  ;;  %7173 = vmatprep.subr.bf16.mxu0 %v13165_v24  ;;  %v13204_v23 = vcombine.low %v4070_v25, %v4074_v26  ;;  %v13134_v24 = vcombine.low %v3999_v29, %v4003_v30  ;;  %v13142_v57 = vcombine.low %v4007_v38, %v4011_v3  ;;  %v14173_v25 = vld [vmem:[#allocation11 + $0x40] sm:$0xff]   ;;  %v4051_v30 = vld [vmem:[#allocation8 + $0xe38] sm:$0xff] }
 0x47f   :  { %7310 = vmatprep.subr.bf16.mxu1 %v13095_v39  ;;  %v13213_v39 = vcombine.high %v4078_v37, %v4082_v53  ;;  %v13175_v29 = vcombine.high %v4039_v32, %v4043_v61  ;;  %v4055_v53 = vld [vmem:[#allocation8 + $0xe58] sm:$0xff] }
 0x481   :  { %7174 = vmatpush1.bf16.msra.mxu0 %v13164_v45  ;;  %v13221_v45 = vcombine.high %v4086_v41, %v4090_v40  ;;  %v4067_v41 = vld [vmem:[#allocation8 + $0xeb8] sm:$0xff] }
 0x482   :  { %7311 = vmatpush1.bf16.msra.mxu1 %v13094_v51  ;;  %7175 = vmatprep.subr.bf16.mxu0 %v13173_v9  ;;  %v4094_v51 = vld [vmem:[#allocation8 + $0xf90] sm:$0xff]  ;;  %v14178_v40 = vld [vmem:[#allocation11 + $0x10] sm:$0xff]  }
 0x483   :  { %7312 = vmatprep.subr.bf16.mxu1 %v13103_v59  ;;  %v4098_v9 = vld [vmem:[#allocation8 + $0xfb0] sm:$0xff]  ;;  %v15609_v59 = vld [vmem:[#allocation10] sm:$0xff] }
 0x484   :  { %v13228_v1 = vcombine.low %v4094_v51, %v4098_v9 }
 0x485   :  { %7176 = vmatpush1.bf16.msra.mxu0 %v13172_v58  ;;  %v13229_v58 = vcombine.high %v4094_v51, %v4098_v9  ;;  %v14181_v9 = vld [vmem:[#allocation11 + $0x60] sm:$0xff]  }
 0x486   :  { %7313 = vmatpush1.bf16.msra.mxu1 %v13102_v16  ;;  %7177 = vmatprep.subr.bf16.mxu0 %v13181_v34  ;;  %v4117_v16 = vrot.slane %v15609_v59, %v15491_v15  ;;  %v13159_v34 = vcombine.high %v4023_v52, %v4027_v63 }
 0x487   :  { %7314 = vmatprep.subr.bf16.mxu1 %v13111_v60  ;;  %v4102_v60 = vld [vmem:[#allocation8 + $0xfd0] sm:$0xff] }
 0x489   :  { %7178 = vmatpush1.bf16.msra.mxu0 %v13180_v42  ;;  %v13158_v42 = vcombine.low %v4023_v52, %v4027_v63  ;;  %v4079_v63 = vld [vmem:[#allocation8 + $0xf18] sm:$0xff] }
 0x48a   :  { %7315 = vmatpush1.bf16.msra.mxu1 %v13110_v2  ;;  %7179 = vmatprep.subr.bf16.mxu0 %v13189_v5  ;;  %v13237_v2 = vcombine.high %v4102_v60, %v4106_v62  ;;  %v14012_v5 = vadd.f32 %v15605_v43, %v4117_v16  ;;  %v4047_v43 = vld [vmem:[#allocation8 + $0xe18] sm:$0xff]  ;;  %v14183_v16 = vld [vmem:[#allocation11 + $0x68] sm:$0xff]  }
 0x48b   :  { %7325 = vmatprep.subr.bf16.mxu1 %v13119_v6  ;;  %v13183_v37 = vcombine.high %v4047_v43, %v4051_v30 }
 0x48c   :  { %v7367_v26 = vmax.f32 %v14012_v5, 0.0  ;;  %v4095_v5 = vld [vmem:[#allocation8 + $0xf98] sm:$0xff] }
 0x48d   :  { %7180 = vmatpush1.bf16.msra.mxu0 %v13188_v8  ;;  %7317 = vmatmul.mubr.bf16.vlgmr.msra.gmra.mrb[16].mxu1 %v15559_v28  ;;  %v13143_v28 = vcombine.high %v4007_v38, %v4011_v3  ;;  %v4059_v38 = vld [vmem:[#allocation8 + $0xe78] sm:$0xff]  ;;  %v14176_v3 = vld [vmem:[#allocation11 + $0x8] sm:$0xff]  }
 0x48e   :  { %7326 = vmatpush1.bf16.msra.mxu1 %v13118_v11  ;;  %7357 = vmatprep.mubr.bf16.mxu1 %v15580_v46  ;;  %v4015_v46 = vld [vmem:[#allocation8 + $0xd18] sm:$0xff]  ;;  %v13236_v11 = vcombine.low %v4102_v60, %v4106_v62 }
 0x48f   :  { %7181 = vmatprep.subr.bf16.mxu0 %v13197_v14  ;;  %7327 = vmatprep.subr.bf16.mxu1 %v13127_v17  ;;  %v13151_v47 = vcombine.high %v4015_v46, %v4019_v27  ;;  %v13150_v56 = vcombine.low %v4015_v46, %v4019_v27  ;;  %v13166_v17 = vcombine.low %v4031_v4, %v4035_v0  ;;  %v14179_v27 = vld [vmem:[#allocation11 + $0x58] sm:$0xff]   ;;  %v4087_v60 = vld [vmem:[#allocation8 + $0xf58] sm:$0xff]  ;;  %v14184_v4 = vld [vmem:[#allocation11 + $0x28] sm:$0xff]  }
 0x490   :  { %v13190_v46 = vcombine.low %v4055_v53, %v4059_v38  ;;  %v4091_v62 = vld [vmem:[#allocation8 + $0xf78] sm:$0xff]  ;;  %v4113_v0 = vrot.slane %v15609_v59, %v15488_v12 }
 0x491   :  { %7182 = vmatpush1.bf16.msra.mxu0 %v13196_v31  ;;  %v14174_v31 = vld [vmem:[#allocation11] sm:$0xff]  }
 0x492   :  { %7328 = vmatpush1.bf16.msra.mxu1 %v13126_v33  ;;  %7183 = vmatprep.subr.bf16.mxu0 %v13205_v36  ;;  %v13174_v33 = vcombine.low %v4039_v32, %v4043_v61  ;;  %v14175_v36 = vld [vmem:[#allocation11 + $0x48] sm:$0xff]   ;;  %v14186_v32 = vld [vmem:[#allocation11 + $0x30] sm:$0xff]   ;;  %v14011_v61 = vadd.f32 %v15603_v21, %v4113_v0  ;;  %v14204_v0 = vld [vmem:[#allocation11 + $0xb8] sm:$0xff]  }
 0x493   :  { %7329 = vmatprep.subr.bf16.mxu1 %v13135_v35  ;;  %v7375_v35 = vpack.c.bf16 %v7367_v26, %v7367_v26  ;;  %v4107_v26 = vld [vmem:[#allocation8 + $0xff8] sm:$0xff] }
 0x495   :  { %7184 = vmatpush1.bf16.msra.mxu0 %v13204_v23  ;;  %v13182_v23 = vcombine.low %v4047_v43, %v4051_v30  ;;  %v7366_v43 = vmax.f32 %v14011_v61, 0.0  ;;  %v14221_v61 = vld [vmem:[#allocation11 + $0x1c0] sm:$0xff]  }
 0x496   :  { %7330 = vmatpush1.bf16.msra.mxu1 %v13134_v24  ;;  %7185 = vmatprep.subr.bf16.mxu0 %v13213_v39  ;;  %v14177_v24 = vld [vmem:[#allocation11 + $0x50] sm:$0xff]   ;;  %v13191_v39 = vcombine.high %v4055_v53, %v4059_v38  ;;  %v14207_v53 = vld [vmem:[#allocation11 + $0x148] sm:$0xff]   ;;  %v14189_v38 = vld [vmem:[#allocation11 + $0xc0] sm:$0xff]  }
 0x497   :  { %7331 = vmatprep.subr.bf16.mxu1 %v13143_v28  ;;  %v4063_v28 = vld [vmem:[#allocation8 + $0xe98] sm:$0xff] }
 0x498   :  { %v13198_v51 = vcombine.low %v4063_v28, %v4067_v41 }
 0x499   :  { %7186 = vmatpush1.bf16.msra.mxu0 %v13212_v44  ;;  %v13199_v44 = vcombine.high %v4063_v28, %v4067_v41  ;;  %v14209_v28 = vld [vmem:[#allocation11 + $0x150] sm:$0xff]  }
 0x49a   :  { %7332 = vmatpush1.bf16.msra.mxu1 %v13142_v57  ;;  %7187 = vmatprep.subr.bf16.mxu0 %v13221_v45  ;;  %v4071_v57 = vld [vmem:[#allocation8 + $0xed8] sm:$0xff] }
 0x49b   :  { %7333 = vmatprep.subr.bf16.mxu1 %v13151_v47  ;;  %v4075_v45 = vld [vmem:[#allocation8 + $0xef8] sm:$0xff]  ;;  %v14180_v47 = vld [vmem:[#allocation11 + $0x18] sm:$0xff]  }
 0x49c   :  { %v13207_v52 = vcombine.high %v4071_v57, %v4075_v45  ;;  %v14210_v41 = vld [vmem:[#allocation11 + $0x110] sm:$0xff]  }
 0x49d   :  { %7188 = vmatpush1.bf16.msra.mxu0 %v13220_v54  ;;  %v4083_v54 = vld [vmem:[#allocation8 + $0xf38] sm:$0xff] }
 0x49e   :  { %7334 = vmatpush1.bf16.msra.mxu1 %v13150_v56  ;;  %7189 = vmatprep.subr.bf16.mxu0 %v13229_v58  ;;  %v14182_v56 = vld [vmem:[#allocation11 + $0x20] sm:$0xff]   ;;  %v13206_v58 = vcombine.low %v4071_v57, %v4075_v45  ;;  %v14194_v57 = vld [vmem:[#allocation11 + $0x90] sm:$0xff]  }
 0x49f   :  { %v15614_v6 = vpop.f32.mrb[12].mxu1  ;;  %7335 = vmatprep.subr.bf16.mxu1 %v13159_v34  ;;  %v13215_v34 = vcombine.high %v4079_v63, %v4083_v54  ;;  %v14213_v45 = vld [vmem:[#allocation11 + $0x160] sm:$0xff]  }
 0x4a0   :  { %v15616_v20 = vpop.f32.mrb[13].mxu1 }
 0x4a1   :  { %7190 = vmatpush1.bf16.msra.mxu0 %v13228_v1  ;;  %v7035_v8 = vpop.f32.mrb[14].mxu1  ;;  %v13214_v1 = vcombine.low %v4079_v63, %v4083_v54  ;;  %v14216_v63 = vld [vmem:[#allocation11 + $0x128] sm:$0xff]   ;;  %v14198_v54 = vld [vmem:[#allocation11 + $0xa0] sm:$0xff]  }
 0x4a2   :  { %7336 = vmatpush1.bf16.msra.mxu1 %v13158_v42  ;;  %v7036_v14 = vpop.f32.mrb[15].mxu1  ;;  %7191 = vmatprep.subr.bf16.mxu0 %v13237_v2  ;;  %v14185_v42 = vld [vmem:[#allocation11 + $0x70] sm:$0xff]   ;;  %v13223_v2 = vcombine.high %v4087_v60, %v4091_v62  ;;  %v13222_v8 = vcombine.low %v4087_v60, %v4091_v62 }
 0x4a3   :  { %7337 = vmatprep.subr.bf16.mxu1 %v13167_v19  ;;  %v4099_v19 = vld [vmem:[#allocation8 + $0xfb8] sm:$0xff] }
 0x4a4   :  { %v13231_v14 = vcombine.high %v4095_v5, %v4099_v19  ;;  %v13230_v30 = vcombine.low %v4095_v5, %v4099_v19  ;;  %v14202_v60 = vld [vmem:[#allocation11 + $0xb0] sm:$0xff]   ;;  %v14219_v19 = vld [vmem:[#allocation11 + $0x178] sm:$0xff]  }
 0x4a5   :  { %7192 = vmatpush1.bf16.msra.mxu0 %v13236_v11  ;;  %v14187_v11 = vld [vmem:[#allocation11 + $0x78] sm:$0xff]   ;;  %v14218_v5 = vld [vmem:[#allocation11 + $0x130] sm:$0xff]  }
 0x4a6   :  { %7338 = vmatpush1.bf16.msra.mxu1 %v13166_v17  ;;  %13825 = vmatprep.subr.bf16.mxu0 %v14173_v25  ;;  %v4125_v17 = vrot.slane %v15609_v59, %v15514_v18  ;;  %v4103_v25 = vld [vmem:[#allocation8 + $0xfd8] sm:$0xff] }
 0x4a7   :  { %7339 = vmatprep.subr.bf16.mxu1 %v13175_v29  ;;  %v14188_v29 = vld [vmem:[#allocation11 + $0x38] sm:$0xff]   ;;  %v13239_v21 = vcombine.high %v4103_v25, %v4107_v26 }
 0x4a8   :  { %7194 = vmatmul.mubr.bf16.vlgmr.msra.gmra.mrb[12].mxu0 %v15582_v7 }
 0x4a9   :  { %13826 = vmatpush3.bf16.msra.mxu0 %v14174_v31  ;;  %7933 = vmatprep.mubr.bf16.mxu0 %v7375_v35  ;;  %v14205_v31 = vld [vmem:[#allocation11 + $0x140] sm:$0xff]   ;;  %v7374_v35 = vpack.c.bf16 %v7366_v43, %v7366_v43 }
 0x4aa   :  { %7340 = vmatpush1.bf16.msra.mxu1 %v13174_v33  ;;  %13827 = vmatprep.subr.bf16.mxu0 %v14175_v36  ;;  %v14014_v33 = vadd.f32 %v15616_v20, %v4125_v17  ;;  %v14206_v36 = vld [vmem:[#allocation11 + $0x100] sm:$0xff]   ;;  %v14226_v17 = vld [vmem:[#allocation11 + $0x190] sm:$0xff]  }
 0x4ab   :  { %7341 = vmatprep.subr.bf16.mxu1 %v13183_v37  ;;  %v13238_v37 = vcombine.low %v4103_v25, %v4107_v26  ;;  %v14227_v25 = vld [vmem:[#allocation11 + $0x1d8] sm:$0xff]   ;;  %v14230_v43 = vld [vmem:[#allocation11 + $0x1a0] sm:$0xff]  }
 0x4ac   :  { %v14228_v26 = vld [vmem:[#allocation11 + $0x198] sm:$0xff]  }
 0x4ad   :  { %13828 = vmatpush3.bf16.msra.mxu0 %v14176_v3  ;;  %v7369_v3 = vmax.f32 %v14014_v33, 0.0  ;;  %v14234_v33 = vld [vmem:[#allocation11 + $0x1b0] sm:$0xff]  }
 0x4ae   :  { %7342 = vmatpush1.bf16.msra.mxu1 %v13182_v23  ;;  %13829 = vmatprep.subr.bf16.mxu0 %v14177_v24  ;;  %v14208_v23 = vld [vmem:[#allocation11 + $0x108] sm:$0xff]   ;;  %v14190_v24 = vld [vmem:[#allocation11 + $0x80] sm:$0xff]  }
 0x4af   :  { %7343 = vmatprep.subr.bf16.mxu1 %v13191_v39  ;;  %v14191_v39 = vld [vmem:[#allocation11 + $0xc8] sm:$0xff]   ;;  %v7377_v20 = vpack.c.bf16 %v7369_v3, %v7369_v3 }
 0x4b1   :  { %13830 = vmatpush3.bf16.msra.mxu0 %v14178_v40  ;;  %v14192_v40 = vld [vmem:[#allocation11 + $0x88] sm:$0xff]  }
 0x4b2   :  { %7344 = vmatpush1.bf16.msra.mxu1 %v13190_v46  ;;  %13831 = vmatprep.subr.bf16.mxu0 %v14179_v27  ;;  %v14211_v46 = vld [vmem:[#allocation11 + $0x158] sm:$0xff]   ;;  %v14193_v27 = vld [vmem:[#allocation11 + $0xd0] sm:$0xff]  }
 0x4b3   :  { %7345 = vmatprep.subr.bf16.mxu1 %v13199_v44  ;;  %v14212_v44 = vld [vmem:[#allocation11 + $0x118] sm:$0xff]  }
 0x4b5   :  { %13832 = vmatpush3.bf16.msra.mxu0 %v14180_v47  ;;  %v14195_v47 = vld [vmem:[#allocation11 + $0xd8] sm:$0xff]  }
 0x4b6   :  { %7346 = vmatpush1.bf16.msra.mxu1 %v13198_v51  ;;  %13833 = vmatprep.subr.bf16.mxu0 %v14181_v9  ;;  %v14214_v51 = vld [vmem:[#allocation11 + $0x120] sm:$0xff]   ;;  %v14215_v9 = vld [vmem:[#allocation11 + $0x168] sm:$0xff]  }
 0x4b7   :  { %7347 = vmatprep.subr.bf16.mxu1 %v13207_v52  ;;  %v14197_v52 = vld [vmem:[#allocation11 + $0xe0] sm:$0xff]  }
 0x4b9   :  { %13834 = vmatpush3.bf16.msra.mxu0 %v14182_v56  ;;  %v14199_v56 = vld [vmem:[#allocation11 + $0xe8] sm:$0xff]  }
 0x4ba   :  { %7348 = vmatpush1.bf16.msra.mxu1 %v13206_v58  ;;  %13835 = vmatprep.subr.bf16.mxu0 %v14183_v16  ;;  %v14200_v58 = vld [vmem:[#allocation11 + $0xa8] sm:$0xff]   ;;  %v4121_v16 = vrot.slane %v15609_v59, %v15517_v22 }
 0x4bb   :  { %7349 = vmatprep.subr.bf16.mxu1 %v13215_v34  ;;  %v14201_v34 = vld [vmem:[#allocation11 + $0xf0] sm:$0xff]  }
 0x4bc   :  { %v14013_v62 = vadd.f32 %v15614_v6, %v4121_v16  ;;  %v14223_v6 = vld [vmem:[#allocation11 + $0x1c8] sm:$0xff]  }
 0x4bd   :  { %13836 = vmatpush3.bf16.msra.mxu0 %v14184_v4  ;;  %v14203_v4 = vld [vmem:[#allocation11 + $0xf8] sm:$0xff]  }
 0x4be   :  { %7350 = vmatpush1.bf16.msra.mxu1 %v13214_v1  ;;  %13837 = vmatprep.subr.bf16.mxu0 %v14185_v42  ;;  %v7368_v1 = vmax.f32 %v14013_v62, 0.0 }
 0x4bf   :  { %7351 = vmatprep.subr.bf16.mxu1 %v13223_v2  ;;  %v14217_v2 = vld [vmem:[#allocation11 + $0x170] sm:$0xff]  }
 0x4c0   :  { %v7376_v42 = vpack.c.bf16 %v7368_v1, %v7368_v1 }
 0x4c1   :  { %13838 = vmatpush3.bf16.msra.mxu0 %v14186_v32  ;;  %v14220_v32 = vld [vmem:[#allocation11 + $0x138] sm:$0xff]  }
 0x4c2   :  { %7352 = vmatpush1.bf16.msra.mxu1 %v13222_v8  ;;  %13839 = vmatprep.subr.bf16.mxu0 %v14187_v11  ;;  %v14222_v8 = vld [vmem:[#allocation11 + $0x180] sm:$0xff]   ;;  %v14224_v11 = vld [vmem:[#allocation11 + $0x188] sm:$0xff]  }
 0x4c3   :  { %7353 = vmatprep.subr.bf16.mxu1 %v13231_v14  ;;  %v14225_v14 = vld [vmem:[#allocation11 + $0x1d0] sm:$0xff]  }
 0x4c5   :  { %13840 = vmatpush3.bf16.msra.mxu0 %v14188_v29  ;;  %v14229_v29 = vld [vmem:[#allocation11 + $0x1e0] sm:$0xff]  }
 0x4c6   :  { %7354 = vmatpush1.bf16.msra.mxu1 %v13230_v30  ;;  %13869 = vmatprep.subr.bf16.mxu0 %v14205_v31  ;;  %v14231_v30 = vld [vmem:[#allocation11 + $0x1e8] sm:$0xff]  }
 0x4c7   :  { %7355 = vmatprep.subr.bf16.mxu1 %v13239_v21  ;;  %v14232_v31 = vld [vmem:[#allocation11 + $0x1a8] sm:$0xff]   ;;  %v14233_v21 = vld [vmem:[#allocation11 + $0x1f0] sm:$0xff]  }
 0x4c8   :  { %7934 = vmatmul.mubr.bf16.vlgmr.msra.gmra.mrb[16].mxu0 %v7374_v35  ;;  %v14236_v35 = vld [vmem:[#allocation11 + $0x1b8] sm:$0xff]  }
 0x4c9   :  { %13870 = vmatpush3.bf16.msra.mxu0 %v14206_v36  ;;  %v14235_v36 = vld [vmem:[#allocation11 + $0x1f8] sm:$0xff]  }
 0x4ca   :  { %7356 = vmatpush1.bf16.msra.mxu1 %v13238_v37  ;;  %13871 = vmatprep.subr.bf16.mxu0 %v14207_v53  ;;  %v4129_v37 = vrot.slane %v15609_v59, %v15540_v48  ;;  %v4133_v53 = vrot.slane %v15609_v59, %v15543_v49 }
 0x4cb   :  { %13847 = vmatprep.subr.bf16.mxu1 %v14189_v38 }
 0x4cd   :  { %7358 = vmatmul.mubr.bf16.vlgmr.msra.gmra.mrb[16].mxu1 %v15582_v7  ;;  %13872 = vmatpush3.bf16.msra.mxu0 %v14208_v23  ;;  %v14196_v7 = vld [vmem:[#allocation11 + $0x98] sm:$0xff]  }
 0x4ce   :  { %13848 = vmatpush3.bf16.msra.mxu1 %v14190_v24  ;;  %7973 = vmatprep.mubr.bf16.mxu1 %v7377_v20 }
 0x4cf   :  { %13849 = vmatprep.subr.bf16.mxu1 %v14191_v39  ;;  %13873 = vmatprep.subr.bf16.mxu0 %v14209_v28 }
 0x4d1   :  { %13874 = vmatpush3.bf16.msra.mxu0 %v14210_v41 }
 0x4d2   :  { %13850 = vmatpush3.bf16.msra.mxu1 %v14192_v40  ;;  %13875 = vmatprep.subr.bf16.mxu0 %v14211_v46 }
 0x4d3   :  { %13851 = vmatprep.subr.bf16.mxu1 %v14193_v27 }
 0x4d5   :  { %13876 = vmatpush3.bf16.msra.mxu0 %v14212_v44 }
 0x4d6   :  { %13852 = vmatpush3.bf16.msra.mxu1 %v14194_v57  ;;  %13877 = vmatprep.subr.bf16.mxu0 %v14213_v45 }
 0x4d7   :  { %13853 = vmatprep.subr.bf16.mxu1 %v14195_v47  ;;  %v4137_v47 = vrot.slane %v15609_v59, %v15571_v10 }
 0x4d9   :  { %13878 = vmatpush3.bf16.msra.mxu0 %v14214_v51 }
 0x4da   :  { %13854 = vmatpush3.bf16.msra.mxu1 %v14196_v7  ;;  %13879 = vmatprep.subr.bf16.mxu0 %v14215_v9  ;;  %v4141_v7 = vrot.slane %v15609_v59, %v15574_v13 }
 0x4db   :  { %13855 = vmatprep.subr.bf16.mxu1 %v14197_v52 }
 0x4dd   :  { %13880 = vmatpush3.bf16.msra.mxu0 %v14216_v63 }
 0x4de   :  { %13856 = vmatpush3.bf16.msra.mxu1 %v14198_v54  ;;  %13881 = vmatprep.subr.bf16.mxu0 %v14217_v2 }
 0x4df   :  { %13857 = vmatprep.subr.bf16.mxu1 %v14199_v56 }
 0x4e1   :  { %13882 = vmatpush3.bf16.msra.mxu0 %v14218_v5 }
 0x4e2   :  { %13858 = vmatpush3.bf16.msra.mxu1 %v14200_v58  ;;  %13883 = vmatprep.subr.bf16.mxu0 %v14219_v19 }
 0x4e3   :  { %13859 = vmatprep.subr.bf16.mxu1 %v14201_v34 }
 0x4e5   :  { %13884 = vmatpush3.bf16.msra.mxu0 %v14220_v32  ;;  %v8086_v32 = vld [vmem:[#allocation14] sm:$0xff] }
 0x4e6   :  { %13860 = vmatpush3.bf16.msra.mxu1 %v14202_v60 }
 0x4e7   :  { %13861 = vmatprep.subr.bf16.mxu1 %v14203_v4  ;;  %v13240_v4 = vld [vmem:[#allocation13] ss:$0 sm:$0xff] }
 0x4ea   :  { %13862 = vmatpush3.bf16.msra.mxu1 %v14204_v0 }
 0x4eb   :  { %13891 = vmatprep.subr.bf16.mxu1 %v14221_v61  ;;  %v8090_v61 = vld [vmem:[#allocation14 + $0x20] sm:$0xff] }
 0x4ed   :  { %7974 = vmatmul.mubr.bf16.vlgmr.msra.gmra.mrb[20].mxu1 %v7376_v42 }
 0x4ee   :  { %13892 = vmatpush3.bf16.msra.mxu1 %v14222_v8  ;;  %v8087_v8 = vld [vmem:[#allocation14 + $0x8] sm:$0xff] }
 0x4ef   :  { %13893 = vmatprep.subr.bf16.mxu1 %v14223_v6  ;;  %v13306_v6 = vcombine.low %v8086_v32, %v8090_v61 }
 0x4f2   :  { %13894 = vmatpush3.bf16.msra.mxu1 %v14224_v11  ;;  %v13307_v11 = vcombine.high %v8086_v32, %v8090_v61 }
 0x4f3   :  { %13895 = vmatprep.subr.bf16.mxu1 %v14225_v14  ;;  %v8091_v14 = vld [vmem:[#allocation14 + $0x28] sm:$0xff] }
 0x4f4   :  { %8512 = vmatprep.subr.bf16.mxu0 %v13307_v11  ;;  %v8146_v11 = vld [vmem:[#allocation14 + $0x1e0] sm:$0xff] }
 0x4f6   :  { %13896 = vmatpush3.bf16.msra.mxu1 %v14226_v17  ;;  %v8094_v17 = vld [vmem:[#allocation14 + $0x40] sm:$0xff] }
 0x4f7   :  { %13897 = vmatprep.subr.bf16.mxu1 %v14227_v25  ;;  %v8098_v25 = vld [vmem:[#allocation14 + $0x60] sm:$0xff] }
 0x4fa   :  { %13898 = vmatpush3.bf16.msra.mxu1 %v14228_v26  ;;  %v13308_v26 = vcombine.low %v8087_v8, %v8091_v14 }
 0x4fb   :  { %13899 = vmatprep.subr.bf16.mxu1 %v14229_v29  ;;  %v13309_v29 = vcombine.high %v8087_v8, %v8091_v14  ;;  %v8143_v14 = vld [vmem:[#allocation14 + $0x1c8] sm:$0xff] }
 0x4fe   :  { %13900 = vmatpush3.bf16.msra.mxu1 %v14230_v43  ;;  %v13315_v43 = vcombine.high %v8094_v17, %v8098_v25 }
 0x4ff   :  { %13901 = vmatprep.subr.bf16.mxu1 %v14231_v30  ;;  %v8095_v30 = vld [vmem:[#allocation14 + $0x48] sm:$0xff] }
 0x502   :  { %13902 = vmatpush3.bf16.msra.mxu1 %v14232_v31  ;;  %v8099_v31 = vld [vmem:[#allocation14 + $0x68] sm:$0xff] }
 0x503   :  { %13903 = vmatprep.subr.bf16.mxu1 %v14233_v21  ;;  %v8102_v21 = vld [vmem:[#allocation14 + $0x80] sm:$0xff] }
 0x506   :  { %13904 = vmatpush3.bf16.msra.mxu1 %v14234_v33  ;;  %v13317_v33 = vcombine.high %v8095_v30, %v8099_v31 }
 0x507   :  { %13905 = vmatprep.subr.bf16.mxu1 %v14235_v36  ;;  %v8106_v36 = vld [vmem:[#allocation14 + $0xa0] sm:$0xff] }
 0x50a   :  { %13906 = vmatpush3.bf16.msra.mxu1 %v14236_v35  ;;  %v8103_v35 = vld [vmem:[#allocation14 + $0x88] sm:$0xff] }
 0x50b   :  { %8553 = vmatprep.subr.bf16.mxu1 %v13309_v29 }
 0x57b   :  { %v7195_v38 = vpop.f32.mrb[12].mxu0 }
 0x57c   :  { %v14015_v3 = vadd.f32 %v7195_v38, %v4129_v37  ;;  %v7197_v23 = vpop.f32.mrb[13].mxu0  ;;  %v8107_v37 = vld [vmem:[#allocation14 + $0xa8] sm:$0xff]  ;;  %v13316_v38 = vcombine.low %v8095_v30, %v8099_v31  ;;  %v8088_v30 = vld [vmem:[#allocation14 + $0x10] sm:$0xff] }
 0x57d   :  { %v14016_v24 = vadd.f32 %v7197_v23, %v4133_v53  ;;  %v7199_v39 = vpop.f32.mrb[14].mxu0  ;;  %v13314_v53 = vcombine.low %v8094_v17, %v8098_v25  ;;  %v13325_v23 = vcombine.high %v8103_v35, %v8107_v37  ;;  %v8147_v25 = vld [vmem:[#allocation14 + $0x1e8] sm:$0xff]  ;;  %v8092_v31 = vld [vmem:[#allocation14 + $0x30] sm:$0xff] }
 0x57e   :  { %v7370_v28 = vmax.f32 %v14015_v3, 0.0  ;;  %v7200_v20 = vpop.f32.mrb[15].mxu0  ;;  %v13323_v3 = vcombine.high %v8102_v21, %v8106_v36  ;;  %v8114_v39 = vld [vmem:[#allocation14 + $0xe0] sm:$0xff]  ;;  %v13364_v29 = vcombine.low %v8143_v14, %v8147_v25 }
 0x57f   :  { %v7371_v41 = vmax.f32 %v14016_v24, 0.0  ;;  %v8110_v24 = vld [vmem:[#allocation14 + $0xc0] sm:$0xff]  ;;  %v8115_v20 = vld [vmem:[#allocation14 + $0xe8] sm:$0xff] }
 0x580   :  { %v7378_v46 = vpack.c.bf16 %v7370_v28, %v7370_v28  ;;  %v8111_v28 = vld [vmem:[#allocation14 + $0xc8] sm:$0xff] }
 0x581   :  { %v7379_v40 = vpack.c.bf16 %v7371_v41, %v7371_v41  ;;  %v13322_v41 = vcombine.low %v8102_v21, %v8106_v36  ;;  %v8089_v21 = vld [vmem:[#allocation14 + $0x18] sm:$0xff] }
 0x582   :  { %v8093_v36 = vld [vmem:[#allocation14 + $0x38] sm:$0xff] }
 0x583   :  { %8013 = vmatprep.mubr.bf16.mxu0 %v7379_v40  ;;  %v13324_v40 = vcombine.low %v8103_v35, %v8107_v37  ;;  %v13310_v35 = vcombine.low %v8088_v30, %v8092_v31  ;;  %v13312_v37 = vcombine.low %v8089_v21, %v8093_v36 }
 0x584   :  { %8014 = vmatmul.mubr.bf16.vlgmr.msra.gmra.mrb[20].mxu0 %v7378_v46  ;;  %v13331_v46 = vcombine.high %v8110_v24, %v8114_v39 }
 0x585   :  { %8544 = vmatprep.mubr.bf16.mxu0 %v15229_v50  ;;  %8513 = vmatpush1.bf16.msra.mxu0 %v13306_v6  ;;  %v8142_v6 = vld [vmem:[#allocation14 + $0x1c0] sm:$0xff] }
 0x586   :  { %8514 = vmatprep.subr.bf16.mxu0 %v13315_v43  ;;  %v13363_v17 = vcombine.high %v8142_v6, %v8146_v11  ;;  %v13365_v43 = vcombine.high %v8143_v14, %v8147_v25  ;;  %v8124_v14 = vld [vmem:[#allocation14 + $0x130] sm:$0xff]  ;;  %v8125_v25 = vld [vmem:[#allocation14 + $0x138] sm:$0xff] }
 0x589   :  { %8515 = vmatpush1.bf16.msra.mxu0 %v13314_v53  ;;  %v13313_v53 = vcombine.high %v8089_v21, %v8093_v36  ;;  %v8129_v21 = vld [vmem:[#allocation14 + $0x158] sm:$0xff] }
 0x58a   :  { %8516 = vmatprep.subr.bf16.mxu0 %v13323_v3 }
 0x58d   :  { %8517 = vmatpush1.bf16.msra.mxu0 %v13322_v41 }
 0x58e   :  { %8518 = vmatprep.subr.bf16.mxu0 %v13331_v46 }
 0x59b   :  { %v13841_v27 = vpop.f32.mrb[16].mxu0 }
 0x59c   :  { %v13842_v44 = vpop.f32.mrb[17].mxu0 }
 0x59d   :  { %v13843_v57 = vadd.f32 %v13842_v44, %v13841_v27  ;;  %v13844_v45 = vpop.f32.mrb[18].mxu0  ;;  %v13333_v27 = vcombine.high %v8111_v28, %v8115_v20  ;;  %v8118_v44 = vld [vmem:[#allocation14 + $0x100] sm:$0xff] }
 0x59e   :  { %v13845_v51 = vpop.f32.mrb[19].mxu0  ;;  %v8119_v45 = vld [vmem:[#allocation14 + $0x108] sm:$0xff] }
 0x59f   :  { %v7936_v42 = vadd.f32 %v13843_v57, %v13240_v4  ;;  %v8122_v57 = vld [vmem:[#allocation14 + $0x120] sm:$0xff]  ;;  %v13330_v51 = vcombine.low %v8110_v24, %v8114_v39 }
 0x5a0   :  { %v7359_v9 = vpop.f32.mrb[16].mxu1  ;;  %v8134_v4 = vld [vmem:[#allocation14 + $0x180] sm:$0xff] }
 0x5a1   :  { %v14017_v52 = vadd.f32 %v7359_v9, %v4137_v47  ;;  %v7361_v63 = vpop.f32.mrb[17].mxu1  ;;  %v8123_v47 = vld [vmem:[#allocation14 + $0x128] sm:$0xff]  ;;  %v13339_v9 = vcombine.high %v8118_v44, %v8122_v57  ;;  %8519 = vmatpush1.bf16.msra.mxu0 %v13330_v51 }
 0x5a2   :  { %v14018_v54 = vadd.f32 %v7361_v63, %v4141_v7  ;;  %v7363_v56 = vpop.f32.mrb[18].mxu1  ;;  %v13332_v7 = vcombine.low %v8111_v28, %v8115_v20  ;;  %v8126_v63 = vld [vmem:[#allocation14 + $0x140] sm:$0xff] }
 0x5a3   :  { %v7372_v58 = vmax.f32 %v14017_v52, 0.0  ;;  %v7364_v16 = vpop.f32.mrb[19].mxu1  ;;  %v13341_v52 = vcombine.high %v8119_v45, %v8123_v47  ;;  %v8127_v56 = vld [vmem:[#allocation14 + $0x148] sm:$0xff]  ;;  %8520 = vmatprep.subr.bf16.mxu0 %v13339_v9 }
 0x5a4   :  { %v7373_v34 = vmax.f32 %v14018_v54, 0.0  ;;  %v8130_v54 = vld [vmem:[#allocation14 + $0x160] sm:$0xff]  ;;  %v13338_v16 = vcombine.low %v8118_v44, %v8122_v57  ;;  %v8100_v57 = vld [vmem:[#allocation14 + $0x70] sm:$0xff] }
 0x5a5   :  { %v7380_v62 = vpack.c.bf16 %v7372_v58, %v7372_v58  ;;  %v8131_v58 = vld [vmem:[#allocation14 + $0x168] sm:$0xff] }
 0x5a6   :  { %v7381_v60 = vpack.c.bf16 %v7373_v34, %v7373_v34  ;;  %v13340_v34 = vcombine.low %v8119_v45, %v8123_v47  ;;  %8521 = vmatpush1.bf16.msra.mxu0 %v13338_v16  ;;  %v8097_v45 = vld [vmem:[#allocation14 + $0x58] sm:$0xff] }
 0x5a7   :  { %v8101_v47 = vld [vmem:[#allocation14 + $0x78] sm:$0xff] }
 0x5a8   :  { %8053 = vmatprep.mubr.bf16.mxu1 %v7381_v60  ;;  %v13347_v60 = vcombine.high %v8126_v63, %v8130_v54 }
 0x5a9   :  { %8054 = vmatmul.mubr.bf16.vlgmr.msra.gmra.mrb[24].mxu1 %v7380_v62  ;;  %v13349_v62 = vcombine.high %v8127_v56, %v8131_v58 }
 0x5aa   :  { %8585 = vmatprep.mubr.bf16.mxu1 %v15229_v50  ;;  %8554 = vmatpush1.bf16.msra.mxu1 %v13308_v26  ;;  %v13362_v26 = vcombine.low %v8142_v6, %v8146_v11  ;;  %v8120_v11 = vld [vmem:[#allocation14 + $0x110] sm:$0xff] }
 0x5ab   :  { %8555 = vmatprep.subr.bf16.mxu1 %v13317_v33  ;;  %8522 = vmatprep.subr.bf16.mxu0 %v13347_v60  ;;  %v13311_v33 = vcombine.high %v8088_v30, %v8092_v31  ;;  %v13320_v60 = vcombine.low %v8097_v45, %v8101_v47  ;;  %v8128_v30 = vld [vmem:[#allocation14 + $0x150] sm:$0xff]  ;;  %v13342_v36 = vcombine.low %v8120_v11, %v8124_v14 }
 0x5ac   :  { %v8132_v31 = vld [vmem:[#allocation14 + $0x170] sm:$0xff] }
 0x5ae   :  { %8556 = vmatpush1.bf16.msra.mxu1 %v13316_v38 }
 0x5af   :  { %8557 = vmatprep.subr.bf16.mxu1 %v13325_v23 }
 0x5b2   :  { %8558 = vmatpush1.bf16.msra.mxu1 %v13324_v40 }
 0x5b3   :  { %8559 = vmatprep.subr.bf16.mxu1 %v13333_v27  ;;  %v8096_v27 = vld [vmem:[#allocation14 + $0x50] sm:$0xff] }
 0x5b6   :  { %8560 = vmatpush1.bf16.msra.mxu1 %v13332_v7 }
 0x5b7   :  { %8561 = vmatprep.subr.bf16.mxu1 %v13341_v52  ;;  %v13319_v52 = vcombine.high %v8096_v27, %v8100_v57 }
 0x5ba   :  { %8562 = vmatpush1.bf16.msra.mxu1 %v13340_v34  ;;  %v13318_v34 = vcombine.low %v8096_v27, %v8100_v57  ;;  %v8144_v27 = vld [vmem:[#allocation14 + $0x1d0] sm:$0xff]  ;;  %v8145_v57 = vld [vmem:[#allocation14 + $0x1d8] sm:$0xff] }
 0x5bb   :  { %8563 = vmatprep.subr.bf16.mxu1 %v13349_v62 }
 0x5c0   :  { %v13863_v0 = vpop.f32.mrb[20].mxu1 }
 0x5c1   :  { %v13864_v1 = vpop.f32.mrb[21].mxu1 }
 0x5c2   :  { %v13865_v2 = vadd.f32 %v13864_v1, %v13863_v0  ;;  %v13866_v59 = vpop.f32.mrb[22].mxu1  ;;  %v8138_v0 = vld [vmem:[#allocation14 + $0x1a0] sm:$0xff]  ;;  %v8135_v1 = vld [vmem:[#allocation14 + $0x188] sm:$0xff] }
 0x5c3   :  { %v13867_v5 = vpop.f32.mrb[23].mxu1  ;;  %v13348_v59 = vcombine.low %v8127_v56, %v8131_v58  ;;  %v13354_v61 = vcombine.low %v8134_v4, %v8138_v0  ;;  %v8105_v56 = vld [vmem:[#allocation14 + $0x98] sm:$0xff] }
 0x5c4   :  { %v15639_v19 = vadd.f32 %v13865_v2, %v7936_v42  ;;  %v8139_v42 = vld [vmem:[#allocation14 + $0x1a8] sm:$0xff]  ;;  %v13346_v2 = vcombine.low %v8126_v63, %v8130_v54  ;;  %v13355_v5 = vcombine.high %v8134_v4, %v8138_v0  ;;  %v8104_v63 = vld [vmem:[#allocation14 + $0x90] sm:$0xff]  ;;  %v8109_v58 = vld [vmem:[#allocation14 + $0xb8] sm:$0xff] }
 0x5c5   :  { %v13357_v32 = vcombine.high %v8135_v1, %v8139_v42  ;;  %8564 = vmatpush1.bf16.msra.mxu1 %v13348_v59  ;;  %v13356_v8 = vcombine.low %v8135_v1, %v8139_v42  ;;  %v8108_v54 = vld [vmem:[#allocation14 + $0xb0] sm:$0xff]  ;;  %v13329_v0 = vcombine.high %v8105_v56, %v8109_v58  ;;  %v8117_v59 = vld [vmem:[#allocation14 + $0xf8] sm:$0xff] }
 0x5c6   :  { %8523 = vmatpush1.bf16.msra.mxu0 %v13346_v2  ;;  %v13327_v4 = vcombine.high %v8104_v63, %v8108_v54  ;;  %v8112_v1 = vld [vmem:[#allocation14 + $0xd0] sm:$0xff]  ;;  %v8113_v2 = vld [vmem:[#allocation14 + $0xd8] sm:$0xff] }
 0x5c7   :  { %8524 = vmatprep.subr.bf16.mxu0 %v13355_v5  ;;  %8565 = vmatprep.subr.bf16.mxu1 %v13357_v32  ;;  %v8116_v42 = vld [vmem:[#allocation14 + $0xf0] sm:$0xff]  ;;  %v13326_v32 = vcombine.low %v8104_v63, %v8108_v54  ;;  %v13337_v6 = vcombine.high %v8113_v2, %v8117_v59 }
 0x5c9   :  { %8566 = vmatpush1.bf16.msra.mxu1 %v13356_v8  ;;  %v13335_v8 = vcombine.high %v8112_v1, %v8116_v42 }
 0x5ca   :  { %8525 = vmatpush1.bf16.msra.mxu0 %v13354_v61  ;;  %8567 = vmatprep.subr.bf16.mxu1 %v13365_v43  ;;  %v13328_v61 = vcombine.low %v8105_v56, %v8109_v58 }
 0x5cb   :  { %8526 = vmatprep.subr.bf16.mxu0 %v13363_v17  ;;  %v8121_v17 = vld [vmem:[#allocation14 + $0x118] sm:$0xff] }
 0x5cc   :  { %v13345_v43 = vcombine.high %v8121_v17, %v8125_v25 }
 0x5cd   :  { %8568 = vmatpush1.bf16.msra.mxu1 %v13364_v29  ;;  %v13336_v29 = vcombine.low %v8113_v2, %v8117_v59  ;;  %v14245_v2 = vld [vmem:[#allocation17 + $0x3c] ss:$28 sps:$4 sm:$0xff]   ;;  %v14248_v59 = vld [vmem:[#allocation17 + $0x44] ss:$28 sps:$4 sm:$0xff]  }
 0x5ce   :  { %8527 = vmatpush1.bf16.msra.mxu0 %v13362_v26  ;;  %8635 = vmatprep.subr.bf16.mxu1 %v13313_v53  ;;  %v13334_v26 = vcombine.low %v8112_v1, %v8116_v42  ;;  %v14240_v1 = vld [vmem:[#allocation17 + $0x8] ss:$28 sps:$4 sm:$0xff]   ;;  %v8062_v42 = vand.u32 127, %v644_v55 }
 0x5cf   :  { %8594 = vmatprep.subr.bf16.mxu0 %v13311_v33  ;;  %v8133_v33 = vld [vmem:[#allocation14 + $0x178] sm:$0xff] }
 0x5d0   :  { %v13353_v53 = vcombine.high %v8129_v21, %v8133_v33  ;;  %vm8063_vm1 = vcmp.lt.s32.totalorder %v8062_v42, 64  ;;  %v14317_v42 = vld [vmem:[#allocation17 + $0x2dc] ss:$28 sps:$4 sm:$0xff]  }
 0x657   :  { %v13885_v38 = vpop.f32.mrb[20].mxu0 }
 0x658   :  { %v13886_v3 = vpop.f32.mrb[21].mxu0 }
 0x659   :  { %v13887_v23 = vadd.f32 %v13886_v3, %v13885_v38  ;;  %v13888_v24 = vpop.f32.mrb[22].mxu0  ;;  %v8136_v38 = vld [vmem:[#allocation14 + $0x190] sm:$0xff] }
 0x65a   :  { %v13889_v39 = vpop.f32.mrb[23].mxu0  ;;  %v8140_v3 = vld [vmem:[#allocation14 + $0x1b0] sm:$0xff]  ;;  %v8141_v24 = vld [vmem:[#allocation14 + $0x1b8] sm:$0xff] }
 0x65b   :  { %v8016_v28 = vadd.f32 %v13887_v23, %v15639_v19  ;;  %v13321_v19 = vcombine.high %v8097_v45, %v8101_v47  ;;  %v8137_v23 = vld [vmem:[#allocation14 + $0x198] sm:$0xff]  ;;  %v13358_v47 = vcombine.low %v8136_v38, %v8140_v3 }
 0x65c   :  { %v8149_v45 = vld [vmem:[#allocation14 + $0x1f8] sm:$0xff] }
 0x65d   :  { %v13369_v63 = vcombine.high %v8145_v57, %v8149_v45  ;;  %v13368_v58 = vcombine.low %v8145_v57, %v8149_v45  ;;  %v14293_v57 = vld [vmem:[#allocation17 + $0x1fc] ss:$28 sps:$4 sm:$0xff]   ;;  %v14296_v45 = vld [vmem:[#allocation17 + $0x204] ss:$28 sps:$4 sm:$0xff]  }
 0x67c   :  { %v13907_v20 = vpop.f32.mrb[24].mxu1 }
 0x67d   :  { %v13908_v41 = vpop.f32.mrb[25].mxu1 }
 0x67e   :  { %v13909_v40 = vadd.f32 %v13908_v41, %v13907_v20  ;;  %v13910_v46 = vpop.f32.mrb[26].mxu1  ;;  %v13352_v20 = vcombine.low %v8129_v21, %v8133_v33  ;;  %v14263_v21 = vld [vmem:[#allocation17 + $0xe4] ss:$28 sps:$4 sm:$0xff]   ;;  %v14266_v33 = vld [vmem:[#allocation17 + $0xec] ss:$28 sps:$4 sm:$0xff]  }
 0x67f   :  { %v13911_v44 = vpop.f32.mrb[27].mxu1  ;;  %v13361_v46 = vcombine.high %v8137_v23, %v8141_v24 }
 0x680   :  { %v15642_v51 = vadd.f32 %v13909_v40, %v8016_v28  ;;  %v13350_v28 = vcombine.low %v8128_v30, %v8132_v31  ;;  %v13359_v40 = vcombine.high %v8136_v38, %v8140_v3  ;;  %v8148_v44 = vld [vmem:[#allocation14 + $0x1f0] sm:$0xff]  ;;  %v14275_v38 = vld [vmem:[#allocation17 + $0x154] ss:$28 sps:$4 sm:$0xff]   ;;  %v14278_v3 = vld [vmem:[#allocation17 + $0x15c] ss:$28 sps:$4 sm:$0xff]  }
 0x681   :  { %v13366_v56 = vcombine.low %v8144_v27, %v8148_v44 }
 0x682   :  { %v15645_v7 = vadd.f32 -5.0, %v15642_v51  ;;  %v15649_v9 = vpack.c.bf16 %v15642_v51, %v15642_v51 }
 0x684   :  { %v8068_v16 = vand.u32 2147483647, %v15645_v7  ;;  %8545 = vmatmul.mubr.bf16.vlgmr.msra.gmra.mrb[24].mxu0 %v15649_v9  ;;  %8586 = vmatmul.mubr.bf16.vlgmr.msra.gmra.mrb[28].mxu1 %v15649_v9  ;;  %vm8066_vm2 = vcmp.ne.f32.partialorder %v15645_v7, %v15645_v7 }
 0x685   :  { %8595 = vmatpush1.bf16.msra.mxu0 %v13310_v35  ;;  %8636 = vmatpush1.bf16.msra.mxu1 %v13312_v37  ;;  %v13344_v35 = vcombine.low %v8121_v17, %v8125_v25  ;;  %v13351_v37 = vcombine.high %v8128_v30, %v8132_v31  ;;  %v14254_v17 = vld [vmem:[#allocation17 + $0x7c] ss:$28 sps:$4 sm:$0xff]   ;;  %v14255_v30 = vld [vmem:[#allocation17 + $0xa8] ss:$28 sps:$4 sm:$0xff]   ;;  %v14258_v31 = vld [vmem:[#allocation17 + $0xb0] ss:$28 sps:$4 sm:$0xff]  }
 0x686   :  { %v8069_v62 = vsub.f32 0.0, %v8068_v16  ;;  %8596 = vmatprep.subr.bf16.mxu0 %v13319_v52  ;;  %8637 = vmatprep.subr.bf16.mxu1 %v13321_v19  ;;  %v13360_v52 = vcombine.low %v8137_v23, %v8141_v24  ;;  %v13367_v19 = vcombine.high %v8144_v27, %v8148_v44  ;;  %v14239_v16 = vld [vmem:[#allocation17 + $0x4] ss:$28 sps:$4 sm:$0xff]   ;;  %v14273_v23 = vld [vmem:[#allocation17 + $0x150] ss:$28 sps:$4 sm:$0xff]  }
 0x687   :  { %8626 = vmatprep.mubr.bf16.mxu0 %v15229_v50  ;;  %8667 = vmatprep.mubr.bf16.mxu1 %v15229_v50  ;;  %v13343_v50 = vcombine.high %v8120_v11, %v8124_v14  ;;  %v14246_v11 = vld [vmem:[#allocation17 + $0x40] ss:$28 sps:$4 sm:$0xff]   ;;  %v14251_v14 = vld [vmem:[#allocation17 + $0x74] ss:$28 sps:$4 sm:$0xff]   ;;  %v14288_v44 = vld [vmem:[#allocation17 + $0x1c8] ss:$28 sps:$4 sm:$0xff]  }
 0x688   :  { %v8070_v5 = vmul.f32 1.442695, %v8069_v62  ;;  %v14276_v24 = vld [vmem:[#allocation17 + $0x158] ss:$28 sps:$4 sm:$0xff]   ;;  %v14285_v27 = vld [vmem:[#allocation17 + $0x1c0] ss:$28 sps:$4 sm:$0xff]  }
 0x689   :  { %8597 = vmatpush1.bf16.msra.mxu0 %v13318_v34  ;;  %8638 = vmatpush1.bf16.msra.mxu1 %v13320_v60  ;;  %v14242_v34 = vld [vmem:[#allocation17 + $0xc] ss:$28 sps:$4 sm:$0xff]  }
 0x68a   :  { %14877 = vpow2.f32 %v8070_v5  ;;  %8598 = vmatprep.subr.bf16.mxu0 %v13327_v4  ;;  %8639 = vmatprep.subr.bf16.mxu1 %v13329_v0  ;;  %v14237_v0 = vld [vmem:[#allocation17] ss:$28 sps:$4 sm:$0xff]  }
 0x68d   :  { %8599 = vmatpush1.bf16.msra.mxu0 %v13326_v32  ;;  %8640 = vmatpush1.bf16.msra.mxu1 %v13328_v61  ;;  %v8065_v61 = vmax.f32 %v15645_v7, 0.0 }
 0x68e   :  { %8600 = vmatprep.subr.bf16.mxu0 %v13335_v8  ;;  %8641 = vmatprep.subr.bf16.mxu1 %v13337_v6  ;;  %v14243_v6 = vld [vmem:[#allocation17 + $0x38] ss:$28 sps:$4 sm:$0xff]  }
 0x691   :  { %8601 = vmatpush1.bf16.msra.mxu0 %v13334_v26  ;;  %8642 = vmatpush1.bf16.msra.mxu1 %v13336_v29  ;;  %v14252_v29 = vld [vmem:[#allocation17 + $0x78] ss:$28 sps:$4 sm:$0xff]  }
 0x692   :  { %8602 = vmatprep.subr.bf16.mxu0 %v13343_v50  ;;  %8643 = vmatprep.subr.bf16.mxu1 %v13345_v43  ;;  %v14257_v50 = vld [vmem:[#allocation17 + $0xac] ss:$28 sps:$4 sm:$0xff]   ;;  %v14260_v43 = vld [vmem:[#allocation17 + $0xb4] ss:$28 sps:$4 sm:$0xff]  }
 0x694   :  { %v14878_v39 = vpop.eup %14877 }
 0x695   :  { %8603 = vmatpush1.bf16.msra.mxu0 %v13342_v36  ;;  %8644 = vmatpush1.bf16.msra.mxu1 %v13344_v35  ;;  %v8072_v41 = vadd.f32 1.0, %v14878_v39  ;;  %v8075_v54 = vmul.f32 -0.5, %v14878_v39  ;;  %v8078_v62 = vand.u32 2147483647, %v14878_v39  ;;  %v14269_v36 = vld [vmem:[#allocation17 + $0x11c] ss:$28 sps:$4 sm:$0xff]  }
 0x696   :  { %8604 = vmatprep.subr.bf16.mxu0 %v13351_v37  ;;  %8645 = vmatprep.subr.bf16.mxu1 %v13353_v53  ;;  %v14272_v35 = vld [vmem:[#allocation17 + $0x124] ss:$28 sps:$4 sm:$0xff]   ;;  %v14267_v37 = vld [vmem:[#allocation17 + $0x118] ss:$28 sps:$4 sm:$0xff]  }
 0x697   :  { %14879 = vlog2.f32 %v8072_v41  ;;  %v8076_v60 = vadd.f32 1.0, %v8075_v54  ;;  %vm8079_vm0 = vcmp.lt.f32.partialorder %v8078_v62, 0.0004427343  ;;  %v14270_v53 = vld [vmem:[#allocation17 + $0x120] ss:$28 sps:$4 sm:$0xff]  }
 0x698   :  { %v14282_v41 = vld [vmem:[#allocation17 + $0x190] ss:$28 sps:$4 sm:$0xff]   ;;  %v14311_v62 = vld [vmem:[#allocation17 + $0x2a4] ss:$28 sps:$4 sm:$0xff]  }
 0x699   :  { %8605 = vmatpush1.bf16.msra.mxu0 %v13350_v28  ;;  %8646 = vmatpush1.bf16.msra.mxu1 %v13352_v20  ;;  %v8077_v32 = vmul.f32 %v14878_v39, %v8076_v60  ;;  %v14281_v39 = vld [vmem:[#allocation17 + $0x18c] ss:$28 sps:$4 sm:$0xff]   ;;  %v14284_v28 = vld [vmem:[#allocation17 + $0x194] ss:$28 sps:$4 sm:$0xff]  }
 0x69a   :  { %8606 = vmatprep.subr.bf16.mxu0 %v13359_v40  ;;  %8647 = vmatprep.subr.bf16.mxu1 %v13361_v46  ;;  %v14279_v20 = vld [vmem:[#allocation17 + $0x188] ss:$28 sps:$4 sm:$0xff]   ;;  %v14297_v54 = vld [vmem:[#allocation17 + $0x230] ss:$28 sps:$4 sm:$0xff]  }
 0x69b   :  { %v14287_v40 = vld [vmem:[#allocation17 + $0x1c4] ss:$28 sps:$4 sm:$0xff]   ;;  %v14290_v46 = vld [vmem:[#allocation17 + $0x1cc] ss:$28 sps:$4 sm:$0xff]  }
 0x69c   :  { %v14306_v60 = vld [vmem:[#allocation17 + $0x270] ss:$28 sps:$4 sm:$0xff]  }
 0x69d   :  { %8607 = vmatpush1.bf16.msra.mxu0 %v13358_v47  ;;  %8648 = vmatpush1.bf16.msra.mxu1 %v13360_v52  ;;  %v14291_v47 = vld [vmem:[#allocation17 + $0x1f8] ss:$28 sps:$4 sm:$0xff]   ;;  %v14294_v52 = vld [vmem:[#allocation17 + $0x200] ss:$28 sps:$4 sm:$0xff]  }
 0x69e   :  { %8608 = vmatprep.subr.bf16.mxu0 %v13367_v19  ;;  %8649 = vmatprep.subr.bf16.mxu1 %v13369_v63  ;;  %v14299_v19 = vld [vmem:[#allocation17 + $0x234] ss:$28 sps:$4 sm:$0xff]   ;;  %v14302_v63 = vld [vmem:[#allocation17 + $0x23c] ss:$28 sps:$4 sm:$0xff]  }
 0x6a1   :  { %v14880_v4 = vpop.eup %14879  ;;  %8609 = vmatpush1.bf16.msra.mxu0 %v13366_v56  ;;  %8650 = vmatpush1.bf16.msra.mxu1 %v13368_v58  ;;  %v14300_v56 = vld [vmem:[#allocation17 + $0x238] ss:$28 sps:$4 sm:$0xff]   ;;  %v14305_v58 = vld [vmem:[#allocation17 + $0x26c] ss:$28 sps:$4 sm:$0xff]  }
 0x6a2   :  { %11545 = vmatprep.subr.bf16.mxu0 %v14239_v16  ;;  %11709 = vmatprep.subr.bf16.mxu1 %v14242_v34  ;;  %v8074_v5 = vmul.f32 0.6931472, %v14880_v4  ;;  %v14308_v16 = vld [vmem:[#allocation17 + $0x274] ss:$28 sps:$4 sm:$0xff]   ;;  %v14303_v34 = vld [vmem:[#allocation17 + $0x268] ss:$28 sps:$4 sm:$0xff]  }
 0x6a3   :  { %v14314_v4 = vld [vmem:[#allocation17 + $0x2ac] ss:$28 sps:$4 sm:$0xff]  }
 0x6a4   :  { %8627 = vmatmul.mubr.bf16.vlgmr.msra.gmra.mrb[28].mxu0 %v15649_v9  ;;  %8668 = vmatmul.mubr.bf16.vlgmr.msra.gmra.mrb[32].mxu1 %v15649_v9  ;;  %v8080_v8 = vsel %vm8079_vm0, %v8077_v32, %v8074_v5  ;;  %v14249_v9 = vld [vmem:[#allocation17 + $0x70] ss:$28 sps:$4 sm:$0xff]   ;;  %v14318_v5 = vld [vmem:[#allocation17 + $0x2e0] ss:$28 sps:$4 sm:$0xff]  }
 0x6a5   :  { %11546 = vmatpush1.bf16.msra.mxu0 %v14237_v0  ;;  %11710 = vmatpush1.bf16.msra.mxu1 %v14240_v1  ;;  %v8081_v55 = vadd.f32 %v8080_v8, %v8065_v61  ;;  %v14309_v0 = vld [vmem:[#allocation17 + $0x2a0] ss:$28 sps:$4 sm:$0xff]   ;;  %v14312_v1 = vld [vmem:[#allocation17 + $0x2a8] ss:$28 sps:$4 sm:$0xff]   ;;  %v14323_v32 = vld [vmem:[#allocation17 + $0x314] ss:$28 sps:$4 sm:$0xff]  }
 0x6a6   :  { %11547 = vmatprep.subr.bf16.mxu0 %v14245_v2  ;;  %11711 = vmatprep.subr.bf16.mxu1 %v14248_v59  ;;  %v14320_v2 = vld [vmem:[#allocation17 + $0x2e4] ss:$28 sps:$4 sm:$0xff]   ;;  %v14315_v59 = vld [vmem:[#allocation17 + $0x2d8] ss:$28 sps:$4 sm:$0xff]   ;;  %v14321_v8 = vld [vmem:[#allocation17 + $0x310] ss:$28 sps:$4 sm:$0xff]  }
 0x6a7   :  { %v8082_v25 = vsel %vm8066_vm2, %v15645_v7, %v8081_v55  ;;  %v14264_v7 = vld [vmem:[#allocation17 + $0xe8] ss:$28 sps:$4 sm:$0xff]   ;;  %v14326_v61 = vld [vmem:[#allocation17 + $0x31c] ss:$28 sps:$4 sm:$0xff]   ;;  %v14332_v55 = vld [vmem:[#allocation17 + $0x354] ss:$28 sps:$4 sm:$0xff]  }
 0x6a8   :  { %v8083_v26 = vsel %vm8063_vm1, %v15642_v51, %v8082_v25  ;;  %v14261_v51 = vld [vmem:[#allocation17 + $0xe0] ss:$28 sps:$4 sm:$0xff]  }
 0x6a9   :  { %11548 = vmatpush1.bf16.msra.mxu0 %v14243_v6  ;;  %11712 = vmatpush1.bf16.msra.mxu1 %v14246_v11  ;;  %8084 = vst [vmem:[#allocation20] sm:$0xff] %v8083_v26  ;;  %v14324_v6 = vld [vmem:[#allocation17 + $0x318] ss:$28 sps:$4 sm:$0xff]   ;;  %v14329_v11 = vld [vmem:[#allocation17 + $0x34c] ss:$28 sps:$4 sm:$0xff]  }
 0x6aa   :  { %11549 = vmatprep.subr.bf16.mxu0 %v14251_v14  ;;  %11713 = vmatprep.subr.bf16.mxu1 %v14254_v17  ;;  %v14327_v14 = vld [vmem:[#allocation17 + $0x348] ss:$28 sps:$4 sm:$0xff]   ;;  %v14330_v17 = vld [vmem:[#allocation17 + $0x350] ss:$28 sps:$4 sm:$0xff]  }
 0x6ab   :  { %v14335_v25 = vld [vmem:[#allocation17 + $0x384] ss:$28 sps:$4 sm:$0xff]   ;;  %v14338_v26 = vld [vmem:[#allocation17 + $0x38c] ss:$28 sps:$4 sm:$0xff]  }
 0x6ad   :  { %11550 = vmatpush1.bf16.msra.mxu0 %v14249_v9  ;;  %11714 = vmatpush1.bf16.msra.mxu1 %v14252_v29  ;;  %v15664_v9 = vld [vmem:[#allocation16] sm:$0xff] }
 0x6ae   :  { %11551 = vmatprep.subr.bf16.mxu0 %v14257_v50  ;;  %11715 = vmatprep.subr.bf16.mxu1 %v14260_v43  ;;  %v8155_v29 = vrot.slane %v15664_v9, %v15488_v12  ;;  %v8159_v50 = vrot.slane %v15664_v9, %v15491_v15  ;;  %v8167_v43 = vrot.slane %v15664_v9, %v15514_v18 }
 0x6b1   :  { %11552 = vmatpush1.bf16.msra.mxu0 %v14255_v30  ;;  %11716 = vmatpush1.bf16.msra.mxu1 %v14258_v31 }
 0x6b2   :  { %11553 = vmatprep.subr.bf16.mxu0 %v14263_v21  ;;  %11717 = vmatprep.subr.bf16.mxu1 %v14266_v33 }
 0x6b5   :  { %11554 = vmatpush1.bf16.msra.mxu0 %v14261_v51  ;;  %11718 = vmatpush1.bf16.msra.mxu1 %v14264_v7 }
 0x6b6   :  { %11555 = vmatprep.subr.bf16.mxu0 %v14269_v36  ;;  %11719 = vmatprep.subr.bf16.mxu1 %v14272_v35 }
 0x6b9   :  { %11556 = vmatpush1.bf16.msra.mxu0 %v14267_v37  ;;  %11720 = vmatpush1.bf16.msra.mxu1 %v14270_v53 }
 0x6ba   :  { %11557 = vmatprep.subr.bf16.mxu0 %v14275_v38  ;;  %11721 = vmatprep.subr.bf16.mxu1 %v14278_v3 }
 0x6bd   :  { %11558 = vmatpush1.bf16.msra.mxu0 %v14273_v23  ;;  %11722 = vmatpush1.bf16.msra.mxu1 %v14276_v24 }
 0x6be   :  { %11559 = vmatprep.subr.bf16.mxu0 %v14281_v39  ;;  %11723 = vmatprep.subr.bf16.mxu1 %v14284_v28  ;;  %v14333_v28 = vld [vmem:[#allocation17 + $0x380] ss:$28 sps:$4 sm:$0xff]  }
 0x6c1   :  { %11560 = vmatpush1.bf16.msra.mxu0 %v14279_v20  ;;  %11724 = vmatpush1.bf16.msra.mxu1 %v14282_v41  ;;  %v14336_v20 = vld [vmem:[#allocation17 + $0x388] ss:$28 sps:$4 sm:$0xff]  }
 0x6c2   :  { %11561 = vmatprep.subr.bf16.mxu0 %v14287_v40  ;;  %11725 = vmatprep.subr.bf16.mxu1 %v14290_v46  ;;  %v14341_v40 = vld [vmem:[#allocation17 + $0x3bc] ss:$28 sps:$4 sm:$0xff]   ;;  %v14344_v46 = vld [vmem:[#allocation17 + $0x3c4] ss:$28 sps:$4 sm:$0xff]  }
 0x6c5   :  { %11562 = vmatpush1.bf16.msra.mxu0 %v14285_v27  ;;  %11726 = vmatpush1.bf16.msra.mxu1 %v14288_v44  ;;  %v14339_v44 = vld [vmem:[#allocation17 + $0x3b8] ss:$28 sps:$4 sm:$0xff]  }
 0x6c6   :  { %11563 = vmatprep.subr.bf16.mxu0 %v14293_v57  ;;  %11727 = vmatprep.subr.bf16.mxu1 %v14296_v45  ;;  %v14342_v57 = vld [vmem:[#allocation17 + $0x3c0] ss:$28 sps:$4 sm:$0xff]   ;;  %v14347_v45 = vld [vmem:[#allocation17 + $0x3f4] ss:$28 sps:$4 sm:$0xff]  }
 0x6c9   :  { %11564 = vmatpush1.bf16.msra.mxu0 %v14291_v47  ;;  %11728 = vmatpush1.bf16.msra.mxu1 %v14294_v52  ;;  %v14350_v47 = vld [vmem:[#allocation17 + $0x3fc] ss:$28 sps:$4 sm:$0xff]   ;;  %v14345_v52 = vld [vmem:[#allocation17 + $0x3f0] ss:$28 sps:$4 sm:$0xff]  }
 0x6ca   :  { %11565 = vmatprep.subr.bf16.mxu0 %v14299_v19  ;;  %11729 = vmatprep.subr.bf16.mxu1 %v14302_v63  ;;  %v14348_v19 = vld [vmem:[#allocation17 + $0x3f8] ss:$28 sps:$4 sm:$0xff]   ;;  %v14353_v63 = vld [vmem:[#allocation17 + $0x42c] ss:$28 sps:$4 sm:$0xff]  }
 0x6cd   :  { %11566 = vmatpush1.bf16.msra.mxu0 %v14297_v54  ;;  %11730 = vmatpush1.bf16.msra.mxu1 %v14300_v56  ;;  %v14356_v54 = vld [vmem:[#allocation17 + $0x434] ss:$28 sps:$4 sm:$0xff]   ;;  %v14351_v56 = vld [vmem:[#allocation17 + $0x428] ss:$28 sps:$4 sm:$0xff]  }
 0x6ce   :  { %11567 = vmatprep.subr.bf16.mxu0 %v14305_v58  ;;  %11731 = vmatprep.subr.bf16.mxu1 %v14308_v16  ;;  %v14354_v58 = vld [vmem:[#allocation17 + $0x430] ss:$28 sps:$4 sm:$0xff]   ;;  %v14359_v16 = vld [vmem:[#allocation17 + $0x464] ss:$28 sps:$4 sm:$0xff]  }
 0x6d1   :  { %11568 = vmatpush1.bf16.msra.mxu0 %v14303_v34  ;;  %11732 = vmatpush1.bf16.msra.mxu1 %v14306_v60  ;;  %v14362_v34 = vld [vmem:[#allocation17 + $0x46c] ss:$28 sps:$4 sm:$0xff]   ;;  %v14357_v60 = vld [vmem:[#allocation17 + $0x460] ss:$28 sps:$4 sm:$0xff]  }
 0x6d2   :  { %11569 = vmatprep.subr.bf16.mxu0 %v14311_v62  ;;  %11733 = vmatprep.subr.bf16.mxu1 %v14314_v4  ;;  %v14360_v62 = vld [vmem:[#allocation17 + $0x468] ss:$28 sps:$4 sm:$0xff]   ;;  %v14365_v4 = vld [vmem:[#allocation17 + $0x49c] ss:$28 sps:$4 sm:$0xff]  }
 0x6d5   :  { %11570 = vmatpush1.bf16.msra.mxu0 %v14309_v0  ;;  %11734 = vmatpush1.bf16.msra.mxu1 %v14312_v1  ;;  %v14368_v0 = vld [vmem:[#allocation17 + $0x4a4] ss:$28 sps:$4 sm:$0xff]   ;;  %v14363_v1 = vld [vmem:[#allocation17 + $0x498] ss:$28 sps:$4 sm:$0xff]  }
 0x6d6   :  { %11571 = vmatprep.subr.bf16.mxu0 %v14317_v42  ;;  %11735 = vmatprep.subr.bf16.mxu1 %v14320_v2  ;;  %v14366_v42 = vld [vmem:[#allocation17 + $0x4a0] ss:$28 sps:$4 sm:$0xff]   ;;  %v14371_v2 = vld [vmem:[#allocation17 + $0x4d4] ss:$28 sps:$4 sm:$0xff]  }
 0x6d9   :  { %11572 = vmatpush1.bf16.msra.mxu0 %v14315_v59  ;;  %11736 = vmatpush1.bf16.msra.mxu1 %v14318_v5  ;;  %v14374_v59 = vld [vmem:[#allocation17 + $0x4dc] ss:$28 sps:$4 sm:$0xff]   ;;  %v14369_v5 = vld [vmem:[#allocation17 + $0x4d0] ss:$28 sps:$4 sm:$0xff]  }
 0x6da   :  { %11573 = vmatprep.subr.bf16.mxu0 %v14323_v32  ;;  %11737 = vmatprep.subr.bf16.mxu1 %v14326_v61  ;;  %v14372_v32 = vld [vmem:[#allocation17 + $0x4d8] ss:$28 sps:$4 sm:$0xff]   ;;  %v14377_v61 = vld [vmem:[#allocation17 + $0x50c] ss:$28 sps:$4 sm:$0xff]  }
 0x6dd   :  { %11574 = vmatpush1.bf16.msra.mxu0 %v14321_v8  ;;  %11738 = vmatpush1.bf16.msra.mxu1 %v14324_v6  ;;  %v14380_v8 = vld [vmem:[#allocation17 + $0x514] ss:$28 sps:$4 sm:$0xff]  }
 0x6de   :  { %11575 = vmatprep.subr.bf16.mxu0 %v14329_v11  ;;  %11739 = vmatprep.subr.bf16.mxu1 %v14332_v55 }
 0x6e1   :  { %11576 = vmatpush1.bf16.msra.mxu0 %v14327_v14  ;;  %11740 = vmatpush1.bf16.msra.mxu1 %v14330_v17 }
 0x6e2   :  { %11586 = vmatprep.subr.bf16.mxu0 %v14335_v25  ;;  %11750 = vmatprep.subr.bf16.mxu1 %v14338_v26  ;;  %v14375_v26 = vld [vmem:[#allocation17 + $0x508] ss:$28 sps:$4 sm:$0xff]  }
 0x757   :  { %v8546_v30 = vpop.f32.mrb[24].mxu0  ;;  %v15672_v31 = vpop.f32.mrb[28].mxu1 }
 0x758   :  { %v8547_v21 = vadd.f32 %v8546_v30, %v8155_v29  ;;  %v8548_v33 = vpop.f32.mrb[25].mxu0  ;;  %v8589_v51 = vpop.f32.mrb[29].mxu1  ;;  %v14378_v29 = vld [vmem:[#allocation17 + $0x510] ss:$28 sps:$4 sm:$0xff]   ;;  %v14383_v30 = vld [vmem:[#allocation17 + $0x544] ss:$28 sps:$4 sm:$0xff]  }
 0x759   :  { %v8549_v7 = vadd.f32 %v8548_v33, %v8159_v50  ;;  %v8590_v36 = vadd.f32 %v8589_v51, %v8167_v43  ;;  %v8550_v35 = vpop.f32.mrb[26].mxu0  ;;  %v8591_v37 = vpop.f32.mrb[30].mxu1  ;;  %v14381_v33 = vld [vmem:[#allocation17 + $0x540] ss:$28 sps:$4 sm:$0xff]   ;;  %v14384_v51 = vld [vmem:[#allocation17 + $0x548] ss:$28 sps:$4 sm:$0xff]  }
 0x75a   :  { %v8676_v53 = vmax.f32 %v8547_v21, 0.0  ;;  %v8551_v38 = vpop.f32.mrb[27].mxu0  ;;  %v8592_v3 = vpop.f32.mrb[31].mxu1  ;;  %v14386_v21 = vld [vmem:[#allocation17 + $0x54c] ss:$28 sps:$4 sm:$0xff]  }
 0x75b   :  { %v8677_v23 = vmax.f32 %v8549_v7, 0.0  ;;  %v8679_v24 = vmax.f32 %v8590_v36, 0.0  ;;  %v14389_v7 = vld [vmem:[#allocation17 + $0x57c] ss:$28 sps:$4 sm:$0xff]   ;;  %v14392_v36 = vld [vmem:[#allocation17 + $0x584] ss:$28 sps:$4 sm:$0xff]  }
 0x75c   :  { %v15676_v41 = vpack.c.bf16 %v8676_v53, %v8676_v53  ;;  %v14387_v35 = vld [vmem:[#allocation17 + $0x578] ss:$28 sps:$4 sm:$0xff]   ;;  %v14390_v37 = vld [vmem:[#allocation17 + $0x580] ss:$28 sps:$4 sm:$0xff]   ;;  %v14393_v3 = vld [vmem:[#allocation17 + $0x5b0] ss:$28 sps:$4 sm:$0xff]  }
 0x75d   :  { %v15674_v39 = vpack.c.bf16 %v8677_v23, %v8677_v23  ;;  %v15680_v27 = vpack.c.bf16 %v8679_v24, %v8679_v24  ;;  %v14395_v53 = vld [vmem:[#allocation17 + $0x5b4] ss:$28 sps:$4 sm:$0xff]   ;;  %v14398_v38 = vld [vmem:[#allocation17 + $0x5bc] ss:$28 sps:$4 sm:$0xff]   ;;  %v14401_v24 = vld [vmem:[#allocation17 + $0x5ec] ss:$28 sps:$4 sm:$0xff]  }
 0x75e   :  { %v14396_v23 = vld [vmem:[#allocation17 + $0x5b8] ss:$28 sps:$4 sm:$0xff]  }
 0x75f   :  { %11577 = vmatprep.mubr.bf16.mxu0 %v15674_v39  ;;  %11741 = vmatprep.mubr.bf16.mxu1 %v15674_v39 }
 0x760   :  { %11578 = vmatmul.mubr.bf16.vlgmr.msra.gmra.mrb[32].mxu0 %v15676_v41  ;;  %11742 = vmatmul.mubr.bf16.vlgmr.msra.gmra.mrb[36].mxu1 %v15676_v41 }
 0x761   :  { %11587 = vmatpush1.bf16.msra.mxu0 %v14333_v28  ;;  %11751 = vmatpush1.bf16.msra.mxu1 %v14336_v20  ;;  %v14404_v28 = vld [vmem:[#allocation17 + $0x5f4] ss:$28 sps:$4 sm:$0xff]   ;;  %v14399_v20 = vld [vmem:[#allocation17 + $0x5e8] ss:$28 sps:$4 sm:$0xff]  }
 0x762   :  { %11618 = vmatprep.mubr.bf16.mxu0 %v15680_v27  ;;  %11782 = vmatprep.mubr.bf16.mxu1 %v15680_v27 }
 0x763   :  { %11588 = vmatprep.subr.bf16.mxu0 %v14341_v40  ;;  %11752 = vmatprep.subr.bf16.mxu1 %v14344_v46  ;;  %v14402_v40 = vld [vmem:[#allocation17 + $0x5f0] ss:$28 sps:$4 sm:$0xff]   ;;  %v14407_v46 = vld [vmem:[#allocation17 + $0x624] ss:$28 sps:$4 sm:$0xff]  }
 0x765   :  { %11589 = vmatpush1.bf16.msra.mxu0 %v14339_v44  ;;  %11753 = vmatpush1.bf16.msra.mxu1 %v14342_v57  ;;  %v14410_v44 = vld [vmem:[#allocation17 + $0x62c] ss:$28 sps:$4 sm:$0xff]   ;;  %v14405_v57 = vld [vmem:[#allocation17 + $0x620] ss:$28 sps:$4 sm:$0xff]  }
 0x766   :  { %11590 = vmatprep.subr.bf16.mxu0 %v14347_v45  ;;  %11754 = vmatprep.subr.bf16.mxu1 %v14350_v47  ;;  %v14408_v45 = vld [vmem:[#allocation17 + $0x628] ss:$28 sps:$4 sm:$0xff]   ;;  %v14413_v47 = vld [vmem:[#allocation17 + $0x65c] ss:$28 sps:$4 sm:$0xff]  }
 0x769   :  { %11591 = vmatpush1.bf16.msra.mxu0 %v14345_v52  ;;  %11755 = vmatpush1.bf16.msra.mxu1 %v14348_v19  ;;  %v14416_v52 = vld [vmem:[#allocation17 + $0x664] ss:$28 sps:$4 sm:$0xff]   ;;  %v14411_v19 = vld [vmem:[#allocation17 + $0x658] ss:$28 sps:$4 sm:$0xff]  }
 0x76a   :  { %11592 = vmatprep.subr.bf16.mxu0 %v14353_v63  ;;  %11756 = vmatprep.subr.bf16.mxu1 %v14356_v54  ;;  %v14414_v63 = vld [vmem:[#allocation17 + $0x660] ss:$28 sps:$4 sm:$0xff]   ;;  %v8163_v54 = vrot.slane %v15664_v9, %v15517_v22 }
 0x76d   :  { %11593 = vmatpush1.bf16.msra.mxu0 %v14351_v56  ;;  %11757 = vmatpush1.bf16.msra.mxu1 %v14354_v58  ;;  %v14419_v56 = vld [vmem:[#allocation17 + $0x694] ss:$28 sps:$4 sm:$0xff]   ;;  %v14422_v58 = vld [vmem:[#allocation17 + $0x69c] ss:$28 sps:$4 sm:$0xff]  }
 0x76e   :  { %11594 = vmatprep.subr.bf16.mxu0 %v14359_v16  ;;  %11758 = vmatprep.subr.bf16.mxu1 %v14362_v34  ;;  %v8175_v16 = vrot.slane %v15664_v9, %v15543_v49  ;;  %v14417_v34 = vld [vmem:[#allocation17 + $0x690] ss:$28 sps:$4 sm:$0xff]  }
 0x771   :  { %11595 = vmatpush1.bf16.msra.mxu0 %v14357_v60  ;;  %11759 = vmatpush1.bf16.msra.mxu1 %v14360_v62  ;;  %v14420_v60 = vld [vmem:[#allocation17 + $0x698] ss:$28 sps:$4 sm:$0xff]   ;;  %v8588_v62 = vadd.f32 %v15672_v31, %v8163_v54  ;;  %v14482_v54 = vld [vmem:[#allocation17 + $0x8cc] ss:$28 sps:$4 sm:$0xff]  }
 0x772   :  { %11596 = vmatprep.subr.bf16.mxu0 %v14365_v4  ;;  %11760 = vmatprep.subr.bf16.mxu1 %v14368_v0  ;;  %v14425_v4 = vld [vmem:[#allocation17 + $0x6cc] ss:$28 sps:$4 sm:$0xff]   ;;  %v14428_v0 = vld [vmem:[#allocation17 + $0x6d4] ss:$28 sps:$4 sm:$0xff]  }
 0x775   :  { %11597 = vmatpush1.bf16.msra.mxu0 %v14363_v1  ;;  %11761 = vmatpush1.bf16.msra.mxu1 %v14366_v42  ;;  %v14423_v42 = vld [vmem:[#allocation17 + $0x6c8] ss:$28 sps:$4 sm:$0xff]  }
 0x776   :  { %11598 = vmatprep.subr.bf16.mxu0 %v14371_v2  ;;  %11762 = vmatprep.subr.bf16.mxu1 %v14374_v59  ;;  %v14426_v2 = vld [vmem:[#allocation17 + $0x6d0] ss:$28 sps:$4 sm:$0xff]   ;;  %v8678_v59 = vmax.f32 %v8588_v62, 0.0  ;;  %v14486_v62 = vld [vmem:[#allocation17 + $0x900] ss:$28 sps:$4 sm:$0xff]  }
 0x777   :  { %v15686_v6 = vpop.f32.mrb[28].mxu0  ;;  %v15688_v11 = vpop.f32.mrb[32].mxu1 }
 0x778   :  { %v15690_v55 = vpop.f32.mrb[29].mxu0  ;;  %v15692_v14 = vpop.f32.mrb[33].mxu1  ;;  %v15700_v31 = vpack.c.bf16 %v8678_v59, %v8678_v59  ;;  %v14500_v59 = vld [vmem:[#allocation17 + $0x974] ss:$28 sps:$4 sm:$0xff]  }
 0x779   :  { %v8632_v17 = vpop.f32.mrb[30].mxu0  ;;  %v8673_v25 = vpop.f32.mrb[34].mxu1  ;;  %11599 = vmatpush1.bf16.msra.mxu0 %v14369_v5  ;;  %11763 = vmatpush1.bf16.msra.mxu1 %v14372_v32  ;;  %v8631_v1 = vadd.f32 %v15690_v55, %v8175_v16  ;;  %v14431_v5 = vld [vmem:[#allocation17 + $0x704] ss:$28 sps:$4 sm:$0xff]   ;;  %v14434_v32 = vld [vmem:[#allocation17 + $0x70c] ss:$28 sps:$4 sm:$0xff]  }
 0x77a   :  { %v8633_v50 = vpop.f32.mrb[31].mxu0  ;;  %v8674_v43 = vpop.f32.mrb[35].mxu1  ;;  %11600 = vmatprep.subr.bf16.mxu0 %v14377_v61  ;;  %11764 = vmatprep.subr.bf16.mxu1 %v14380_v8  ;;  %v14429_v8 = vld [vmem:[#allocation17 + $0x700] ss:$28 sps:$4 sm:$0xff]   ;;  %v14432_v17 = vld [vmem:[#allocation17 + $0x708] ss:$28 sps:$4 sm:$0xff]  }
 0x77b   :  { %v8681_v61 = vmax.f32 %v8631_v1, 0.0  ;;  %v14437_v55 = vld [vmem:[#allocation17 + $0x73c] ss:$28 sps:$4 sm:$0xff]   ;;  %v14443_v43 = vld [vmem:[#allocation17 + $0x774] ss:$28 sps:$4 sm:$0xff]  }
 0x77c   :  { %v14438_v50 = vld [vmem:[#allocation17 + $0x740] ss:$28 sps:$4 sm:$0xff]   ;;  %v14489_v1 = vld [vmem:[#allocation17 + $0x930] ss:$28 sps:$4 sm:$0xff]  }
 0x77d   :  { %11601 = vmatpush1.bf16.msra.mxu0 %v14375_v26  ;;  %11765 = vmatpush1.bf16.msra.mxu1 %v14378_v29  ;;  %v15702_v25 = vpack.c.bf16 %v8681_v61, %v8681_v61  ;;  %v14440_v26 = vld [vmem:[#allocation17 + $0x744] ss:$28 sps:$4 sm:$0xff]   ;;  %v14435_v29 = vld [vmem:[#allocation17 + $0x738] ss:$28 sps:$4 sm:$0xff]  }
 0x77e   :  { %11602 = vmatprep.subr.bf16.mxu0 %v14383_v30  ;;  %11766 = vmatprep.subr.bf16.mxu1 %v14386_v21  ;;  %v14446_v30 = vld [vmem:[#allocation17 + $0x77c] ss:$28 sps:$4 sm:$0xff]   ;;  %v14441_v21 = vld [vmem:[#allocation17 + $0x770] ss:$28 sps:$4 sm:$0xff]   ;;  %v14503_v61 = vld [vmem:[#allocation17 + $0x9a4] ss:$28 sps:$4 sm:$0xff]  }
 0x77f   :  { %v14485_v16 = vld [vmem:[#allocation17 + $0x8fc] ss:$28 sps:$4 sm:$0xff]  }
 0x781   :  { %11603 = vmatpush1.bf16.msra.mxu0 %v14381_v33  ;;  %11767 = vmatpush1.bf16.msra.mxu1 %v14384_v51  ;;  %v14444_v33 = vld [vmem:[#allocation17 + $0x778] ss:$28 sps:$4 sm:$0xff]   ;;  %v14449_v51 = vld [vmem:[#allocation17 + $0x7ac] ss:$28 sps:$4 sm:$0xff]  }
 0x782   :  { %11604 = vmatprep.subr.bf16.mxu0 %v14389_v7  ;;  %11768 = vmatprep.subr.bf16.mxu1 %v14392_v36  ;;  %v14452_v7 = vld [vmem:[#allocation17 + $0x7b4] ss:$28 sps:$4 sm:$0xff]   ;;  %v14447_v36 = vld [vmem:[#allocation17 + $0x7a8] ss:$28 sps:$4 sm:$0xff]  }
 0x785   :  { %11605 = vmatpush1.bf16.msra.mxu0 %v14387_v35  ;;  %11769 = vmatpush1.bf16.msra.mxu1 %v14390_v37  ;;  %v14450_v35 = vld [vmem:[#allocation17 + $0x7b0] ss:$28 sps:$4 sm:$0xff]   ;;  %v14455_v37 = vld [vmem:[#allocation17 + $0x7e4] ss:$28 sps:$4 sm:$0xff]  }
 0x786   :  { %11606 = vmatprep.subr.bf16.mxu0 %v14395_v53  ;;  %11770 = vmatprep.subr.bf16.mxu1 %v14398_v38  ;;  %v14458_v53 = vld [vmem:[#allocation17 + $0x7ec] ss:$28 sps:$4 sm:$0xff]   ;;  %v14453_v38 = vld [vmem:[#allocation17 + $0x7e0] ss:$28 sps:$4 sm:$0xff]  }
 0x789   :  { %11607 = vmatpush1.bf16.msra.mxu0 %v14393_v3  ;;  %11771 = vmatpush1.bf16.msra.mxu1 %v14396_v23  ;;  %v14456_v3 = vld [vmem:[#allocation17 + $0x7e8] ss:$28 sps:$4 sm:$0xff]   ;;  %v14461_v23 = vld [vmem:[#allocation17 + $0x81c] ss:$28 sps:$4 sm:$0xff]  }
 0x78a   :  { %11608 = vmatprep.subr.bf16.mxu0 %v14401_v24  ;;  %11772 = vmatprep.subr.bf16.mxu1 %v14404_v28  ;;  %v14464_v24 = vld [vmem:[#allocation17 + $0x824] ss:$28 sps:$4 sm:$0xff]   ;;  %v14459_v28 = vld [vmem:[#allocation17 + $0x818] ss:$28 sps:$4 sm:$0xff]  }
 0x78d   :  { %11609 = vmatpush1.bf16.msra.mxu0 %v14399_v20  ;;  %11773 = vmatpush1.bf16.msra.mxu1 %v14402_v40  ;;  %v14462_v20 = vld [vmem:[#allocation17 + $0x820] ss:$28 sps:$4 sm:$0xff]   ;;  %v14467_v40 = vld [vmem:[#allocation17 + $0x854] ss:$28 sps:$4 sm:$0xff]  }
 0x78e   :  { %11610 = vmatprep.subr.bf16.mxu0 %v14407_v46  ;;  %11774 = vmatprep.subr.bf16.mxu1 %v14410_v44  ;;  %v14470_v46 = vld [vmem:[#allocation17 + $0x85c] ss:$28 sps:$4 sm:$0xff]   ;;  %v14465_v44 = vld [vmem:[#allocation17 + $0x850] ss:$28 sps:$4 sm:$0xff]  }
 0x791   :  { %11611 = vmatpush1.bf16.msra.mxu0 %v14405_v57  ;;  %11775 = vmatpush1.bf16.msra.mxu1 %v14408_v45  ;;  %v14468_v57 = vld [vmem:[#allocation17 + $0x858] ss:$28 sps:$4 sm:$0xff]   ;;  %v14473_v45 = vld [vmem:[#allocation17 + $0x88c] ss:$28 sps:$4 sm:$0xff]  }
 0x792   :  { %11612 = vmatprep.subr.bf16.mxu0 %v14413_v47  ;;  %11776 = vmatprep.subr.bf16.mxu1 %v14416_v52  ;;  %v14476_v47 = vld [vmem:[#allocation17 + $0x894] ss:$28 sps:$4 sm:$0xff]   ;;  %v14471_v52 = vld [vmem:[#allocation17 + $0x888] ss:$28 sps:$4 sm:$0xff]  }
 0x795   :  { %11613 = vmatpush1.bf16.msra.mxu0 %v14411_v19  ;;  %11777 = vmatpush1.bf16.msra.mxu1 %v14414_v63  ;;  %v14474_v19 = vld [vmem:[#allocation17 + $0x890] ss:$28 sps:$4 sm:$0xff]   ;;  %v14479_v63 = vld [vmem:[#allocation17 + $0x8c4] ss:$28 sps:$4 sm:$0xff]  }
 0x796   :  { %11614 = vmatprep.subr.bf16.mxu0 %v14419_v56  ;;  %11778 = vmatprep.subr.bf16.mxu1 %v14422_v58  ;;  %v14477_v56 = vld [vmem:[#allocation17 + $0x8c0] ss:$28 sps:$4 sm:$0xff]   ;;  %v14480_v58 = vld [vmem:[#allocation17 + $0x8c8] ss:$28 sps:$4 sm:$0xff]  }
 0x799   :  { %11615 = vmatpush1.bf16.msra.mxu0 %v14417_v34  ;;  %11779 = vmatpush1.bf16.msra.mxu1 %v14420_v60  ;;  %v14488_v34 = vld [vmem:[#allocation17 + $0x904] ss:$28 sps:$4 sm:$0xff]   ;;  %v14483_v60 = vld [vmem:[#allocation17 + $0x8f8] ss:$28 sps:$4 sm:$0xff]  }
 0x79a   :  { %11616 = vmatprep.subr.bf16.mxu0 %v14425_v4  ;;  %11780 = vmatprep.subr.bf16.mxu1 %v14428_v0  ;;  %v14491_v4 = vld [vmem:[#allocation17 + $0x934] ss:$28 sps:$4 sm:$0xff]   ;;  %v14494_v0 = vld [vmem:[#allocation17 + $0x93c] ss:$28 sps:$4 sm:$0xff]  }
 0x79d   :  { %11617 = vmatpush1.bf16.msra.mxu0 %v14423_v42  ;;  %11781 = vmatpush1.bf16.msra.mxu1 %v14426_v2  ;;  %v14492_v42 = vld [vmem:[#allocation17 + $0x938] ss:$28 sps:$4 sm:$0xff]   ;;  %v14497_v2 = vld [vmem:[#allocation17 + $0x96c] ss:$28 sps:$4 sm:$0xff]  }
 0x79e   :  { %11627 = vmatprep.subr.bf16.mxu0 %v14431_v5  ;;  %11791 = vmatprep.subr.bf16.mxu1 %v14434_v32  ;;  %v14495_v5 = vld [vmem:[#allocation17 + $0x968] ss:$28 sps:$4 sm:$0xff]   ;;  %v14498_v32 = vld [vmem:[#allocation17 + $0x970] ss:$28 sps:$4 sm:$0xff]  }
 0x7a0   :  { %11619 = vmatmul.mubr.bf16.vlgmr.msra.gmra.mrb[32].mxu0 %v15700_v31  ;;  %11783 = vmatmul.mubr.bf16.vlgmr.msra.gmra.mrb[36].mxu1 %v15700_v31 }
 0x7a1   :  { %11628 = vmatpush1.bf16.msra.mxu0 %v14429_v8  ;;  %11659 = vmatprep.mubr.bf16.mxu0 %v15702_v25  ;;  %v14506_v8 = vld [vmem:[#allocation17 + $0x9ac] ss:$28 sps:$4 sm:$0xff]  }
 0x7a2   :  { %11792 = vmatpush1.bf16.msra.mxu1 %v14432_v17  ;;  %11823 = vmatprep.mubr.bf16.mxu1 %v15702_v25  ;;  %v14501_v17 = vld [vmem:[#allocation17 + $0x9a0] ss:$28 sps:$4 sm:$0xff]  }
 0x7a3   :  { %11629 = vmatprep.subr.bf16.mxu0 %v14437_v55  ;;  %11793 = vmatprep.subr.bf16.mxu1 %v14440_v26  ;;  %v14504_v55 = vld [vmem:[#allocation17 + $0x9a8] ss:$28 sps:$4 sm:$0xff]   ;;  %v14509_v26 = vld [vmem:[#allocation17 + $0x9dc] ss:$28 sps:$4 sm:$0xff]  }
 0x7a5   :  { %11630 = vmatpush1.bf16.msra.mxu0 %v14435_v29  ;;  %v14512_v29 = vld [vmem:[#allocation17 + $0x9e4] ss:$28 sps:$4 sm:$0xff]  }
 0x7a6   :  { %11794 = vmatpush1.bf16.msra.mxu1 %v14438_v50  ;;  %11631 = vmatprep.subr.bf16.mxu0 %v14443_v43  ;;  %v14507_v50 = vld [vmem:[#allocation17 + $0x9d8] ss:$28 sps:$4 sm:$0xff]   ;;  %v8171_v43 = vrot.slane %v15664_v9, %v15540_v48 }
 0x7a7   :  { %11795 = vmatprep.subr.bf16.mxu1 %v14446_v30  ;;  %v14510_v30 = vld [vmem:[#allocation17 + $0x9e0] ss:$28 sps:$4 sm:$0xff]  }
 0x7a9   :  { %11632 = vmatpush1.bf16.msra.mxu0 %v14441_v21  ;;  %v14515_v21 = vld [vmem:[#allocation17 + $0xa14] ss:$28 sps:$4 sm:$0xff]  }
 0x7aa   :  { %11796 = vmatpush1.bf16.msra.mxu1 %v14444_v33  ;;  %11633 = vmatprep.subr.bf16.mxu0 %v14449_v51  ;;  %v14518_v33 = vld [vmem:[#allocation17 + $0xa1c] ss:$28 sps:$4 sm:$0xff]   ;;  %v8183_v51 = vrot.slane %v15664_v9, %v15574_v13  ;;  %v14530_v13 = vld [vmem:[#allocation17 + $0xa8c] ss:$28 sps:$4 sm:$0xff]  }
 0x7ab   :  { %11797 = vmatprep.subr.bf16.mxu1 %v14452_v7  ;;  %v14513_v7 = vld [vmem:[#allocation17 + $0xa10] ss:$28 sps:$4 sm:$0xff]  }
 0x7ad   :  { %11634 = vmatpush1.bf16.msra.mxu0 %v14447_v36  ;;  %v8629_v36 = vadd.f32 %v15686_v6, %v8171_v43  ;;  %v14525_v6 = vld [vmem:[#allocation17 + $0xa80] ss:$28 sps:$4 sm:$0xff]   ;;  %v14578_v43 = vld [vmem:[#allocation17 + $0xc4c] ss:$28 sps:$4 sm:$0xff]  }
 0x7ae   :  { %11798 = vmatpush1.bf16.msra.mxu1 %v14450_v35  ;;  %11635 = vmatprep.subr.bf16.mxu0 %v14455_v37  ;;  %v14516_v35 = vld [vmem:[#allocation17 + $0xa18] ss:$28 sps:$4 sm:$0xff]   ;;  %v14521_v37 = vld [vmem:[#allocation17 + $0xa4c] ss:$28 sps:$4 sm:$0xff]  }
 0x7af   :  { %11799 = vmatprep.subr.bf16.mxu1 %v14458_v53  ;;  %v14524_v53 = vld [vmem:[#allocation17 + $0xa54] ss:$28 sps:$4 sm:$0xff]  }
 0x7b1   :  { %11636 = vmatpush1.bf16.msra.mxu0 %v14453_v38  ;;  %v8672_v38 = vadd.f32 %v15692_v14, %v8183_v51  ;;  %v14584_v51 = vld [vmem:[#allocation17 + $0xc84] ss:$28 sps:$4 sm:$0xff]  }
 0x7b2   :  { %11800 = vmatpush1.bf16.msra.mxu1 %v14456_v3  ;;  %11637 = vmatprep.subr.bf16.mxu0 %v14461_v23  ;;  %v14519_v3 = vld [vmem:[#allocation17 + $0xa48] ss:$28 sps:$4 sm:$0xff]   ;;  %v8680_v23 = vmax.f32 %v8629_v36, 0.0  ;;  %v14582_v36 = vld [vmem:[#allocation17 + $0xc80] ss:$28 sps:$4 sm:$0xff]  }
 0x7b3   :  { %11801 = vmatprep.subr.bf16.mxu1 %v14464_v24  ;;  %v14522_v24 = vld [vmem:[#allocation17 + $0xa50] ss:$28 sps:$4 sm:$0xff]  }
 0x7b5   :  { %11638 = vmatpush1.bf16.msra.mxu0 %v14459_v28  ;;  %v14527_v28 = vld [vmem:[#allocation17 + $0xa84] ss:$28 sps:$4 sm:$0xff]  }
 0x7b6   :  { %11802 = vmatpush1.bf16.msra.mxu1 %v14462_v20  ;;  %11639 = vmatprep.subr.bf16.mxu0 %v14467_v40  ;;  %v8683_v20 = vmax.f32 %v8672_v38, 0.0  ;;  %v15714_v40 = vpack.c.bf16 %v8680_v23, %v8680_v23  ;;  %v14588_v38 = vld [vmem:[#allocation17 + $0xcb8] ss:$28 sps:$4 sm:$0xff]  }
 0x7b7   :  { %11803 = vmatprep.subr.bf16.mxu1 %v14470_v46  ;;  %v14528_v46 = vld [vmem:[#allocation17 + $0xa88] ss:$28 sps:$4 sm:$0xff]   ;;  %v14596_v23 = vld [vmem:[#allocation17 + $0xcf4] ss:$28 sps:$4 sm:$0xff]  }
 0x7b8   :  { %v15716_v14 = vpack.c.bf16 %v8683_v20, %v8683_v20  ;;  %v14602_v20 = vld [vmem:[#allocation17 + $0xd2c] ss:$28 sps:$4 sm:$0xff]  }
 0x7b9   :  { %11640 = vmatpush1.bf16.msra.mxu0 %v14465_v44  ;;  %v14533_v44 = vld [vmem:[#allocation17 + $0xabc] ss:$28 sps:$4 sm:$0xff]  }
 0x7ba   :  { %11804 = vmatpush1.bf16.msra.mxu1 %v14468_v57  ;;  %11641 = vmatprep.subr.bf16.mxu0 %v14473_v45  ;;  %v14536_v57 = vld [vmem:[#allocation17 + $0xac4] ss:$28 sps:$4 sm:$0xff]   ;;  %v14531_v45 = vld [vmem:[#allocation17 + $0xab8] ss:$28 sps:$4 sm:$0xff]  }
 0x7bb   :  { %11805 = vmatprep.subr.bf16.mxu1 %v14476_v47  ;;  %v14534_v47 = vld [vmem:[#allocation17 + $0xac0] ss:$28 sps:$4 sm:$0xff]  }
 0x7bd   :  { %11642 = vmatpush1.bf16.msra.mxu0 %v14471_v52  ;;  %v14539_v52 = vld [vmem:[#allocation17 + $0xaf4] ss:$28 sps:$4 sm:$0xff]  }
 0x7be   :  { %11806 = vmatpush1.bf16.msra.mxu1 %v14474_v19  ;;  %11643 = vmatprep.subr.bf16.mxu0 %v14479_v63  ;;  %v14542_v19 = vld [vmem:[#allocation17 + $0xafc] ss:$28 sps:$4 sm:$0xff]   ;;  %v14537_v63 = vld [vmem:[#allocation17 + $0xaf0] ss:$28 sps:$4 sm:$0xff]  }
 0x7bf   :  { %11807 = vmatprep.subr.bf16.mxu1 %v14482_v54  ;;  %v14540_v54 = vld [vmem:[#allocation17 + $0xaf8] ss:$28 sps:$4 sm:$0xff]  }
 0x7c1   :  { %11644 = vmatpush1.bf16.msra.mxu0 %v14477_v56  ;;  %v14545_v56 = vld [vmem:[#allocation17 + $0xb2c] ss:$28 sps:$4 sm:$0xff]  }
 0x7c2   :  { %11808 = vmatpush1.bf16.msra.mxu1 %v14480_v58  ;;  %11645 = vmatprep.subr.bf16.mxu0 %v14485_v16  ;;  %v14548_v58 = vld [vmem:[#allocation17 + $0xb34] ss:$28 sps:$4 sm:$0xff]   ;;  %v14543_v16 = vld [vmem:[#allocation17 + $0xb28] ss:$28 sps:$4 sm:$0xff]  }
 0x7c3   :  { %11809 = vmatprep.subr.bf16.mxu1 %v14488_v34  ;;  %v14546_v34 = vld [vmem:[#allocation17 + $0xb30] ss:$28 sps:$4 sm:$0xff]  }
 0x7c5   :  { %11646 = vmatpush1.bf16.msra.mxu0 %v14483_v60  ;;  %v14551_v60 = vld [vmem:[#allocation17 + $0xb64] ss:$28 sps:$4 sm:$0xff]  }
 0x7c6   :  { %11810 = vmatpush1.bf16.msra.mxu1 %v14486_v62  ;;  %11647 = vmatprep.subr.bf16.mxu0 %v14491_v4  ;;  %v14554_v62 = vld [vmem:[#allocation17 + $0xb6c] ss:$28 sps:$4 sm:$0xff]   ;;  %v14549_v4 = vld [vmem:[#allocation17 + $0xb60] ss:$28 sps:$4 sm:$0xff]  }
 0x7c7   :  { %11811 = vmatprep.subr.bf16.mxu1 %v14494_v0  ;;  %v14552_v0 = vld [vmem:[#allocation17 + $0xb68] ss:$28 sps:$4 sm:$0xff]  }
 0x7c9   :  { %11648 = vmatpush1.bf16.msra.mxu0 %v14489_v1  ;;  %v14557_v1 = vld [vmem:[#allocation17 + $0xb9c] ss:$28 sps:$4 sm:$0xff]  }
 0x7ca   :  { %11812 = vmatpush1.bf16.msra.mxu1 %v14492_v42  ;;  %11649 = vmatprep.subr.bf16.mxu0 %v14497_v2  ;;  %v14560_v42 = vld [vmem:[#allocation17 + $0xba4] ss:$28 sps:$4 sm:$0xff]   ;;  %v14555_v2 = vld [vmem:[#allocation17 + $0xb98] ss:$28 sps:$4 sm:$0xff]  }
 0x7cb   :  { %11813 = vmatprep.subr.bf16.mxu1 %v14500_v59  ;;  %v14558_v59 = vld [vmem:[#allocation17 + $0xba0] ss:$28 sps:$4 sm:$0xff]  }
 0x7cd   :  { %11650 = vmatpush1.bf16.msra.mxu0 %v14495_v5  ;;  %v14563_v5 = vld [vmem:[#allocation17 + $0xbd4] ss:$28 sps:$4 sm:$0xff]  }
 0x7ce   :  { %11814 = vmatpush1.bf16.msra.mxu1 %v14498_v32  ;;  %11651 = vmatprep.subr.bf16.mxu0 %v14503_v61  ;;  %v14566_v32 = vld [vmem:[#allocation17 + $0xbdc] ss:$28 sps:$4 sm:$0xff]   ;;  %v14561_v61 = vld [vmem:[#allocation17 + $0xbd0] ss:$28 sps:$4 sm:$0xff]  }
 0x7cf   :  { %11815 = vmatprep.subr.bf16.mxu1 %v14506_v8  ;;  %v14564_v8 = vld [vmem:[#allocation17 + $0xbd8] ss:$28 sps:$4 sm:$0xff]  }
 0x7d1   :  { %11652 = vmatpush1.bf16.msra.mxu0 %v14501_v17  ;;  %v14569_v17 = vld [vmem:[#allocation17 + $0xc0c] ss:$28 sps:$4 sm:$0xff]  }
 0x7d2   :  { %11816 = vmatpush1.bf16.msra.mxu1 %v14504_v55  ;;  %11653 = vmatprep.subr.bf16.mxu0 %v14509_v26  ;;  %v14572_v55 = vld [vmem:[#allocation17 + $0xc14] ss:$28 sps:$4 sm:$0xff]   ;;  %v14567_v26 = vld [vmem:[#allocation17 + $0xc08] ss:$28 sps:$4 sm:$0xff]  }
 0x7d3   :  { %11817 = vmatprep.subr.bf16.mxu1 %v14512_v29  ;;  %v14570_v29 = vld [vmem:[#allocation17 + $0xc10] ss:$28 sps:$4 sm:$0xff]  }
 0x7d5   :  { %11654 = vmatpush1.bf16.msra.mxu0 %v14507_v50  ;;  %v14575_v50 = vld [vmem:[#allocation17 + $0xc44] ss:$28 sps:$4 sm:$0xff]  }
 0x7d6   :  { %11818 = vmatpush1.bf16.msra.mxu1 %v14510_v30  ;;  %11655 = vmatprep.subr.bf16.mxu0 %v14515_v21  ;;  %v14573_v30 = vld [vmem:[#allocation17 + $0xc40] ss:$28 sps:$4 sm:$0xff]   ;;  %v14576_v21 = vld [vmem:[#allocation17 + $0xc48] ss:$28 sps:$4 sm:$0xff]  }
 0x7d7   :  { %11819 = vmatprep.subr.bf16.mxu1 %v14518_v33  ;;  %v14581_v33 = vld [vmem:[#allocation17 + $0xc7c] ss:$28 sps:$4 sm:$0xff]  }
 0x7d9   :  { %11656 = vmatpush1.bf16.msra.mxu0 %v14513_v7  ;;  %v14579_v7 = vld [vmem:[#allocation17 + $0xc78] ss:$28 sps:$4 sm:$0xff]  }
 0x7da   :  { %11820 = vmatpush1.bf16.msra.mxu1 %v14516_v35  ;;  %11657 = vmatprep.subr.bf16.mxu0 %v14521_v37  ;;  %v14587_v35 = vld [vmem:[#allocation17 + $0xcb4] ss:$28 sps:$4 sm:$0xff]   ;;  %v14590_v37 = vld [vmem:[#allocation17 + $0xcbc] ss:$28 sps:$4 sm:$0xff]  }
 0x7db   :  { %11821 = vmatprep.subr.bf16.mxu1 %v14524_v53  ;;  %v14585_v53 = vld [vmem:[#allocation17 + $0xcb0] ss:$28 sps:$4 sm:$0xff]  }
 0x7dd   :  { %11658 = vmatpush1.bf16.msra.mxu0 %v14519_v3  ;;  %v14593_v3 = vld [vmem:[#allocation17 + $0xcec] ss:$28 sps:$4 sm:$0xff]  }
 0x7de   :  { %11822 = vmatpush1.bf16.msra.mxu1 %v14522_v24  ;;  %11668 = vmatprep.subr.bf16.mxu0 %v14527_v28  ;;  %v14591_v24 = vld [vmem:[#allocation17 + $0xce8] ss:$28 sps:$4 sm:$0xff]   ;;  %v14594_v28 = vld [vmem:[#allocation17 + $0xcf0] ss:$28 sps:$4 sm:$0xff]  }
 0x7df   :  { %11832 = vmatprep.subr.bf16.mxu1 %v14530_v13  ;;  %v14599_v13 = vld [vmem:[#allocation17 + $0xd24] ss:$28 sps:$4 sm:$0xff]  }
 0x7e0   :  { %11660 = vmatmul.mubr.bf16.vlgmr.msra.gmra.mrb[32].mxu0 %v15714_v40 }
 0x7e1   :  { %11824 = vmatmul.mubr.bf16.vlgmr.msra.gmra.mrb[36].mxu1 %v15714_v40  ;;  %11669 = vmatpush1.bf16.msra.mxu0 %v14525_v6  ;;  %v14597_v6 = vld [vmem:[#allocation17 + $0xd20] ss:$28 sps:$4 sm:$0xff]  }
 0x7e2   :  { %11700 = vmatprep.mubr.bf16.mxu0 %v15716_v14  ;;  %11833 = vmatpush1.bf16.msra.mxu1 %v14528_v46  ;;  %v14600_v46 = vld [vmem:[#allocation17 + $0xd28] ss:$28 sps:$4 sm:$0xff]  }
 0x7e3   :  { %11864 = vmatprep.mubr.bf16.mxu1 %v15716_v14  ;;  %11670 = vmatprep.subr.bf16.mxu0 %v14533_v44  ;;  %v14605_v44 = vld [vmem:[#allocation17 + $0xd5c] ss:$28 sps:$4 sm:$0xff]  }
 0x7e4   :  { %11834 = vmatprep.subr.bf16.mxu1 %v14536_v57  ;;  %v14608_v57 = vld [vmem:[#allocation17 + $0xd64] ss:$28 sps:$4 sm:$0xff]  }
 0x7e5   :  { %11671 = vmatpush1.bf16.msra.mxu0 %v14531_v45  ;;  %v14603_v45 = vld [vmem:[#allocation17 + $0xd58] ss:$28 sps:$4 sm:$0xff]  }
 0x7e6   :  { %11835 = vmatpush1.bf16.msra.mxu1 %v14534_v47  ;;  %11672 = vmatprep.subr.bf16.mxu0 %v14539_v52  ;;  %v8179_v47 = vrot.slane %v15664_v9, %v15571_v10  ;;  %v14606_v52 = vld [vmem:[#allocation17 + $0xd60] ss:$28 sps:$4 sm:$0xff]   ;;  %v14618_v9 = vld [vmem:[#allocation17 + $0xdd0] ss:$28 sps:$4 sm:$0xff]  }
 0x7e7   :  { %11836 = vmatprep.subr.bf16.mxu1 %v14542_v19  ;;  %v14611_v19 = vld [vmem:[#allocation17 + $0xd94] ss:$28 sps:$4 sm:$0xff]  }
 0x7e9   :  { %11673 = vmatpush1.bf16.msra.mxu0 %v14537_v63  ;;  %v14614_v63 = vld [vmem:[#allocation17 + $0xd9c] ss:$28 sps:$4 sm:$0xff]  }
 0x7ea   :  { %11837 = vmatpush1.bf16.msra.mxu1 %v14540_v54  ;;  %11674 = vmatprep.subr.bf16.mxu0 %v14545_v56  ;;  %v14609_v54 = vld [vmem:[#allocation17 + $0xd90] ss:$28 sps:$4 sm:$0xff]   ;;  %v8670_v56 = vadd.f32 %v15688_v11, %v8179_v47  ;;  %v14625_v11 = vld [vmem:[#allocation17 + $0x18] ss:$28 sps:$4 sm:$0xff]   ;;  %v14666_v47 = vld [vmem:[#allocation17 + $0x208] ss:$28 sps:$4 sm:$0xff]  }
 0x7eb   :  { %11838 = vmatprep.subr.bf16.mxu1 %v14548_v58  ;;  %v14612_v58 = vld [vmem:[#allocation17 + $0xd98] ss:$28 sps:$4 sm:$0xff]  }
 0x7ed   :  { %11675 = vmatpush1.bf16.msra.mxu0 %v14543_v16  ;;  %v14617_v16 = vld [vmem:[#allocation17 + $0xdcc] ss:$28 sps:$4 sm:$0xff]  }
 0x7ee   :  { %11839 = vmatpush1.bf16.msra.mxu1 %v14546_v34  ;;  %11676 = vmatprep.subr.bf16.mxu0 %v14551_v60  ;;  %v14620_v34 = vld [vmem:[#allocation17 + $0xdd4] ss:$28 sps:$4 sm:$0xff]   ;;  %v14615_v60 = vld [vmem:[#allocation17 + $0xdc8] ss:$28 sps:$4 sm:$0xff]  }
 0x7ef   :  { %11840 = vmatprep.subr.bf16.mxu1 %v14554_v62  ;;  %v8682_v62 = vmax.f32 %v8670_v56, 0.0  ;;  %v14675_v56 = vld [vmem:[#allocation17 + $0x408] ss:$28 sps:$4 sm:$0xff]  }
 0x7f1   :  { %11677 = vmatpush1.bf16.msra.mxu0 %v14549_v4  ;;  %v14623_v4 = vld [vmem:[#allocation17 + $0x14] ss:$28 sps:$4 sm:$0xff]  }
 0x7f2   :  { %11841 = vmatpush1.bf16.msra.mxu1 %v14552_v0  ;;  %11678 = vmatprep.subr.bf16.mxu0 %v14557_v1  ;;  %v14624_v0 = vld [vmem:[#allocation17 + $0x1d8] ss:$28 sps:$4 sm:$0xff]   ;;  %v14621_v1 = vld [vmem:[#allocation17 + $0x10] ss:$28 sps:$4 sm:$0xff]  }
 0x7f3   :  { %11842 = vmatprep.subr.bf16.mxu1 %v14560_v42  ;;  %v15725_v42 = vpack.c.bf16 %v8682_v62, %v8682_v62  ;;  %v14683_v62 = vld [vmem:[#allocation17 + $0x2b4] ss:$28 sps:$4 sm:$0xff]  }
 0x7f5   :  { %11679 = vmatpush1.bf16.msra.mxu0 %v14555_v2  ;;  %v14628_v2 = vld [vmem:[#allocation17 + $0x4c] ss:$28 sps:$4 sm:$0xff]  }
 0x7f6   :  { %11843 = vmatpush1.bf16.msra.mxu1 %v14558_v59  ;;  %11680 = vmatprep.subr.bf16.mxu0 %v14563_v5  ;;  %v14629_v59 = vld [vmem:[#allocation17 + $0x210] ss:$28 sps:$4 sm:$0xff]   ;;  %v14626_v5 = vld [vmem:[#allocation17 + $0x48] ss:$28 sps:$4 sm:$0xff]  }
 0x7f7   :  { %11844 = vmatprep.subr.bf16.mxu1 %v14566_v32  ;;  %v14630_v32 = vld [vmem:[#allocation17 + $0x50] ss:$28 sps:$4 sm:$0xff]  }
 0x7f9   :  { %11681 = vmatpush1.bf16.msra.mxu0 %v14561_v61  ;;  %v14633_v61 = vld [vmem:[#allocation17 + $0x84] ss:$28 sps:$4 sm:$0xff]  }
 0x7fa   :  { %11845 = vmatpush1.bf16.msra.mxu1 %v14564_v8  ;;  %11682 = vmatprep.subr.bf16.mxu0 %v14569_v17  ;;  %v14634_v8 = vld [vmem:[#allocation17 + $0x248] ss:$28 sps:$4 sm:$0xff]   ;;  %v14631_v17 = vld [vmem:[#allocation17 + $0x80] ss:$28 sps:$4 sm:$0xff]  }
 0x7fb   :  { %11846 = vmatprep.subr.bf16.mxu1 %v14572_v55  ;;  %v14635_v55 = vld [vmem:[#allocation17 + $0x88] ss:$28 sps:$4 sm:$0xff]  }
 0x7fd   :  { %11683 = vmatpush1.bf16.msra.mxu0 %v14567_v26  ;;  %v14638_v26 = vld [vmem:[#allocation17 + $0xbc] ss:$28 sps:$4 sm:$0xff]  }
 0x7fe   :  { %11847 = vmatpush1.bf16.msra.mxu1 %v14570_v29  ;;  %11684 = vmatprep.subr.bf16.mxu0 %v14575_v50  ;;  %v14639_v29 = vld [vmem:[#allocation17 + $0x280] ss:$28 sps:$4 sm:$0xff]   ;;  %v14636_v50 = vld [vmem:[#allocation17 + $0xb8] ss:$28 sps:$4 sm:$0xff]  }
 0x7ff   :  { %11848 = vmatprep.subr.bf16.mxu1 %v14578_v43  ;;  %v14640_v43 = vld [vmem:[#allocation17 + $0xc0] ss:$28 sps:$4 sm:$0xff]  }
 0x801   :  { %11685 = vmatpush1.bf16.msra.mxu0 %v14573_v30  ;;  %v14643_v30 = vld [vmem:[#allocation17 + $0xf4] ss:$28 sps:$4 sm:$0xff]  }
 0x802   :  { %11849 = vmatpush1.bf16.msra.mxu1 %v14576_v21  ;;  %11686 = vmatprep.subr.bf16.mxu0 %v14581_v33  ;;  %v14644_v21 = vld [vmem:[#allocation17 + $0x2b8] ss:$28 sps:$4 sm:$0xff]  }
 0x803   :  { %11850 = vmatprep.subr.bf16.mxu1 %v14584_v51  ;;  %v14645_v33 = vld [vmem:[#allocation17 + $0xf8] ss:$28 sps:$4 sm:$0xff]   ;;  %v14648_v51 = vld [vmem:[#allocation17 + $0x12c] ss:$28 sps:$4 sm:$0xff]  }
 0x805   :  { %11687 = vmatpush1.bf16.msra.mxu0 %v14579_v7  ;;  %v14649_v7 = vld [vmem:[#allocation17 + $0x2f0] ss:$28 sps:$4 sm:$0xff]  }
 0x806   :  { %11851 = vmatpush1.bf16.msra.mxu1 %v14582_v36  ;;  %11688 = vmatprep.subr.bf16.mxu0 %v14587_v35  ;;  %v14646_v36 = vld [vmem:[#allocation17 + $0x128] ss:$28 sps:$4 sm:$0xff]   ;;  %v14650_v35 = vld [vmem:[#allocation17 + $0x130] ss:$28 sps:$4 sm:$0xff]  }
 0x807   :  { %11852 = vmatprep.subr.bf16.mxu1 %v14590_v37  ;;  %v14653_v37 = vld [vmem:[#allocation17 + $0x164] ss:$28 sps:$4 sm:$0xff]  }
 0x809   :  { %11689 = vmatpush1.bf16.msra.mxu0 %v14585_v53  ;;  %v14654_v53 = vld [vmem:[#allocation17 + $0x328] ss:$28 sps:$4 sm:$0xff]  }
 0x80a   :  { %11853 = vmatpush1.bf16.msra.mxu1 %v14588_v38  ;;  %11690 = vmatprep.subr.bf16.mxu0 %v14593_v3  ;;  %v14651_v38 = vld [vmem:[#allocation17 + $0x160] ss:$28 sps:$4 sm:$0xff]   ;;  %v14655_v3 = vld [vmem:[#allocation17 + $0x168] ss:$28 sps:$4 sm:$0xff]  }
 0x80b   :  { %11854 = vmatprep.subr.bf16.mxu1 %v14596_v23  ;;  %v14658_v23 = vld [vmem:[#allocation17 + $0x19c] ss:$28 sps:$4 sm:$0xff]  }
 0x80d   :  { %11691 = vmatpush1.bf16.msra.mxu0 %v14591_v24  ;;  %v14659_v24 = vld [vmem:[#allocation17 + $0x360] ss:$28 sps:$4 sm:$0xff]  }
 0x80e   :  { %11855 = vmatpush1.bf16.msra.mxu1 %v14594_v28  ;;  %11692 = vmatprep.subr.bf16.mxu0 %v14599_v13  ;;  %v14656_v28 = vld [vmem:[#allocation17 + $0x198] ss:$28 sps:$4 sm:$0xff]   ;;  %v14660_v13 = vld [vmem:[#allocation17 + $0x1a0] ss:$28 sps:$4 sm:$0xff]  }
 0x80f   :  { %11856 = vmatprep.subr.bf16.mxu1 %v14602_v20  ;;  %v14663_v20 = vld [vmem:[#allocation17 + $0x1d4] ss:$28 sps:$4 sm:$0xff]  }
 0x811   :  { %11693 = vmatpush1.bf16.msra.mxu0 %v14597_v6  ;;  %v14664_v6 = vld [vmem:[#allocation17 + $0x558] ss:$28 sps:$4 sm:$0xff]  }
 0x812   :  { %11857 = vmatpush1.bf16.msra.mxu1 %v14600_v46  ;;  %11694 = vmatprep.subr.bf16.mxu0 %v14605_v44  ;;  %v14661_v46 = vld [vmem:[#allocation17 + $0x1d0] ss:$28 sps:$4 sm:$0xff]   ;;  %v14665_v44 = vld [vmem:[#allocation17 + $0x398] ss:$28 sps:$4 sm:$0xff]  }
 0x813   :  { %11858 = vmatprep.subr.bf16.mxu1 %v14608_v57  ;;  %v14668_v57 = vld [vmem:[#allocation17 + $0x20c] ss:$28 sps:$4 sm:$0xff]  }
 0x815   :  { %11695 = vmatpush1.bf16.msra.mxu0 %v14603_v45  ;;  %v14669_v45 = vld [vmem:[#allocation17 + $0x590] ss:$28 sps:$4 sm:$0xff]  }
 0x816   :  { %11859 = vmatpush1.bf16.msra.mxu1 %v14606_v52  ;;  %11696 = vmatprep.subr.bf16.mxu0 %v14611_v19  ;;  %v14670_v52 = vld [vmem:[#allocation17 + $0x3d0] ss:$28 sps:$4 sm:$0xff]   ;;  %v14673_v19 = vld [vmem:[#allocation17 + $0x244] ss:$28 sps:$4 sm:$0xff]  }
 0x817   :  { %11860 = vmatprep.subr.bf16.mxu1 %v14614_v63  ;;  %v14674_v63 = vld [vmem:[#allocation17 + $0x5c8] ss:$28 sps:$4 sm:$0xff]  }
 0x819   :  { %11697 = vmatpush1.bf16.msra.mxu0 %v14609_v54  ;;  %v14671_v54 = vld [vmem:[#allocation17 + $0x240] ss:$28 sps:$4 sm:$0xff]  }
 0x81a   :  { %11861 = vmatpush1.bf16.msra.mxu1 %v14612_v58  ;;  %11698 = vmatprep.subr.bf16.mxu0 %v14617_v16  ;;  %v14678_v58 = vld [vmem:[#allocation17 + $0x27c] ss:$28 sps:$4 sm:$0xff]  }
 0x81b   :  { %11862 = vmatprep.subr.bf16.mxu1 %v14620_v34  ;;  %v14679_v16 = vld [vmem:[#allocation17 + $0x600] ss:$28 sps:$4 sm:$0xff]   ;;  %v14676_v34 = vld [vmem:[#allocation17 + $0x278] ss:$28 sps:$4 sm:$0xff]  }
 0x81d   :  { %11699 = vmatpush1.bf16.msra.mxu0 %v14615_v60  ;;  %v14680_v60 = vld [vmem:[#allocation17 + $0x440] ss:$28 sps:$4 sm:$0xff]  }
 0x81e   :  { %11863 = vmatpush1.bf16.msra.mxu1 %v14618_v9  ;;  %11873 = vmatprep.subr.bf16.mxu0 %v14623_v4  ;;  %v14684_v9 = vld [vmem:[#allocation17 + $0x638] ss:$28 sps:$4 sm:$0xff]   ;;  %v14681_v4 = vld [vmem:[#allocation17 + $0x2b0] ss:$28 sps:$4 sm:$0xff]  }
 0x81f   :  { %13913 = vmatprep.subr.bf16.mxu1 %v14624_v0  ;;  %v14685_v0 = vld [vmem:[#allocation17 + $0x478] ss:$28 sps:$4 sm:$0xff]  }
 0x820   :  { %11701 = vmatmul.mubr.bf16.vlgmr.msra.gmra.mrb[32].mxu0 %v15725_v42 }
 0x821   :  { %11865 = vmatmul.mubr.bf16.vlgmr.msra.gmra.mrb[36].mxu1 %v15725_v42  ;;  %11874 = vmatpush1.bf16.msra.mxu0 %v14621_v1  ;;  %v14688_v1 = vld [vmem:[#allocation17 + $0x2ec] ss:$28 sps:$4 sm:$0xff]  }
 0x822   :  { %11905 = vmatprep.mubr.bf16.mxu0 %v15674_v39  ;;  %13914 = vmatpush3.bf16.msra.mxu1 %v14625_v11  ;;  %v14689_v11 = vld [vmem:[#allocation17 + $0x670] ss:$28 sps:$4 sm:$0xff]  }
 0x823   :  { %12069 = vmatprep.mubr.bf16.mxu1 %v15674_v39  ;;  %11875 = vmatprep.subr.bf16.mxu0 %v14628_v2  ;;  %v14641_v39 = vld [vmem:[#allocation17 + $0xf0] ss:$28 sps:$4 sm:$0xff]   ;;  %v14686_v2 = vld [vmem:[#allocation17 + $0x2e8] ss:$28 sps:$4 sm:$0xff]  }
 0x824   :  { %13915 = vmatprep.subr.bf16.mxu1 %v14629_v59  ;;  %v14690_v59 = vld [vmem:[#allocation17 + $0x4b0] ss:$28 sps:$4 sm:$0xff]  }
 0x825   :  { %11876 = vmatpush1.bf16.msra.mxu0 %v14626_v5  ;;  %v14693_v5 = vld [vmem:[#allocation17 + $0x324] ss:$28 sps:$4 sm:$0xff]  }
 0x826   :  { %13916 = vmatpush3.bf16.msra.mxu1 %v14630_v32  ;;  %11877 = vmatprep.subr.bf16.mxu0 %v14633_v61  ;;  %v14694_v32 = vld [vmem:[#allocation17 + $0x6a8] ss:$28 sps:$4 sm:$0xff]   ;;  %v14691_v61 = vld [vmem:[#allocation17 + $0x320] ss:$28 sps:$4 sm:$0xff]  }
 0x827   :  { %13917 = vmatprep.subr.bf16.mxu1 %v14634_v8  ;;  %v14695_v8 = vld [vmem:[#allocation17 + $0x4e8] ss:$28 sps:$4 sm:$0xff]  }
 0x829   :  { %11878 = vmatpush1.bf16.msra.mxu0 %v14631_v17  ;;  %v14698_v17 = vld [vmem:[#allocation17 + $0x35c] ss:$28 sps:$4 sm:$0xff]  }
 0x82a   :  { %13918 = vmatpush3.bf16.msra.mxu1 %v14635_v55  ;;  %11879 = vmatprep.subr.bf16.mxu0 %v14638_v26  ;;  %v14699_v55 = vld [vmem:[#allocation17 + $0x6e0] ss:$28 sps:$4 sm:$0xff]   ;;  %v14696_v26 = vld [vmem:[#allocation17 + $0x358] ss:$28 sps:$4 sm:$0xff]  }
 0x82b   :  { %13919 = vmatprep.subr.bf16.mxu1 %v14639_v29  ;;  %v14700_v29 = vld [vmem:[#allocation17 + $0x520] ss:$28 sps:$4 sm:$0xff]  }
 0x82d   :  { %11880 = vmatpush1.bf16.msra.mxu0 %v14636_v50  ;;  %v14703_v50 = vld [vmem:[#allocation17 + $0x394] ss:$28 sps:$4 sm:$0xff]  }
 0x82e   :  { %13920 = vmatpush3.bf16.msra.mxu1 %v14640_v43  ;;  %11881 = vmatprep.subr.bf16.mxu0 %v14643_v30  ;;  %v14704_v43 = vld [vmem:[#allocation17 + $0x8d8] ss:$28 sps:$4 sm:$0xff]   ;;  %v14701_v30 = vld [vmem:[#allocation17 + $0x390] ss:$28 sps:$4 sm:$0xff]  }
 0x82f   :  { %13921 = vmatprep.subr.bf16.mxu1 %v14644_v21  ;;  %v14705_v21 = vld [vmem:[#allocation17 + $0x718] ss:$28 sps:$4 sm:$0xff]  }
 0x831   :  { %11882 = vmatpush1.bf16.msra.mxu0 %v14641_v39  ;;  %v14708_v39 = vld [vmem:[#allocation17 + $0x3cc] ss:$28 sps:$4 sm:$0xff]  }
 0x832   :  { %13922 = vmatpush3.bf16.msra.mxu1 %v14645_v33  ;;  %11883 = vmatprep.subr.bf16.mxu0 %v14648_v51  ;;  %v14709_v33 = vld [vmem:[#allocation17 + $0x910] ss:$28 sps:$4 sm:$0xff]   ;;  %v14706_v51 = vld [vmem:[#allocation17 + $0x3c8] ss:$28 sps:$4 sm:$0xff]  }
 0x833   :  { %13923 = vmatprep.subr.bf16.mxu1 %v14649_v7  ;;  %v14710_v7 = vld [vmem:[#allocation17 + $0x750] ss:$28 sps:$4 sm:$0xff]  }
 0x835   :  { %11884 = vmatpush1.bf16.msra.mxu0 %v14646_v36  ;;  %v14713_v36 = vld [vmem:[#allocation17 + $0x404] ss:$28 sps:$4 sm:$0xff]  }
 0x836   :  { %13924 = vmatpush3.bf16.msra.mxu1 %v14650_v35  ;;  %11885 = vmatprep.subr.bf16.mxu0 %v14653_v37  ;;  %v14714_v35 = vld [vmem:[#allocation17 + $0x948] ss:$28 sps:$4 sm:$0xff]   ;;  %v14711_v37 = vld [vmem:[#allocation17 + $0x400] ss:$28 sps:$4 sm:$0xff]  }
 0x837   :  { %13925 = vmatprep.subr.bf16.mxu1 %v14654_v53  ;;  %v14718_v53 = vld [vmem:[#allocation17 + $0x43c] ss:$28 sps:$4 sm:$0xff]  }
 0x839   :  { %11886 = vmatpush1.bf16.msra.mxu0 %v14651_v38  ;;  %v14719_v38 = vld [vmem:[#allocation17 + $0x980] ss:$28 sps:$4 sm:$0xff]  }
 0x83a   :  { %13926 = vmatpush3.bf16.msra.mxu1 %v14655_v3  ;;  %11887 = vmatprep.subr.bf16.mxu0 %v14658_v23  ;;  %v14716_v3 = vld [vmem:[#allocation17 + $0x438] ss:$28 sps:$4 sm:$0xff]  }
 0x83b   :  { %13927 = vmatprep.subr.bf16.mxu1 %v14659_v24  ;;  %v14723_v23 = vld [vmem:[#allocation17 + $0x474] ss:$28 sps:$4 sm:$0xff]  }
 0x83c   :  { %v14724_v24 = vld [vmem:[#allocation17 + $0x9b8] ss:$28 sps:$4 sm:$0xff]  }
 0x83d   :  { %11888 = vmatpush1.bf16.msra.mxu0 %v14656_v28  ;;  %v14721_v28 = vld [vmem:[#allocation17 + $0x470] ss:$28 sps:$4 sm:$0xff]  }
 0x83e   :  { %13928 = vmatpush3.bf16.msra.mxu1 %v14660_v13  ;;  %11889 = vmatprep.subr.bf16.mxu0 %v14663_v20  ;;  %v14725_v13 = vld [vmem:[#allocation17 + $0x7f8] ss:$28 sps:$4 sm:$0xff]   ;;  %v14728_v20 = vld [vmem:[#allocation17 + $0x4ac] ss:$28 sps:$4 sm:$0xff]  }
 0x83f   :  { %13935 = vmatprep.subr.bf16.mxu1 %v14664_v6  ;;  %v14729_v6 = vld [vmem:[#allocation17 + $0x9f0] ss:$28 sps:$4 sm:$0xff]  }
 0x841   :  { %12070 = vmatmul.mubr.bf16.vlgmr.msra.gmra.mrb[40].mxu1 %v15676_v41  ;;  %11890 = vmatpush1.bf16.msra.mxu0 %v14661_v46  ;;  %v14726_v46 = vld [vmem:[#allocation17 + $0x4a8] ss:$28 sps:$4 sm:$0xff]  }
 0x842   :  { %13936 = vmatpush3.bf16.msra.mxu1 %v14665_v44  ;;  %12109 = vmatprep.mubr.bf16.mxu1 %v15680_v27  ;;  %v14730_v44 = vld [vmem:[#allocation17 + $0x830] ss:$28 sps:$4 sm:$0xff]  }
 0x843   :  { %11891 = vmatprep.subr.bf16.mxu0 %v14668_v57  ;;  %13937 = vmatprep.subr.bf16.mxu1 %v14669_v45  ;;  %v14733_v57 = vld [vmem:[#allocation17 + $0x4e4] ss:$28 sps:$4 sm:$0xff]  }
 0x844   :  { %v14734_v45 = vld [vmem:[#allocation17 + $0xa28] ss:$28 sps:$4 sm:$0xff]  }
 0x845   :  { %11892 = vmatpush1.bf16.msra.mxu0 %v14666_v47  ;;  %v14731_v47 = vld [vmem:[#allocation17 + $0x4e0] ss:$28 sps:$4 sm:$0xff]  }
 0x846   :  { %13938 = vmatpush3.bf16.msra.mxu1 %v14670_v52  ;;  %11893 = vmatprep.subr.bf16.mxu0 %v14673_v19  ;;  %v14735_v52 = vld [vmem:[#allocation17 + $0x868] ss:$28 sps:$4 sm:$0xff]   ;;  %v14738_v19 = vld [vmem:[#allocation17 + $0x51c] ss:$28 sps:$4 sm:$0xff]  }
 0x847   :  { %13939 = vmatprep.subr.bf16.mxu1 %v14674_v63  ;;  %v14739_v63 = vld [vmem:[#allocation17 + $0xa60] ss:$28 sps:$4 sm:$0xff]  }
 0x849   :  { %11894 = vmatpush1.bf16.msra.mxu0 %v14671_v54  ;;  %v14736_v54 = vld [vmem:[#allocation17 + $0x518] ss:$28 sps:$4 sm:$0xff]  }
 0x84a   :  { %13940 = vmatpush3.bf16.msra.mxu1 %v14675_v56  ;;  %11895 = vmatprep.subr.bf16.mxu0 %v14678_v58  ;;  %v14740_v56 = vld [vmem:[#allocation17 + $0x8a0] ss:$28 sps:$4 sm:$0xff]   ;;  %v14743_v58 = vld [vmem:[#allocation17 + $0x554] ss:$28 sps:$4 sm:$0xff]  }
 0x84b   :  { %13941 = vmatprep.subr.bf16.mxu1 %v14679_v16  ;;  %v14744_v16 = vld [vmem:[#allocation17 + $0xc58] ss:$28 sps:$4 sm:$0xff]  }
 0x84d   :  { %11896 = vmatpush1.bf16.msra.mxu0 %v14676_v34  ;;  %v14741_v34 = vld [vmem:[#allocation17 + $0x550] ss:$28 sps:$4 sm:$0xff]  }
 0x84e   :  { %13942 = vmatpush3.bf16.msra.mxu1 %v14680_v60  ;;  %11897 = vmatprep.subr.bf16.mxu0 %v14683_v62  ;;  %v14745_v60 = vld [vmem:[#allocation17 + $0xa98] ss:$28 sps:$4 sm:$0xff]   ;;  %v14748_v62 = vld [vmem:[#allocation17 + $0x58c] ss:$28 sps:$4 sm:$0xff]  }
 0x84f   :  { %13943 = vmatprep.subr.bf16.mxu1 %v14684_v9  ;;  %v14749_v9 = vld [vmem:[#allocation17 + $0xc90] ss:$28 sps:$4 sm:$0xff]  }
 0x851   :  { %11898 = vmatpush1.bf16.msra.mxu0 %v14681_v4  ;;  %v14746_v4 = vld [vmem:[#allocation17 + $0x588] ss:$28 sps:$4 sm:$0xff]  }
 0x852   :  { %13944 = vmatpush3.bf16.msra.mxu1 %v14685_v0  ;;  %11899 = vmatprep.subr.bf16.mxu0 %v14688_v1  ;;  %v14750_v0 = vld [vmem:[#allocation17 + $0xad0] ss:$28 sps:$4 sm:$0xff]   ;;  %v14753_v1 = vld [vmem:[#allocation17 + $0x5c4] ss:$28 sps:$4 sm:$0xff]  }
 0x853   :  { %13945 = vmatprep.subr.bf16.mxu1 %v14689_v11  ;;  %v14754_v11 = vld [vmem:[#allocation17 + $0xcc8] ss:$28 sps:$4 sm:$0xff]  }
 0x855   :  { %11900 = vmatpush1.bf16.msra.mxu0 %v14686_v2  ;;  %v14751_v2 = vld [vmem:[#allocation17 + $0x5c0] ss:$28 sps:$4 sm:$0xff]  }
 0x856   :  { %13946 = vmatpush3.bf16.msra.mxu1 %v14690_v59  ;;  %11901 = vmatprep.subr.bf16.mxu0 %v14693_v5  ;;  %v14755_v59 = vld [vmem:[#allocation17 + $0xb08] ss:$28 sps:$4 sm:$0xff]   ;;  %v14758_v5 = vld [vmem:[#allocation17 + $0x5fc] ss:$28 sps:$4 sm:$0xff]  }
 0x857   :  { %13947 = vmatprep.subr.bf16.mxu1 %v14694_v32  ;;  %v14759_v32 = vld [vmem:[#allocation17 + $0xd00] ss:$28 sps:$4 sm:$0xff]  }
 0x859   :  { %11902 = vmatpush1.bf16.msra.mxu0 %v14691_v61  ;;  %v14756_v61 = vld [vmem:[#allocation17 + $0x5f8] ss:$28 sps:$4 sm:$0xff]  }
 0x85a   :  { %13948 = vmatpush3.bf16.msra.mxu1 %v14695_v8  ;;  %11903 = vmatprep.subr.bf16.mxu0 %v14698_v17  ;;  %v14760_v8 = vld [vmem:[#allocation17 + $0xb40] ss:$28 sps:$4 sm:$0xff]   ;;  %v14763_v17 = vld [vmem:[#allocation17 + $0x634] ss:$28 sps:$4 sm:$0xff]  }
 0x85b   :  { %13949 = vmatprep.subr.bf16.mxu1 %v14699_v55  ;;  %v14764_v55 = vld [vmem:[#allocation17 + $0xd38] ss:$28 sps:$4 sm:$0xff]  }
 0x85d   :  { %11904 = vmatpush1.bf16.msra.mxu0 %v14696_v26  ;;  %v14761_v26 = vld [vmem:[#allocation17 + $0x630] ss:$28 sps:$4 sm:$0xff]  }
 0x85e   :  { %13950 = vmatpush3.bf16.msra.mxu1 %v14700_v29  ;;  %11914 = vmatprep.subr.bf16.mxu0 %v14703_v50  ;;  %v14765_v29 = vld [vmem:[#allocation17 + $0xb78] ss:$28 sps:$4 sm:$0xff]   ;;  %v14768_v50 = vld [vmem:[#allocation17 + $0x66c] ss:$28 sps:$4 sm:$0xff]  }
 0x85f   :  { %13957 = vmatprep.subr.bf16.mxu1 %v14704_v43  ;;  %v14769_v43 = vld [vmem:[#allocation17 + $0xd70] ss:$28 sps:$4 sm:$0xff]  }
 0x860   :  { %11906 = vmatmul.mubr.bf16.vlgmr.msra.gmra.mrb[36].mxu0 %v15676_v41  ;;  %v14715_v41 = vld [vmem:[#allocation17 + $0x788] ss:$28 sps:$4 sm:$0xff]  }
 0x861   :  { %12110 = vmatmul.mubr.bf16.vlgmr.msra.gmra.mrb[44].mxu1 %v15700_v31  ;;  %11915 = vmatpush1.bf16.msra.mxu0 %v14701_v30  ;;  %v14766_v30 = vld [vmem:[#allocation17 + $0x668] ss:$28 sps:$4 sm:$0xff]  }
 0x862   :  { %11946 = vmatprep.mubr.bf16.mxu0 %v15680_v27  ;;  %13958 = vmatpush3.bf16.msra.mxu1 %v14705_v21  ;;  %v14720_v27 = vld [vmem:[#allocation17 + $0x7c0] ss:$28 sps:$4 sm:$0xff]   ;;  %v14770_v21 = vld [vmem:[#allocation17 + $0xbb0] ss:$28 sps:$4 sm:$0xff]  }
 0x863   :  { %12149 = vmatprep.mubr.bf16.mxu1 %v15702_v25  ;;  %11916 = vmatprep.subr.bf16.mxu0 %v14708_v39  ;;  %v14773_v39 = vld [vmem:[#allocation17 + $0x6a4] ss:$28 sps:$4 sm:$0xff]  }
 0x864   :  { %13959 = vmatprep.subr.bf16.mxu1 %v14709_v33  ;;  %v14774_v33 = vld [vmem:[#allocation17 + $0xda8] ss:$28 sps:$4 sm:$0xff]  }
 0x865   :  { %11917 = vmatpush1.bf16.msra.mxu0 %v14706_v51  ;;  %v14771_v51 = vld [vmem:[#allocation17 + $0x6a0] ss:$28 sps:$4 sm:$0xff]  }
 0x866   :  { %13960 = vmatpush3.bf16.msra.mxu1 %v14710_v7  ;;  %11918 = vmatprep.subr.bf16.mxu0 %v14713_v36  ;;  %v14775_v7 = vld [vmem:[#allocation17 + $0xbe8] ss:$28 sps:$4 sm:$0xff]   ;;  %v14778_v36 = vld [vmem:[#allocation17 + $0x6dc] ss:$28 sps:$4 sm:$0xff]  }
 0x867   :  { %13961 = vmatprep.subr.bf16.mxu1 %v14714_v35  ;;  %v14779_v35 = vld [vmem:[#allocation17 + $0xde0] ss:$28 sps:$4 sm:$0xff]  }
 0x869   :  { %11919 = vmatpush1.bf16.msra.mxu0 %v14711_v37  ;;  %v14776_v37 = vld [vmem:[#allocation17 + $0x6d8] ss:$28 sps:$4 sm:$0xff]  }
 0x86a   :  { %13962 = vmatpush3.bf16.msra.mxu1 %v14715_v41  ;;  %11920 = vmatprep.subr.bf16.mxu0 %v14718_v53  ;;  %v14780_v41 = vld [vmem:[#allocation17 + $0xc20] ss:$28 sps:$4 sm:$0xff]   ;;  %v14783_v53 = vld [vmem:[#allocation17 + $0x714] ss:$28 sps:$4 sm:$0xff]  }
 0x86b   :  { %13963 = vmatprep.subr.bf16.mxu1 %v14719_v38  ;;  %v14781_v38 = vld [vmem:[#allocation17 + $0x710] ss:$28 sps:$4 sm:$0xff]  }
 0x86d   :  { %11921 = vmatpush1.bf16.msra.mxu0 %v14716_v3  ;;  %v14786_v3 = vld [vmem:[#allocation17 + $0x74c] ss:$28 sps:$4 sm:$0xff]  }
 0x86e   :  { %13964 = vmatpush3.bf16.msra.mxu1 %v14720_v27  ;;  %11922 = vmatprep.subr.bf16.mxu0 %v14723_v23  ;;  %v14784_v27 = vld [vmem:[#allocation17 + $0x748] ss:$28 sps:$4 sm:$0xff]  }
 0x86f   :  { %13965 = vmatprep.subr.bf16.mxu1 %v14724_v24  ;;  %v14789_v23 = vld [vmem:[#allocation17 + $0x784] ss:$28 sps:$4 sm:$0xff]  }
 0x870   :  { %v14787_v24 = vld [vmem:[#allocation17 + $0x780] ss:$28 sps:$4 sm:$0xff]  }
 0x871   :  { %11923 = vmatpush1.bf16.msra.mxu0 %v14721_v28  ;;  %v14792_v28 = vld [vmem:[#allocation17 + $0x7bc] ss:$28 sps:$4 sm:$0xff]  }
 0x872   :  { %13966 = vmatpush3.bf16.msra.mxu1 %v14725_v13  ;;  %11924 = vmatprep.subr.bf16.mxu0 %v14728_v20  ;;  %v14790_v13 = vld [vmem:[#allocation17 + $0x7b8] ss:$28 sps:$4 sm:$0xff]  }
 0x873   :  { %13967 = vmatprep.subr.bf16.mxu1 %v14729_v6  ;;  %v14795_v20 = vld [vmem:[#allocation17 + $0x7f4] ss:$28 sps:$4 sm:$0xff]  }
 0x874   :  { %v14793_v6 = vld [vmem:[#allocation17 + $0x7f0] ss:$28 sps:$4 sm:$0xff]  }
 0x875   :  { %11925 = vmatpush1.bf16.msra.mxu0 %v14726_v46  ;;  %v14796_v46 = vld [vmem:[#allocation17 + $0x828] ss:$28 sps:$4 sm:$0xff]  }
 0x876   :  { %13968 = vmatpush3.bf16.msra.mxu1 %v14730_v44  ;;  %11926 = vmatprep.subr.bf16.mxu0 %v14733_v57  ;;  %v14801_v44 = vld [vmem:[#allocation17 + $0x864] ss:$28 sps:$4 sm:$0xff]   ;;  %v14804_v57 = vld [vmem:[#allocation17 + $0x89c] ss:$28 sps:$4 sm:$0xff]  }
 0x877   :  { %13969 = vmatprep.subr.bf16.mxu1 %v14734_v45  ;;  %v14802_v45 = vld [vmem:[#allocation17 + $0x898] ss:$28 sps:$4 sm:$0xff]  }
 0x879   :  { %11927 = vmatpush1.bf16.msra.mxu0 %v14731_v47  ;;  %v14807_v47 = vld [vmem:[#allocation17 + $0x8d4] ss:$28 sps:$4 sm:$0xff]  }
 0x87a   :  { %13970 = vmatpush3.bf16.msra.mxu1 %v14735_v52  ;;  %11928 = vmatprep.subr.bf16.mxu0 %v14738_v19  ;;  %v14805_v52 = vld [vmem:[#allocation17 + $0x8d0] ss:$28 sps:$4 sm:$0xff]  }
 0x87b   :  { %13971 = vmatprep.subr.bf16.mxu1 %v14739_v63  ;;  %v14810_v19 = vld [vmem:[#allocation17 + $0x90c] ss:$28 sps:$4 sm:$0xff]  }
 0x87c   :  { %v14808_v63 = vld [vmem:[#allocation17 + $0x908] ss:$28 sps:$4 sm:$0xff]  }
 0x87d   :  { %11929 = vmatpush1.bf16.msra.mxu0 %v14736_v54  ;;  %v14813_v54 = vld [vmem:[#allocation17 + $0x944] ss:$28 sps:$4 sm:$0xff]  }
 0x87e   :  { %13972 = vmatpush3.bf16.msra.mxu1 %v14740_v56  ;;  %11930 = vmatprep.subr.bf16.mxu0 %v14743_v58  ;;  %v14811_v56 = vld [vmem:[#allocation17 + $0x940] ss:$28 sps:$4 sm:$0xff]  }
 0x87f   :  { %13979 = vmatprep.subr.bf16.mxu1 %v14744_v16  ;;  %v14816_v58 = vld [vmem:[#allocation17 + $0x97c] ss:$28 sps:$4 sm:$0xff]  }
 0x880   :  { %v14814_v16 = vld [vmem:[#allocation17 + $0x978] ss:$28 sps:$4 sm:$0xff]  }
 0x881   :  { %12150 = vmatmul.mubr.bf16.vlgmr.msra.gmra.mrb[48].mxu1 %v15714_v40  ;;  %11931 = vmatpush1.bf16.msra.mxu0 %v14741_v34  ;;  %v14819_v34 = vld [vmem:[#allocation17 + $0x9b4] ss:$28 sps:$4 sm:$0xff]  }
 0x882   :  { %13980 = vmatpush3.bf16.msra.mxu1 %v14745_v60  ;;  %12189 = vmatprep.mubr.bf16.mxu1 %v15716_v14  ;;  %v14817_v60 = vld [vmem:[#allocation17 + $0x9b0] ss:$28 sps:$4 sm:$0xff]  }
 0x883   :  { %11932 = vmatprep.subr.bf16.mxu0 %v14748_v62  ;;  %13981 = vmatprep.subr.bf16.mxu1 %v14749_v9  ;;  %v14822_v62 = vld [vmem:[#allocation17 + $0x9ec] ss:$28 sps:$4 sm:$0xff]  }
 0x884   :  { %v14820_v9 = vld [vmem:[#allocation17 + $0x9e8] ss:$28 sps:$4 sm:$0xff]  }
 0x885   :  { %11933 = vmatpush1.bf16.msra.mxu0 %v14746_v4  ;;  %v14825_v4 = vld [vmem:[#allocation17 + $0xa24] ss:$28 sps:$4 sm:$0xff]  }
 0x886   :  { %13982 = vmatpush3.bf16.msra.mxu1 %v14750_v0  ;;  %11934 = vmatprep.subr.bf16.mxu0 %v14753_v1  ;;  %v14823_v0 = vld [vmem:[#allocation17 + $0xa20] ss:$28 sps:$4 sm:$0xff]  }
 0x887   :  { %13983 = vmatprep.subr.bf16.mxu1 %v14754_v11  ;;  %v14828_v1 = vld [vmem:[#allocation17 + $0xa5c] ss:$28 sps:$4 sm:$0xff]  }
 0x888   :  { %v14826_v11 = vld [vmem:[#allocation17 + $0xa58] ss:$28 sps:$4 sm:$0xff]  }
 0x889   :  { %11935 = vmatpush1.bf16.msra.mxu0 %v14751_v2  ;;  %v14831_v2 = vld [vmem:[#allocation17 + $0xa94] ss:$28 sps:$4 sm:$0xff]  }
 0x88a   :  { %13984 = vmatpush3.bf16.msra.mxu1 %v14755_v59  ;;  %11936 = vmatprep.subr.bf16.mxu0 %v14758_v5  ;;  %v14829_v59 = vld [vmem:[#allocation17 + $0xa90] ss:$28 sps:$4 sm:$0xff]  }
 0x88b   :  { %13985 = vmatprep.subr.bf16.mxu1 %v14759_v32  ;;  %v14834_v5 = vld [vmem:[#allocation17 + $0xacc] ss:$28 sps:$4 sm:$0xff]  }
 0x88c   :  { %v14832_v32 = vld [vmem:[#allocation17 + $0xac8] ss:$28 sps:$4 sm:$0xff]  }
 0x88d   :  { %11937 = vmatpush1.bf16.msra.mxu0 %v14756_v61  ;;  %v14837_v61 = vld [vmem:[#allocation17 + $0xb04] ss:$28 sps:$4 sm:$0xff]  }
 0x88e   :  { %13986 = vmatpush3.bf16.msra.mxu1 %v14760_v8  ;;  %11938 = vmatprep.subr.bf16.mxu0 %v14763_v17  ;;  %v14835_v8 = vld [vmem:[#allocation17 + $0xb00] ss:$28 sps:$4 sm:$0xff]  }
 0x88f   :  { %13987 = vmatprep.subr.bf16.mxu1 %v14764_v55  ;;  %v14840_v17 = vld [vmem:[#allocation17 + $0xb3c] ss:$28 sps:$4 sm:$0xff]  }
 0x890   :  { %v14838_v55 = vld [vmem:[#allocation17 + $0xb38] ss:$28 sps:$4 sm:$0xff]  }
 0x891   :  { %11939 = vmatpush1.bf16.msra.mxu0 %v14761_v26  ;;  %v14843_v26 = vld [vmem:[#allocation17 + $0xb74] ss:$28 sps:$4 sm:$0xff]  }
 0x892   :  { %13988 = vmatpush3.bf16.msra.mxu1 %v14765_v29  ;;  %11940 = vmatprep.subr.bf16.mxu0 %v14768_v50  ;;  %v14841_v29 = vld [vmem:[#allocation17 + $0xb70] ss:$28 sps:$4 sm:$0xff]   ;;  %v15744_v50 = vld [vmem:[#allocation19] sm:$0xff] }
 0x893   :  { %13989 = vmatprep.subr.bf16.mxu1 %v14769_v43  ;;  %v9217_v43 = vrot.slane %v15744_v50, %v15517_v22 }
 0x895   :  { %11941 = vmatpush1.bf16.msra.mxu0 %v14766_v30  ;;  %v9213_v30 = vrot.slane %v15744_v50, %v15491_v15 }
 0x896   :  { %13990 = vmatpush3.bf16.msra.mxu1 %v14770_v21  ;;  %11942 = vmatprep.subr.bf16.mxu0 %v14773_v39  ;;  %v14844_v21 = vld [vmem:[#allocation17 + $0xba8] ss:$28 sps:$4 sm:$0xff]   ;;  %v9221_v39 = vrot.slane %v15744_v50, %v15514_v18 }
 0x897   :  { %13991 = vmatprep.subr.bf16.mxu1 %v14774_v33  ;;  %v14849_v33 = vld [vmem:[#allocation17 + $0xbe4] ss:$28 sps:$4 sm:$0xff]  }
 0x899   :  { %11943 = vmatpush1.bf16.msra.mxu0 %v14771_v51 }
 0x89a   :  { %13992 = vmatpush3.bf16.msra.mxu1 %v14775_v7  ;;  %11944 = vmatprep.subr.bf16.mxu0 %v14778_v36 }
 0x89b   :  { %13993 = vmatprep.subr.bf16.mxu1 %v14779_v35 }
 0x89d   :  { %11945 = vmatpush1.bf16.msra.mxu0 %v14776_v37 }
 0x89e   :  { %13994 = vmatpush3.bf16.msra.mxu1 %v14780_v41  ;;  %11955 = vmatprep.subr.bf16.mxu0 %v14783_v53 }
 0x8a0   :  { %11947 = vmatmul.mubr.bf16.vlgmr.msra.gmra.mrb[36].mxu0 %v15700_v31  ;;  %v14798_v31 = vld [vmem:[#allocation17 + $0x82c] ss:$28 sps:$4 sm:$0xff]  }
 0x8a1   :  { %12190 = vmatmul.mubr.bf16.vlgmr.msra.gmra.mrb[52].mxu1 %v15725_v42  ;;  %11956 = vmatpush1.bf16.msra.mxu0 %v14781_v38  ;;  %v14847_v38 = vld [vmem:[#allocation17 + $0xbe0] ss:$28 sps:$4 sm:$0xff]  }
 0x8a2   :  { %11987 = vmatprep.mubr.bf16.mxu0 %v15702_v25  ;;  %11957 = vmatprep.subr.bf16.mxu0 %v14786_v3  ;;  %v14799_v25 = vld [vmem:[#allocation17 + $0x860] ss:$28 sps:$4 sm:$0xff]  }
 0x8a5   :  { %11958 = vmatpush1.bf16.msra.mxu0 %v14784_v27 }
 0x8a6   :  { %11959 = vmatprep.subr.bf16.mxu0 %v14789_v23  ;;  %v14852_v23 = vld [vmem:[#allocation17 + $0xc1c] ss:$28 sps:$4 sm:$0xff]  }
 0x8a9   :  { %11960 = vmatpush1.bf16.msra.mxu0 %v14787_v24 }
 0x8aa   :  { %11961 = vmatprep.subr.bf16.mxu0 %v14792_v28 }
 0x8ad   :  { %11962 = vmatpush1.bf16.msra.mxu0 %v14790_v13 }
 0x8ae   :  { %11963 = vmatprep.subr.bf16.mxu0 %v14795_v20  ;;  %v14850_v20 = vld [vmem:[#allocation17 + $0xc18] ss:$28 sps:$4 sm:$0xff]  }
 0x8b1   :  { %11964 = vmatpush1.bf16.msra.mxu0 %v14793_v6  ;;  %v14855_v6 = vld [vmem:[#allocation17 + $0xc54] ss:$28 sps:$4 sm:$0xff]  }
 0x8b2   :  { %11965 = vmatprep.subr.bf16.mxu0 %v14798_v31  ;;  %v14853_v31 = vld [vmem:[#allocation17 + $0xc50] ss:$28 sps:$4 sm:$0xff]  }
 0x8b5   :  { %11966 = vmatpush1.bf16.msra.mxu0 %v14796_v46  ;;  %v14858_v46 = vld [vmem:[#allocation17 + $0xc8c] ss:$28 sps:$4 sm:$0xff]  }
 0x8b6   :  { %11967 = vmatprep.subr.bf16.mxu0 %v14801_v44  ;;  %v14856_v44 = vld [vmem:[#allocation17 + $0xc88] ss:$28 sps:$4 sm:$0xff]  }
 0x8b9   :  { %11968 = vmatpush1.bf16.msra.mxu0 %v14799_v25 }
 0x8ba   :  { %11969 = vmatprep.subr.bf16.mxu0 %v14804_v57  ;;  %v14861_v57 = vld [vmem:[#allocation17 + $0xcc4] ss:$28 sps:$4 sm:$0xff]  }
 0x8bd   :  { %11970 = vmatpush1.bf16.msra.mxu0 %v14802_v45 }
 0x8be   :  { %11971 = vmatprep.subr.bf16.mxu0 %v14807_v47 }
 0x8c1   :  { %11972 = vmatpush1.bf16.msra.mxu0 %v14805_v52 }
 0x8c2   :  { %11973 = vmatprep.subr.bf16.mxu0 %v14810_v19 }
 0x8c5   :  { %11974 = vmatpush1.bf16.msra.mxu0 %v14808_v63 }
 0x8c6   :  { %11975 = vmatprep.subr.bf16.mxu0 %v14813_v54 }
 0x8c9   :  { %11976 = vmatpush1.bf16.msra.mxu0 %v14811_v56  ;;  %v14859_v56 = vld [vmem:[#allocation17 + $0xcc0] ss:$28 sps:$4 sm:$0xff]  }
 0x8ca   :  { %11977 = vmatprep.subr.bf16.mxu0 %v14816_v58 }
 0x8cd   :  { %11978 = vmatpush1.bf16.msra.mxu0 %v14814_v16  ;;  %v14864_v16 = vld [vmem:[#allocation17 + $0xcfc] ss:$28 sps:$4 sm:$0xff]  }
 0x8ce   :  { %11979 = vmatprep.subr.bf16.mxu0 %v14819_v34  ;;  %v14862_v34 = vld [vmem:[#allocation17 + $0xcf8] ss:$28 sps:$4 sm:$0xff]  }
 0x8d1   :  { %11980 = vmatpush1.bf16.msra.mxu0 %v14817_v60  ;;  %v14867_v60 = vld [vmem:[#allocation17 + $0xd34] ss:$28 sps:$4 sm:$0xff]  }
 0x8d2   :  { %11981 = vmatprep.subr.bf16.mxu0 %v14822_v62  ;;  %v14865_v62 = vld [vmem:[#allocation17 + $0xd30] ss:$28 sps:$4 sm:$0xff]  }
 0x8d5   :  { %11982 = vmatpush1.bf16.msra.mxu0 %v14820_v9  ;;  %v14870_v9 = vld [vmem:[#allocation17 + $0xd6c] ss:$28 sps:$4 sm:$0xff]  }
 0x8d6   :  { %11983 = vmatprep.subr.bf16.mxu0 %v14825_v4 }
 0x8d9   :  { %11984 = vmatpush1.bf16.msra.mxu0 %v14823_v0 }
 0x8da   :  { %11985 = vmatprep.subr.bf16.mxu0 %v14828_v1 }
 0x8dd   :  { %11986 = vmatpush1.bf16.msra.mxu0 %v14826_v11  ;;  %v14868_v11 = vld [vmem:[#allocation17 + $0xd68] ss:$28 sps:$4 sm:$0xff]  }
 0x8de   :  { %11996 = vmatprep.subr.bf16.mxu0 %v14831_v2 }
 0x8e0   :  { %11988 = vmatmul.mubr.bf16.vlgmr.msra.gmra.mrb[36].mxu0 %v15714_v40  ;;  %v14846_v40 = vld [vmem:[#allocation17 + $0xbac] ss:$28 sps:$4 sm:$0xff]  }
 0x8e1   :  { %11997 = vmatpush1.bf16.msra.mxu0 %v14829_v59  ;;  %12028 = vmatprep.mubr.bf16.mxu0 %v15716_v14  ;;  %v9209_v14 = vrot.slane %v15744_v50, %v15488_v12  ;;  %v14873_v59 = vld [vmem:[#allocation17 + $0xda4] ss:$28 sps:$4 sm:$0xff]  }
 0x8e2   :  { %11998 = vmatprep.subr.bf16.mxu0 %v14834_v5 }
 0x8e5   :  { %11999 = vmatpush1.bf16.msra.mxu0 %v14832_v32 }
 0x8e6   :  { %12000 = vmatprep.subr.bf16.mxu0 %v14837_v61  ;;  %v14871_v61 = vld [vmem:[#allocation17 + $0xda0] ss:$28 sps:$4 sm:$0xff]  }
 0x8e9   :  { %12001 = vmatpush1.bf16.msra.mxu0 %v14835_v8 }
 0x8ea   :  { %12002 = vmatprep.subr.bf16.mxu0 %v14840_v17 }
 0x8ed   :  { %12003 = vmatpush1.bf16.msra.mxu0 %v14838_v55  ;;  %v14876_v55 = vld [vmem:[#allocation17 + $0xddc] ss:$28 sps:$4 sm:$0xff]  }
 0x8ee   :  { %12004 = vmatprep.subr.bf16.mxu0 %v14843_v26 }
 0x8f1   :  { %12005 = vmatpush1.bf16.msra.mxu0 %v14841_v29  ;;  %v14874_v29 = vld [vmem:[#allocation17 + $0xdd8] ss:$28 sps:$4 sm:$0xff]  }
 0x8f2   :  { %12006 = vmatprep.subr.bf16.mxu0 %v14846_v40  ;;  %v9233_v40 = vrot.slane %v15744_v50, %v15571_v10 }
 0x8f3   :  { %v11702_v51 = vpop.f32.mrb[32].mxu0 }
 0x8f4   :  { %v14019_v7 = vadd.f32 %v11702_v51, %v9209_v14  ;;  %v11866_v36 = vpop.f32.mrb[36].mxu1  ;;  %v11704_v35 = vpop.f32.mrb[33].mxu0 }
 0x8f5   :  { %v14021_v37 = vadd.f32 %v11866_v36, %v9217_v43  ;;  %v14020_v41 = vadd.f32 %v11704_v35, %v9213_v30  ;;  %v11868_v12 = vpop.f32.mrb[37].mxu1  ;;  %v11706_v53 = vpop.f32.mrb[34].mxu0  ;;  %12007 = vmatpush1.bf16.msra.mxu0 %v14844_v21 }
 0x8f6   :  { %v13818_v22 = vmul.f32 -1.442695, %v14019_v7  ;;  %v14022_v3 = vadd.f32 %v11868_v12, %v9221_v39  ;;  %v11870_v27 = vpop.f32.mrb[38].mxu1  ;;  %v11707_v15 = vpop.f32.mrb[35].mxu0  ;;  %12008 = vmatprep.subr.bf16.mxu0 %v14849_v33 }
 0x8f7   :  { %v13820_v24 = vmul.f32 -1.442695, %v14021_v37  ;;  %v13819_v18 = vmul.f32 -1.442695, %v14020_v41  ;;  %v11871_v28 = vpop.f32.mrb[39].mxu1 }
 0x8f8   :  { %14881 = vpow2.f32 %v13818_v22  ;;  %v13821_v13 = vmul.f32 -1.442695, %v14022_v3 }
 0x8f9   :  { %14883 = vpow2.f32 %v13820_v24  ;;  %12009 = vmatpush1.bf16.msra.mxu0 %v14847_v38 }
 0x8fa   :  { %14885 = vpow2.f32 %v13819_v18  ;;  %12010 = vmatprep.subr.bf16.mxu0 %v14852_v23 }
 0x8fb   :  { %14887 = vpow2.f32 %v13821_v13 }
 0x8fd   :  { %12011 = vmatpush1.bf16.msra.mxu0 %v14850_v20 }
 0x8fe   :  { %12012 = vmatprep.subr.bf16.mxu0 %v14855_v6 }
 0x901   :  { %12013 = vmatpush1.bf16.msra.mxu0 %v14853_v31 }
 0x902   :  { %v14882_v25 = vpop.eup %14881  ;;  %12014 = vmatprep.subr.bf16.mxu0 %v14858_v46 }
 0x903   :  { %v14884_v45 = vpop.eup %14883  ;;  %v12218_v47 = vadd.f32 1.0, %v14882_v25 }
 0x904   :  { %v14886_v52 = vpop.eup %14885  ;;  %v12220_v19 = vadd.f32 1.0, %v14884_v45 }
 0x905   :  { %v14888_v63 = vpop.eup %14887  ;;  %14889 = vrcp.f32 %v12218_v47  ;;  %v12219_v54 = vadd.f32 1.0, %v14886_v52  ;;  %12015 = vmatpush1.bf16.msra.mxu0 %v14856_v44 }
 0x906   :  { %14891 = vrcp.f32 %v12220_v19  ;;  %v12221_v58 = vadd.f32 1.0, %v14888_v63  ;;  %12016 = vmatprep.subr.bf16.mxu0 %v14861_v57 }
 0x907   :  { %14893 = vrcp.f32 %v12219_v54 }
 0x908   :  { %14895 = vrcp.f32 %v12221_v58 }
 0x909   :  { %12017 = vmatpush1.bf16.msra.mxu0 %v14859_v56 }
 0x90a   :  { %12018 = vmatprep.subr.bf16.mxu0 %v14864_v16 }
 0x90d   :  { %12019 = vmatpush1.bf16.msra.mxu0 %v14862_v34 }
 0x90e   :  { %12020 = vmatprep.subr.bf16.mxu0 %v14867_v60 }
 0x90f   :  { %v14890_v4 = vpop.eup %14889 }
 0x910   :  { %v14892_v0 = vpop.eup %14891  ;;  %12239 = vst [vmem:[#allocation21] sm:$0xff] %v14890_v4 }
 0x911   :  { %v14894_v1 = vpop.eup %14893  ;;  %12241 = vst [vmem:[#allocation21 + $0x10] sm:$0xff] %v14892_v0  ;;  %12021 = vmatpush1.bf16.msra.mxu0 %v14865_v62 }
 0x912   :  { %v14896_v2 = vpop.eup %14895  ;;  %12240 = vst [vmem:[#allocation21 + $0x8] sm:$0xff] %v14894_v1  ;;  %12022 = vmatprep.subr.bf16.mxu0 %v14870_v9 }
 0x913   :  { %12242 = vst [vmem:[#allocation21 + $0x18] sm:$0xff] %v14896_v2 }
 0x914   :  { %v13929_v5 = vpop.f32.mrb[40].mxu1 }
 0x915   :  { %v13930_v32 = vpop.f32.mrb[41].mxu1  ;;  %12023 = vmatpush1.bf16.msra.mxu0 %v14868_v11 }
 0x916   :  { %v13931_v8 = vadd.f32 %v13930_v32, %v13929_v5  ;;  %v13932_v17 = vpop.f32.mrb[42].mxu1  ;;  %12024 = vmatprep.subr.bf16.mxu0 %v14873_v59 }
 0x917   :  { %v13933_v26 = vpop.f32.mrb[43].mxu1 }
 0x918   :  { %v12072_v30 = vadd.f32 %v13931_v8, %v9233_v40 }
 0x919   :  { %12025 = vmatpush1.bf16.msra.mxu0 %v14871_v61 }
 0x91a   :  { %12026 = vmatprep.subr.bf16.mxu0 %v14876_v55 }
 0x91d   :  { %12027 = vmatpush1.bf16.msra.mxu0 %v14874_v29 }
 0x920   :  { %12029 = vmatmul.mubr.bf16.vlgmr.msra.gmra.mrb[36].mxu0 %v15725_v42 }
 0x934   :  { %v13951_v14 = vpop.f32.mrb[44].mxu1 }
 0x935   :  { %v13952_v43 = vpop.f32.mrb[45].mxu1 }
 0x936   :  { %v13953_v21 = vadd.f32 %v13952_v43, %v13951_v14  ;;  %v13954_v39 = vpop.f32.mrb[46].mxu1 }
 0x937   :  { %v13955_v33 = vpop.f32.mrb[47].mxu1 }
 0x938   :  { %v12112_v51 = vadd.f32 %v13953_v21, %v12072_v30 }
 0x954   :  { %v13973_v7 = vpop.f32.mrb[48].mxu1 }
 0x955   :  { %v13974_v36 = vpop.f32.mrb[49].mxu1 }
 0x956   :  { %v13975_v35 = vadd.f32 %v13974_v36, %v13973_v7  ;;  %v13976_v37 = vpop.f32.mrb[50].mxu1 }
 0x957   :  { %v13977_v41 = vpop.f32.mrb[51].mxu1 }
 0x958   :  { %v12152_v12 = vadd.f32 %v13975_v35, %v12112_v51 }
 0x974   :  { %v13995_v53 = vpop.f32.mrb[52].mxu1 }
 0x975   :  { %v13996_v38 = vpop.f32.mrb[53].mxu1 }
 0x976   :  { %v13997_v22 = vadd.f32 %v13996_v38, %v13995_v53  ;;  %v13998_v42 = vpop.f32.mrb[54].mxu1 }
 0x977   :  { %v13999_v3 = vpop.f32.mrb[55].mxu1 }
 0x978   :  { %v12192_v27 = vadd.f32 %v13997_v22, %v12152_v12 }
 0x97a   :  { %v13824_v10 = vmul.f32 -1.442695, %v12192_v27 }
 0x97c   :  { %14897 = vpow2.f32 %v13824_v10 }
 0x986   :  { %v14898_v15 = vpop.eup %14897 }
 0x987   :  { %v12224_v23 = vadd.f32 1.0, %v14898_v15 }
 0x989   :  { %14899 = vrcp.f32 %v12224_v23 }
 0x993   :  { %v14900_v24 = vpop.eup %14899 }
 0x994   :  { %12245 = vst [vmem:[#allocation21 + $0x30] sm:$0xff] %v14900_v24 }
 0x995   :  { %15163 = shalt.err (!%p15160_p8)
}
 0x996   :  { %s15164_s30 = scalar_lea.hbm %s15796_s11, 128 }
 0x997   :  { %p15165_p9 = scmp.ne.s32.totalorder %s15796_s11, %s15164_s30  ;;  %p15168_p10 = scmp.lt.u32.totalorder %s15164_s30, %s15796_s11 }
 0x999   :  { %p15170_p11 = pnand %p15168_p10, %p15165_p9 }
 0x99b   :  { %15173 = shalt.err (!%p15170_p11)
}
 0x99c   :  { %12255 = dma.vmem_to_hbm [thread:$0]  %s12253_s14, 128, %s15796_s11, [#allocation4]   ;;  %v9225_v18 = vrot.slane %v15744_v50, %v15540_v48  ;;  %v9229_v28 = vrot.slane %v15744_v50, %v15543_v49 }
 0x99d   :  { %s15231_s11 = smov [#allocation21]  }
 0x99e   :  { %s12262_s24 = sshll.u32 %s15231_s11, 4  ;;  %s12263_s24 = int_to_ptr.vmem [resolvable:$true] %s12262_s24 }
 0x99f   :  { %s15174_s3 = scalar_lea.vmem %s12263_s24, 896  ;;  %p15179_p13 = scmp.lt.s32.totalorder %s12263_s24, %s12263_s24 }
 0x9a0   :  { %p15175_p12 = scmp.ne.s32.totalorder %s12263_s24, %s15174_s3  ;;  %p15180_p0 = scmp.lt.s32.totalorder %s15174_s3, %s15174_s3 }
 0x9a2   :  { %p15181_p1 = por %p15180_p0, %p15179_p13 }
 0x9a4   :  { %p15182_p2 = pnand %p15181_p1, %p15175_p12 }
 0x9f3   :  { %v12030_v13 = vpop.f32.mrb[36].mxu0 }
 0x9f4   :  { %v14023_v20 = vadd.f32 %v12030_v13, %v9225_v18  ;;  %v12032_v6 = vpop.f32.mrb[37].mxu0 }
 0x9f5   :  { %v14024_v31 = vadd.f32 %v12032_v6, %v9229_v28  ;;  %v12034_v46 = vpop.f32.mrb[38].mxu0 }
 0x9f6   :  { %v13822_v44 = vmul.f32 -1.442695, %v14023_v20  ;;  %v12035_v25 = vpop.f32.mrb[39].mxu0 }
 0x9f7   :  { %v13823_v57 = vmul.f32 -1.442695, %v14024_v31 }
 0x9f8   :  { %14901 = vpow2.f32 %v13822_v44 }
 0x9f9   :  { %14903 = vpow2.f32 %v13823_v57 }
 0xa02   :  { %v14902_v45 = vpop.eup %14901 }
 0xa03   :  { %v14904_v47 = vpop.eup %14903  ;;  %v12222_v52 = vadd.f32 1.0, %v14902_v45 }
 0xa04   :  { %v12223_v19 = vadd.f32 1.0, %v14904_v47 }
 0xa05   :  { %14905 = vrcp.f32 %v12222_v52 }
 0xa06   :  { %14907 = vrcp.f32 %v12223_v19 }
 0xa0f   :  { %v14906_v48 = vpop.eup %14905 }
 0xa10   :  { %v14908_v49 = vpop.eup %14907  ;;  %12243 = vst [vmem:[#allocation21 + $0x20] sm:$0xff] %v14906_v48 }
 0xa11   :  { %12244 = vst [vmem:[#allocation21 + $0x28] sm:$0xff] %v14908_v49 }
 0xa12   :  { %15185 = shalt.err (!%p15182_p2)
}
 0xa13   :  { %s15186_s19 = scalar_lea.hbm %s15797_s12, 896 }
 0xa14   :  { %p15187_p3 = scmp.ne.s32.totalorder %s15797_s12, %s15186_s19  ;;  %p15190_p4 = scmp.lt.u32.totalorder %s15186_s19, %s15797_s12 }
 0xa16   :  { %p15192_p5 = pnand %p15190_p4, %p15187_p3 }
 0xa18   :  { %15195 = shalt.err (!%p15192_p5)
}
 0xa19   :  { %12265 = dma.vmem_to_hbm [thread:$0]  %s12263_s24, 896, %s15797_s12, [#allocation22]  }
 0xa1a   :  { %15208 = dma.done.wait [#allocation4], 128  }
 0xa1b   :  { %15209 = vsyncadd [#allocation4], 4294967168 }
 0xa1c   :  { %15210 = dma.done.wait [#allocation22], 896  }
 0xa1d   :  { %15211 = vsyncadd [#allocation22], 4294966400 }
 0xa1e   :  { %12272 = vsyncpa [#allocation3], 1 }
 0xa1f   :  { %12273 = vsyncpa [#allocation6], 1 }
 0xa20   :  { %12274 = vsyncpa [#allocation9], 1 }
 0xa21   :  { %12275 = vsyncpa [#allocation12], 1 }
 0xa22   :  { %12276 = vsyncpa [#allocation15], 1 }
 0xa23   :  { %12277 = vsyncpa [#allocation18], 1 }
 0xa24   :  { %12278 = vsyncpa [#allocation4], 1 }
 0xa25   :  { %12279 = vsyncpa [#allocation22], 1 }

</bundles_post_ra>
